<compile_context>
chip_gen: v5e
topology: v5e:2x2
jax: 0.10.0
libtpu: 0.0.40
codegen_flags: <defaults>
</compile_context>

<pallas_src>
from functools import partial

import jax
import jax.numpy as jnp
from jax.experimental import pallas as pl
from jax.experimental.pallas import tpu as pltpu


NUM_HEADS = 8
COEF = 4


# ------------------------------ fused kernel -------------------------------

def _mult_ea_fused_kernel(x_ref, wt_ref, bt_ref, w0_ref, b0_ref, w1_ref, b1_ref,
                          wp_ref, bp_ref, o_ref, *,
                          bblk, n_tok, num_groups, heads_per_group, k_dim,
                          compute_dtype):
    cdt = compute_dtype
    f32 = jnp.float32
    bn = bblk * n_tok                       # fused matmul M dimension

    x = x_ref[...].reshape(bn, x_ref.shape[-1]).astype(cdt)      # (bn, C)

    # trans_dims: (bn, C) @ (C, 4C) -> (bn, 4C); bf16 operands, f32 accumulate.
    y = jnp.dot(x, wt_ref[...], preferred_element_type=f32) + bt_ref[...]
    y = y.astype(cdt)                                            # (bn, 4C)

    gd = w0_ref.shape[0]                    # heads_per_group * D
    gk = w0_ref.shape[1]                    # heads_per_group * k
    w0 = w0_ref[...]
    b0 = b0_ref[...]
    w1 = w1_ref[...]
    b1 = b1_ref[...]

    z_parts = []
    # Static unroll over head groups (num_groups = H / G is small).  linear_0 /
    # linear_1 weights are shared across heads, so one (gd, gk) block-diagonal
    # serves every group; only (bn, gk)-sized temporaries are live per group.
    for g in range(num_groups):
        yg = y[:, g * gd:(g + 1) * gd]                                   # (bn, gd)

        # linear_0 for this head group.
        a = jnp.dot(yg, w0, preferred_element_type=f32) + b0             # (bn, gk) f32
        a = a.reshape(bblk, n_tok, gk)

        # softmax over the token axis (torch dim=-2), per batch, in f32.
        a = jnp.exp(a - jnp.max(a, axis=1, keepdims=True))
        p = a * pl.reciprocal(jnp.sum(a, axis=1, keepdims=True), approx=True)

        # per-head renorm: attn / (1e-9 + attn.sum over k).  Lane reduction +
        # broadcast multiply (VPU/XLU) — no MXU membership matmuls.
        head_parts = []
        for h in range(heads_per_group):
            ph = p[..., h * k_dim:(h + 1) * k_dim]                       # (bblk, n, k)
            inv = pl.reciprocal(1e-9 + jnp.sum(ph, axis=-1, keepdims=True),
                                approx=True)
            head_parts.append(ph * inv)
        # attn_drop: identity (eval mode)
        attn = jnp.concatenate(head_parts, axis=-1).reshape(bn, gk).astype(cdt)

        # linear_1 for this head group (+ implicit head merge via column order).
        zg = jnp.dot(attn, w1, preferred_element_type=f32) + b1          # (bn, gd) f32
        z_parts.append(zg.astype(cdt))

    z = jnp.concatenate(z_parts, axis=-1)                                # (bn, 4C)

    # proj: (bn, 4C) @ (4C, C) -> (bn, C); proj_drop identity (eval mode).
    out = jnp.dot(z, wp_ref[...], preferred_element_type=f32) + bp_ref[...]
    o_ref[...] = out.reshape(bblk, n_tok, -1).astype(o_ref.dtype)


# ------------------------------ wrapper glue --------------------------------

def init_params(key, dim, num_heads=NUM_HEADS, coef=COEF):
    assert dim % num_heads == 0
    H = num_heads * coef
    D = dim * coef // H
    k = 256 // coef
    keys = jax.random.split(key, 8)

    def lin(kw, kb, fan_in, fan_out):
        bound = 1.0 / float(fan_in) ** 0.5
        w = jax.random.uniform(kw, (fan_in, fan_out), jnp.float32, -bound, bound)
        b = jax.random.uniform(kb, (1, fan_out), jnp.float32, -bound, bound)
        return w, b

    wt, bt = lin(keys[0], keys[1], dim, dim * coef)      # trans_dims
    w0, b0 = lin(keys[2], keys[3], D, k)                 # linear_0
    w1, b1 = lin(keys[4], keys[5], k, D)                 # linear_1
    wp, bp = lin(keys[6], keys[7], dim * coef, dim)      # proj
    return dict(wt=wt, bt=bt, w0=w0, b0=b0, w1=w1, b1=b1, wp=wp, bp=bp)


def _pick_head_group(num_heads_total, k_dim, head_group=None):
    # G*k should match the MXU output width: 256 on v6e/v7x (G=4 for k=64);
    # pass head_group=2 on v5e (128-wide MXU).
    if head_group is None:
        head_group = max(1, 256 // k_dim)
    head_group = max(1, min(head_group, num_heads_total))
    while num_heads_total % head_group:
        head_group -= 1
    return head_group


def _pick_batch_block(batch, n_tokens, target_rows=512):
    # Largest batch divisor keeping the fused matmul M dim (bblk*N) <= target,
    # but guarantee >= 2 "parallel" grid steps whenever the batch allows it
    # (v7x has 2 TensorCores; a 1-step grid would idle one of them).
    bblk = 1
    for cand in range(1, batch + 1):
        if batch % cand == 0 and cand * n_tokens <= target_rows:
            bblk = cand
    if batch // bblk < 2 and batch > 1:
        for cand in range(bblk - 1, 0, -1):
            if batch % cand == 0 and batch // cand >= 2:
                bblk = cand
                break
    return bblk


def _vmem_limit_bytes(estimate_bytes):
    # Explicit per-step VMEM budget (weights x buffer count + double-buffered
    # x/out blocks + live intermediates), clamped to chip capacity when
    # queryable.  Fallback capacity = v7x physical (smallest of v5e/v6e/v7x).
    try:
        cap = pltpu.get_tpu_info().vmem_capacity_bytes
    except Exception:
        cap = 64 * 1024 * 1024
    budget = max(32 * 1024 * 1024, 2 * int(estimate_bytes))
    return int(min(cap * 7 // 8, budget))


def mult_ea_forward(x, p, num_heads=NUM_HEADS, coef=COEF,
                    compute_dtype=jnp.bfloat16, head_group=None,
                    batch_block=None):
    """Fused Mult_EA forward (inference semantics).

    MXU operands default to bfloat16 with float32 accumulation (softmax /
    renorm stay in float32); pass compute_dtype=jnp.float32 for exact math.
    """
    B, N, C = x.shape
    H = num_heads * coef
    D = C * coef // H
    k = 256 // coef
    C4 = C * coef
    assert p["w0"].shape == (D, k)
    cdt = jnp.dtype(compute_dtype)

    G = _pick_head_group(H, k, head_group)
    NG = H // G
    gd, gk = G * D, G * k

    bblk = batch_block if batch_block is not None else _pick_batch_block(B, N)
    assert B % bblk == 0

    # Per-group weights: linear_0 / linear_1 are shared across heads, so one
    # small (G*D, G*k) block-diagonal serves every group.  MXU inputs in cdt,
    # biases in f32 (added to the f32 accumulators).
    eye_g = jnp.eye(G, dtype=jnp.float32)
    w0g = jnp.kron(eye_g, p["w0"]).astype(cdt)            # (G*D, G*k)
    w1g = jnp.kron(eye_g, p["w1"]).astype(cdt)            # (G*k, G*D)
    b0g = jnp.tile(p["b0"], (1, G)).astype(jnp.float32)   # (1, G*k)
    b1g = jnp.tile(p["b1"], (1, G)).astype(jnp.float32)   # (1, G*D)
    wt = p["wt"].astype(cdt)                              # (C, 4C)
    wp = p["wp"].astype(cdt)                              # (4C, C)
    bt = p["bt"].astype(jnp.float32)                      # (1, 4C)
    bp = p["bp"].astype(jnp.float32)                      # (1, C)

    kernel = partial(_mult_ea_fused_kernel, bblk=bblk, n_tok=N,
                     num_groups=NG, heads_per_group=G, k_dim=k,
                     compute_dtype=cdt)

    rows = B * N
    wdt = cdt.itemsize
    flops = 2 * rows * (C * C4 + 2 * C4 * gk + C4 * C)
    transcendentals = rows * H * k + B * H * k + rows * H
    weight_bytes = ((wt.size + wp.size + w0g.size + w1g.size) * wdt
                    + 4 * (bt.size + b0g.size + b1g.size + bp.size))
    bytes_accessed = 2 * rows * C * x.dtype.itemsize + weight_bytes
    cost = pl.CostEstimate(flops=int(flops),
                           transcendentals=int(transcendentals),
                           bytes_accessed=int(bytes_accessed))

    io_block_bytes = 2 * 2 * bblk * N * C * x.dtype.itemsize       # x + out, 2-buffered
    temp_bytes = bblk * N * (2 * C4 * wdt + 4 * (3 * gk + C4))     # y, z, live f32 temps

    const = lambda b: (0, 0)

    def run(single_buffer_weights):
        if single_buffer_weights:
            wkw = {"pipeline_mode": pl.Buffered(1)}   # constant blocks: 1 buffer
            wbufs = 1
        else:
            wkw = {}
            wbufs = 2
        wspec = lambda shape: pl.BlockSpec(shape, const, **wkw)
        est = wbufs * weight_bytes + io_block_bytes + temp_bytes
        return pl.pallas_call(
            kernel,
            out_shape=jax.ShapeDtypeStruct((B, N, C), x.dtype),
            grid=(B // bblk,),
            in_specs=[
                pl.BlockSpec((bblk, N, C), lambda b: (b, 0, 0)),   # x
                wspec((C, C4)),     # trans_dims W
                wspec((1, C4)),     # trans_dims b
                wspec((gd, gk)),    # linear_0 W (per-group block-diag, shared)
                wspec((1, gk)),     # linear_0 b (tiled over G)
                wspec((gk, gd)),    # linear_1 W (per-group block-diag, shared)
                wspec((1, gd)),     # linear_1 b (tiled over G)
                wspec((C4, C)),     # proj W
                wspec((1, C)),      # proj b
            ],
            out_specs=pl.BlockSpec((bblk, N, C), lambda b: (b, 0, 0)),
            compiler_params=pltpu.CompilerParams(
                dimension_semantics=("parallel",),
                vmem_limit_bytes=_vmem_limit_bytes(est)),
            cost_estimate=cost,
        )(x, wt, bt, w0g, b0g, w1g, b1g, wp, bp)

    try:
        return run(True)
    except Exception:
        # pl.Buffered(1) not supported by this jax/Mosaic build — fall back to
        # default double-buffered constant blocks.
        return run(False)


# plain-JAX reference (for a silent correctness check)
def ref_forward(x, p, num_heads=NUM_HEADS, coef=COEF):
    B, N, C = x.shape
    H = num_heads * coef
    y = x @ p["wt"] + p["bt"]
    y = y.reshape(B, N, H, -1).transpose(0, 2, 1, 3)
    attn = y @ p["w0"] + p["b0"]
    attn = jax.nn.softmax(attn, axis=-2)
    attn = attn / (1e-9 + attn.sum(axis=-1, keepdims=True))
    z = attn @ p["w1"] + p["b1"]
    z = z.transpose(0, 2, 1, 3).reshape(B, N, -1)
    return z @ p["wp"] + p["bp"]


if __name__ == "__main__":
    B, N, C = 2, 16, 64          # dim=64, num_heads=8 -> H=32, D=8, k=64
    key = jax.random.PRNGKey(0)
    kx, kp = jax.random.split(key)
    x = jax.random.normal(kx, (B, N, C), jnp.float32)
    params = init_params(kp, C)

    expected = ref_forward(x, params)

    # exact-math path (f32 MXU operands) — tight check
    out_f32 = jax.block_until_ready(
        mult_ea_forward(x, params, compute_dtype=jnp.float32))
    assert out_f32.shape == (B, N, C)
    assert jnp.allclose(out_f32, expected, atol=3e-3, rtol=3e-3), \
        float(jnp.max(jnp.abs(out_f32 - expected)))

    # default path: bf16 MXU operands, f32 accumulation / softmax — looser check
    out = jax.block_until_ready(mult_ea_forward(x, params))
    assert out.shape == (B, N, C)
    diff = out.astype(jnp.float32) - expected
    rel = jnp.sqrt(jnp.sum(diff * diff)) / (jnp.sqrt(jnp.sum(expected * expected)) + 1e-12)
    assert float(rel) < 0.05, float(rel)

    print("KERNEL_OK")
</pallas_src>

<mosaic_0001>
module attributes {stable_mosaic.version = 11 : i64} {
  func.func @_mult_ea_fused_kernel(%arg0: i32, %arg1: memref<1x16x64xf32, #tpu.memory_space<vmem>>, %arg2: memref<64x256xf32, #tpu.memory_space<vmem>>, %arg3: memref<1x256xf32, #tpu.memory_space<vmem>>, %arg4: memref<32x256xf32, #tpu.memory_space<vmem>>, %arg5: memref<1x256xf32, #tpu.memory_space<vmem>>, %arg6: memref<256x32xf32, #tpu.memory_space<vmem>>, %arg7: memref<1x32xf32, #tpu.memory_space<vmem>>, %arg8: memref<256x64xf32, #tpu.memory_space<vmem>>, %arg9: memref<1x64xf32, #tpu.memory_space<vmem>>, %arg10: memref<1x16x64xf32, #tpu.memory_space<vmem>>) attributes {dimension_semantics = [#tpu.dimension_semantics<parallel>], iteration_bounds = array<i64: 2>, scalar_prefetch = 0 : i64, scratch_operands = 0 : i64, tpu.core_type = #tpu.core_type<tc>, window_params = [{transform_indices = @transform_0, window_bounds = array<i64: 1, 16, 64>}, {pipeline_mode = #tpu.pipeline_mode<synchronous>, transform_indices = @transform_1, window_bounds = array<i64: 64, 256>}, {pipeline_mode = #tpu.pipeline_mode<synchronous>, transform_indices = @transform_2, window_bounds = array<i64: 1, 256>}, {pipeline_mode = #tpu.pipeline_mode<synchronous>, transform_indices = @transform_3, window_bounds = array<i64: 32, 256>}, {pipeline_mode = #tpu.pipeline_mode<synchronous>, transform_indices = @transform_4, window_bounds = array<i64: 1, 256>}, {pipeline_mode = #tpu.pipeline_mode<synchronous>, transform_indices = @transform_5, window_bounds = array<i64: 256, 32>}, {pipeline_mode = #tpu.pipeline_mode<synchronous>, transform_indices = @transform_6, window_bounds = array<i64: 1, 32>}, {pipeline_mode = #tpu.pipeline_mode<synchronous>, transform_indices = @transform_7, window_bounds = array<i64: 256, 64>}, {pipeline_mode = #tpu.pipeline_mode<synchronous>, transform_indices = @transform_8, window_bounds = array<i64: 1, 64>}, {transform_indices = @transform_9, window_bounds = array<i64: 1, 16, 64>}]} {
    %c0 = arith.constant 0 : index
    %c0_0 = arith.constant 0 : index
    %c0_1 = arith.constant 0 : index
    %0 = vector.load %arg1[%c0, %c0_0, %c0_1] : memref<1x16x64xf32, #tpu.memory_space<vmem>>, vector<1x16x64xf32>
    %1 = vector.shape_cast %0 : vector<1x16x64xf32> to vector<16x64xf32>
    %c0_2 = arith.constant 0 : index
    %c0_3 = arith.constant 0 : index
    %2 = vector.load %arg2[%c0_2, %c0_3] : memref<64x256xf32, #tpu.memory_space<vmem>>, vector<64x256xf32>
    %cst = arith.constant dense<0.000000e+00> : vector<16x256xf32>
    %3 = tpu.matmul %1, %2, %cst {dimension_numbers = #tpu.dot_dimension_numbers<[1], [0], [0], [1], [0, 0, 1, 1], [], []>} : vector<16x64xf32>, vector<64x256xf32>, vector<16x256xf32> -> vector<16x256xf32>
    %c0_4 = arith.constant 0 : index
    %c0_5 = arith.constant 0 : index
    %4 = vector.load %arg3[%c0_4, %c0_5] : memref<1x256xf32, #tpu.memory_space<vmem>>, vector<1x256xf32>
    %5 = vector.broadcast %4 : vector<1x256xf32> to vector<16x256xf32>
    %6 = arith.addf %3, %5 : vector<16x256xf32>
    %c0_6 = arith.constant 0 : index
    %c0_7 = arith.constant 0 : index
    %7 = vector.load %arg4[%c0_6, %c0_7] : memref<32x256xf32, #tpu.memory_space<vmem>>, vector<32x256xf32>
    %c0_8 = arith.constant 0 : index
    %c0_9 = arith.constant 0 : index
    %8 = vector.load %arg5[%c0_8, %c0_9] : memref<1x256xf32, #tpu.memory_space<vmem>>, vector<1x256xf32>
    %c0_10 = arith.constant 0 : index
    %c0_11 = arith.constant 0 : index
    %9 = vector.load %arg6[%c0_10, %c0_11] : memref<256x32xf32, #tpu.memory_space<vmem>>, vector<256x32xf32>
    %c0_12 = arith.constant 0 : index
    %c0_13 = arith.constant 0 : index
    %10 = vector.load %arg7[%c0_12, %c0_13] : memref<1x32xf32, #tpu.memory_space<vmem>>, vector<1x32xf32>
    %11 = vector.extract_strided_slice %6 {offsets = [0, 0], sizes = [16, 32], strides = [1, 1]} : vector<16x256xf32> to vector<16x32xf32>
    %cst_14 = arith.constant dense<0.000000e+00> : vector<16x256xf32>
    %12 = tpu.matmul %11, %7, %cst_14 {dimension_numbers = #tpu.dot_dimension_numbers<[1], [0], [0], [1], [0, 0, 1, 1], [], []>} : vector<16x32xf32>, vector<32x256xf32>, vector<16x256xf32> -> vector<16x256xf32>
    %13 = vector.broadcast %8 : vector<1x256xf32> to vector<16x256xf32>
    %14 = arith.addf %12, %13 : vector<16x256xf32>
    %15 = vector.shape_cast %14 : vector<16x256xf32> to vector<1x16x256xf32>
    %cst_15 = arith.constant dense<0xFF800000> : vector<1x256xf32>
    %16 = vector.multi_reduction <maximumf>, %15, %cst_15 [1] : vector<1x16x256xf32> to vector<1x256xf32>
    %17 = vector.shape_cast %16 : vector<1x256xf32> to vector<1x1x256xf32>
    %18 = vector.broadcast %17 : vector<1x1x256xf32> to vector<1x16x256xf32>
    %19 = arith.subf %15, %18 : vector<1x16x256xf32>
    %20 = math.exp %19 : vector<1x16x256xf32>
    %cst_16 = arith.constant dense<0.000000e+00> : vector<1x256xf32>
    %21 = vector.multi_reduction <add>, %20, %cst_16 [1] : vector<1x16x256xf32> to vector<1x256xf32>
    %22 = vector.shape_cast %21 : vector<1x256xf32> to vector<1x1x256xf32>
    %23 = tpu.reciprocal %22 {approx = true} : vector<1x1x256xf32> -> vector<1x1x256xf32>
    %24 = vector.broadcast %23 : vector<1x1x256xf32> to vector<1x16x256xf32>
    %25 = arith.mulf %20, %24 : vector<1x16x256xf32>
    %26 = vector.extract_strided_slice %25 {offsets = [0, 0, 0], sizes = [1, 16, 64], strides = [1, 1, 1]} : vector<1x16x256xf32> to vector<1x16x64xf32>
    %cst_17 = arith.constant dense<0.000000e+00> : vector<1x16xf32>
    %27 = vector.multi_reduction <add>, %26, %cst_17 [2] : vector<1x16x64xf32> to vector<1x16xf32>
    %28 = vector.shape_cast %27 : vector<1x16xf32> to vector<1x16x1xf32>
    %cst_18 = arith.constant 9.99999971E-10 : f32
    %29 = vector.broadcast %cst_18 : f32 to vector<1x16x1xf32>
    %30 = arith.addf %29, %28 : vector<1x16x1xf32>
    %31 = tpu.reciprocal %30 {approx = true} : vector<1x16x1xf32> -> vector<1x16x1xf32>
    %32 = vector.broadcast %31 : vector<1x16x1xf32> to vector<1x16x64xf32>
    %33 = arith.mulf %26, %32 : vector<1x16x64xf32>
    %34 = vector.extract_strided_slice %25 {offsets = [0, 0, 64], sizes = [1, 16, 64], strides = [1, 1, 1]} : vector<1x16x256xf32> to vector<1x16x64xf32>
    %cst_19 = arith.constant dense<0.000000e+00> : vector<1x16xf32>
    %35 = vector.multi_reduction <add>, %34, %cst_19 [2] : vector<1x16x64xf32> to vector<1x16xf32>
    %36 = vector.shape_cast %35 : vector<1x16xf32> to vector<1x16x1xf32>
    %cst_20 = arith.constant 9.99999971E-10 : f32
    %37 = vector.broadcast %cst_20 : f32 to vector<1x16x1xf32>
    %38 = arith.addf %37, %36 : vector<1x16x1xf32>
    %39 = tpu.reciprocal %38 {approx = true} : vector<1x16x1xf32> -> vector<1x16x1xf32>
    %40 = vector.broadcast %39 : vector<1x16x1xf32> to vector<1x16x64xf32>
    %41 = arith.mulf %34, %40 : vector<1x16x64xf32>
    %42 = vector.extract_strided_slice %25 {offsets = [0, 0, 128], sizes = [1, 16, 64], strides = [1, 1, 1]} : vector<1x16x256xf32> to vector<1x16x64xf32>
    %cst_21 = arith.constant dense<0.000000e+00> : vector<1x16xf32>
    %43 = vector.multi_reduction <add>, %42, %cst_21 [2] : vector<1x16x64xf32> to vector<1x16xf32>
    %44 = vector.shape_cast %43 : vector<1x16xf32> to vector<1x16x1xf32>
    %cst_22 = arith.constant 9.99999971E-10 : f32
    %45 = vector.broadcast %cst_22 : f32 to vector<1x16x1xf32>
    %46 = arith.addf %45, %44 : vector<1x16x1xf32>
    %47 = tpu.reciprocal %46 {approx = true} : vector<1x16x1xf32> -> vector<1x16x1xf32>
    %48 = vector.broadcast %47 : vector<1x16x1xf32> to vector<1x16x64xf32>
    %49 = arith.mulf %42, %48 : vector<1x16x64xf32>
    %50 = vector.extract_strided_slice %25 {offsets = [0, 0, 192], sizes = [1, 16, 64], strides = [1, 1, 1]} : vector<1x16x256xf32> to vector<1x16x64xf32>
    %cst_23 = arith.constant dense<0.000000e+00> : vector<1x16xf32>
    %51 = vector.multi_reduction <add>, %50, %cst_23 [2] : vector<1x16x64xf32> to vector<1x16xf32>
    %52 = vector.shape_cast %51 : vector<1x16xf32> to vector<1x16x1xf32>
    %cst_24 = arith.constant 9.99999971E-10 : f32
    %53 = vector.broadcast %cst_24 : f32 to vector<1x16x1xf32>
    %54 = arith.addf %53, %52 : vector<1x16x1xf32>
    %55 = tpu.reciprocal %54 {approx = true} : vector<1x16x1xf32> -> vector<1x16x1xf32>
    %56 = vector.broadcast %55 : vector<1x16x1xf32> to vector<1x16x64xf32>
    %57 = arith.mulf %50, %56 : vector<1x16x64xf32>
    %58 = tpu.concatenate %33, %41, %49, %57 in 2 : vector<1x16x64xf32>, vector<1x16x64xf32>, vector<1x16x64xf32>, vector<1x16x64xf32> -> vector<1x16x256xf32>
    %59 = vector.shape_cast %58 : vector<1x16x256xf32> to vector<16x256xf32>
    %cst_25 = arith.constant dense<0.000000e+00> : vector<16x32xf32>
    %60 = tpu.matmul %59, %9, %cst_25 {dimension_numbers = #tpu.dot_dimension_numbers<[1], [0], [0], [1], [0, 0, 1, 1], [], []>} : vector<16x256xf32>, vector<256x32xf32>, vector<16x32xf32> -> vector<16x32xf32>
    %61 = vector.broadcast %10 : vector<1x32xf32> to vector<16x32xf32>
    %62 = arith.addf %60, %61 : vector<16x32xf32>
    %63 = vector.extract_strided_slice %6 {offsets = [0, 32], sizes = [16, 32], strides = [1, 1]} : vector<16x256xf32> to vector<16x32xf32>
    %cst_26 = arith.constant dense<0.000000e+00> : vector<16x256xf32>
    %64 = tpu.matmul %63, %7, %cst_26 {dimension_numbers = #tpu.dot_dimension_numbers<[1], [0], [0], [1], [0, 0, 1, 1], [], []>} : vector<16x32xf32>, vector<32x256xf32>, vector<16x256xf32> -> vector<16x256xf32>
    %65 = vector.broadcast %8 : vector<1x256xf32> to vector<16x256xf32>
    %66 = arith.addf %64, %65 : vector<16x256xf32>
    %67 = vector.shape_cast %66 : vector<16x256xf32> to vector<1x16x256xf32>
    %cst_27 = arith.constant dense<0xFF800000> : vector<1x256xf32>
    %68 = vector.multi_reduction <maximumf>, %67, %cst_27 [1] : vector<1x16x256xf32> to vector<1x256xf32>
    %69 = vector.shape_cast %68 : vector<1x256xf32> to vector<1x1x256xf32>
    %70 = vector.broadcast %69 : vector<1x1x256xf32> to vector<1x16x256xf32>
    %71 = arith.subf %67, %70 : vector<1x16x256xf32>
    %72 = math.exp %71 : vector<1x16x256xf32>
    %cst_28 = arith.constant dense<0.000000e+00> : vector<1x256xf32>
    %73 = vector.multi_reduction <add>, %72, %cst_28 [1] : vector<1x16x256xf32> to vector<1x256xf32>
    %74 = vector.shape_cast %73 : vector<1x256xf32> to vector<1x1x256xf32>
    %75 = tpu.reciprocal %74 {approx = true} : vector<1x1x256xf32> -> vector<1x1x256xf32>
    %76 = vector.broadcast %75 : vector<1x1x256xf32> to vector<1x16x256xf32>
    %77 = arith.mulf %72, %76 : vector<1x16x256xf32>
    %78 = vector.extract_strided_slice %77 {offsets = [0, 0, 0], sizes = [1, 16, 64], strides = [1, 1, 1]} : vector<1x16x256xf32> to vector<1x16x64xf32>
    %cst_29 = arith.constant dense<0.000000e+00> : vector<1x16xf32>
    %79 = vector.multi_reduction <add>, %78, %cst_29 [2] : vector<1x16x64xf32> to vector<1x16xf32>
    %80 = vector.shape_cast %79 : vector<1x16xf32> to vector<1x16x1xf32>
    %cst_30 = arith.constant 9.99999971E-10 : f32
    %81 = vector.broadcast %cst_30 : f32 to vector<1x16x1xf32>
    %82 = arith.addf %81, %80 : vector<1x16x1xf32>
    %83 = tpu.reciprocal %82 {approx = true} : vector<1x16x1xf32> -> vector<1x16x1xf32>
    %84 = vector.broadcast %83 : vector<1x16x1xf32> to vector<1x16x64xf32>
    %85 = arith.mulf %78, %84 : vector<1x16x64xf32>
    %86 = vector.extract_strided_slice %77 {offsets = [0, 0, 64], sizes = [1, 16, 64], strides = [1, 1, 1]} : vector<1x16x256xf32> to vector<1x16x64xf32>
    %cst_31 = arith.constant dense<0.000000e+00> : vector<1x16xf32>
    %87 = vector.multi_reduction <add>, %86, %cst_31 [2] : vector<1x16x64xf32> to vector<1x16xf32>
    %88 = vector.shape_cast %87 : vector<1x16xf32> to vector<1x16x1xf32>
    %cst_32 = arith.constant 9.99999971E-10 : f32
    %89 = vector.broadcast %cst_32 : f32 to vector<1x16x1xf32>
    %90 = arith.addf %89, %88 : vector<1x16x1xf32>
    %91 = tpu.reciprocal %90 {approx = true} : vector<1x16x1xf32> -> vector<1x16x1xf32>
    %92 = vector.broadcast %91 : vector<1x16x1xf32> to vector<1x16x64xf32>
    %93 = arith.mulf %86, %92 : vector<1x16x64xf32>
    %94 = vector.extract_strided_slice %77 {offsets = [0, 0, 128], sizes = [1, 16, 64], strides = [1, 1, 1]} : vector<1x16x256xf32> to vector<1x16x64xf32>
    %cst_33 = arith.constant dense<0.000000e+00> : vector<1x16xf32>
    %95 = vector.multi_reduction <add>, %94, %cst_33 [2] : vector<1x16x64xf32> to vector<1x16xf32>
    %96 = vector.shape_cast %95 : vector<1x16xf32> to vector<1x16x1xf32>
    %cst_34 = arith.constant 9.99999971E-10 : f32
    %97 = vector.broadcast %cst_34 : f32 to vector<1x16x1xf32>
    %98 = arith.addf %97, %96 : vector<1x16x1xf32>
    %99 = tpu.reciprocal %98 {approx = true} : vector<1x16x1xf32> -> vector<1x16x1xf32>
    %100 = vector.broadcast %99 : vector<1x16x1xf32> to vector<1x16x64xf32>
    %101 = arith.mulf %94, %100 : vector<1x16x64xf32>
    %102 = vector.extract_strided_slice %77 {offsets = [0, 0, 192], sizes = [1, 16, 64], strides = [1, 1, 1]} : vector<1x16x256xf32> to vector<1x16x64xf32>
    %cst_35 = arith.constant dense<0.000000e+00> : vector<1x16xf32>
    %103 = vector.multi_reduction <add>, %102, %cst_35 [2] : vector<1x16x64xf32> to vector<1x16xf32>
    %104 = vector.shape_cast %103 : vector<1x16xf32> to vector<1x16x1xf32>
    %cst_36 = arith.constant 9.99999971E-10 : f32
    %105 = vector.broadcast %cst_36 : f32 to vector<1x16x1xf32>
    %106 = arith.addf %105, %104 : vector<1x16x1xf32>
    %107 = tpu.reciprocal %106 {approx = true} : vector<1x16x1xf32> -> vector<1x16x1xf32>
    %108 = vector.broadcast %107 : vector<1x16x1xf32> to vector<1x16x64xf32>
    %109 = arith.mulf %102, %108 : vector<1x16x64xf32>
    %110 = tpu.concatenate %85, %93, %101, %109 in 2 : vector<1x16x64xf32>, vector<1x16x64xf32>, vector<1x16x64xf32>, vector<1x16x64xf32> -> vector<1x16x256xf32>
    %111 = vector.shape_cast %110 : vector<1x16x256xf32> to vector<16x256xf32>
    %cst_37 = arith.constant dense<0.000000e+00> : vector<16x32xf32>
    %112 = tpu.matmul %111, %9, %cst_37 {dimension_numbers = #tpu.dot_dimension_numbers<[1], [0], [0], [1], [0, 0, 1, 1], [], []>} : vector<16x256xf32>, vector<256x32xf32>, vector<16x32xf32> -> vector<16x32xf32>
    %113 = vector.broadcast %10 : vector<1x32xf32> to vector<16x32xf32>
    %114 = arith.addf %112, %113 : vector<16x32xf32>
    %115 = vector.extract_strided_slice %6 {offsets = [0, 64], sizes = [16, 32], strides = [1, 1]} : vector<16x256xf32> to vector<16x32xf32>
    %cst_38 = arith.constant dense<0.000000e+00> : vector<16x256xf32>
    %116 = tpu.matmul %115, %7, %cst_38 {dimension_numbers = #tpu.dot_dimension_numbers<[1], [0], [0], [1], [0, 0, 1, 1], [], []>} : vector<16x32xf32>, vector<32x256xf32>, vector<16x256xf32> -> vector<16x256xf32>
    %117 = vector.broadcast %8 : vector<1x256xf32> to vector<16x256xf32>
    %118 = arith.addf %116, %117 : vector<16x256xf32>
    %119 = vector.shape_cast %118 : vector<16x256xf32> to vector<1x16x256xf32>
    %cst_39 = arith.constant dense<0xFF800000> : vector<1x256xf32>
    %120 = vector.multi_reduction <maximumf>, %119, %cst_39 [1] : vector<1x16x256xf32> to vector<1x256xf32>
    %121 = vector.shape_cast %120 : vector<1x256xf32> to vector<1x1x256xf32>
    %122 = vector.broadcast %121 : vector<1x1x256xf32> to vector<1x16x256xf32>
    %123 = arith.subf %119, %122 : vector<1x16x256xf32>
    %124 = math.exp %123 : vector<1x16x256xf32>
    %cst_40 = arith.constant dense<0.000000e+00> : vector<1x256xf32>
    %125 = vector.multi_reduction <add>, %124, %cst_40 [1] : vector<1x16x256xf32> to vector<1x256xf32>
    %126 = vector.shape_cast %125 : vector<1x256xf32> to vector<1x1x256xf32>
    %127 = tpu.reciprocal %126 {approx = true} : vector<1x1x256xf32> -> vector<1x1x256xf32>
    %128 = vector.broadcast %127 : vector<1x1x256xf32> to vector<1x16x256xf32>
    %129 = arith.mulf %124, %128 : vector<1x16x256xf32>
    %130 = vector.extract_strided_slice %129 {offsets = [0, 0, 0], sizes = [1, 16, 64], strides = [1, 1, 1]} : vector<1x16x256xf32> to vector<1x16x64xf32>
    %cst_41 = arith.constant dense<0.000000e+00> : vector<1x16xf32>
    %131 = vector.multi_reduction <add>, %130, %cst_41 [2] : vector<1x16x64xf32> to vector<1x16xf32>
    %132 = vector.shape_cast %131 : vector<1x16xf32> to vector<1x16x1xf32>
    %cst_42 = arith.constant 9.99999971E-10 : f32
    %133 = vector.broadcast %cst_42 : f32 to vector<1x16x1xf32>
    %134 = arith.addf %133, %132 : vector<1x16x1xf32>
    %135 = tpu.reciprocal %134 {approx = true} : vector<1x16x1xf32> -> vector<1x16x1xf32>
    %136 = vector.broadcast %135 : vector<1x16x1xf32> to vector<1x16x64xf32>
    %137 = arith.mulf %130, %136 : vector<1x16x64xf32>
    %138 = vector.extract_strided_slice %129 {offsets = [0, 0, 64], sizes = [1, 16, 64], strides = [1, 1, 1]} : vector<1x16x256xf32> to vector<1x16x64xf32>
    %cst_43 = arith.constant dense<0.000000e+00> : vector<1x16xf32>
    %139 = vector.multi_reduction <add>, %138, %cst_43 [2] : vector<1x16x64xf32> to vector<1x16xf32>
    %140 = vector.shape_cast %139 : vector<1x16xf32> to vector<1x16x1xf32>
    %cst_44 = arith.constant 9.99999971E-10 : f32
    %141 = vector.broadcast %cst_44 : f32 to vector<1x16x1xf32>
    %142 = arith.addf %141, %140 : vector<1x16x1xf32>
    %143 = tpu.reciprocal %142 {approx = true} : vector<1x16x1xf32> -> vector<1x16x1xf32>
    %144 = vector.broadcast %143 : vector<1x16x1xf32> to vector<1x16x64xf32>
    %145 = arith.mulf %138, %144 : vector<1x16x64xf32>
    %146 = vector.extract_strided_slice %129 {offsets = [0, 0, 128], sizes = [1, 16, 64], strides = [1, 1, 1]} : vector<1x16x256xf32> to vector<1x16x64xf32>
    %cst_45 = arith.constant dense<0.000000e+00> : vector<1x16xf32>
    %147 = vector.multi_reduction <add>, %146, %cst_45 [2] : vector<1x16x64xf32> to vector<1x16xf32>
    %148 = vector.shape_cast %147 : vector<1x16xf32> to vector<1x16x1xf32>
    %cst_46 = arith.constant 9.99999971E-10 : f32
    %149 = vector.broadcast %cst_46 : f32 to vector<1x16x1xf32>
    %150 = arith.addf %149, %148 : vector<1x16x1xf32>
    %151 = tpu.reciprocal %150 {approx = true} : vector<1x16x1xf32> -> vector<1x16x1xf32>
    %152 = vector.broadcast %151 : vector<1x16x1xf32> to vector<1x16x64xf32>
    %153 = arith.mulf %146, %152 : vector<1x16x64xf32>
    %154 = vector.extract_strided_slice %129 {offsets = [0, 0, 192], sizes = [1, 16, 64], strides = [1, 1, 1]} : vector<1x16x256xf32> to vector<1x16x64xf32>
    %cst_47 = arith.constant dense<0.000000e+00> : vector<1x16xf32>
    %155 = vector.multi_reduction <add>, %154, %cst_47 [2] : vector<1x16x64xf32> to vector<1x16xf32>
    %156 = vector.shape_cast %155 : vector<1x16xf32> to vector<1x16x1xf32>
    %cst_48 = arith.constant 9.99999971E-10 : f32
    %157 = vector.broadcast %cst_48 : f32 to vector<1x16x1xf32>
    %158 = arith.addf %157, %156 : vector<1x16x1xf32>
    %159 = tpu.reciprocal %158 {approx = true} : vector<1x16x1xf32> -> vector<1x16x1xf32>
    %160 = vector.broadcast %159 : vector<1x16x1xf32> to vector<1x16x64xf32>
    %161 = arith.mulf %154, %160 : vector<1x16x64xf32>
    %162 = tpu.concatenate %137, %145, %153, %161 in 2 : vector<1x16x64xf32>, vector<1x16x64xf32>, vector<1x16x64xf32>, vector<1x16x64xf32> -> vector<1x16x256xf32>
    %163 = vector.shape_cast %162 : vector<1x16x256xf32> to vector<16x256xf32>
    %cst_49 = arith.constant dense<0.000000e+00> : vector<16x32xf32>
    %164 = tpu.matmul %163, %9, %cst_49 {dimension_numbers = #tpu.dot_dimension_numbers<[1], [0], [0], [1], [0, 0, 1, 1], [], []>} : vector<16x256xf32>, vector<256x32xf32>, vector<16x32xf32> -> vector<16x32xf32>
    %165 = vector.broadcast %10 : vector<1x32xf32> to vector<16x32xf32>
    %166 = arith.addf %164, %165 : vector<16x32xf32>
    %167 = vector.extract_strided_slice %6 {offsets = [0, 96], sizes = [16, 32], strides = [1, 1]} : vector<16x256xf32> to vector<16x32xf32>
    %cst_50 = arith.constant dense<0.000000e+00> : vector<16x256xf32>
    %168 = tpu.matmul %167, %7, %cst_50 {dimension_numbers = #tpu.dot_dimension_numbers<[1], [0], [0], [1], [0, 0, 1, 1], [], []>} : vector<16x32xf32>, vector<32x256xf32>, vector<16x256xf32> -> vector<16x256xf32>
    %169 = vector.broadcast %8 : vector<1x256xf32> to vector<16x256xf32>
    %170 = arith.addf %168, %169 : vector<16x256xf32>
    %171 = vector.shape_cast %170 : vector<16x256xf32> to vector<1x16x256xf32>
    %cst_51 = arith.constant dense<0xFF800000> : vector<1x256xf32>
    %172 = vector.multi_reduction <maximumf>, %171, %cst_51 [1] : vector<1x16x256xf32> to vector<1x256xf32>
    %173 = vector.shape_cast %172 : vector<1x256xf32> to vector<1x1x256xf32>
    %174 = vector.broadcast %173 : vector<1x1x256xf32> to vector<1x16x256xf32>
    %175 = arith.subf %171, %174 : vector<1x16x256xf32>
    %176 = math.exp %175 : vector<1x16x256xf32>
    %cst_52 = arith.constant dense<0.000000e+00> : vector<1x256xf32>
    %177 = vector.multi_reduction <add>, %176, %cst_52 [1] : vector<1x16x256xf32> to vector<1x256xf32>
    %178 = vector.shape_cast %177 : vector<1x256xf32> to vector<1x1x256xf32>
    %179 = tpu.reciprocal %178 {approx = true} : vector<1x1x256xf32> -> vector<1x1x256xf32>
    %180 = vector.broadcast %179 : vector<1x1x256xf32> to vector<1x16x256xf32>
    %181 = arith.mulf %176, %180 : vector<1x16x256xf32>
    %182 = vector.extract_strided_slice %181 {offsets = [0, 0, 0], sizes = [1, 16, 64], strides = [1, 1, 1]} : vector<1x16x256xf32> to vector<1x16x64xf32>
    %cst_53 = arith.constant dense<0.000000e+00> : vector<1x16xf32>
    %183 = vector.multi_reduction <add>, %182, %cst_53 [2] : vector<1x16x64xf32> to vector<1x16xf32>
    %184 = vector.shape_cast %183 : vector<1x16xf32> to vector<1x16x1xf32>
    %cst_54 = arith.constant 9.99999971E-10 : f32
    %185 = vector.broadcast %cst_54 : f32 to vector<1x16x1xf32>
    %186 = arith.addf %185, %184 : vector<1x16x1xf32>
    %187 = tpu.reciprocal %186 {approx = true} : vector<1x16x1xf32> -> vector<1x16x1xf32>
    %188 = vector.broadcast %187 : vector<1x16x1xf32> to vector<1x16x64xf32>
    %189 = arith.mulf %182, %188 : vector<1x16x64xf32>
    %190 = vector.extract_strided_slice %181 {offsets = [0, 0, 64], sizes = [1, 16, 64], strides = [1, 1, 1]} : vector<1x16x256xf32> to vector<1x16x64xf32>
    %cst_55 = arith.constant dense<0.000000e+00> : vector<1x16xf32>
    %191 = vector.multi_reduction <add>, %190, %cst_55 [2] : vector<1x16x64xf32> to vector<1x16xf32>
    %192 = vector.shape_cast %191 : vector<1x16xf32> to vector<1x16x1xf32>
    %cst_56 = arith.constant 9.99999971E-10 : f32
    %193 = vector.broadcast %cst_56 : f32 to vector<1x16x1xf32>
    %194 = arith.addf %193, %192 : vector<1x16x1xf32>
    %195 = tpu.reciprocal %194 {approx = true} : vector<1x16x1xf32> -> vector<1x16x1xf32>
    %196 = vector.broadcast %195 : vector<1x16x1xf32> to vector<1x16x64xf32>
    %197 = arith.mulf %190, %196 : vector<1x16x64xf32>
    %198 = vector.extract_strided_slice %181 {offsets = [0, 0, 128], sizes = [1, 16, 64], strides = [1, 1, 1]} : vector<1x16x256xf32> to vector<1x16x64xf32>
    %cst_57 = arith.constant dense<0.000000e+00> : vector<1x16xf32>
    %199 = vector.multi_reduction <add>, %198, %cst_57 [2] : vector<1x16x64xf32> to vector<1x16xf32>
    %200 = vector.shape_cast %199 : vector<1x16xf32> to vector<1x16x1xf32>
    %cst_58 = arith.constant 9.99999971E-10 : f32
    %201 = vector.broadcast %cst_58 : f32 to vector<1x16x1xf32>
    %202 = arith.addf %201, %200 : vector<1x16x1xf32>
    %203 = tpu.reciprocal %202 {approx = true} : vector<1x16x1xf32> -> vector<1x16x1xf32>
    %204 = vector.broadcast %203 : vector<1x16x1xf32> to vector<1x16x64xf32>
    %205 = arith.mulf %198, %204 : vector<1x16x64xf32>
    %206 = vector.extract_strided_slice %181 {offsets = [0, 0, 192], sizes = [1, 16, 64], strides = [1, 1, 1]} : vector<1x16x256xf32> to vector<1x16x64xf32>
    %cst_59 = arith.constant dense<0.000000e+00> : vector<1x16xf32>
    %207 = vector.multi_reduction <add>, %206, %cst_59 [2] : vector<1x16x64xf32> to vector<1x16xf32>
    %208 = vector.shape_cast %207 : vector<1x16xf32> to vector<1x16x1xf32>
    %cst_60 = arith.constant 9.99999971E-10 : f32
    %209 = vector.broadcast %cst_60 : f32 to vector<1x16x1xf32>
    %210 = arith.addf %209, %208 : vector<1x16x1xf32>
    %211 = tpu.reciprocal %210 {approx = true} : vector<1x16x1xf32> -> vector<1x16x1xf32>
    %212 = vector.broadcast %211 : vector<1x16x1xf32> to vector<1x16x64xf32>
    %213 = arith.mulf %206, %212 : vector<1x16x64xf32>
    %214 = tpu.concatenate %189, %197, %205, %213 in 2 : vector<1x16x64xf32>, vector<1x16x64xf32>, vector<1x16x64xf32>, vector<1x16x64xf32> -> vector<1x16x256xf32>
    %215 = vector.shape_cast %214 : vector<1x16x256xf32> to vector<16x256xf32>
    %cst_61 = arith.constant dense<0.000000e+00> : vector<16x32xf32>
    %216 = tpu.matmul %215, %9, %cst_61 {dimension_numbers = #tpu.dot_dimension_numbers<[1], [0], [0], [1], [0, 0, 1, 1], [], []>} : vector<16x256xf32>, vector<256x32xf32>, vector<16x32xf32> -> vector<16x32xf32>
    %217 = vector.broadcast %10 : vector<1x32xf32> to vector<16x32xf32>
    %218 = arith.addf %216, %217 : vector<16x32xf32>
    %219 = vector.extract_strided_slice %6 {offsets = [0, 128], sizes = [16, 32], strides = [1, 1]} : vector<16x256xf32> to vector<16x32xf32>
    %cst_62 = arith.constant dense<0.000000e+00> : vector<16x256xf32>
    %220 = tpu.matmul %219, %7, %cst_62 {dimension_numbers = #tpu.dot_dimension_numbers<[1], [0], [0], [1], [0, 0, 1, 1], [], []>} : vector<16x32xf32>, vector<32x256xf32>, vector<16x256xf32> -> vector<16x256xf32>
    %221 = vector.broadcast %8 : vector<1x256xf32> to vector<16x256xf32>
    %222 = arith.addf %220, %221 : vector<16x256xf32>
    %223 = vector.shape_cast %222 : vector<16x256xf32> to vector<1x16x256xf32>
    %cst_63 = arith.constant dense<0xFF800000> : vector<1x256xf32>
    %224 = vector.multi_reduction <maximumf>, %223, %cst_63 [1] : vector<1x16x256xf32> to vector<1x256xf32>
    %225 = vector.shape_cast %224 : vector<1x256xf32> to vector<1x1x256xf32>
    %226 = vector.broadcast %225 : vector<1x1x256xf32> to vector<1x16x256xf32>
    %227 = arith.subf %223, %226 : vector<1x16x256xf32>
    %228 = math.exp %227 : vector<1x16x256xf32>
    %cst_64 = arith.constant dense<0.000000e+00> : vector<1x256xf32>
    %229 = vector.multi_reduction <add>, %228, %cst_64 [1] : vector<1x16x256xf32> to vector<1x256xf32>
    %230 = vector.shape_cast %229 : vector<1x256xf32> to vector<1x1x256xf32>
    %231 = tpu.reciprocal %230 {approx = true} : vector<1x1x256xf32> -> vector<1x1x256xf32>
    %232 = vector.broadcast %231 : vector<1x1x256xf32> to vector<1x16x256xf32>
    %233 = arith.mulf %228, %232 : vector<1x16x256xf32>
    %234 = vector.extract_strided_slice %233 {offsets = [0, 0, 0], sizes = [1, 16, 64], strides = [1, 1, 1]} : vector<1x16x256xf32> to vector<1x16x64xf32>
    %cst_65 = arith.constant dense<0.000000e+00> : vector<1x16xf32>
    %235 = vector.multi_reduction <add>, %234, %cst_65 [2] : vector<1x16x64xf32> to vector<1x16xf32>
    %236 = vector.shape_cast %235 : vector<1x16xf32> to vector<1x16x1xf32>
    %cst_66 = arith.constant 9.99999971E-10 : f32
    %237 = vector.broadcast %cst_66 : f32 to vector<1x16x1xf32>
    %238 = arith.addf %237, %236 : vector<1x16x1xf32>
    %239 = tpu.reciprocal %238 {approx = true} : vector<1x16x1xf32> -> vector<1x16x1xf32>
    %240 = vector.broadcast %239 : vector<1x16x1xf32> to vector<1x16x64xf32>
    %241 = arith.mulf %234, %240 : vector<1x16x64xf32>
    %242 = vector.extract_strided_slice %233 {offsets = [0, 0, 64], sizes = [1, 16, 64], strides = [1, 1, 1]} : vector<1x16x256xf32> to vector<1x16x64xf32>
    %cst_67 = arith.constant dense<0.000000e+00> : vector<1x16xf32>
    %243 = vector.multi_reduction <add>, %242, %cst_67 [2] : vector<1x16x64xf32> to vector<1x16xf32>
    %244 = vector.shape_cast %243 : vector<1x16xf32> to vector<1x16x1xf32>
    %cst_68 = arith.constant 9.99999971E-10 : f32
    %245 = vector.broadcast %cst_68 : f32 to vector<1x16x1xf32>
    %246 = arith.addf %245, %244 : vector<1x16x1xf32>
    %247 = tpu.reciprocal %246 {approx = true} : vector<1x16x1xf32> -> vector<1x16x1xf32>
    %248 = vector.broadcast %247 : vector<1x16x1xf32> to vector<1x16x64xf32>
    %249 = arith.mulf %242, %248 : vector<1x16x64xf32>
    %250 = vector.extract_strided_slice %233 {offsets = [0, 0, 128], sizes = [1, 16, 64], strides = [1, 1, 1]} : vector<1x16x256xf32> to vector<1x16x64xf32>
    %cst_69 = arith.constant dense<0.000000e+00> : vector<1x16xf32>
    %251 = vector.multi_reduction <add>, %250, %cst_69 [2] : vector<1x16x64xf32> to vector<1x16xf32>
    %252 = vector.shape_cast %251 : vector<1x16xf32> to vector<1x16x1xf32>
    %cst_70 = arith.constant 9.99999971E-10 : f32
    %253 = vector.broadcast %cst_70 : f32 to vector<1x16x1xf32>
    %254 = arith.addf %253, %252 : vector<1x16x1xf32>
    %255 = tpu.reciprocal %254 {approx = true} : vector<1x16x1xf32> -> vector<1x16x1xf32>
    %256 = vector.broadcast %255 : vector<1x16x1xf32> to vector<1x16x64xf32>
    %257 = arith.mulf %250, %256 : vector<1x16x64xf32>
    %258 = vector.extract_strided_slice %233 {offsets = [0, 0, 192], sizes = [1, 16, 64], strides = [1, 1, 1]} : vector<1x16x256xf32> to vector<1x16x64xf32>
    %cst_71 = arith.constant dense<0.000000e+00> : vector<1x16xf32>
    %259 = vector.multi_reduction <add>, %258, %cst_71 [2] : vector<1x16x64xf32> to vector<1x16xf32>
    %260 = vector.shape_cast %259 : vector<1x16xf32> to vector<1x16x1xf32>
    %cst_72 = arith.constant 9.99999971E-10 : f32
    %261 = vector.broadcast %cst_72 : f32 to vector<1x16x1xf32>
    %262 = arith.addf %261, %260 : vector<1x16x1xf32>
    %263 = tpu.reciprocal %262 {approx = true} : vector<1x16x1xf32> -> vector<1x16x1xf32>
    %264 = vector.broadcast %263 : vector<1x16x1xf32> to vector<1x16x64xf32>
    %265 = arith.mulf %258, %264 : vector<1x16x64xf32>
    %266 = tpu.concatenate %241, %249, %257, %265 in 2 : vector<1x16x64xf32>, vector<1x16x64xf32>, vector<1x16x64xf32>, vector<1x16x64xf32> -> vector<1x16x256xf32>
    %267 = vector.shape_cast %266 : vector<1x16x256xf32> to vector<16x256xf32>
    %cst_73 = arith.constant dense<0.000000e+00> : vector<16x32xf32>
    %268 = tpu.matmul %267, %9, %cst_73 {dimension_numbers = #tpu.dot_dimension_numbers<[1], [0], [0], [1], [0, 0, 1, 1], [], []>} : vector<16x256xf32>, vector<256x32xf32>, vector<16x32xf32> -> vector<16x32xf32>
    %269 = vector.broadcast %10 : vector<1x32xf32> to vector<16x32xf32>
    %270 = arith.addf %268, %269 : vector<16x32xf32>
    %271 = vector.extract_strided_slice %6 {offsets = [0, 160], sizes = [16, 32], strides = [1, 1]} : vector<16x256xf32> to vector<16x32xf32>
    %cst_74 = arith.constant dense<0.000000e+00> : vector<16x256xf32>
    %272 = tpu.matmul %271, %7, %cst_74 {dimension_numbers = #tpu.dot_dimension_numbers<[1], [0], [0], [1], [0, 0, 1, 1], [], []>} : vector<16x32xf32>, vector<32x256xf32>, vector<16x256xf32> -> vector<16x256xf32>
    %273 = vector.broadcast %8 : vector<1x256xf32> to vector<16x256xf32>
    %274 = arith.addf %272, %273 : vector<16x256xf32>
    %275 = vector.shape_cast %274 : vector<16x256xf32> to vector<1x16x256xf32>
    %cst_75 = arith.constant dense<0xFF800000> : vector<1x256xf32>
    %276 = vector.multi_reduction <maximumf>, %275, %cst_75 [1] : vector<1x16x256xf32> to vector<1x256xf32>
    %277 = vector.shape_cast %276 : vector<1x256xf32> to vector<1x1x256xf32>
    %278 = vector.broadcast %277 : vector<1x1x256xf32> to vector<1x16x256xf32>
    %279 = arith.subf %275, %278 : vector<1x16x256xf32>
    %280 = math.exp %279 : vector<1x16x256xf32>
    %cst_76 = arith.constant dense<0.000000e+00> : vector<1x256xf32>
    %281 = vector.multi_reduction <add>, %280, %cst_76 [1] : vector<1x16x256xf32> to vector<1x256xf32>
    %282 = vector.shape_cast %281 : vector<1x256xf32> to vector<1x1x256xf32>
    %283 = tpu.reciprocal %282 {approx = true} : vector<1x1x256xf32> -> vector<1x1x256xf32>
    %284 = vector.broadcast %283 : vector<1x1x256xf32> to vector<1x16x256xf32>
    %285 = arith.mulf %280, %284 : vector<1x16x256xf32>
    %286 = vector.extract_strided_slice %285 {offsets = [0, 0, 0], sizes = [1, 16, 64], strides = [1, 1, 1]} : vector<1x16x256xf32> to vector<1x16x64xf32>
    %cst_77 = arith.constant dense<0.000000e+00> : vector<1x16xf32>
    %287 = vector.multi_reduction <add>, %286, %cst_77 [2] : vector<1x16x64xf32> to vector<1x16xf32>
    %288 = vector.shape_cast %287 : vector<1x16xf32> to vector<1x16x1xf32>
    %cst_78 = arith.constant 9.99999971E-10 : f32
    %289 = vector.broadcast %cst_78 : f32 to vector<1x16x1xf32>
    %290 = arith.addf %289, %288 : vector<1x16x1xf32>
    %291 = tpu.reciprocal %290 {approx = true} : vector<1x16x1xf32> -> vector<1x16x1xf32>
    %292 = vector.broadcast %291 : vector<1x16x1xf32> to vector<1x16x64xf32>
    %293 = arith.mulf %286, %292 : vector<1x16x64xf32>
    %294 = vector.extract_strided_slice %285 {offsets = [0, 0, 64], sizes = [1, 16, 64], strides = [1, 1, 1]} : vector<1x16x256xf32> to vector<1x16x64xf32>
    %cst_79 = arith.constant dense<0.000000e+00> : vector<1x16xf32>
    %295 = vector.multi_reduction <add>, %294, %cst_79 [2] : vector<1x16x64xf32> to vector<1x16xf32>
    %296 = vector.shape_cast %295 : vector<1x16xf32> to vector<1x16x1xf32>
    %cst_80 = arith.constant 9.99999971E-10 : f32
    %297 = vector.broadcast %cst_80 : f32 to vector<1x16x1xf32>
    %298 = arith.addf %297, %296 : vector<1x16x1xf32>
    %299 = tpu.reciprocal %298 {approx = true} : vector<1x16x1xf32> -> vector<1x16x1xf32>
    %300 = vector.broadcast %299 : vector<1x16x1xf32> to vector<1x16x64xf32>
    %301 = arith.mulf %294, %300 : vector<1x16x64xf32>
    %302 = vector.extract_strided_slice %285 {offsets = [0, 0, 128], sizes = [1, 16, 64], strides = [1, 1, 1]} : vector<1x16x256xf32> to vector<1x16x64xf32>
    %cst_81 = arith.constant dense<0.000000e+00> : vector<1x16xf32>
    %303 = vector.multi_reduction <add>, %302, %cst_81 [2] : vector<1x16x64xf32> to vector<1x16xf32>
    %304 = vector.shape_cast %303 : vector<1x16xf32> to vector<1x16x1xf32>
    %cst_82 = arith.constant 9.99999971E-10 : f32
    %305 = vector.broadcast %cst_82 : f32 to vector<1x16x1xf32>
    %306 = arith.addf %305, %304 : vector<1x16x1xf32>
    %307 = tpu.reciprocal %306 {approx = true} : vector<1x16x1xf32> -> vector<1x16x1xf32>
    %308 = vector.broadcast %307 : vector<1x16x1xf32> to vector<1x16x64xf32>
    %309 = arith.mulf %302, %308 : vector<1x16x64xf32>
    %310 = vector.extract_strided_slice %285 {offsets = [0, 0, 192], sizes = [1, 16, 64], strides = [1, 1, 1]} : vector<1x16x256xf32> to vector<1x16x64xf32>
    %cst_83 = arith.constant dense<0.000000e+00> : vector<1x16xf32>
    %311 = vector.multi_reduction <add>, %310, %cst_83 [2] : vector<1x16x64xf32> to vector<1x16xf32>
    %312 = vector.shape_cast %311 : vector<1x16xf32> to vector<1x16x1xf32>
    %cst_84 = arith.constant 9.99999971E-10 : f32
    %313 = vector.broadcast %cst_84 : f32 to vector<1x16x1xf32>
    %314 = arith.addf %313, %312 : vector<1x16x1xf32>
    %315 = tpu.reciprocal %314 {approx = true} : vector<1x16x1xf32> -> vector<1x16x1xf32>
    %316 = vector.broadcast %315 : vector<1x16x1xf32> to vector<1x16x64xf32>
    %317 = arith.mulf %310, %316 : vector<1x16x64xf32>
    %318 = tpu.concatenate %293, %301, %309, %317 in 2 : vector<1x16x64xf32>, vector<1x16x64xf32>, vector<1x16x64xf32>, vector<1x16x64xf32> -> vector<1x16x256xf32>
    %319 = vector.shape_cast %318 : vector<1x16x256xf32> to vector<16x256xf32>
    %cst_85 = arith.constant dense<0.000000e+00> : vector<16x32xf32>
    %320 = tpu.matmul %319, %9, %cst_85 {dimension_numbers = #tpu.dot_dimension_numbers<[1], [0], [0], [1], [0, 0, 1, 1], [], []>} : vector<16x256xf32>, vector<256x32xf32>, vector<16x32xf32> -> vector<16x32xf32>
    %321 = vector.broadcast %10 : vector<1x32xf32> to vector<16x32xf32>
    %322 = arith.addf %320, %321 : vector<16x32xf32>
    %323 = vector.extract_strided_slice %6 {offsets = [0, 192], sizes = [16, 32], strides = [1, 1]} : vector<16x256xf32> to vector<16x32xf32>
    %cst_86 = arith.constant dense<0.000000e+00> : vector<16x256xf32>
    %324 = tpu.matmul %323, %7, %cst_86 {dimension_numbers = #tpu.dot_dimension_numbers<[1], [0], [0], [1], [0, 0, 1, 1], [], []>} : vector<16x32xf32>, vector<32x256xf32>, vector<16x256xf32> -> vector<16x256xf32>
    %325 = vector.broadcast %8 : vector<1x256xf32> to vector<16x256xf32>
    %326 = arith.addf %324, %325 : vector<16x256xf32>
    %327 = vector.shape_cast %326 : vector<16x256xf32> to vector<1x16x256xf32>
    %cst_87 = arith.constant dense<0xFF800000> : vector<1x256xf32>
    %328 = vector.multi_reduction <maximumf>, %327, %cst_87 [1] : vector<1x16x256xf32> to vector<1x256xf32>
    %329 = vector.shape_cast %328 : vector<1x256xf32> to vector<1x1x256xf32>
    %330 = vector.broadcast %329 : vector<1x1x256xf32> to vector<1x16x256xf32>
    %331 = arith.subf %327, %330 : vector<1x16x256xf32>
    %332 = math.exp %331 : vector<1x16x256xf32>
    %cst_88 = arith.constant dense<0.000000e+00> : vector<1x256xf32>
    %333 = vector.multi_reduction <add>, %332, %cst_88 [1] : vector<1x16x256xf32> to vector<1x256xf32>
    %334 = vector.shape_cast %333 : vector<1x256xf32> to vector<1x1x256xf32>
    %335 = tpu.reciprocal %334 {approx = true} : vector<1x1x256xf32> -> vector<1x1x256xf32>
    %336 = vector.broadcast %335 : vector<1x1x256xf32> to vector<1x16x256xf32>
    %337 = arith.mulf %332, %336 : vector<1x16x256xf32>
    %338 = vector.extract_strided_slice %337 {offsets = [0, 0, 0], sizes = [1, 16, 64], strides = [1, 1, 1]} : vector<1x16x256xf32> to vector<1x16x64xf32>
    %cst_89 = arith.constant dense<0.000000e+00> : vector<1x16xf32>
    %339 = vector.multi_reduction <add>, %338, %cst_89 [2] : vector<1x16x64xf32> to vector<1x16xf32>
    %340 = vector.shape_cast %339 : vector<1x16xf32> to vector<1x16x1xf32>
    %cst_90 = arith.constant 9.99999971E-10 : f32
    %341 = vector.broadcast %cst_90 : f32 to vector<1x16x1xf32>
    %342 = arith.addf %341, %340 : vector<1x16x1xf32>
    %343 = tpu.reciprocal %342 {approx = true} : vector<1x16x1xf32> -> vector<1x16x1xf32>
    %344 = vector.broadcast %343 : vector<1x16x1xf32> to vector<1x16x64xf32>
    %345 = arith.mulf %338, %344 : vector<1x16x64xf32>
    %346 = vector.extract_strided_slice %337 {offsets = [0, 0, 64], sizes = [1, 16, 64], strides = [1, 1, 1]} : vector<1x16x256xf32> to vector<1x16x64xf32>
    %cst_91 = arith.constant dense<0.000000e+00> : vector<1x16xf32>
    %347 = vector.multi_reduction <add>, %346, %cst_91 [2] : vector<1x16x64xf32> to vector<1x16xf32>
    %348 = vector.shape_cast %347 : vector<1x16xf32> to vector<1x16x1xf32>
    %cst_92 = arith.constant 9.99999971E-10 : f32
    %349 = vector.broadcast %cst_92 : f32 to vector<1x16x1xf32>
    %350 = arith.addf %349, %348 : vector<1x16x1xf32>
    %351 = tpu.reciprocal %350 {approx = true} : vector<1x16x1xf32> -> vector<1x16x1xf32>
    %352 = vector.broadcast %351 : vector<1x16x1xf32> to vector<1x16x64xf32>
    %353 = arith.mulf %346, %352 : vector<1x16x64xf32>
    %354 = vector.extract_strided_slice %337 {offsets = [0, 0, 128], sizes = [1, 16, 64], strides = [1, 1, 1]} : vector<1x16x256xf32> to vector<1x16x64xf32>
    %cst_93 = arith.constant dense<0.000000e+00> : vector<1x16xf32>
    %355 = vector.multi_reduction <add>, %354, %cst_93 [2] : vector<1x16x64xf32> to vector<1x16xf32>
    %356 = vector.shape_cast %355 : vector<1x16xf32> to vector<1x16x1xf32>
    %cst_94 = arith.constant 9.99999971E-10 : f32
    %357 = vector.broadcast %cst_94 : f32 to vector<1x16x1xf32>
    %358 = arith.addf %357, %356 : vector<1x16x1xf32>
    %359 = tpu.reciprocal %358 {approx = true} : vector<1x16x1xf32> -> vector<1x16x1xf32>
    %360 = vector.broadcast %359 : vector<1x16x1xf32> to vector<1x16x64xf32>
    %361 = arith.mulf %354, %360 : vector<1x16x64xf32>
    %362 = vector.extract_strided_slice %337 {offsets = [0, 0, 192], sizes = [1, 16, 64], strides = [1, 1, 1]} : vector<1x16x256xf32> to vector<1x16x64xf32>
    %cst_95 = arith.constant dense<0.000000e+00> : vector<1x16xf32>
    %363 = vector.multi_reduction <add>, %362, %cst_95 [2] : vector<1x16x64xf32> to vector<1x16xf32>
    %364 = vector.shape_cast %363 : vector<1x16xf32> to vector<1x16x1xf32>
    %cst_96 = arith.constant 9.99999971E-10 : f32
    %365 = vector.broadcast %cst_96 : f32 to vector<1x16x1xf32>
    %366 = arith.addf %365, %364 : vector<1x16x1xf32>
    %367 = tpu.reciprocal %366 {approx = true} : vector<1x16x1xf32> -> vector<1x16x1xf32>
    %368 = vector.broadcast %367 : vector<1x16x1xf32> to vector<1x16x64xf32>
    %369 = arith.mulf %362, %368 : vector<1x16x64xf32>
    %370 = tpu.concatenate %345, %353, %361, %369 in 2 : vector<1x16x64xf32>, vector<1x16x64xf32>, vector<1x16x64xf32>, vector<1x16x64xf32> -> vector<1x16x256xf32>
    %371 = vector.shape_cast %370 : vector<1x16x256xf32> to vector<16x256xf32>
    %cst_97 = arith.constant dense<0.000000e+00> : vector<16x32xf32>
    %372 = tpu.matmul %371, %9, %cst_97 {dimension_numbers = #tpu.dot_dimension_numbers<[1], [0], [0], [1], [0, 0, 1, 1], [], []>} : vector<16x256xf32>, vector<256x32xf32>, vector<16x32xf32> -> vector<16x32xf32>
    %373 = vector.broadcast %10 : vector<1x32xf32> to vector<16x32xf32>
    %374 = arith.addf %372, %373 : vector<16x32xf32>
    %375 = vector.extract_strided_slice %6 {offsets = [0, 224], sizes = [16, 32], strides = [1, 1]} : vector<16x256xf32> to vector<16x32xf32>
    %cst_98 = arith.constant dense<0.000000e+00> : vector<16x256xf32>
    %376 = tpu.matmul %375, %7, %cst_98 {dimension_numbers = #tpu.dot_dimension_numbers<[1], [0], [0], [1], [0, 0, 1, 1], [], []>} : vector<16x32xf32>, vector<32x256xf32>, vector<16x256xf32> -> vector<16x256xf32>
    %377 = vector.broadcast %8 : vector<1x256xf32> to vector<16x256xf32>
    %378 = arith.addf %376, %377 : vector<16x256xf32>
    %379 = vector.shape_cast %378 : vector<16x256xf32> to vector<1x16x256xf32>
    %cst_99 = arith.constant dense<0xFF800000> : vector<1x256xf32>
    %380 = vector.multi_reduction <maximumf>, %379, %cst_99 [1] : vector<1x16x256xf32> to vector<1x256xf32>
    %381 = vector.shape_cast %380 : vector<1x256xf32> to vector<1x1x256xf32>
    %382 = vector.broadcast %381 : vector<1x1x256xf32> to vector<1x16x256xf32>
    %383 = arith.subf %379, %382 : vector<1x16x256xf32>
    %384 = math.exp %383 : vector<1x16x256xf32>
    %cst_100 = arith.constant dense<0.000000e+00> : vector<1x256xf32>
    %385 = vector.multi_reduction <add>, %384, %cst_100 [1] : vector<1x16x256xf32> to vector<1x256xf32>
    %386 = vector.shape_cast %385 : vector<1x256xf32> to vector<1x1x256xf32>
    %387 = tpu.reciprocal %386 {approx = true} : vector<1x1x256xf32> -> vector<1x1x256xf32>
    %388 = vector.broadcast %387 : vector<1x1x256xf32> to vector<1x16x256xf32>
    %389 = arith.mulf %384, %388 : vector<1x16x256xf32>
    %390 = vector.extract_strided_slice %389 {offsets = [0, 0, 0], sizes = [1, 16, 64], strides = [1, 1, 1]} : vector<1x16x256xf32> to vector<1x16x64xf32>
    %cst_101 = arith.constant dense<0.000000e+00> : vector<1x16xf32>
    %391 = vector.multi_reduction <add>, %390, %cst_101 [2] : vector<1x16x64xf32> to vector<1x16xf32>
    %392 = vector.shape_cast %391 : vector<1x16xf32> to vector<1x16x1xf32>
    %cst_102 = arith.constant 9.99999971E-10 : f32
    %393 = vector.broadcast %cst_102 : f32 to vector<1x16x1xf32>
    %394 = arith.addf %393, %392 : vector<1x16x1xf32>
    %395 = tpu.reciprocal %394 {approx = true} : vector<1x16x1xf32> -> vector<1x16x1xf32>
    %396 = vector.broadcast %395 : vector<1x16x1xf32> to vector<1x16x64xf32>
    %397 = arith.mulf %390, %396 : vector<1x16x64xf32>
    %398 = vector.extract_strided_slice %389 {offsets = [0, 0, 64], sizes = [1, 16, 64], strides = [1, 1, 1]} : vector<1x16x256xf32> to vector<1x16x64xf32>
    %cst_103 = arith.constant dense<0.000000e+00> : vector<1x16xf32>
    %399 = vector.multi_reduction <add>, %398, %cst_103 [2] : vector<1x16x64xf32> to vector<1x16xf32>
    %400 = vector.shape_cast %399 : vector<1x16xf32> to vector<1x16x1xf32>
    %cst_104 = arith.constant 9.99999971E-10 : f32
    %401 = vector.broadcast %cst_104 : f32 to vector<1x16x1xf32>
    %402 = arith.addf %401, %400 : vector<1x16x1xf32>
    %403 = tpu.reciprocal %402 {approx = true} : vector<1x16x1xf32> -> vector<1x16x1xf32>
    %404 = vector.broadcast %403 : vector<1x16x1xf32> to vector<1x16x64xf32>
    %405 = arith.mulf %398, %404 : vector<1x16x64xf32>
    %406 = vector.extract_strided_slice %389 {offsets = [0, 0, 128], sizes = [1, 16, 64], strides = [1, 1, 1]} : vector<1x16x256xf32> to vector<1x16x64xf32>
    %cst_105 = arith.constant dense<0.000000e+00> : vector<1x16xf32>
    %407 = vector.multi_reduction <add>, %406, %cst_105 [2] : vector<1x16x64xf32> to vector<1x16xf32>
    %408 = vector.shape_cast %407 : vector<1x16xf32> to vector<1x16x1xf32>
    %cst_106 = arith.constant 9.99999971E-10 : f32
    %409 = vector.broadcast %cst_106 : f32 to vector<1x16x1xf32>
    %410 = arith.addf %409, %408 : vector<1x16x1xf32>
    %411 = tpu.reciprocal %410 {approx = true} : vector<1x16x1xf32> -> vector<1x16x1xf32>
    %412 = vector.broadcast %411 : vector<1x16x1xf32> to vector<1x16x64xf32>
    %413 = arith.mulf %406, %412 : vector<1x16x64xf32>
    %414 = vector.extract_strided_slice %389 {offsets = [0, 0, 192], sizes = [1, 16, 64], strides = [1, 1, 1]} : vector<1x16x256xf32> to vector<1x16x64xf32>
    %cst_107 = arith.constant dense<0.000000e+00> : vector<1x16xf32>
    %415 = vector.multi_reduction <add>, %414, %cst_107 [2] : vector<1x16x64xf32> to vector<1x16xf32>
    %416 = vector.shape_cast %415 : vector<1x16xf32> to vector<1x16x1xf32>
    %cst_108 = arith.constant 9.99999971E-10 : f32
    %417 = vector.broadcast %cst_108 : f32 to vector<1x16x1xf32>
    %418 = arith.addf %417, %416 : vector<1x16x1xf32>
    %419 = tpu.reciprocal %418 {approx = true} : vector<1x16x1xf32> -> vector<1x16x1xf32>
    %420 = vector.broadcast %419 : vector<1x16x1xf32> to vector<1x16x64xf32>
    %421 = arith.mulf %414, %420 : vector<1x16x64xf32>
    %422 = tpu.concatenate %397, %405, %413, %421 in 2 : vector<1x16x64xf32>, vector<1x16x64xf32>, vector<1x16x64xf32>, vector<1x16x64xf32> -> vector<1x16x256xf32>
    %423 = vector.shape_cast %422 : vector<1x16x256xf32> to vector<16x256xf32>
    %cst_109 = arith.constant dense<0.000000e+00> : vector<16x32xf32>
    %424 = tpu.matmul %423, %9, %cst_109 {dimension_numbers = #tpu.dot_dimension_numbers<[1], [0], [0], [1], [0, 0, 1, 1], [], []>} : vector<16x256xf32>, vector<256x32xf32>, vector<16x32xf32> -> vector<16x32xf32>
    %425 = vector.broadcast %10 : vector<1x32xf32> to vector<16x32xf32>
    %426 = arith.addf %424, %425 : vector<16x32xf32>
    %427 = tpu.concatenate %62, %114, %166, %218, %270, %322, %374, %426 in 1 : vector<16x32xf32>, vector<16x32xf32>, vector<16x32xf32>, vector<16x32xf32>, vector<16x32xf32>, vector<16x32xf32>, vector<16x32xf32>, vector<16x32xf32> -> vector<16x256xf32>
    %c0_110 = arith.constant 0 : index
    %c0_111 = arith.constant 0 : index
    %428 = vector.load %arg8[%c0_110, %c0_111] : memref<256x64xf32, #tpu.memory_space<vmem>>, vector<256x64xf32>
    %cst_112 = arith.constant dense<0.000000e+00> : vector<16x64xf32>
    %429 = tpu.matmul %427, %428, %cst_112 {dimension_numbers = #tpu.dot_dimension_numbers<[1], [0], [0], [1], [0, 0, 1, 1], [], []>} : vector<16x256xf32>, vector<256x64xf32>, vector<16x64xf32> -> vector<16x64xf32>
    %c0_113 = arith.constant 0 : index
    %c0_114 = arith.constant 0 : index
    %430 = vector.load %arg9[%c0_113, %c0_114] : memref<1x64xf32, #tpu.memory_space<vmem>>, vector<1x64xf32>
    %431 = vector.broadcast %430 : vector<1x64xf32> to vector<16x64xf32>
    %432 = arith.addf %429, %431 : vector<16x64xf32>
    %433 = vector.shape_cast %432 : vector<16x64xf32> to vector<1x16x64xf32>
    %c0_115 = arith.constant 0 : index
    %c0_116 = arith.constant 0 : index
    %c0_117 = arith.constant 0 : index
    %434 = vector.load %arg10[%c0_115, %c0_116, %c0_117] : memref<1x16x64xf32, #tpu.memory_space<vmem>>, vector<1x16x64xf32>
    tpu.vector_store %arg10[%c0_115, %c0_116, %c0_117], %433 {strides = array<i32>} : memref<1x16x64xf32, #tpu.memory_space<vmem>>, vector<1x16x64xf32>,
    return
  }
  func.func @transform_0(%arg0: i32) -> (i32, i32, i32) {
    %c0_i32 = arith.constant 0 : i32
    %c0_i32_0 = arith.constant 0 : i32
    %c0_i32_1 = arith.constant 0 : i32
    return %arg0, %c0_i32, %c0_i32_0 : i32, i32, i32
  }
  func.func @transform_1(%arg0: i32) -> (i32, i32) {
    %c0_i32 = arith.constant 0 : i32
    %c0_i32_0 = arith.constant 0 : i32
    %c0_i32_1 = arith.constant 0 : i32
    return %c0_i32, %c0_i32_0 : i32, i32
  }
  func.func @transform_2(%arg0: i32) -> (i32, i32) {
    %c0_i32 = arith.constant 0 : i32
    %c0_i32_0 = arith.constant 0 : i32
    %c0_i32_1 = arith.constant 0 : i32
    return %c0_i32, %c0_i32_0 : i32, i32
  }
  func.func @transform_3(%arg0: i32) -> (i32, i32) {
    %c0_i32 = arith.constant 0 : i32
    %c0_i32_0 = arith.constant 0 : i32
    %c0_i32_1 = arith.constant 0 : i32
    return %c0_i32, %c0_i32_0 : i32, i32
  }
  func.func @transform_4(%arg0: i32) -> (i32, i32) {
    %c0_i32 = arith.constant 0 : i32
    %c0_i32_0 = arith.constant 0 : i32
    %c0_i32_1 = arith.constant 0 : i32
    return %c0_i32, %c0_i32_0 : i32, i32
  }
  func.func @transform_5(%arg0: i32) -> (i32, i32) {
    %c0_i32 = arith.constant 0 : i32
    %c0_i32_0 = arith.constant 0 : i32
    %c0_i32_1 = arith.constant 0 : i32
    return %c0_i32, %c0_i32_0 : i32, i32
  }
  func.func @transform_6(%arg0: i32) -> (i32, i32) {
    %c0_i32 = arith.constant 0 : i32
    %c0_i32_0 = arith.constant 0 : i32
    %c0_i32_1 = arith.constant 0 : i32
    return %c0_i32, %c0_i32_0 : i32, i32
  }
  func.func @transform_7(%arg0: i32) -> (i32, i32) {
    %c0_i32 = arith.constant 0 : i32
    %c0_i32_0 = arith.constant 0 : i32
    %c0_i32_1 = arith.constant 0 : i32
    return %c0_i32, %c0_i32_0 : i32, i32
  }
  func.func @transform_8(%arg0: i32) -> (i32, i32) {
    %c0_i32 = arith.constant 0 : i32
    %c0_i32_0 = arith.constant 0 : i32
    %c0_i32_1 = arith.constant 0 : i32
    return %c0_i32, %c0_i32_0 : i32, i32
  }
  func.func @transform_9(%arg0: i32) -> (i32, i32, i32) {
    %c0_i32 = arith.constant 0 : i32
    %c0_i32_0 = arith.constant 0 : i32
    %c0_i32_1 = arith.constant 0 : i32
    return %arg0, %c0_i32, %c0_i32_0 : i32, i32, i32
  }
}

module attributes {stable_mosaic.version = 11 : i64} {
  func.func @_mult_ea_fused_kernel(%arg0: i32, %arg1: memref<1x16x64xf32, #tpu.memory_space<vmem>>, %arg2: memref<64x256xf32, #tpu.memory_space<vmem>>, %arg3: memref<1x256xf32, #tpu.memory_space<vmem>>, %arg4: memref<32x256xf32, #tpu.memory_space<vmem>>, %arg5: memref<1x256xf32, #tpu.memory_space<vmem>>, %arg6: memref<256x32xf32, #tpu.memory_space<vmem>>, %arg7: memref<1x32xf32, #tpu.memory_space<vmem>>, %arg8: memref<256x64xf32, #tpu.memory_space<vmem>>, %arg9: memref<1x64xf32, #tpu.memory_space<vmem>>, %arg10: memref<1x16x64xf32, #tpu.memory_space<vmem>>) attributes {dimension_semantics = [#tpu.dimension_semantics<parallel>], iteration_bounds = array<i64: 2>, scalar_prefetch = 0 : i64, scratch_operands = 0 : i64, tpu.core_type = #tpu.core_type<tc>, window_params = [{transform_indices = @transform_0, window_bounds = array<i64: 1, 16, 64>}, {pipeline_mode = #tpu.pipeline_mode<synchronous>, transform_indices = @transform_1, window_bounds = array<i64: 64, 256>}, {pipeline_mode = #tpu.pipeline_mode<synchronous>, transform_indices = @transform_2, window_bounds = array<i64: 1, 256>}, {pipeline_mode = #tpu.pipeline_mode<synchronous>, transform_indices = @transform_3, window_bounds = array<i64: 32, 256>}, {pipeline_mode = #tpu.pipeline_mode<synchronous>, transform_indices = @transform_4, window_bounds = array<i64: 1, 256>}, {pipeline_mode = #tpu.pipeline_mode<synchronous>, transform_indices = @transform_5, window_bounds = array<i64: 256, 32>}, {pipeline_mode = #tpu.pipeline_mode<synchronous>, transform_indices = @transform_6, window_bounds = array<i64: 1, 32>}, {pipeline_mode = #tpu.pipeline_mode<synchronous>, transform_indices = @transform_7, window_bounds = array<i64: 256, 64>}, {pipeline_mode = #tpu.pipeline_mode<synchronous>, transform_indices = @transform_8, window_bounds = array<i64: 1, 64>}, {transform_indices = @transform_9, window_bounds = array<i64: 1, 16, 64>}]} {
    %c0 = arith.constant 0 : index
    %c0_0 = arith.constant 0 : index
    %c0_1 = arith.constant 0 : index
    %0 = vector.load %arg1[%c0, %c0_0, %c0_1] : memref<1x16x64xf32, #tpu.memory_space<vmem>>, vector<1x16x64xf32>
    %1 = vector.shape_cast %0 : vector<1x16x64xf32> to vector<16x64xf32>
    %c0_2 = arith.constant 0 : index
    %c0_3 = arith.constant 0 : index
    %2 = vector.load %arg2[%c0_2, %c0_3] : memref<64x256xf32, #tpu.memory_space<vmem>>, vector<64x256xf32>
    %cst = arith.constant dense<0.000000e+00> : vector<16x256xf32>
    %3 = tpu.matmul %1, %2, %cst {dimension_numbers = #tpu.dot_dimension_numbers<[1], [0], [0], [1], [0, 0, 1, 1], [], []>} : vector<16x64xf32>, vector<64x256xf32>, vector<16x256xf32> -> vector<16x256xf32>
    %c0_4 = arith.constant 0 : index
    %c0_5 = arith.constant 0 : index
    %4 = vector.load %arg3[%c0_4, %c0_5] : memref<1x256xf32, #tpu.memory_space<vmem>>, vector<1x256xf32>
    %5 = vector.broadcast %4 : vector<1x256xf32> to vector<16x256xf32>
    %6 = arith.addf %3, %5 : vector<16x256xf32>
    %c0_6 = arith.constant 0 : index
    %c0_7 = arith.constant 0 : index
    %7 = vector.load %arg4[%c0_6, %c0_7] : memref<32x256xf32, #tpu.memory_space<vmem>>, vector<32x256xf32>
    %c0_8 = arith.constant 0 : index
    %c0_9 = arith.constant 0 : index
    %8 = vector.load %arg5[%c0_8, %c0_9] : memref<1x256xf32, #tpu.memory_space<vmem>>, vector<1x256xf32>
    %c0_10 = arith.constant 0 : index
    %c0_11 = arith.constant 0 : index
    %9 = vector.load %arg6[%c0_10, %c0_11] : memref<256x32xf32, #tpu.memory_space<vmem>>, vector<256x32xf32>
    %c0_12 = arith.constant 0 : index
    %c0_13 = arith.constant 0 : index
    %10 = vector.load %arg7[%c0_12, %c0_13] : memref<1x32xf32, #tpu.memory_space<vmem>>, vector<1x32xf32>
    %11 = vector.extract_strided_slice %6 {offsets = [0, 0], sizes = [16, 32], strides = [1, 1]} : vector<16x256xf32> to vector<16x32xf32>
    %cst_14 = arith.constant dense<0.000000e+00> : vector<16x256xf32>
    %12 = tpu.matmul %11, %7, %cst_14 {dimension_numbers = #tpu.dot_dimension_numbers<[1], [0], [0], [1], [0, 0, 1, 1], [], []>} : vector<16x32xf32>, vector<32x256xf32>, vector<16x256xf32> -> vector<16x256xf32>
    %13 = vector.broadcast %8 : vector<1x256xf32> to vector<16x256xf32>
    %14 = arith.addf %12, %13 : vector<16x256xf32>
    %15 = vector.shape_cast %14 : vector<16x256xf32> to vector<1x16x256xf32>
    %cst_15 = arith.constant dense<0xFF800000> : vector<1x256xf32>
    %16 = vector.multi_reduction <maximumf>, %15, %cst_15 [1] : vector<1x16x256xf32> to vector<1x256xf32>
    %17 = vector.shape_cast %16 : vector<1x256xf32> to vector<1x1x256xf32>
    %18 = vector.broadcast %17 : vector<1x1x256xf32> to vector<1x16x256xf32>
    %19 = arith.subf %15, %18 : vector<1x16x256xf32>
    %20 = math.exp %19 : vector<1x16x256xf32>
    %cst_16 = arith.constant dense<0.000000e+00> : vector<1x256xf32>
    %21 = vector.multi_reduction <add>, %20, %cst_16 [1] : vector<1x16x256xf32> to vector<1x256xf32>
    %22 = vector.shape_cast %21 : vector<1x256xf32> to vector<1x1x256xf32>
    %23 = tpu.reciprocal %22 {approx = true} : vector<1x1x256xf32> -> vector<1x1x256xf32>
    %24 = vector.broadcast %23 : vector<1x1x256xf32> to vector<1x16x256xf32>
    %25 = arith.mulf %20, %24 : vector<1x16x256xf32>
    %26 = vector.extract_strided_slice %25 {offsets = [0, 0, 0], sizes = [1, 16, 64], strides = [1, 1, 1]} : vector<1x16x256xf32> to vector<1x16x64xf32>
    %cst_17 = arith.constant dense<0.000000e+00> : vector<1x16xf32>
    %27 = vector.multi_reduction <add>, %26, %cst_17 [2] : vector<1x16x64xf32> to vector<1x16xf32>
    %28 = vector.shape_cast %27 : vector<1x16xf32> to vector<1x16x1xf32>
    %cst_18 = arith.constant 9.99999971E-10 : f32
    %29 = vector.broadcast %cst_18 : f32 to vector<1x16x1xf32>
    %30 = arith.addf %29, %28 : vector<1x16x1xf32>
    %31 = tpu.reciprocal %30 {approx = true} : vector<1x16x1xf32> -> vector<1x16x1xf32>
    %32 = vector.broadcast %31 : vector<1x16x1xf32> to vector<1x16x64xf32>
    %33 = arith.mulf %26, %32 : vector<1x16x64xf32>
    %34 = vector.extract_strided_slice %25 {offsets = [0, 0, 64], sizes = [1, 16, 64], strides = [1, 1, 1]} : vector<1x16x256xf32> to vector<1x16x64xf32>
    %cst_19 = arith.constant dense<0.000000e+00> : vector<1x16xf32>
    %35 = vector.multi_reduction <add>, %34, %cst_19 [2] : vector<1x16x64xf32> to vector<1x16xf32>
    %36 = vector.shape_cast %35 : vector<1x16xf32> to vector<1x16x1xf32>
    %cst_20 = arith.constant 9.99999971E-10 : f32
    %37 = vector.broadcast %cst_20 : f32 to vector<1x16x1xf32>
    %38 = arith.addf %37, %36 : vector<1x16x1xf32>
    %39 = tpu.reciprocal %38 {approx = true} : vector<1x16x1xf32> -> vector<1x16x1xf32>
    %40 = vector.broadcast %39 : vector<1x16x1xf32> to vector<1x16x64xf32>
    %41 = arith.mulf %34, %40 : vector<1x16x64xf32>
    %42 = vector.extract_strided_slice %25 {offsets = [0, 0, 128], sizes = [1, 16, 64], strides = [1, 1, 1]} : vector<1x16x256xf32> to vector<1x16x64xf32>
    %cst_21 = arith.constant dense<0.000000e+00> : vector<1x16xf32>
    %43 = vector.multi_reduction <add>, %42, %cst_21 [2] : vector<1x16x64xf32> to vector<1x16xf32>
    %44 = vector.shape_cast %43 : vector<1x16xf32> to vector<1x16x1xf32>
    %cst_22 = arith.constant 9.99999971E-10 : f32
    %45 = vector.broadcast %cst_22 : f32 to vector<1x16x1xf32>
    %46 = arith.addf %45, %44 : vector<1x16x1xf32>
    %47 = tpu.reciprocal %46 {approx = true} : vector<1x16x1xf32> -> vector<1x16x1xf32>
    %48 = vector.broadcast %47 : vector<1x16x1xf32> to vector<1x16x64xf32>
    %49 = arith.mulf %42, %48 : vector<1x16x64xf32>
    %50 = vector.extract_strided_slice %25 {offsets = [0, 0, 192], sizes = [1, 16, 64], strides = [1, 1, 1]} : vector<1x16x256xf32> to vector<1x16x64xf32>
    %cst_23 = arith.constant dense<0.000000e+00> : vector<1x16xf32>
    %51 = vector.multi_reduction <add>, %50, %cst_23 [2] : vector<1x16x64xf32> to vector<1x16xf32>
    %52 = vector.shape_cast %51 : vector<1x16xf32> to vector<1x16x1xf32>
    %cst_24 = arith.constant 9.99999971E-10 : f32
    %53 = vector.broadcast %cst_24 : f32 to vector<1x16x1xf32>
    %54 = arith.addf %53, %52 : vector<1x16x1xf32>
    %55 = tpu.reciprocal %54 {approx = true} : vector<1x16x1xf32> -> vector<1x16x1xf32>
    %56 = vector.broadcast %55 : vector<1x16x1xf32> to vector<1x16x64xf32>
    %57 = arith.mulf %50, %56 : vector<1x16x64xf32>
    %58 = tpu.concatenate %33, %41, %49, %57 in 2 : vector<1x16x64xf32>, vector<1x16x64xf32>, vector<1x16x64xf32>, vector<1x16x64xf32> -> vector<1x16x256xf32>
    %59 = vector.shape_cast %58 : vector<1x16x256xf32> to vector<16x256xf32>
    %cst_25 = arith.constant dense<0.000000e+00> : vector<16x32xf32>
    %60 = tpu.matmul %59, %9, %cst_25 {dimension_numbers = #tpu.dot_dimension_numbers<[1], [0], [0], [1], [0, 0, 1, 1], [], []>} : vector<16x256xf32>, vector<256x32xf32>, vector<16x32xf32> -> vector<16x32xf32>
    %61 = vector.broadcast %10 : vector<1x32xf32> to vector<16x32xf32>
    %62 = arith.addf %60, %61 : vector<16x32xf32>
    %63 = vector.extract_strided_slice %6 {offsets = [0, 32], sizes = [16, 32], strides = [1, 1]} : vector<16x256xf32> to vector<16x32xf32>
    %cst_26 = arith.constant dense<0.000000e+00> : vector<16x256xf32>
    %64 = tpu.matmul %63, %7, %cst_26 {dimension_numbers = #tpu.dot_dimension_numbers<[1], [0], [0], [1], [0, 0, 1, 1], [], []>} : vector<16x32xf32>, vector<32x256xf32>, vector<16x256xf32> -> vector<16x256xf32>
    %65 = vector.broadcast %8 : vector<1x256xf32> to vector<16x256xf32>
    %66 = arith.addf %64, %65 : vector<16x256xf32>
    %67 = vector.shape_cast %66 : vector<16x256xf32> to vector<1x16x256xf32>
    %cst_27 = arith.constant dense<0xFF800000> : vector<1x256xf32>
    %68 = vector.multi_reduction <maximumf>, %67, %cst_27 [1] : vector<1x16x256xf32> to vector<1x256xf32>
    %69 = vector.shape_cast %68 : vector<1x256xf32> to vector<1x1x256xf32>
    %70 = vector.broadcast %69 : vector<1x1x256xf32> to vector<1x16x256xf32>
    %71 = arith.subf %67, %70 : vector<1x16x256xf32>
    %72 = math.exp %71 : vector<1x16x256xf32>
    %cst_28 = arith.constant dense<0.000000e+00> : vector<1x256xf32>
    %73 = vector.multi_reduction <add>, %72, %cst_28 [1] : vector<1x16x256xf32> to vector<1x256xf32>
    %74 = vector.shape_cast %73 : vector<1x256xf32> to vector<1x1x256xf32>
    %75 = tpu.reciprocal %74 {approx = true} : vector<1x1x256xf32> -> vector<1x1x256xf32>
    %76 = vector.broadcast %75 : vector<1x1x256xf32> to vector<1x16x256xf32>
    %77 = arith.mulf %72, %76 : vector<1x16x256xf32>
    %78 = vector.extract_strided_slice %77 {offsets = [0, 0, 0], sizes = [1, 16, 64], strides = [1, 1, 1]} : vector<1x16x256xf32> to vector<1x16x64xf32>
    %cst_29 = arith.constant dense<0.000000e+00> : vector<1x16xf32>
    %79 = vector.multi_reduction <add>, %78, %cst_29 [2] : vector<1x16x64xf32> to vector<1x16xf32>
    %80 = vector.shape_cast %79 : vector<1x16xf32> to vector<1x16x1xf32>
    %cst_30 = arith.constant 9.99999971E-10 : f32
    %81 = vector.broadcast %cst_30 : f32 to vector<1x16x1xf32>
    %82 = arith.addf %81, %80 : vector<1x16x1xf32>
    %83 = tpu.reciprocal %82 {approx = true} : vector<1x16x1xf32> -> vector<1x16x1xf32>
    %84 = vector.broadcast %83 : vector<1x16x1xf32> to vector<1x16x64xf32>
    %85 = arith.mulf %78, %84 : vector<1x16x64xf32>
    %86 = vector.extract_strided_slice %77 {offsets = [0, 0, 64], sizes = [1, 16, 64], strides = [1, 1, 1]} : vector<1x16x256xf32> to vector<1x16x64xf32>
    %cst_31 = arith.constant dense<0.000000e+00> : vector<1x16xf32>
    %87 = vector.multi_reduction <add>, %86, %cst_31 [2] : vector<1x16x64xf32> to vector<1x16xf32>
    %88 = vector.shape_cast %87 : vector<1x16xf32> to vector<1x16x1xf32>
    %cst_32 = arith.constant 9.99999971E-10 : f32
    %89 = vector.broadcast %cst_32 : f32 to vector<1x16x1xf32>
    %90 = arith.addf %89, %88 : vector<1x16x1xf32>
    %91 = tpu.reciprocal %90 {approx = true} : vector<1x16x1xf32> -> vector<1x16x1xf32>
    %92 = vector.broadcast %91 : vector<1x16x1xf32> to vector<1x16x64xf32>
    %93 = arith.mulf %86, %92 : vector<1x16x64xf32>
    %94 = vector.extract_strided_slice %77 {offsets = [0, 0, 128], sizes = [1, 16, 64], strides = [1, 1, 1]} : vector<1x16x256xf32> to vector<1x16x64xf32>
    %cst_33 = arith.constant dense<0.000000e+00> : vector<1x16xf32>
    %95 = vector.multi_reduction <add>, %94, %cst_33 [2] : vector<1x16x64xf32> to vector<1x16xf32>
    %96 = vector.shape_cast %95 : vector<1x16xf32> to vector<1x16x1xf32>
    %cst_34 = arith.constant 9.99999971E-10 : f32
    %97 = vector.broadcast %cst_34 : f32 to vector<1x16x1xf32>
    %98 = arith.addf %97, %96 : vector<1x16x1xf32>
    %99 = tpu.reciprocal %98 {approx = true} : vector<1x16x1xf32> -> vector<1x16x1xf32>
    %100 = vector.broadcast %99 : vector<1x16x1xf32> to vector<1x16x64xf32>
    %101 = arith.mulf %94, %100 : vector<1x16x64xf32>
    %102 = vector.extract_strided_slice %77 {offsets = [0, 0, 192], sizes = [1, 16, 64], strides = [1, 1, 1]} : vector<1x16x256xf32> to vector<1x16x64xf32>
    %cst_35 = arith.constant dense<0.000000e+00> : vector<1x16xf32>
    %103 = vector.multi_reduction <add>, %102, %cst_35 [2] : vector<1x16x64xf32> to vector<1x16xf32>
    %104 = vector.shape_cast %103 : vector<1x16xf32> to vector<1x16x1xf32>
    %cst_36 = arith.constant 9.99999971E-10 : f32
    %105 = vector.broadcast %cst_36 : f32 to vector<1x16x1xf32>
    %106 = arith.addf %105, %104 : vector<1x16x1xf32>
    %107 = tpu.reciprocal %106 {approx = true} : vector<1x16x1xf32> -> vector<1x16x1xf32>
    %108 = vector.broadcast %107 : vector<1x16x1xf32> to vector<1x16x64xf32>
    %109 = arith.mulf %102, %108 : vector<1x16x64xf32>
    %110 = tpu.concatenate %85, %93, %101, %109 in 2 : vector<1x16x64xf32>, vector<1x16x64xf32>, vector<1x16x64xf32>, vector<1x16x64xf32> -> vector<1x16x256xf32>
    %111 = vector.shape_cast %110 : vector<1x16x256xf32> to vector<16x256xf32>
    %cst_37 = arith.constant dense<0.000000e+00> : vector<16x32xf32>
    %112 = tpu.matmul %111, %9, %cst_37 {dimension_numbers = #tpu.dot_dimension_numbers<[1], [0], [0], [1], [0, 0, 1, 1], [], []>} : vector<16x256xf32>, vector<256x32xf32>, vector<16x32xf32> -> vector<16x32xf32>
    %113 = vector.broadcast %10 : vector<1x32xf32> to vector<16x32xf32>
    %114 = arith.addf %112, %113 : vector<16x32xf32>
    %115 = vector.extract_strided_slice %6 {offsets = [0, 64], sizes = [16, 32], strides = [1, 1]} : vector<16x256xf32> to vector<16x32xf32>
    %cst_38 = arith.constant dense<0.000000e+00> : vector<16x256xf32>
    %116 = tpu.matmul %115, %7, %cst_38 {dimension_numbers = #tpu.dot_dimension_numbers<[1], [0], [0], [1], [0, 0, 1, 1], [], []>} : vector<16x32xf32>, vector<32x256xf32>, vector<16x256xf32> -> vector<16x256xf32>
    %117 = vector.broadcast %8 : vector<1x256xf32> to vector<16x256xf32>
    %118 = arith.addf %116, %117 : vector<16x256xf32>
    %119 = vector.shape_cast %118 : vector<16x256xf32> to vector<1x16x256xf32>
    %cst_39 = arith.constant dense<0xFF800000> : vector<1x256xf32>
    %120 = vector.multi_reduction <maximumf>, %119, %cst_39 [1] : vector<1x16x256xf32> to vector<1x256xf32>
    %121 = vector.shape_cast %120 : vector<1x256xf32> to vector<1x1x256xf32>
    %122 = vector.broadcast %121 : vector<1x1x256xf32> to vector<1x16x256xf32>
    %123 = arith.subf %119, %122 : vector<1x16x256xf32>
    %124 = math.exp %123 : vector<1x16x256xf32>
    %cst_40 = arith.constant dense<0.000000e+00> : vector<1x256xf32>
    %125 = vector.multi_reduction <add>, %124, %cst_40 [1] : vector<1x16x256xf32> to vector<1x256xf32>
    %126 = vector.shape_cast %125 : vector<1x256xf32> to vector<1x1x256xf32>
    %127 = tpu.reciprocal %126 {approx = true} : vector<1x1x256xf32> -> vector<1x1x256xf32>
    %128 = vector.broadcast %127 : vector<1x1x256xf32> to vector<1x16x256xf32>
    %129 = arith.mulf %124, %128 : vector<1x16x256xf32>
    %130 = vector.extract_strided_slice %129 {offsets = [0, 0, 0], sizes = [1, 16, 64], strides = [1, 1, 1]} : vector<1x16x256xf32> to vector<1x16x64xf32>
    %cst_41 = arith.constant dense<0.000000e+00> : vector<1x16xf32>
    %131 = vector.multi_reduction <add>, %130, %cst_41 [2] : vector<1x16x64xf32> to vector<1x16xf32>
    %132 = vector.shape_cast %131 : vector<1x16xf32> to vector<1x16x1xf32>
    %cst_42 = arith.constant 9.99999971E-10 : f32
    %133 = vector.broadcast %cst_42 : f32 to vector<1x16x1xf32>
    %134 = arith.addf %133, %132 : vector<1x16x1xf32>
    %135 = tpu.reciprocal %134 {approx = true} : vector<1x16x1xf32> -> vector<1x16x1xf32>
    %136 = vector.broadcast %135 : vector<1x16x1xf32> to vector<1x16x64xf32>
    %137 = arith.mulf %130, %136 : vector<1x16x64xf32>
    %138 = vector.extract_strided_slice %129 {offsets = [0, 0, 64], sizes = [1, 16, 64], strides = [1, 1, 1]} : vector<1x16x256xf32> to vector<1x16x64xf32>
    %cst_43 = arith.constant dense<0.000000e+00> : vector<1x16xf32>
    %139 = vector.multi_reduction <add>, %138, %cst_43 [2] : vector<1x16x64xf32> to vector<1x16xf32>
    %140 = vector.shape_cast %139 : vector<1x16xf32> to vector<1x16x1xf32>
    %cst_44 = arith.constant 9.99999971E-10 : f32
    %141 = vector.broadcast %cst_44 : f32 to vector<1x16x1xf32>
    %142 = arith.addf %141, %140 : vector<1x16x1xf32>
    %143 = tpu.reciprocal %142 {approx = true} : vector<1x16x1xf32> -> vector<1x16x1xf32>
    %144 = vector.broadcast %143 : vector<1x16x1xf32> to vector<1x16x64xf32>
    %145 = arith.mulf %138, %144 : vector<1x16x64xf32>
    %146 = vector.extract_strided_slice %129 {offsets = [0, 0, 128], sizes = [1, 16, 64], strides = [1, 1, 1]} : vector<1x16x256xf32> to vector<1x16x64xf32>
    %cst_45 = arith.constant dense<0.000000e+00> : vector<1x16xf32>
    %147 = vector.multi_reduction <add>, %146, %cst_45 [2] : vector<1x16x64xf32> to vector<1x16xf32>
    %148 = vector.shape_cast %147 : vector<1x16xf32> to vector<1x16x1xf32>
    %cst_46 = arith.constant 9.99999971E-10 : f32
    %149 = vector.broadcast %cst_46 : f32 to vector<1x16x1xf32>
    %150 = arith.addf %149, %148 : vector<1x16x1xf32>
    %151 = tpu.reciprocal %150 {approx = true} : vector<1x16x1xf32> -> vector<1x16x1xf32>
    %152 = vector.broadcast %151 : vector<1x16x1xf32> to vector<1x16x64xf32>
    %153 = arith.mulf %146, %152 : vector<1x16x64xf32>
    %154 = vector.extract_strided_slice %129 {offsets = [0, 0, 192], sizes = [1, 16, 64], strides = [1, 1, 1]} : vector<1x16x256xf32> to vector<1x16x64xf32>
    %cst_47 = arith.constant dense<0.000000e+00> : vector<1x16xf32>
    %155 = vector.multi_reduction <add>, %154, %cst_47 [2] : vector<1x16x64xf32> to vector<1x16xf32>
    %156 = vector.shape_cast %155 : vector<1x16xf32> to vector<1x16x1xf32>
    %cst_48 = arith.constant 9.99999971E-10 : f32
    %157 = vector.broadcast %cst_48 : f32 to vector<1x16x1xf32>
    %158 = arith.addf %157, %156 : vector<1x16x1xf32>
    %159 = tpu.reciprocal %158 {approx = true} : vector<1x16x1xf32> -> vector<1x16x1xf32>
    %160 = vector.broadcast %159 : vector<1x16x1xf32> to vector<1x16x64xf32>
    %161 = arith.mulf %154, %160 : vector<1x16x64xf32>
    %162 = tpu.concatenate %137, %145, %153, %161 in 2 : vector<1x16x64xf32>, vector<1x16x64xf32>, vector<1x16x64xf32>, vector<1x16x64xf32> -> vector<1x16x256xf32>
    %163 = vector.shape_cast %162 : vector<1x16x256xf32> to vector<16x256xf32>
    %cst_49 = arith.constant dense<0.000000e+00> : vector<16x32xf32>
    %164 = tpu.matmul %163, %9, %cst_49 {dimension_numbers = #tpu.dot_dimension_numbers<[1], [0], [0], [1], [0, 0, 1, 1], [], []>} : vector<16x256xf32>, vector<256x32xf32>, vector<16x32xf32> -> vector<16x32xf32>
    %165 = vector.broadcast %10 : vector<1x32xf32> to vector<16x32xf32>
    %166 = arith.addf %164, %165 : vector<16x32xf32>
    %167 = vector.extract_strided_slice %6 {offsets = [0, 96], sizes = [16, 32], strides = [1, 1]} : vector<16x256xf32> to vector<16x32xf32>
    %cst_50 = arith.constant dense<0.000000e+00> : vector<16x256xf32>
    %168 = tpu.matmul %167, %7, %cst_50 {dimension_numbers = #tpu.dot_dimension_numbers<[1], [0], [0], [1], [0, 0, 1, 1], [], []>} : vector<16x32xf32>, vector<32x256xf32>, vector<16x256xf32> -> vector<16x256xf32>
    %169 = vector.broadcast %8 : vector<1x256xf32> to vector<16x256xf32>
    %170 = arith.addf %168, %169 : vector<16x256xf32>
    %171 = vector.shape_cast %170 : vector<16x256xf32> to vector<1x16x256xf32>
    %cst_51 = arith.constant dense<0xFF800000> : vector<1x256xf32>
    %172 = vector.multi_reduction <maximumf>, %171, %cst_51 [1] : vector<1x16x256xf32> to vector<1x256xf32>
    %173 = vector.shape_cast %172 : vector<1x256xf32> to vector<1x1x256xf32>
    %174 = vector.broadcast %173 : vector<1x1x256xf32> to vector<1x16x256xf32>
    %175 = arith.subf %171, %174 : vector<1x16x256xf32>
    %176 = math.exp %175 : vector<1x16x256xf32>
    %cst_52 = arith.constant dense<0.000000e+00> : vector<1x256xf32>
    %177 = vector.multi_reduction <add>, %176, %cst_52 [1] : vector<1x16x256xf32> to vector<1x256xf32>
    %178 = vector.shape_cast %177 : vector<1x256xf32> to vector<1x1x256xf32>
    %179 = tpu.reciprocal %178 {approx = true} : vector<1x1x256xf32> -> vector<1x1x256xf32>
    %180 = vector.broadcast %179 : vector<1x1x256xf32> to vector<1x16x256xf32>
    %181 = arith.mulf %176, %180 : vector<1x16x256xf32>
    %182 = vector.extract_strided_slice %181 {offsets = [0, 0, 0], sizes = [1, 16, 64], strides = [1, 1, 1]} : vector<1x16x256xf32> to vector<1x16x64xf32>
    %cst_53 = arith.constant dense<0.000000e+00> : vector<1x16xf32>
    %183 = vector.multi_reduction <add>, %182, %cst_53 [2] : vector<1x16x64xf32> to vector<1x16xf32>
    %184 = vector.shape_cast %183 : vector<1x16xf32> to vector<1x16x1xf32>
    %cst_54 = arith.constant 9.99999971E-10 : f32
    %185 = vector.broadcast %cst_54 : f32 to vector<1x16x1xf32>
    %186 = arith.addf %185, %184 : vector<1x16x1xf32>
    %187 = tpu.reciprocal %186 {approx = true} : vector<1x16x1xf32> -> vector<1x16x1xf32>
    %188 = vector.broadcast %187 : vector<1x16x1xf32> to vector<1x16x64xf32>
    %189 = arith.mulf %182, %188 : vector<1x16x64xf32>
    %190 = vector.extract_strided_slice %181 {offsets = [0, 0, 64], sizes = [1, 16, 64], strides = [1, 1, 1]} : vector<1x16x256xf32> to vector<1x16x64xf32>
    %cst_55 = arith.constant dense<0.000000e+00> : vector<1x16xf32>
    %191 = vector.multi_reduction <add>, %190, %cst_55 [2] : vector<1x16x64xf32> to vector<1x16xf32>
    %192 = vector.shape_cast %191 : vector<1x16xf32> to vector<1x16x1xf32>
    %cst_56 = arith.constant 9.99999971E-10 : f32
    %193 = vector.broadcast %cst_56 : f32 to vector<1x16x1xf32>
    %194 = arith.addf %193, %192 : vector<1x16x1xf32>
    %195 = tpu.reciprocal %194 {approx = true} : vector<1x16x1xf32> -> vector<1x16x1xf32>
    %196 = vector.broadcast %195 : vector<1x16x1xf32> to vector<1x16x64xf32>
    %197 = arith.mulf %190, %196 : vector<1x16x64xf32>
    %198 = vector.extract_strided_slice %181 {offsets = [0, 0, 128], sizes = [1, 16, 64], strides = [1, 1, 1]} : vector<1x16x256xf32> to vector<1x16x64xf32>
    %cst_57 = arith.constant dense<0.000000e+00> : vector<1x16xf32>
    %199 = vector.multi_reduction <add>, %198, %cst_57 [2] : vector<1x16x64xf32> to vector<1x16xf32>
    %200 = vector.shape_cast %199 : vector<1x16xf32> to vector<1x16x1xf32>
    %cst_58 = arith.constant 9.99999971E-10 : f32
    %201 = vector.broadcast %cst_58 : f32 to vector<1x16x1xf32>
    %202 = arith.addf %201, %200 : vector<1x16x1xf32>
    %203 = tpu.reciprocal %202 {approx = true} : vector<1x16x1xf32> -> vector<1x16x1xf32>
    %204 = vector.broadcast %203 : vector<1x16x1xf32> to vector<1x16x64xf32>
    %205 = arith.mulf %198, %204 : vector<1x16x64xf32>
    %206 = vector.extract_strided_slice %181 {offsets = [0, 0, 192], sizes = [1, 16, 64], strides = [1, 1, 1]} : vector<1x16x256xf32> to vector<1x16x64xf32>
    %cst_59 = arith.constant dense<0.000000e+00> : vector<1x16xf32>
    %207 = vector.multi_reduction <add>, %206, %cst_59 [2] : vector<1x16x64xf32> to vector<1x16xf32>
    %208 = vector.shape_cast %207 : vector<1x16xf32> to vector<1x16x1xf32>
    %cst_60 = arith.constant 9.99999971E-10 : f32
    %209 = vector.broadcast %cst_60 : f32 to vector<1x16x1xf32>
    %210 = arith.addf %209, %208 : vector<1x16x1xf32>
    %211 = tpu.reciprocal %210 {approx = true} : vector<1x16x1xf32> -> vector<1x16x1xf32>
    %212 = vector.broadcast %211 : vector<1x16x1xf32> to vector<1x16x64xf32>
    %213 = arith.mulf %206, %212 : vector<1x16x64xf32>
    %214 = tpu.concatenate %189, %197, %205, %213 in 2 : vector<1x16x64xf32>, vector<1x16x64xf32>, vector<1x16x64xf32>, vector<1x16x64xf32> -> vector<1x16x256xf32>
    %215 = vector.shape_cast %214 : vector<1x16x256xf32> to vector<16x256xf32>
    %cst_61 = arith.constant dense<0.000000e+00> : vector<16x32xf32>
    %216 = tpu.matmul %215, %9, %cst_61 {dimension_numbers = #tpu.dot_dimension_numbers<[1], [0], [0], [1], [0, 0, 1, 1], [], []>} : vector<16x256xf32>, vector<256x32xf32>, vector<16x32xf32> -> vector<16x32xf32>
    %217 = vector.broadcast %10 : vector<1x32xf32> to vector<16x32xf32>
    %218 = arith.addf %216, %217 : vector<16x32xf32>
    %219 = vector.extract_strided_slice %6 {offsets = [0, 128], sizes = [16, 32], strides = [1, 1]} : vector<16x256xf32> to vector<16x32xf32>
    %cst_62 = arith.constant dense<0.000000e+00> : vector<16x256xf32>
    %220 = tpu.matmul %219, %7, %cst_62 {dimension_numbers = #tpu.dot_dimension_numbers<[1], [0], [0], [1], [0, 0, 1, 1], [], []>} : vector<16x32xf32>, vector<32x256xf32>, vector<16x256xf32> -> vector<16x256xf32>
    %221 = vector.broadcast %8 : vector<1x256xf32> to vector<16x256xf32>
    %222 = arith.addf %220, %221 : vector<16x256xf32>
    %223 = vector.shape_cast %222 : vector<16x256xf32> to vector<1x16x256xf32>
    %cst_63 = arith.constant dense<0xFF800000> : vector<1x256xf32>
    %224 = vector.multi_reduction <maximumf>, %223, %cst_63 [1] : vector<1x16x256xf32> to vector<1x256xf32>
    %225 = vector.shape_cast %224 : vector<1x256xf32> to vector<1x1x256xf32>
    %226 = vector.broadcast %225 : vector<1x1x256xf32> to vector<1x16x256xf32>
    %227 = arith.subf %223, %226 : vector<1x16x256xf32>
    %228 = math.exp %227 : vector<1x16x256xf32>
    %cst_64 = arith.constant dense<0.000000e+00> : vector<1x256xf32>
    %229 = vector.multi_reduction <add>, %228, %cst_64 [1] : vector<1x16x256xf32> to vector<1x256xf32>
    %230 = vector.shape_cast %229 : vector<1x256xf32> to vector<1x1x256xf32>
    %231 = tpu.reciprocal %230 {approx = true} : vector<1x1x256xf32> -> vector<1x1x256xf32>
    %232 = vector.broadcast %231 : vector<1x1x256xf32> to vector<1x16x256xf32>
    %233 = arith.mulf %228, %232 : vector<1x16x256xf32>
    %234 = vector.extract_strided_slice %233 {offsets = [0, 0, 0], sizes = [1, 16, 64], strides = [1, 1, 1]} : vector<1x16x256xf32> to vector<1x16x64xf32>
    %cst_65 = arith.constant dense<0.000000e+00> : vector<1x16xf32>
    %235 = vector.multi_reduction <add>, %234, %cst_65 [2] : vector<1x16x64xf32> to vector<1x16xf32>
    %236 = vector.shape_cast %235 : vector<1x16xf32> to vector<1x16x1xf32>
    %cst_66 = arith.constant 9.99999971E-10 : f32
    %237 = vector.broadcast %cst_66 : f32 to vector<1x16x1xf32>
    %238 = arith.addf %237, %236 : vector<1x16x1xf32>
    %239 = tpu.reciprocal %238 {approx = true} : vector<1x16x1xf32> -> vector<1x16x1xf32>
    %240 = vector.broadcast %239 : vector<1x16x1xf32> to vector<1x16x64xf32>
    %241 = arith.mulf %234, %240 : vector<1x16x64xf32>
    %242 = vector.extract_strided_slice %233 {offsets = [0, 0, 64], sizes = [1, 16, 64], strides = [1, 1, 1]} : vector<1x16x256xf32> to vector<1x16x64xf32>
    %cst_67 = arith.constant dense<0.000000e+00> : vector<1x16xf32>
    %243 = vector.multi_reduction <add>, %242, %cst_67 [2] : vector<1x16x64xf32> to vector<1x16xf32>
    %244 = vector.shape_cast %243 : vector<1x16xf32> to vector<1x16x1xf32>
    %cst_68 = arith.constant 9.99999971E-10 : f32
    %245 = vector.broadcast %cst_68 : f32 to vector<1x16x1xf32>
    %246 = arith.addf %245, %244 : vector<1x16x1xf32>
    %247 = tpu.reciprocal %246 {approx = true} : vector<1x16x1xf32> -> vector<1x16x1xf32>
    %248 = vector.broadcast %247 : vector<1x16x1xf32> to vector<1x16x64xf32>
    %249 = arith.mulf %242, %248 : vector<1x16x64xf32>
    %250 = vector.extract_strided_slice %233 {offsets = [0, 0, 128], sizes = [1, 16, 64], strides = [1, 1, 1]} : vector<1x16x256xf32> to vector<1x16x64xf32>
    %cst_69 = arith.constant dense<0.000000e+00> : vector<1x16xf32>
    %251 = vector.multi_reduction <add>, %250, %cst_69 [2] : vector<1x16x64xf32> to vector<1x16xf32>
    %252 = vector.shape_cast %251 : vector<1x16xf32> to vector<1x16x1xf32>
    %cst_70 = arith.constant 9.99999971E-10 : f32
    %253 = vector.broadcast %cst_70 : f32 to vector<1x16x1xf32>
    %254 = arith.addf %253, %252 : vector<1x16x1xf32>
    %255 = tpu.reciprocal %254 {approx = true} : vector<1x16x1xf32> -> vector<1x16x1xf32>
    %256 = vector.broadcast %255 : vector<1x16x1xf32> to vector<1x16x64xf32>
    %257 = arith.mulf %250, %256 : vector<1x16x64xf32>
    %258 = vector.extract_strided_slice %233 {offsets = [0, 0, 192], sizes = [1, 16, 64], strides = [1, 1, 1]} : vector<1x16x256xf32> to vector<1x16x64xf32>
    %cst_71 = arith.constant dense<0.000000e+00> : vector<1x16xf32>
    %259 = vector.multi_reduction <add>, %258, %cst_71 [2] : vector<1x16x64xf32> to vector<1x16xf32>
    %260 = vector.shape_cast %259 : vector<1x16xf32> to vector<1x16x1xf32>
    %cst_72 = arith.constant 9.99999971E-10 : f32
    %261 = vector.broadcast %cst_72 : f32 to vector<1x16x1xf32>
    %262 = arith.addf %261, %260 : vector<1x16x1xf32>
    %263 = tpu.reciprocal %262 {approx = true} : vector<1x16x1xf32> -> vector<1x16x1xf32>
    %264 = vector.broadcast %263 : vector<1x16x1xf32> to vector<1x16x64xf32>
    %265 = arith.mulf %258, %264 : vector<1x16x64xf32>
    %266 = tpu.concatenate %241, %249, %257, %265 in 2 : vector<1x16x64xf32>, vector<1x16x64xf32>, vector<1x16x64xf32>, vector<1x16x64xf32> -> vector<1x16x256xf32>
    %267 = vector.shape_cast %266 : vector<1x16x256xf32> to vector<16x256xf32>
    %cst_73 = arith.constant dense<0.000000e+00> : vector<16x32xf32>
    %268 = tpu.matmul %267, %9, %cst_73 {dimension_numbers = #tpu.dot_dimension_numbers<[1], [0], [0], [1], [0, 0, 1, 1], [], []>} : vector<16x256xf32>, vector<256x32xf32>, vector<16x32xf32> -> vector<16x32xf32>
    %269 = vector.broadcast %10 : vector<1x32xf32> to vector<16x32xf32>
    %270 = arith.addf %268, %269 : vector<16x32xf32>
    %271 = vector.extract_strided_slice %6 {offsets = [0, 160], sizes = [16, 32], strides = [1, 1]} : vector<16x256xf32> to vector<16x32xf32>
    %cst_74 = arith.constant dense<0.000000e+00> : vector<16x256xf32>
    %272 = tpu.matmul %271, %7, %cst_74 {dimension_numbers = #tpu.dot_dimension_numbers<[1], [0], [0], [1], [0, 0, 1, 1], [], []>} : vector<16x32xf32>, vector<32x256xf32>, vector<16x256xf32> -> vector<16x256xf32>
    %273 = vector.broadcast %8 : vector<1x256xf32> to vector<16x256xf32>
    %274 = arith.addf %272, %273 : vector<16x256xf32>
    %275 = vector.shape_cast %274 : vector<16x256xf32> to vector<1x16x256xf32>
    %cst_75 = arith.constant dense<0xFF800000> : vector<1x256xf32>
    %276 = vector.multi_reduction <maximumf>, %275, %cst_75 [1] : vector<1x16x256xf32> to vector<1x256xf32>
    %277 = vector.shape_cast %276 : vector<1x256xf32> to vector<1x1x256xf32>
    %278 = vector.broadcast %277 : vector<1x1x256xf32> to vector<1x16x256xf32>
    %279 = arith.subf %275, %278 : vector<1x16x256xf32>
    %280 = math.exp %279 : vector<1x16x256xf32>
    %cst_76 = arith.constant dense<0.000000e+00> : vector<1x256xf32>
    %281 = vector.multi_reduction <add>, %280, %cst_76 [1] : vector<1x16x256xf32> to vector<1x256xf32>
    %282 = vector.shape_cast %281 : vector<1x256xf32> to vector<1x1x256xf32>
    %283 = tpu.reciprocal %282 {approx = true} : vector<1x1x256xf32> -> vector<1x1x256xf32>
    %284 = vector.broadcast %283 : vector<1x1x256xf32> to vector<1x16x256xf32>
    %285 = arith.mulf %280, %284 : vector<1x16x256xf32>
    %286 = vector.extract_strided_slice %285 {offsets = [0, 0, 0], sizes = [1, 16, 64], strides = [1, 1, 1]} : vector<1x16x256xf32> to vector<1x16x64xf32>
    %cst_77 = arith.constant dense<0.000000e+00> : vector<1x16xf32>
    %287 = vector.multi_reduction <add>, %286, %cst_77 [2] : vector<1x16x64xf32> to vector<1x16xf32>
    %288 = vector.shape_cast %287 : vector<1x16xf32> to vector<1x16x1xf32>
    %cst_78 = arith.constant 9.99999971E-10 : f32
    %289 = vector.broadcast %cst_78 : f32 to vector<1x16x1xf32>
    %290 = arith.addf %289, %288 : vector<1x16x1xf32>
    %291 = tpu.reciprocal %290 {approx = true} : vector<1x16x1xf32> -> vector<1x16x1xf32>
    %292 = vector.broadcast %291 : vector<1x16x1xf32> to vector<1x16x64xf32>
    %293 = arith.mulf %286, %292 : vector<1x16x64xf32>
    %294 = vector.extract_strided_slice %285 {offsets = [0, 0, 64], sizes = [1, 16, 64], strides = [1, 1, 1]} : vector<1x16x256xf32> to vector<1x16x64xf32>
    %cst_79 = arith.constant dense<0.000000e+00> : vector<1x16xf32>
    %295 = vector.multi_reduction <add>, %294, %cst_79 [2] : vector<1x16x64xf32> to vector<1x16xf32>
    %296 = vector.shape_cast %295 : vector<1x16xf32> to vector<1x16x1xf32>
    %cst_80 = arith.constant 9.99999971E-10 : f32
    %297 = vector.broadcast %cst_80 : f32 to vector<1x16x1xf32>
    %298 = arith.addf %297, %296 : vector<1x16x1xf32>
    %299 = tpu.reciprocal %298 {approx = true} : vector<1x16x1xf32> -> vector<1x16x1xf32>
    %300 = vector.broadcast %299 : vector<1x16x1xf32> to vector<1x16x64xf32>
    %301 = arith.mulf %294, %300 : vector<1x16x64xf32>
    %302 = vector.extract_strided_slice %285 {offsets = [0, 0, 128], sizes = [1, 16, 64], strides = [1, 1, 1]} : vector<1x16x256xf32> to vector<1x16x64xf32>
    %cst_81 = arith.constant dense<0.000000e+00> : vector<1x16xf32>
    %303 = vector.multi_reduction <add>, %302, %cst_81 [2] : vector<1x16x64xf32> to vector<1x16xf32>
    %304 = vector.shape_cast %303 : vector<1x16xf32> to vector<1x16x1xf32>
    %cst_82 = arith.constant 9.99999971E-10 : f32
    %305 = vector.broadcast %cst_82 : f32 to vector<1x16x1xf32>
    %306 = arith.addf %305, %304 : vector<1x16x1xf32>
    %307 = tpu.reciprocal %306 {approx = true} : vector<1x16x1xf32> -> vector<1x16x1xf32>
    %308 = vector.broadcast %307 : vector<1x16x1xf32> to vector<1x16x64xf32>
    %309 = arith.mulf %302, %308 : vector<1x16x64xf32>
    %310 = vector.extract_strided_slice %285 {offsets = [0, 0, 192], sizes = [1, 16, 64], strides = [1, 1, 1]} : vector<1x16x256xf32> to vector<1x16x64xf32>
    %cst_83 = arith.constant dense<0.000000e+00> : vector<1x16xf32>
    %311 = vector.multi_reduction <add>, %310, %cst_83 [2] : vector<1x16x64xf32> to vector<1x16xf32>
    %312 = vector.shape_cast %311 : vector<1x16xf32> to vector<1x16x1xf32>
    %cst_84 = arith.constant 9.99999971E-10 : f32
    %313 = vector.broadcast %cst_84 : f32 to vector<1x16x1xf32>
    %314 = arith.addf %313, %312 : vector<1x16x1xf32>
    %315 = tpu.reciprocal %314 {approx = true} : vector<1x16x1xf32> -> vector<1x16x1xf32>
    %316 = vector.broadcast %315 : vector<1x16x1xf32> to vector<1x16x64xf32>
    %317 = arith.mulf %310, %316 : vector<1x16x64xf32>
    %318 = tpu.concatenate %293, %301, %309, %317 in 2 : vector<1x16x64xf32>, vector<1x16x64xf32>, vector<1x16x64xf32>, vector<1x16x64xf32> -> vector<1x16x256xf32>
    %319 = vector.shape_cast %318 : vector<1x16x256xf32> to vector<16x256xf32>
    %cst_85 = arith.constant dense<0.000000e+00> : vector<16x32xf32>
    %320 = tpu.matmul %319, %9, %cst_85 {dimension_numbers = #tpu.dot_dimension_numbers<[1], [0], [0], [1], [0, 0, 1, 1], [], []>} : vector<16x256xf32>, vector<256x32xf32>, vector<16x32xf32> -> vector<16x32xf32>
    %321 = vector.broadcast %10 : vector<1x32xf32> to vector<16x32xf32>
    %322 = arith.addf %320, %321 : vector<16x32xf32>
    %323 = vector.extract_strided_slice %6 {offsets = [0, 192], sizes = [16, 32], strides = [1, 1]} : vector<16x256xf32> to vector<16x32xf32>
    %cst_86 = arith.constant dense<0.000000e+00> : vector<16x256xf32>
    %324 = tpu.matmul %323, %7, %cst_86 {dimension_numbers = #tpu.dot_dimension_numbers<[1], [0], [0], [1], [0, 0, 1, 1], [], []>} : vector<16x32xf32>, vector<32x256xf32>, vector<16x256xf32> -> vector<16x256xf32>
    %325 = vector.broadcast %8 : vector<1x256xf32> to vector<16x256xf32>
    %326 = arith.addf %324, %325 : vector<16x256xf32>
    %327 = vector.shape_cast %326 : vector<16x256xf32> to vector<1x16x256xf32>
    %cst_87 = arith.constant dense<0xFF800000> : vector<1x256xf32>
    %328 = vector.multi_reduction <maximumf>, %327, %cst_87 [1] : vector<1x16x256xf32> to vector<1x256xf32>
    %329 = vector.shape_cast %328 : vector<1x256xf32> to vector<1x1x256xf32>
    %330 = vector.broadcast %329 : vector<1x1x256xf32> to vector<1x16x256xf32>
    %331 = arith.subf %327, %330 : vector<1x16x256xf32>
    %332 = math.exp %331 : vector<1x16x256xf32>
    %cst_88 = arith.constant dense<0.000000e+00> : vector<1x256xf32>
    %333 = vector.multi_reduction <add>, %332, %cst_88 [1] : vector<1x16x256xf32> to vector<1x256xf32>
    %334 = vector.shape_cast %333 : vector<1x256xf32> to vector<1x1x256xf32>
    %335 = tpu.reciprocal %334 {approx = true} : vector<1x1x256xf32> -> vector<1x1x256xf32>
    %336 = vector.broadcast %335 : vector<1x1x256xf32> to vector<1x16x256xf32>
    %337 = arith.mulf %332, %336 : vector<1x16x256xf32>
    %338 = vector.extract_strided_slice %337 {offsets = [0, 0, 0], sizes = [1, 16, 64], strides = [1, 1, 1]} : vector<1x16x256xf32> to vector<1x16x64xf32>
    %cst_89 = arith.constant dense<0.000000e+00> : vector<1x16xf32>
    %339 = vector.multi_reduction <add>, %338, %cst_89 [2] : vector<1x16x64xf32> to vector<1x16xf32>
    %340 = vector.shape_cast %339 : vector<1x16xf32> to vector<1x16x1xf32>
    %cst_90 = arith.constant 9.99999971E-10 : f32
    %341 = vector.broadcast %cst_90 : f32 to vector<1x16x1xf32>
    %342 = arith.addf %341, %340 : vector<1x16x1xf32>
    %343 = tpu.reciprocal %342 {approx = true} : vector<1x16x1xf32> -> vector<1x16x1xf32>
    %344 = vector.broadcast %343 : vector<1x16x1xf32> to vector<1x16x64xf32>
    %345 = arith.mulf %338, %344 : vector<1x16x64xf32>
    %346 = vector.extract_strided_slice %337 {offsets = [0, 0, 64], sizes = [1, 16, 64], strides = [1, 1, 1]} : vector<1x16x256xf32> to vector<1x16x64xf32>
    %cst_91 = arith.constant dense<0.000000e+00> : vector<1x16xf32>
    %347 = vector.multi_reduction <add>, %346, %cst_91 [2] : vector<1x16x64xf32> to vector<1x16xf32>
    %348 = vector.shape_cast %347 : vector<1x16xf32> to vector<1x16x1xf32>
    %cst_92 = arith.constant 9.99999971E-10 : f32
    %349 = vector.broadcast %cst_92 : f32 to vector<1x16x1xf32>
    %350 = arith.addf %349, %348 : vector<1x16x1xf32>
    %351 = tpu.reciprocal %350 {approx = true} : vector<1x16x1xf32> -> vector<1x16x1xf32>
    %352 = vector.broadcast %351 : vector<1x16x1xf32> to vector<1x16x64xf32>
    %353 = arith.mulf %346, %352 : vector<1x16x64xf32>
    %354 = vector.extract_strided_slice %337 {offsets = [0, 0, 128], sizes = [1, 16, 64], strides = [1, 1, 1]} : vector<1x16x256xf32> to vector<1x16x64xf32>
    %cst_93 = arith.constant dense<0.000000e+00> : vector<1x16xf32>
    %355 = vector.multi_reduction <add>, %354, %cst_93 [2] : vector<1x16x64xf32> to vector<1x16xf32>
    %356 = vector.shape_cast %355 : vector<1x16xf32> to vector<1x16x1xf32>
    %cst_94 = arith.constant 9.99999971E-10 : f32
    %357 = vector.broadcast %cst_94 : f32 to vector<1x16x1xf32>
    %358 = arith.addf %357, %356 : vector<1x16x1xf32>
    %359 = tpu.reciprocal %358 {approx = true} : vector<1x16x1xf32> -> vector<1x16x1xf32>
    %360 = vector.broadcast %359 : vector<1x16x1xf32> to vector<1x16x64xf32>
    %361 = arith.mulf %354, %360 : vector<1x16x64xf32>
    %362 = vector.extract_strided_slice %337 {offsets = [0, 0, 192], sizes = [1, 16, 64], strides = [1, 1, 1]} : vector<1x16x256xf32> to vector<1x16x64xf32>
    %cst_95 = arith.constant dense<0.000000e+00> : vector<1x16xf32>
    %363 = vector.multi_reduction <add>, %362, %cst_95 [2] : vector<1x16x64xf32> to vector<1x16xf32>
    %364 = vector.shape_cast %363 : vector<1x16xf32> to vector<1x16x1xf32>
    %cst_96 = arith.constant 9.99999971E-10 : f32
    %365 = vector.broadcast %cst_96 : f32 to vector<1x16x1xf32>
    %366 = arith.addf %365, %364 : vector<1x16x1xf32>
    %367 = tpu.reciprocal %366 {approx = true} : vector<1x16x1xf32> -> vector<1x16x1xf32>
    %368 = vector.broadcast %367 : vector<1x16x1xf32> to vector<1x16x64xf32>
    %369 = arith.mulf %362, %368 : vector<1x16x64xf32>
    %370 = tpu.concatenate %345, %353, %361, %369 in 2 : vector<1x16x64xf32>, vector<1x16x64xf32>, vector<1x16x64xf32>, vector<1x16x64xf32> -> vector<1x16x256xf32>
    %371 = vector.shape_cast %370 : vector<1x16x256xf32> to vector<16x256xf32>
    %cst_97 = arith.constant dense<0.000000e+00> : vector<16x32xf32>
    %372 = tpu.matmul %371, %9, %cst_97 {dimension_numbers = #tpu.dot_dimension_numbers<[1], [0], [0], [1], [0, 0, 1, 1], [], []>} : vector<16x256xf32>, vector<256x32xf32>, vector<16x32xf32> -> vector<16x32xf32>
    %373 = vector.broadcast %10 : vector<1x32xf32> to vector<16x32xf32>
    %374 = arith.addf %372, %373 : vector<16x32xf32>
    %375 = vector.extract_strided_slice %6 {offsets = [0, 224], sizes = [16, 32], strides = [1, 1]} : vector<16x256xf32> to vector<16x32xf32>
    %cst_98 = arith.constant dense<0.000000e+00> : vector<16x256xf32>
    %376 = tpu.matmul %375, %7, %cst_98 {dimension_numbers = #tpu.dot_dimension_numbers<[1], [0], [0], [1], [0, 0, 1, 1], [], []>} : vector<16x32xf32>, vector<32x256xf32>, vector<16x256xf32> -> vector<16x256xf32>
    %377 = vector.broadcast %8 : vector<1x256xf32> to vector<16x256xf32>
    %378 = arith.addf %376, %377 : vector<16x256xf32>
    %379 = vector.shape_cast %378 : vector<16x256xf32> to vector<1x16x256xf32>
    %cst_99 = arith.constant dense<0xFF800000> : vector<1x256xf32>
    %380 = vector.multi_reduction <maximumf>, %379, %cst_99 [1] : vector<1x16x256xf32> to vector<1x256xf32>
    %381 = vector.shape_cast %380 : vector<1x256xf32> to vector<1x1x256xf32>
    %382 = vector.broadcast %381 : vector<1x1x256xf32> to vector<1x16x256xf32>
    %383 = arith.subf %379, %382 : vector<1x16x256xf32>
    %384 = math.exp %383 : vector<1x16x256xf32>
    %cst_100 = arith.constant dense<0.000000e+00> : vector<1x256xf32>
    %385 = vector.multi_reduction <add>, %384, %cst_100 [1] : vector<1x16x256xf32> to vector<1x256xf32>
    %386 = vector.shape_cast %385 : vector<1x256xf32> to vector<1x1x256xf32>
    %387 = tpu.reciprocal %386 {approx = true} : vector<1x1x256xf32> -> vector<1x1x256xf32>
    %388 = vector.broadcast %387 : vector<1x1x256xf32> to vector<1x16x256xf32>
    %389 = arith.mulf %384, %388 : vector<1x16x256xf32>
    %390 = vector.extract_strided_slice %389 {offsets = [0, 0, 0], sizes = [1, 16, 64], strides = [1, 1, 1]} : vector<1x16x256xf32> to vector<1x16x64xf32>
    %cst_101 = arith.constant dense<0.000000e+00> : vector<1x16xf32>
    %391 = vector.multi_reduction <add>, %390, %cst_101 [2] : vector<1x16x64xf32> to vector<1x16xf32>
    %392 = vector.shape_cast %391 : vector<1x16xf32> to vector<1x16x1xf32>
    %cst_102 = arith.constant 9.99999971E-10 : f32
    %393 = vector.broadcast %cst_102 : f32 to vector<1x16x1xf32>
    %394 = arith.addf %393, %392 : vector<1x16x1xf32>
    %395 = tpu.reciprocal %394 {approx = true} : vector<1x16x1xf32> -> vector<1x16x1xf32>
    %396 = vector.broadcast %395 : vector<1x16x1xf32> to vector<1x16x64xf32>
    %397 = arith.mulf %390, %396 : vector<1x16x64xf32>
    %398 = vector.extract_strided_slice %389 {offsets = [0, 0, 64], sizes = [1, 16, 64], strides = [1, 1, 1]} : vector<1x16x256xf32> to vector<1x16x64xf32>
    %cst_103 = arith.constant dense<0.000000e+00> : vector<1x16xf32>
    %399 = vector.multi_reduction <add>, %398, %cst_103 [2] : vector<1x16x64xf32> to vector<1x16xf32>
    %400 = vector.shape_cast %399 : vector<1x16xf32> to vector<1x16x1xf32>
    %cst_104 = arith.constant 9.99999971E-10 : f32
    %401 = vector.broadcast %cst_104 : f32 to vector<1x16x1xf32>
    %402 = arith.addf %401, %400 : vector<1x16x1xf32>
    %403 = tpu.reciprocal %402 {approx = true} : vector<1x16x1xf32> -> vector<1x16x1xf32>
    %404 = vector.broadcast %403 : vector<1x16x1xf32> to vector<1x16x64xf32>
    %405 = arith.mulf %398, %404 : vector<1x16x64xf32>
    %406 = vector.extract_strided_slice %389 {offsets = [0, 0, 128], sizes = [1, 16, 64], strides = [1, 1, 1]} : vector<1x16x256xf32> to vector<1x16x64xf32>
    %cst_105 = arith.constant dense<0.000000e+00> : vector<1x16xf32>
    %407 = vector.multi_reduction <add>, %406, %cst_105 [2] : vector<1x16x64xf32> to vector<1x16xf32>
    %408 = vector.shape_cast %407 : vector<1x16xf32> to vector<1x16x1xf32>
    %cst_106 = arith.constant 9.99999971E-10 : f32
    %409 = vector.broadcast %cst_106 : f32 to vector<1x16x1xf32>
    %410 = arith.addf %409, %408 : vector<1x16x1xf32>
    %411 = tpu.reciprocal %410 {approx = true} : vector<1x16x1xf32> -> vector<1x16x1xf32>
    %412 = vector.broadcast %411 : vector<1x16x1xf32> to vector<1x16x64xf32>
    %413 = arith.mulf %406, %412 : vector<1x16x64xf32>
    %414 = vector.extract_strided_slice %389 {offsets = [0, 0, 192], sizes = [1, 16, 64], strides = [1, 1, 1]} : vector<1x16x256xf32> to vector<1x16x64xf32>
    %cst_107 = arith.constant dense<0.000000e+00> : vector<1x16xf32>
    %415 = vector.multi_reduction <add>, %414, %cst_107 [2] : vector<1x16x64xf32> to vector<1x16xf32>
    %416 = vector.shape_cast %415 : vector<1x16xf32> to vector<1x16x1xf32>
    %cst_108 = arith.constant 9.99999971E-10 : f32
    %417 = vector.broadcast %cst_108 : f32 to vector<1x16x1xf32>
    %418 = arith.addf %417, %416 : vector<1x16x1xf32>
    %419 = tpu.reciprocal %418 {approx = true} : vector<1x16x1xf32> -> vector<1x16x1xf32>
    %420 = vector.broadcast %419 : vector<1x16x1xf32> to vector<1x16x64xf32>
    %421 = arith.mulf %414, %420 : vector<1x16x64xf32>
    %422 = tpu.concatenate %397, %405, %413, %421 in 2 : vector<1x16x64xf32>, vector<1x16x64xf32>, vector<1x16x64xf32>, vector<1x16x64xf32> -> vector<1x16x256xf32>
    %423 = vector.shape_cast %422 : vector<1x16x256xf32> to vector<16x256xf32>
    %cst_109 = arith.constant dense<0.000000e+00> : vector<16x32xf32>
    %424 = tpu.matmul %423, %9, %cst_109 {dimension_numbers = #tpu.dot_dimension_numbers<[1], [0], [0], [1], [0, 0, 1, 1], [], []>} : vector<16x256xf32>, vector<256x32xf32>, vector<16x32xf32> -> vector<16x32xf32>
    %425 = vector.broadcast %10 : vector<1x32xf32> to vector<16x32xf32>
    %426 = arith.addf %424, %425 : vector<16x32xf32>
    %427 = tpu.concatenate %62, %114, %166, %218, %270, %322, %374, %426 in 1 : vector<16x32xf32>, vector<16x32xf32>, vector<16x32xf32>, vector<16x32xf32>, vector<16x32xf32>, vector<16x32xf32>, vector<16x32xf32>, vector<16x32xf32> -> vector<16x256xf32>
    %c0_110 = arith.constant 0 : index
    %c0_111 = arith.constant 0 : index
    %428 = vector.load %arg8[%c0_110, %c0_111] : memref<256x64xf32, #tpu.memory_space<vmem>>, vector<256x64xf32>
    %cst_112 = arith.constant dense<0.000000e+00> : vector<16x64xf32>
    %429 = tpu.matmul %427, %428, %cst_112 {dimension_numbers = #tpu.dot_dimension_numbers<[1], [0], [0], [1], [0, 0, 1, 1], [], []>} : vector<16x256xf32>, vector<256x64xf32>, vector<16x64xf32> -> vector<16x64xf32>
    %c0_113 = arith.constant 0 : index
    %c0_114 = arith.constant 0 : index
    %430 = vector.load %arg9[%c0_113, %c0_114] : memref<1x64xf32, #tpu.memory_space<vmem>>, vector<1x64xf32>
    %431 = vector.broadcast %430 : vector<1x64xf32> to vector<16x64xf32>
    %432 = arith.addf %429, %431 : vector<16x64xf32>
    %433 = vector.shape_cast %432 : vector<16x64xf32> to vector<1x16x64xf32>
    %c0_115 = arith.constant 0 : index
    %c0_116 = arith.constant 0 : index
    %c0_117 = arith.constant 0 : index
    %434 = vector.load %arg10[%c0_115, %c0_116, %c0_117] : memref<1x16x64xf32, #tpu.memory_space<vmem>>, vector<1x16x64xf32>
    tpu.vector_store %arg10[%c0_115, %c0_116, %c0_117], %433 {strides = array<i32>} : memref<1x16x64xf32, #tpu.memory_space<vmem>>, vector<1x16x64xf32>,
    return
  }
  func.func @transform_0(%arg0: i32) -> (i32, i32, i32) {
    %c0_i32 = arith.constant 0 : i32
    %c0_i32_0 = arith.constant 0 : i32
    %c0_i32_1 = arith.constant 0 : i32
    return %arg0, %c0_i32, %c0_i32_0 : i32, i32, i32
  }
  func.func @transform_1(%arg0: i32) -> (i32, i32) {
    %c0_i32 = arith.constant 0 : i32
    %c0_i32_0 = arith.constant 0 : i32
    %c0_i32_1 = arith.constant 0 : i32
    return %c0_i32, %c0_i32_0 : i32, i32
  }
  func.func @transform_2(%arg0: i32) -> (i32, i32) {
    %c0_i32 = arith.constant 0 : i32
    %c0_i32_0 = arith.constant 0 : i32
    %c0_i32_1 = arith.constant 0 : i32
    return %c0_i32, %c0_i32_0 : i32, i32
  }
  func.func @transform_3(%arg0: i32) -> (i32, i32) {
    %c0_i32 = arith.constant 0 : i32
    %c0_i32_0 = arith.constant 0 : i32
    %c0_i32_1 = arith.constant 0 : i32
    return %c0_i32, %c0_i32_0 : i32, i32
  }
  func.func @transform_4(%arg0: i32) -> (i32, i32) {
    %c0_i32 = arith.constant 0 : i32
    %c0_i32_0 = arith.constant 0 : i32
    %c0_i32_1 = arith.constant 0 : i32
    return %c0_i32, %c0_i32_0 : i32, i32
  }
  func.func @transform_5(%arg0: i32) -> (i32, i32) {
    %c0_i32 = arith.constant 0 : i32
    %c0_i32_0 = arith.constant 0 : i32
    %c0_i32_1 = arith.constant 0 : i32
    return %c0_i32, %c0_i32_0 : i32, i32
  }
  func.func @transform_6(%arg0: i32) -> (i32, i32) {
    %c0_i32 = arith.constant 0 : i32
    %c0_i32_0 = arith.constant 0 : i32
    %c0_i32_1 = arith.constant 0 : i32
    return %c0_i32, %c0_i32_0 : i32, i32
  }
  func.func @transform_7(%arg0: i32) -> (i32, i32) {
    %c0_i32 = arith.constant 0 : i32
    %c0_i32_0 = arith.constant 0 : i32
    %c0_i32_1 = arith.constant 0 : i32
    return %c0_i32, %c0_i32_0 : i32, i32
  }
  func.func @transform_8(%arg0: i32) -> (i32, i32) {
    %c0_i32 = arith.constant 0 : i32
    %c0_i32_0 = arith.constant 0 : i32
    %c0_i32_1 = arith.constant 0 : i32
    return %c0_i32, %c0_i32_0 : i32, i32
  }
  func.func @transform_9(%arg0: i32) -> (i32, i32, i32) {
    %c0_i32 = arith.constant 0 : i32
    %c0_i32_0 = arith.constant 0 : i32
    %c0_i32_1 = arith.constant 0 : i32
    return %arg0, %c0_i32, %c0_i32_0 : i32, i32, i32
  }
}

</mosaic_0001>

<bundles_post_ra>
// kernel: tpu_custom_call.1
= control target key start
LH: loop header
LB: loop body
LE: loop exit
PB: predicated region body
PF: predicated region fallthrough
CT: control target
= control target key end

     0   :  { %14 = vsyncpa [#allocation3], 0  ;;  %s4440_s0 = inlined_call_operand.vmem [shape: f32[2,16,64], index: 0, kind: input, shape index: {}]   ;;  %s4441_s1 = inlined_call_operand.vmem [shape: f32[64,256], index: 1, kind: input, shape index: {}]   ;;  %s4442_s2 = inlined_call_operand.vmem [shape: f32[1,256], index: 2, kind: input, shape index: {}]   ;;  %s4443_s3 = inlined_call_operand.vmem [shape: f32[32,256], index: 3, kind: input, shape index: {}]   ;;  %s4444_s4 = inlined_call_operand.vmem [shape: f32[1,256], index: 4, kind: input, shape index: {}]   ;;  %s4445_s5 = inlined_call_operand.vmem [shape: f32[256,32], index: 5, kind: input, shape index: {}]   ;;  %s4446_s6 = inlined_call_operand.vmem [shape: f32[1,32], index: 6, kind: input, shape index: {}]   ;;  %s4447_s7 = inlined_call_operand.vmem [shape: f32[256,64], index: 7, kind: input, shape index: {}]   ;;  %s4448_s8 = inlined_call_operand.vmem [shape: f32[1,64], index: 8, kind: input, shape index: {}]   ;;  %s4449_s9 = inlined_call_operand.hbm [shape: f32[2,16,64], index: 9, kind: output, shape index: {}]  }
   0x1   :  { %16 = vsyncpa [#allocation3 + $0x1], 0  ;;  %s2896_s30 = smov 0   ;;  %s2898_s10 = smov 0  }
   0x2   :  { %s2900_s11 = smov 0   ;;  %s2902_s12 = smov 0  }
   0x3 LB: > { %s2917_s13 = sadd.s32 4294967295, %s2839_s12   ;;  %s2390_s14 = sadd.s32 4294967294, %s2839_s12   ;;  %s2839_s12 = sphi %s2902_s12, %s4506_s12   ;;  %s2835_s11 = sphi %s2900_s11, %s4505_s11   ;;  %s2831_s10 = sphi %s2898_s10, %s4504_s10   ;;  %s2827_s30 = sphi %s2896_s30, %s4503_s30  }
   0x4   : > { %s2921_s15 = sadd.s32 1, %s2839_s12   ;;  %s223_s16 = sadd.s32 1, %s2835_s11 }
   0x5   : > { %s220_s17 = ssub.s32 %s2839_s12, %s2921_s15  ;;  %p233_p0 = scmp.ne.s32.totalorder %s2835_s11, %s2831_s10 }
   0x6   : > { %p221_p1 = scmp.eq.s32.totalorder %s220_s17, 0  ;;  %p234_p2 = scmp.eq.s32.totalorder %s2917_s13, 1 }
   0x7   : > { %p239_p3 = scmp.ne.s32.totalorder %s2831_s10, %s2827_s30  ;;  %p240_p4 = scmp.eq.s32.totalorder %s2390_s14, 1 }
   0x8   : > { %s2932_s18 = scalar_select %p221_p1, %s2835_s11, %s223_s16  }
   0x9   : > { %p2934_p5 = por %p234_p2, %p233_p0  ;;  %p2938_p6 = por %p240_p4, %p239_p3 }
   0xa   : > { %p2393_p7 = scmp.ge.s32.totalorder %s2839_s12, 1  ;;  %p290_p8 = scmp.lt.s32.totalorder %s2839_s12, 3 }
   0xc   : > { %p291_p9 = pnand %p2393_p7, %p290_p8 }
   0xe   : > { %294 = sbr.rel (%p291_p9) target bundleno = 2512 (0x9d0), region = 56 }
  0x13   : > { %v347_v0 = vld [vmem:[%s4441_s1 + $0x70] sm:$0xff]  ;;  %v345_v1 = vld [vmem:[%s4441_s1 + $0x60] sm:$0xff]  ;;  %p326_p10 = scmp.lt.s32.totalorder %s2917_s13, 1  ;;  %v2964_v4 = vld [vmem:[%s4443_s3 + $0x38] sm:$0xff]  ;;  %vm355_vm0 = vcmask 523264   ;;  %vm455_vm1 = vcmask 261120  }
  0x14   : > { %370 = vmatpush.msra.mxu0 %v347_v0  ;;  %v343_v2 = vld [vmem:[%s4441_s1 + $0x50] sm:$0xff]  ;;  %v2969_v5 = vld [vmem:[%s4443_s3 + $0x20] sm:$0xff]  ;;  %v2974_v6 = vld [vmem:[%s4443_s3 + $0x28] sm:$0xff]  ;;  %497 = vmatpush.msra.mxu3 %v2964_v4  ;;  %s2842_s14 = smov 64   ;;  %vm2219_vm2 = vcmask 785408   ;;  %s2439_s25 = sshll.u32 %s2917_s13, 4 }
  0x15   : > { %v2957_v3 = vld [vmem:[%s4443_s3 + $0x30] sm:$0xff]  ;;  %s327_s29 = scalar_select %p326_p10, %s2917_s13, 1  ;;  %v341_v7 = vld [vmem:[%s4441_s1 + $0x40] sm:$0xff]  ;;  %v3009_v15 = vld [vmem:[%s4443_s3 + $0x18] sm:$0xff] }
  0x16   : > { %371 = vmatpush.msra.mxu0 %v345_v1  ;;  %474 = vmatpush.msra.mxu2 %v2957_v3  ;;  %v339_v8 = vld [vmem:[%s4441_s1 + $0x30] sm:$0xff]  ;;  %v337_v9 = vld [vmem:[%s4441_s1 + $0x20] sm:$0xff]  ;;  %v3021_v17 = vld [vmem:[%s4443_s3 + $0x8] sm:$0xff]  ;;  %s2324_s16 = scalar_lea.hbm %s4449_s9, %s2439_s25  ;;  %s2797_s25 = scalar_lea.hbm %s4449_s9, 32 }
  0x17   : > { %498 = vmatpush.msra.mxu3 %v2974_v6  ;;  %s2438_s28 = sshll.u32 %s327_s29, 4  ;;  %v335_v10 = vld [vmem:[%s4441_s1 + $0x10] sm:$0xff]  ;;  %v333_v11 = vld [vmem:[%s4441_s1] sm:$0xff]  ;;  %v348_v18 = vld [vmem:[%s4441_s1 + $0x78] sm:$0xff]  ;;  %s2843_s29 = smov 32  }
  0x18   : > { %372 = vmatpush.msra.mxu0 %v343_v2  ;;  %475 = vmatpush.msra.mxu2 %v2969_v5  ;;  %s330_s24 = scalar_lea.vmem %s4440_s0, %s2438_s28  ;;  %v3004_v14 = vld [vmem:[%s4443_s3 + $0x10] sm:$0xff]  ;;  %v3016_v16 = vld [vmem:[%s4443_s3] sm:$0xff]  ;;  %v346_v19 = vld [vmem:[%s4441_s1 + $0x68] sm:$0xff]  ;;  %s2841_s28 = smov 96  }
  0x19   : > { %v331_v12 = vld [vmem:[%s330_s24] sm:$0xff]  ;;  %v332_v13 = vld [vmem:[%s330_s24 + $0x8] sm:$0xff]  ;;  %499 = vmatpush.msra.mxu3 %v3009_v15  ;;  %393 = vmatpush.msra.mxu1 %v348_v18  ;;  %v344_v20 = vld [vmem:[%s4441_s1 + $0x58] sm:$0xff] }
  0x1a   : > { %373 = vmatpush.msra.mxu0 %v341_v7  ;;  %476 = vmatpush.msra.mxu2 %v3004_v14  ;;  %v342_v21 = vld [vmem:[%s4441_s1 + $0x48] sm:$0xff]  ;;  %v340_v22 = vld [vmem:[%s4441_s1 + $0x38] sm:$0xff]  ;;  %v349_v23 = vld [vmem:[%s4442_s2] sm:$0x3] }
  0x1b   : > { %500 = vmatpush.msra.mxu3 %v3021_v17  ;;  %394 = vmatpush.msra.mxu1 %v346_v19  ;;  %v338_v24 = vld [vmem:[%s4441_s1 + $0x28] sm:$0xff]  ;;  %v351_v25 = vperm.slane %v349_v23, 0  ;;  %v336_v26 = vld [vmem:[%s4441_s1 + $0x18] sm:$0xff]  ;;  %v416_v36 = vld [vmem:[%s4444_s4] sm:$0x3] }
  0x1c   : > { %374 = vmatpush.msra.mxu0 %v339_v8  ;;  %477 = vmatpush.msra.mxu2 %v3016_v16  ;;  %v334_v27 = vld [vmem:[%s4441_s1 + $0x8] sm:$0xff]  ;;  %v3085_v37 = vperm.slane %v416_v36, 0  ;;  %v3087_v38 = vperm.slane %v416_v36, 1 }
  0x1d   : > { %395 = vmatpush.msra.mxu1 %v344_v20 }
  0x1e   : > { %375 = vmatpush.msra.mxu0 %v337_v9  ;;  %4469 = vst [vmem:[#allocation5_spill] sm:$0xff] %v3085_v37 }
  0x1f   : > { %396 = vmatpush.msra.mxu1 %v342_v21  ;;  %4470 = vst [vmem:[#allocation6_spill] sm:$0xff] %v3087_v38 }
  0x20   : > { %376 = vmatpush.msra.mxu0 %v335_v10 }
  0x21   : > { %397 = vmatpush.msra.mxu1 %v340_v22 }
  0x22   : > { %377 = vmatpush.msra.mxu0 %v333_v11 }
  0x23   : > { %2397 = vmatmul.msk.f32.vlgmr.msra.gmra.mxu0 %vm355_vm0, %v331_v12  ;;  %398 = vmatpush.msra.mxu1 %v338_v24 }
  0x24   : > { %691 = vmatpush.msrb.mxu0 %v2957_v3 }
  0x25   : > { %399 = vmatpush.msra.mxu1 %v336_v26 }
  0x26   : > { %692 = vmatpush.msrb.mxu0 %v2969_v5 }
  0x27   : > { %400 = vmatpush.msra.mxu1 %v334_v27 }
  0x28   : > { %693 = vmatpush.msrb.mxu0 %v3004_v14  ;;  %2399 = vmatmul.msk.f32.vlgmr.msra.gmra.mxu1 %vm355_vm0, %v331_v12 }
  0x29   : > { %714 = vmatpush.msrb.mxu1 %v2964_v4 }
  0x2a   : > { %694 = vmatpush.msrb.mxu0 %v3016_v16 }
  0x2b   : > { %2398 = vmatmul.msk.f32.gmra.mxu0 %vm355_vm0, %v332_v13  ;;  %715 = vmatpush.msrb.mxu1 %v2974_v6 }
  0x2d   : > { %716 = vmatpush.msrb.mxu1 %v3009_v15 }
  0x2f   : > { %717 = vmatpush.msrb.mxu1 %v3021_v17 }
  0x30   : > { %2400 = vmatmul.msk.f32.gmra.mxu1 %vm355_vm0, %v332_v13 }
  0xa0   : > { %v379_v28 = vpop.f32.mrf.mxu0 }
  0xa1   : > { %v3054_v29 = vadd.f32 %v379_v28, %v351_v25 }
  0xa3   : > { %671 = vrot.lane.b32.xlu0 %v3054_v29, %s2841_s28  ;;  %2401 = vmatmul.msk.f32.vlgmr.msra.gmra.mxu2 %vm455_vm1, %v3054_v29 }
  0xa4   : > { %2403 = vmatmul.msk.f32.vlgmr.msra.gmra.mxu3 %vm455_vm1, %v3054_v29 }
  0xa8   : > { %v382_v30 = vpop.f32.mrf.mxu0 }
  0xa9   : > { %v3065_v31 = vadd.f32 %v382_v30, %v351_v25 }
  0xab   : > { %673 = vrot.lane.b32.xlu0 %v3065_v31, %s2841_s28  ;;  %2402 = vmatmul.msk.f32.gmra.mxu2 %vm455_vm1, %v3065_v31 }
  0xac   : > { %2404 = vmatmul.msk.f32.gmra.mxu3 %vm455_vm1, %v3065_v31 }
  0xb3   : > { %885 = vrot.lane.b32.xlu0 %v3054_v29, %s2842_s14 }
 0x115   : > { %v672_v32 = vpop.permute.xlu0 %671 }
 0x116   : > { %2405 = vmatmul.msk.f32.vlgmr.msrb.gmra.mxu0 %vm455_vm1, %v672_v32  ;;  %2407 = vmatmul.msk.f32.vlgmr.msrb.gmra.mxu1 %vm455_vm1, %v672_v32 }
 0x11d   : > { %v674_v33 = vpop.permute.xlu0 %673 }
 0x11e   : > { %2406 = vmatmul.msk.f32.gmra.mxu0 %vm455_vm1, %v674_v33  ;;  %2408 = vmatmul.msk.f32.gmra.mxu1 %vm455_vm1, %v674_v33 }
 0x126   : > { %v479_v34 = vpop.f32.mrf.mxu2 }
 0x127   : > { %v502_v35 = vpop.f32.mrf.mxu3  ;;  %v480_v40 = vadd.f32 %v479_v34, %v3085_v37 }
 0x128   : > { %v503_v43 = vadd.f32 %v502_v35, %v3087_v38 }
 0x12e   : > { %v482_v39 = vpop.f32.mrf.mxu2 }
 0x12f   : > { %v483_v41 = vadd.f32 %v482_v39, %v3085_v37  ;;  %v505_v42 = vpop.f32.mrf.mxu3 }
 0x130   : > { %v506_v44 = vadd.f32 %v505_v42, %v3087_v38 }
 0x131   : > { %v508_v45 = vmax.f32 %v480_v40, %v483_v41 }
 0x132   : > { %v515_v46 = vmax.f32 %v503_v43, %v506_v44 }
 0x133   : > { %v509_v47 = vrot.slane %v508_v45, 4 }
 0x134   : > { %v516_v48 = vrot.slane %v515_v46, 4 }
 0x135   : > { %v510_v49 = vmax.f32 %v508_v45, %v509_v47 }
 0x136   : > { %v517_v50 = vmax.f32 %v515_v46, %v516_v48 }
 0x137   : > { %v511_v51 = vrot.slane %v510_v49, 2 }
 0x138   : > { %v518_v52 = vrot.slane %v517_v50, 2 }
 0x139   : > { %v512_v53 = vmax.f32 %v510_v49, %v511_v51 }
 0x13a   : > { %v519_v54 = vmax.f32 %v517_v50, %v518_v52 }
 0x13b   : > { %v513_v55 = vrot.slane %v512_v53, 1 }
 0x13c   : > { %v520_v56 = vrot.slane %v519_v54, 1 }
 0x13d   : > { %v514_v57 = vmax.f32 %v512_v53, %v513_v55 }
 0x13e   : > { %v521_v58 = vmax.f32 %v519_v54, %v520_v56 }
 0x13f   : > { %v522_v59 = vsub.f32 %v480_v40, %v514_v57  ;;  %v524_v60 = vsub.f32 %v483_v41, %v514_v57  ;;  %v3113_v41 = vpop.f32.mrf.mxu1 }
 0x140   : > { %v523_v61 = vsub.f32 %v503_v43, %v521_v58  ;;  %v525_v62 = vsub.f32 %v506_v44, %v521_v58  ;;  %4471 = vst [vmem:[#allocation7_spill] sm:$0xff] %v3113_v41 }
 0x141   : > { %v526_v63 = vmul.f32 1.442695, %v522_v59  ;;  %v530_v0 = vmul.f32 1.442695, %v524_v60 }
 0x142   : > { %v528_v1 = vmul.f32 1.442695, %v523_v61  ;;  %v532_v2 = vmul.f32 1.442695, %v525_v62 }
 0x143   : > { %2511 = vpow2.f32 %v526_v63 }
 0x144   : > { %2513 = vpow2.f32 %v530_v0 }
 0x145   : > { %2515 = vpow2.f32 %v528_v1 }
 0x146   : > { %2517 = vpow2.f32 %v532_v2 }
 0x147   : > { %v3115_v42 = vpop.f32.mrf.mxu1 }
 0x148   : > { %4472 = vst [vmem:[#allocation8_spill] sm:$0xff] %v3115_v42 }
 0x149   : > { %v2512_v7 = vpop.eup %2511 }
 0x14a   : > { %v2514_v8 = vpop.eup %2513 }
 0x14b   : > { %v2516_v9 = vpop.eup %2515  ;;  %v534_v10 = vadd.f32 %v2514_v8, %v2512_v7 }
 0x14c   : > { %v2518_v11 = vpop.eup %2517 }
 0x14d   : > { %v535_v12 = vrot.slane %v534_v10, 4  ;;  %v541_v13 = vadd.f32 %v2518_v11, %v2516_v9 }
 0x14f   : > { %v536_v18 = vadd.f32 %v535_v12, %v534_v10  ;;  %v542_v19 = vrot.slane %v541_v13, 4 }
 0x151   : > { %v537_v20 = vrot.slane %v536_v18, 2  ;;  %v543_v21 = vadd.f32 %v542_v19, %v541_v13 }
 0x153   : > { %v538_v22 = vadd.f32 %v537_v20, %v536_v18  ;;  %v544_v23 = vrot.slane %v543_v21, 2 }
 0x155   : > { %v539_v24 = vrot.slane %v538_v22, 1  ;;  %v545_v25 = vadd.f32 %v544_v23, %v543_v21 }
 0x157   : > { %v546_v26 = vrot.slane %v545_v25, 1  ;;  %v540_v27 = vadd.f32 %v539_v24, %v538_v22 }
 0x159   : > { %2519 = vrcp.f32 %v540_v27  ;;  %v547_v28 = vadd.f32 %v546_v26, %v545_v25 }
 0x15b   : > { %2521 = vrcp.f32 %v547_v28 }
 0x15f   : > { %v2520_v30 = vpop.eup %2519 }
 0x160   : > { %v3093_v32 = vmul.f32 %v2520_v30, %v2514_v8  ;;  %v3095_v33 = vmul.f32 %v2520_v30, %v2512_v7 }
 0x161   : > { %v2522_v34 = vpop.eup %2521 }
 0x162   : > { %570 = vrot.lane.b32.xlu2 %v3093_v32, %s2842_s14  ;;  %568 = vrot.lane.b32.xlu1 %v3095_v33, %s2842_s14  ;;  %v3101_v35 = vmul.f32 %v2522_v34, %v2516_v9  ;;  %v3105_v39 = vmul.f32 %v2522_v34, %v2518_v11  ;;  %v554_v45 = vsel %vm355_vm0, %v3095_v33, 0.0  ;;  %v557_v48 = vsel %vm355_vm0, %v3093_v32, 0.0 }
 0x164   : > { %v586_v36 = vsel %vm355_vm0, %v3101_v35, 0.0  ;;  %v589_v40 = vsel %vm355_vm0, %v3105_v39, 0.0 }
 0x165   : > { %587 = vadd.xlane.f32.xlu0 %v586_v36 }
 0x16a   : > { %602 = vrot.lane.b32.xlu2 %v3105_v39, %s2842_s14  ;;  %600 = vrot.lane.b32.xlu1 %v3101_v35, %s2842_s14 }
 0x16d   : > { %590 = vadd.xlane.f32.xlu0 %v589_v40 }
 0x193   : > { %v696_v43 = vpop.f32.mrf.mxu0  ;;  %v719_v44 = vpop.f32.mrf.mxu1 }
 0x194   : > { %555 = vadd.xlane.f32.xlu1 %v554_v45  ;;  %v697_v49 = vadd.f32 %v696_v43, %v3085_v37  ;;  %v720_v50 = vadd.f32 %v719_v44, %v3087_v38 }
 0x19b   : > { %v699_v46 = vpop.f32.mrf.mxu0  ;;  %v722_v47 = vpop.f32.mrf.mxu1 }
 0x19c   : > { %v700_v51 = vadd.f32 %v699_v46, %v3085_v37  ;;  %v723_v52 = vadd.f32 %v722_v47, %v3087_v38  ;;  %558 = vadd.xlane.f32.xlu1 %v557_v48 }
 0x19e   : > { %v725_v53 = vmax.f32 %v697_v49, %v700_v51  ;;  %v732_v54 = vmax.f32 %v720_v50, %v723_v52 }
 0x1a0   : > { %v726_v55 = vrot.slane %v725_v53, 4  ;;  %v733_v56 = vrot.slane %v732_v54, 4 }
 0x1a2   : > { %v727_v57 = vmax.f32 %v725_v53, %v726_v55  ;;  %v734_v58 = vmax.f32 %v732_v54, %v733_v56 }
 0x1a4   : > { %v728_v59 = vrot.slane %v727_v57, 2  ;;  %v735_v60 = vrot.slane %v734_v58, 2 }
 0x1a6   : > { %v729_v61 = vmax.f32 %v727_v57, %v728_v59  ;;  %v736_v62 = vmax.f32 %v734_v58, %v735_v60 }
 0x1a8   : > { %v730_v63 = vrot.slane %v729_v61, 1  ;;  %v737_v0 = vrot.slane %v736_v62, 1 }
 0x1aa   : > { %v731_v1 = vmax.f32 %v729_v61, %v730_v63  ;;  %v738_v2 = vmax.f32 %v736_v62, %v737_v0 }
 0x1ac   : > { %v739_v7 = vsub.f32 %v697_v49, %v731_v1  ;;  %v741_v8 = vsub.f32 %v700_v51, %v731_v1  ;;  %v740_v9 = vsub.f32 %v720_v50, %v738_v2  ;;  %v742_v10 = vsub.f32 %v723_v52, %v738_v2  ;;  %v3153_v1 = vpop.permute.xlu0 %885 }
 0x1ae   : > { %v743_v11 = vmul.f32 1.442695, %v739_v7  ;;  %v747_v12 = vmul.f32 1.442695, %v741_v8  ;;  %v745_v13 = vmul.f32 1.442695, %v740_v9 }
 0x1af   : > { %v749_v18 = vmul.f32 1.442695, %v742_v10  ;;  %v3164_v8 = vld [vmem:[%s4445_s5 + $0x78] sm:$0xff]  ;;  %v3169_v9 = vld [vmem:[%s4445_s5 + $0x70] sm:$0xff] }
 0x1b0   : > { %2523 = vpow2.f32 %v743_v11  ;;  %625 = vmatpush.msrb.mxu2 %v3164_v8  ;;  %v3175_v10 = vld [vmem:[%s4445_s5 + $0xf8] sm:$0xff]  ;;  %839 = vmatpush.msra.mxu0 %v3164_v8 }
 0x1b1   : > { %2525 = vpow2.f32 %v747_v12  ;;  %v3183_v12 = vld [vmem:[%s4445_s5 + $0x68] sm:$0xff]  ;;  %648 = vmatpush.msrb.mxu3 %v3175_v10  ;;  %862 = vmatpush.msra.mxu1 %v3175_v10 }
 0x1b2   : > { %2527 = vpow2.f32 %v745_v13  ;;  %v3189_v13 = vld [vmem:[%s4445_s5 + $0xf0] sm:$0xff]  ;;  %626 = vmatpush.msrb.mxu2 %v3169_v9  ;;  %840 = vmatpush.msra.mxu0 %v3169_v9 }
 0x1b3   : > { %2529 = vpow2.f32 %v749_v18  ;;  %649 = vmatpush.msrb.mxu3 %v3189_v13  ;;  %863 = vmatpush.msra.mxu1 %v3189_v13 }
 0x1b4   : > { %627 = vmatpush.msrb.mxu2 %v3183_v12  ;;  %841 = vmatpush.msra.mxu0 %v3183_v12 }
 0x1b6   : > { %v2524_v19 = vpop.eup %2523 }
 0x1b7   : > { %v2526_v20 = vpop.eup %2525 }
 0x1b8   : > { %v2528_v21 = vpop.eup %2527  ;;  %v751_v22 = vadd.f32 %v2526_v20, %v2524_v19 }
 0x1b9   : > { %v2530_v23 = vpop.eup %2529 }
 0x1ba   : > { %v752_v24 = vrot.slane %v751_v22, 4  ;;  %v758_v25 = vadd.f32 %v2530_v23, %v2528_v21 }
 0x1bc   : > { %v753_v26 = vadd.f32 %v752_v24, %v751_v22  ;;  %v759_v27 = vrot.slane %v758_v25, 4  ;;  %v571_v59 = vpop.permute.xlu2 %570 }
 0x1bd   : > { %v577_v63 = vsel %vm355_vm0, %v571_v59, 0.0  ;;  %v3339_v59 = vld [vmem:[%s4445_s5 + $0x8] sm:$0xff] }
 0x1be   : > { %v754_v28 = vrot.slane %v753_v26, 2  ;;  %v760_v30 = vadd.f32 %v759_v27, %v758_v25 }
 0x1c0   : > { %v755_v34 = vadd.f32 %v754_v28, %v753_v26  ;;  %v761_v36 = vrot.slane %v760_v30, 2  ;;  %v3227_v28 = vld [vmem:[%s4445_s5 + $0x48] sm:$0xff] }
 0x1c2   : > { %v756_v40 = vrot.slane %v755_v34, 1  ;;  %v762_v43 = vadd.f32 %v761_v36, %v760_v30  ;;  %v3232_v30 = vld [vmem:[%s4445_s5 + $0xe8] sm:$0xff]  ;;  %v3244_v36 = vld [vmem:[%s4445_s5 + $0xe0] sm:$0xff] }
 0x1c3   : > { %650 = vmatpush.msrb.mxu3 %v3232_v30  ;;  %864 = vmatpush.msra.mxu1 %v3232_v30 }
 0x1c4   : > { %v763_v44 = vrot.slane %v762_v43, 1  ;;  %v757_v45 = vadd.f32 %v756_v40, %v755_v34  ;;  %v603_v62 = vpop.permute.xlu2 %602  ;;  %v3239_v34 = vld [vmem:[%s4445_s5 + $0x40] sm:$0xff] }
 0x1c5   : > { %v609_v0 = vsel %vm355_vm0, %v603_v62, 0.0  ;;  %651 = vmatpush.msrb.mxu3 %v3244_v36  ;;  %865 = vmatpush.msra.mxu1 %v3244_v36  ;;  %v3358_v62 = vld [vmem:[%s4445_s5 + $0xa0] sm:$0xff] }
 0x1c6   : > { %2531 = vrcp.f32 %v757_v45  ;;  %v764_v46 = vadd.f32 %v763_v44, %v762_v43  ;;  %v3253_v43 = vld [vmem:[%s4445_s5 + $0x38] sm:$0xff]  ;;  %v3263_v45 = vld [vmem:[%s4445_s5 + $0x30] sm:$0xff] }
 0x1c7   : > { %v3258_v44 = vld [vmem:[%s4445_s5 + $0xd8] sm:$0xff] }
 0x1c8   : > { %2533 = vrcp.f32 %v764_v46  ;;  %652 = vmatpush.msrb.mxu3 %v3258_v44  ;;  %v3272_v46 = vld [vmem:[%s4445_s5 + $0xd0] sm:$0xff]  ;;  %866 = vmatpush.msra.mxu1 %v3258_v44 }
 0x1ca   : > { %653 = vmatpush.msrb.mxu3 %v3272_v46  ;;  %867 = vmatpush.msra.mxu1 %v3272_v46 }
 0x1cc   : > { %v2532_v47 = vpop.eup %2531 }
 0x1cd   : > { %v3125_v48 = vmul.f32 %v2532_v47, %v2524_v19  ;;  %v3127_v49 = vmul.f32 %v2532_v47, %v2526_v20  ;;  %v3199_v19 = vld [vmem:[%s4445_s5 + $0x60] sm:$0xff]  ;;  %v3208_v20 = vld [vmem:[%s4445_s5 + $0x58] sm:$0xff] }
 0x1ce   : > { %v2534_v50 = vpop.eup %2533  ;;  %628 = vmatpush.msrb.mxu2 %v3199_v19  ;;  %842 = vmatpush.msra.mxu0 %v3199_v19 }
 0x1cf   : > { %4473 = vst [vmem:[#allocation9_spill] sm:$0xff] %v3127_v49  ;;  %785 = vrot.lane.b32.xlu0 %v3125_v48, %s2842_s14  ;;  %787 = vrot.lane.b32.xlu2 %v3127_v49, %s2842_s14  ;;  %v3133_v51 = vmul.f32 %v2534_v50, %v2528_v21  ;;  %v3137_v52 = vmul.f32 %v2534_v50, %v2530_v23  ;;  %v771_v53 = vsel %vm355_vm0, %v3125_v48, 0.0  ;;  %v774_v57 = vsel %vm355_vm0, %v3127_v49, 0.0  ;;  %v3215_v21 = vld [vmem:[%s4445_s5 + $0x50] sm:$0xff]  ;;  %v3282_v50 = vld [vmem:[%s4445_s5 + $0x28] sm:$0xff] }
 0x1d0   : > { %629 = vmatpush.msrb.mxu2 %v3208_v20  ;;  %843 = vmatpush.msra.mxu0 %v3208_v20 }
 0x1d1   : > { %4474 = vst [vmem:[#allocation10_spill] sm:$0xff] %v3133_v51  ;;  %817 = vrot.lane.b32.xlu1 %v3133_v51, %s2842_s14  ;;  %v803_v55 = vsel %vm355_vm0, %v3133_v51, 0.0  ;;  %v806_v61 = vsel %vm355_vm0, %v3137_v52, 0.0 }
 0x1d2   : > { %4475 = vst [vmem:[#allocation11_spill] sm:$0xff] %v3137_v52  ;;  %630 = vmatpush.msrb.mxu2 %v3215_v21  ;;  %844 = vmatpush.msra.mxu0 %v3215_v21 }
 0x1d4   : > { %v569_v54 = vpop.permute.xlu1 %568  ;;  %631 = vmatpush.msrb.mxu2 %v3227_v28  ;;  %845 = vmatpush.msra.mxu0 %v3227_v28 }
 0x1d5   : > { %v574_v56 = vsel %vm355_vm0, %v569_v54, 0.0  ;;  %v3297_v54 = vld [vmem:[%s4445_s5 + $0x20] sm:$0xff] }
 0x1d6   : > { %632 = vmatpush.msrb.mxu2 %v3239_v34  ;;  %846 = vmatpush.msra.mxu0 %v3239_v34 }
 0x1d7   : > { %819 = vrot.lane.b32.xlu0 %v3137_v52, %s2842_s14 }
 0x1d8   : > { %v3157_v2 = vpop.xlane.xlu0 %587  ;;  %633 = vmatpush.msrb.mxu2 %v3253_v43  ;;  %847 = vmatpush.msra.mxu0 %v3253_v43 }
 0x1da   : > { %634 = vmatpush.msrb.mxu2 %v3263_v45  ;;  %848 = vmatpush.msra.mxu0 %v3263_v45 }
 0x1dc   : > { %v601_v58 = vpop.permute.xlu1 %600  ;;  %635 = vmatpush.msrb.mxu2 %v3282_v50  ;;  %849 = vmatpush.msra.mxu0 %v3282_v50 }
 0x1dd   : > { %v606_v60 = vsel %vm355_vm0, %v601_v58, 0.0  ;;  %v3328_v58 = vld [vmem:[%s4445_s5 + $0xb0] sm:$0xff] }
 0x1de   : > { %636 = vmatpush.msrb.mxu2 %v3297_v54  ;;  %850 = vmatpush.msra.mxu0 %v3297_v54 }
 0x1e0   : > { %v3178_v11 = vpop.xlane.xlu0 %590 }
 0x1f8   : > { %772 = vadd.xlane.f32.xlu2 %v771_v53  ;;  %v3287_v53 = vld [vmem:[%s4445_s5 + $0xc8] sm:$0xff] }
 0x1f9   : > { %654 = vmatpush.msrb.mxu3 %v3287_v53  ;;  %868 = vmatpush.msra.mxu1 %v3287_v53 }
 0x1fb   : > { %804 = vadd.xlane.f32.xlu1 %v803_v55  ;;  %v3302_v55 = vld [vmem:[%s4445_s5 + $0xc0] sm:$0xff] }
 0x1fc   : > { %655 = vmatpush.msrb.mxu3 %v3302_v55  ;;  %869 = vmatpush.msra.mxu1 %v3302_v55 }
 0x200   : > { %575 = vadd.xlane.f32.xlu2 %v574_v56  ;;  %v3314_v56 = vld [vmem:[%s4445_s5 + $0xb8] sm:$0xff] }
 0x201   : > { %656 = vmatpush.msrb.mxu3 %v3314_v56  ;;  %870 = vmatpush.msra.mxu1 %v3314_v56 }
 0x203   : > { %775 = vadd.xlane.f32.xlu1 %v774_v57  ;;  %v3321_v57 = vld [vmem:[%s4445_s5 + $0x10] sm:$0xff]  ;;  %657 = vmatpush.msrb.mxu3 %v3328_v58 }
 0x204   : > { %871 = vmatpush.msra.mxu1 %v3328_v58 }
 0x207   : > { %v3159_v7 = vpop.xlane.xlu1 %555 }
 0x208   : > { %607 = vadd.xlane.f32.xlu2 %v606_v60  ;;  %v3344_v60 = vld [vmem:[%s4445_s5 + $0xa8] sm:$0xff] }
 0x209   : > { %658 = vmatpush.msrb.mxu3 %v3344_v60  ;;  %872 = vmatpush.msra.mxu1 %v3344_v60 }
 0x20b   : > { %807 = vadd.xlane.f32.xlu1 %v806_v61  ;;  %v3353_v61 = vld [vmem:[%s4445_s5] sm:$0xff]  ;;  %659 = vmatpush.msrb.mxu3 %v3358_v62 }
 0x20c   : > { %873 = vmatpush.msra.mxu1 %v3358_v62 }
 0x20f   : > { %v3194_v18 = vpop.xlane.xlu1 %558 }
 0x210   : > { %578 = vadd.xlane.f32.xlu2 %v577_v63  ;;  %v3365_v63 = vld [vmem:[%s4445_s5 + $0x98] sm:$0xff] }
 0x211   : > { %660 = vmatpush.msrb.mxu3 %v3365_v63  ;;  %874 = vmatpush.msra.mxu1 %v3365_v63 }
 0x213   : > { %610 = vadd.xlane.f32.xlu1 %v609_v0  ;;  %v3373_v0 = vld [vmem:[%s4445_s5 + $0x90] sm:$0xff] }
 0x214   : > { %661 = vmatpush.msrb.mxu3 %v3373_v0  ;;  %875 = vmatpush.msra.mxu1 %v3373_v0 }
 0x229   : > { %v788_v26 = vpop.permute.xlu2 %787 }
 0x22a   : > { %v794_v27 = vsel %vm355_vm0, %v788_v26, 0.0  ;;  %v560_v26 = vadd.f32 1e-09, %v3159_v7 }
 0x22c   : > { %887 = vrot.lane.b32.xlu1 %v3065_v31, %s2842_s14  ;;  %2535 = vrcp.f32 %v560_v26 }
 0x232   : > { %v2536_v41 = vpop.eup %2535 }
 0x233   : > { %v564_v7 = vmul.f32 %v2536_v41, %v3095_v33 }
 0x241   : > { %v786_v22 = vpop.permute.xlu0 %785 }
 0x242   : > { %v791_v23 = vsel %vm355_vm0, %v786_v22, 0.0  ;;  %v3385_v22 = vld [vmem:[%s4445_s5 + $0x88] sm:$0xff] }
 0x243   : > { %v818_v24 = vpop.permute.xlu1 %817  ;;  %792 = vadd.xlane.f32.xlu0 %v791_v23  ;;  %662 = vmatpush.msrb.mxu3 %v3385_v22  ;;  %v3394_v23 = vld [vmem:[%s4445_s5 + $0x80] sm:$0xff] }
 0x244   : > { %v823_v25 = vsel %vm355_vm0, %v818_v24, 0.0  ;;  %876 = vmatpush.msra.mxu1 %v3385_v22 }
 0x245   : > { %824 = vadd.xlane.f32.xlu2 %v823_v25  ;;  %663 = vmatpush.msrb.mxu3 %v3394_v23 }
 0x246   : > { %877 = vmatpush.msra.mxu1 %v3394_v23 }
 0x247   : > { %928 = vmatpush.msra.mxu3 %v2964_v4 }
 0x248   : > { %1142 = vmatpush.msrb.mxu1 %v2964_v4 }
 0x249   : > { %v820_v40 = vpop.permute.xlu0 %819  ;;  %929 = vmatpush.msra.mxu3 %v2974_v6 }
 0x24a   : > { %v826_v47 = vsel %vm355_vm0, %v820_v40, 0.0  ;;  %1143 = vmatpush.msrb.mxu1 %v2974_v6 }
 0x24b   : > { %930 = vmatpush.msra.mxu3 %v3009_v15 }
 0x24c   : > { %1144 = vmatpush.msrb.mxu1 %v3009_v15 }
 0x24d   : > { %795 = vadd.xlane.f32.xlu2 %v794_v27  ;;  %931 = vmatpush.msra.mxu3 %v3021_v17 }
 0x24e   : > { %1145 = vmatpush.msrb.mxu1 %v3021_v17 }
 0x255   : > { %827 = vadd.xlane.f32.xlu2 %v826_v47  ;;  %v592_v47 = vadd.f32 1e-09, %v3157_v2 }
 0x257   : > { %1099 = vrot.lane.b32.xlu0 %v3054_v29, %s2843_s29  ;;  %v3309_v29 = vld [vmem:[%s4445_s5 + $0x18] sm:$0xff] }
 0x258   : > { %637 = vmatpush.msrb.mxu2 %v3309_v29  ;;  %851 = vmatpush.msra.mxu0 %v3309_v29 }
 0x25a   : > { %638 = vmatpush.msrb.mxu2 %v3321_v57  ;;  %852 = vmatpush.msra.mxu0 %v3321_v57 }
 0x25c   : > { %639 = vmatpush.msrb.mxu2 %v3339_v59  ;;  %853 = vmatpush.msra.mxu0 %v3339_v59 }
 0x25e   : > { %640 = vmatpush.msrb.mxu2 %v3353_v61  ;;  %854 = vmatpush.msra.mxu0 %v3353_v61 }
 0x260   : > { %905 = vmatpush.msra.mxu2 %v2957_v3  ;;  %1119 = vmatpush.msrb.mxu0 %v2957_v3 }
 0x262   : > { %906 = vmatpush.msra.mxu2 %v2969_v5  ;;  %1120 = vmatpush.msrb.mxu0 %v2969_v5 }
 0x264   : > { %907 = vmatpush.msra.mxu2 %v3004_v14  ;;  %1121 = vmatpush.msrb.mxu0 %v3004_v14 }
 0x266   : > { %908 = vmatpush.msra.mxu2 %v3016_v16  ;;  %1122 = vmatpush.msrb.mxu0 %v3016_v16 }
 0x26b   : > { %v3400_v24 = vpop.xlane.xlu2 %772 }
 0x26d   : > { %1101 = vrot.lane.b32.xlu2 %v3065_v31, %s2843_s29 }
 0x26e   : > { %v3409_v25 = vpop.xlane.xlu1 %804 }
 0x273   : > { %v576_v27 = vpop.xlane.xlu2 %575 }
 0x274   : > { %v580_v31 = vadd.f32 1e-09, %v576_v27  ;;  %v561_v27 = vadd.f32 1e-09, %v3194_v18 }
 0x276   : > { %2537 = vrcp.f32 %v580_v31  ;;  %v3418_v40 = vpop.xlane.xlu1 %775  ;;  %v593_v31 = vadd.f32 1e-09, %v3178_v11 }
 0x277   : > { %2539 = vrcp.f32 %v592_v47 }
 0x27b   : > { %v608_v42 = vpop.xlane.xlu2 %607 }
 0x27c   : > { %v2538_v38 = vpop.eup %2537  ;;  %v612_v37 = vadd.f32 1e-09, %v608_v42 }
 0x27d   : > { %v584_v52 = vmul.f32 %v2538_v38, %v3095_v33  ;;  %v2540_v2 = vpop.eup %2539 }
 0x27e   : > { %2541 = vrcp.f32 %v612_v37  ;;  %v3423_v49 = vpop.xlane.xlu1 %807  ;;  %v596_v37 = vmul.f32 %v2540_v2, %v3101_v35 }
 0x27f   : > { %v618_v26 = vsel %vm355_vm0, %v564_v7, %v584_v52  ;;  %2543 = vrcp.f32 %v561_v27 }
 0x280   : > { %641 = vmatmul.f32.vlgmr.msrb.gmra.mxu2 %v618_v26 }
 0x281   : > { %1053 = vmatpush.msrb.mxu2 %v3164_v8 }
 0x283   : > { %v579_v51 = vpop.xlane.xlu2 %578  ;;  %1054 = vmatpush.msrb.mxu2 %v3169_v9 }
 0x284   : > { %v2542_v42 = vpop.eup %2541  ;;  %v581_v41 = vadd.f32 1e-09, %v579_v51 }
 0x285   : > { %v616_v38 = vmul.f32 %v2542_v42, %v3101_v35  ;;  %1055 = vmatpush.msrb.mxu2 %v3183_v12  ;;  %v2544_v51 = vpop.eup %2543 }
 0x286   : > { %2545 = vrcp.f32 %v581_v41  ;;  %v611_v33 = vpop.xlane.xlu1 %610  ;;  %v565_v47 = vmul.f32 %v2544_v51, %v3093_v32 }
 0x287   : > { %2547 = vrcp.f32 %v593_v31  ;;  %v613_v52 = vadd.f32 1e-09, %v611_v33  ;;  %v620_v18 = vsel %vm355_vm0, %v596_v37, %v616_v38  ;;  %1056 = vmatpush.msrb.mxu2 %v3199_v19 }
 0x288   : > { %664 = vmatmul.f32.vlgmr.msrb.gmra.mxu3 %v620_v18 }
 0x289   : > { %2549 = vrcp.f32 %v613_v52  ;;  %1076 = vmatpush.msrb.mxu3 %v3175_v10  ;;  %1057 = vmatpush.msrb.mxu2 %v3208_v20  ;;  %v4476_v52 = vld [vmem:[#allocation10_spill] sm:$0xff] }
 0x28b   : > { %1077 = vmatpush.msrb.mxu3 %v3189_v13  ;;  %1058 = vmatpush.msrb.mxu2 %v3215_v21 }
 0x28c   : > { %v2546_v35 = vpop.eup %2545 }
 0x28d   : > { %v2548_v11 = vpop.eup %2547  ;;  %v585_v7 = vmul.f32 %v2546_v35, %v3093_v32  ;;  %1078 = vmatpush.msrb.mxu3 %v3232_v30  ;;  %1059 = vmatpush.msrb.mxu2 %v3227_v28  ;;  %v810_v35 = vadd.f32 1e-09, %v3423_v49 }
 0x28e   : > { %v597_v2 = vmul.f32 %v2548_v11, %v3105_v39 }
 0x28f   : > { %v2550_v26 = vpop.eup %2549  ;;  %v619_v27 = vsel %vm355_vm0, %v565_v47, %v585_v7  ;;  %1079 = vmatpush.msrb.mxu3 %v3244_v36  ;;  %1060 = vmatpush.msrb.mxu2 %v3239_v34 }
 0x290   : > { %644 = vmatmul.f32.gmra.mxu2 %v619_v27  ;;  %v617_v31 = vmul.f32 %v2550_v26, %v3105_v39  ;;  %v4477_v26 = vld [vmem:[#allocation9_spill] sm:$0xff] }
 0x291   : > { %1080 = vmatpush.msrb.mxu3 %v3258_v44  ;;  %1061 = vmatpush.msrb.mxu2 %v3253_v43 }
 0x292   : > { %v621_v32 = vsel %vm355_vm0, %v597_v2, %v617_v31 }
 0x293   : > { %667 = vmatmul.f32.gmra.mxu3 %v621_v32  ;;  %1062 = vmatpush.msrb.mxu2 %v3263_v45 }
 0x294   : > { %1081 = vmatpush.msrb.mxu3 %v3272_v46 }
 0x295   : > { %1063 = vmatpush.msrb.mxu2 %v3282_v50 }
 0x296   : > { %1082 = vmatpush.msrb.mxu3 %v3287_v53 }
 0x297   : > { %1064 = vmatpush.msrb.mxu2 %v3297_v54 }
 0x298   : > { %2409 = vmatmul.msk.f32.vlgmr.msra.gmra.mxu2 %vm455_vm1, %v3153_v1  ;;  %1083 = vmatpush.msrb.mxu3 %v3302_v55 }
 0x299   : > { %1065 = vmatpush.msrb.mxu2 %v3309_v29 }
 0x29a   : > { %1084 = vmatpush.msrb.mxu3 %v3314_v56 }
 0x29b   : > { %2411 = vmatmul.msk.f32.vlgmr.msra.gmra.mxu3 %vm455_vm1, %v3153_v1  ;;  %1066 = vmatpush.msrb.mxu2 %v3321_v57 }
 0x29c   : > { %1085 = vmatpush.msrb.mxu3 %v3328_v58 }
 0x29d   : > { %1067 = vmatpush.msrb.mxu2 %v3339_v59 }
 0x29e   : > { %1086 = vmatpush.msrb.mxu3 %v3344_v60  ;;  %v888_v39 = vpop.permute.xlu1 %887 }
 0x29f   : > { %1068 = vmatpush.msrb.mxu2 %v3353_v61 }
 0x2a0   : > { %2410 = vmatmul.msk.f32.gmra.mxu2 %vm455_vm1, %v888_v39  ;;  %1087 = vmatpush.msrb.mxu3 %v3358_v62 }
 0x2a1   : > { %1331 = vmatpush.msra.mxu2 %v2957_v3  ;;  %v777_v3 = vadd.f32 1e-09, %v3400_v24 }
 0x2a2   : > { %1088 = vmatpush.msrb.mxu3 %v3365_v63 }
 0x2a3   : > { %2412 = vmatmul.msk.f32.gmra.mxu3 %vm455_vm1, %v888_v39  ;;  %1332 = vmatpush.msra.mxu2 %v2969_v5  ;;  %v809_v5 = vadd.f32 1e-09, %v3409_v25  ;;  %2551 = vrcp.f32 %v777_v3 }
 0x2a4   : > { %1089 = vmatpush.msrb.mxu3 %v3373_v0 }
 0x2a5   : > { %1333 = vmatpush.msra.mxu2 %v3004_v14  ;;  %2553 = vrcp.f32 %v809_v5 }
 0x2a6   : > { %1090 = vmatpush.msrb.mxu3 %v3385_v22 }
 0x2a7   : > { %1334 = vmatpush.msra.mxu2 %v3016_v16 }
 0x2a8   : > { %1091 = vmatpush.msrb.mxu3 %v3394_v23 }
 0x2a9   : > { %v2552_v41 = vpop.eup %2551 }
 0x2aa   : > { %1354 = vmatpush.msra.mxu3 %v2964_v4  ;;  %v778_v4 = vadd.f32 1e-09, %v3418_v40 }
 0x2ac   : > { %1355 = vmatpush.msra.mxu3 %v2974_v6  ;;  %v2554_v6 = vpop.eup %2553 }
 0x2ad   : > { %v813_v18 = vmul.f32 %v2554_v6, %v4476_v52 }
 0x2ae   : > { %1356 = vmatpush.msra.mxu3 %v3009_v15 }
 0x2b0   : > { %1357 = vmatpush.msra.mxu3 %v3021_v17  ;;  %v781_v17 = vmul.f32 %v2552_v41, %v3125_v48 }
 0x2b6   : > { %v793_v1 = vpop.xlane.xlu0 %792 }
 0x2b7   : > { %v797_v14 = vadd.f32 1e-09, %v793_v1 }
 0x2b8   : > { %v825_v42 = vpop.xlane.xlu2 %824 }
 0x2b9   : > { %2555 = vrcp.f32 %v797_v14  ;;  %v829_v16 = vadd.f32 1e-09, %v825_v42  ;;  %v4481_v42 = vld [vmem:[#allocation5_spill] sm:$0xff] }
 0x2bb   : > { %2557 = vrcp.f32 %v829_v16 }
 0x2bc   : > { %2559 = vrcp.f32 %v778_v4 }
 0x2bf   : > { %v2556_v37 = vpop.eup %2555 }
 0x2c0   : > { %v796_v15 = vpop.xlane.xlu2 %795  ;;  %v801_v24 = vmul.f32 %v2556_v37, %v3125_v48  ;;  %v4482_v37 = vld [vmem:[#allocation6_spill] sm:$0xff] }
 0x2c1   : > { %v2558_v38 = vpop.eup %2557  ;;  %v798_v25 = vadd.f32 1e-09, %v796_v15 }
 0x2c2   : > { %v835_v33 = vsel %vm355_vm0, %v781_v17, %v801_v24  ;;  %v833_v51 = vmul.f32 %v2558_v38, %v4476_v52  ;;  %v2560_v48 = vpop.eup %2559 }
 0x2c3   : > { %2561 = vrcp.f32 %v798_v25  ;;  %855 = vmatmul.f32.vlgmr.msra.gmra.mxu0 %v835_v33  ;;  %v782_v27 = vmul.f32 %v2560_v48, %v4477_v26 }
 0x2c4   : > { %v837_v40 = vsel %vm355_vm0, %v813_v18, %v833_v51  ;;  %1267 = vmatpush.msra.mxu0 %v3164_v8  ;;  %2563 = vrcp.f32 %v810_v35 }
 0x2c5   : > { %878 = vmatmul.f32.vlgmr.msra.gmra.mxu1 %v837_v40 }
 0x2c6   : > { %1268 = vmatpush.msra.mxu0 %v3169_v9  ;;  %1290 = vmatpush.msra.mxu1 %v3175_v10 }
 0x2c8   : > { %v828_v11 = vpop.xlane.xlu2 %827  ;;  %1269 = vmatpush.msra.mxu0 %v3183_v12  ;;  %1291 = vmatpush.msra.mxu1 %v3189_v13  ;;  %v4478_v12 = vld [vmem:[#allocation11_spill] sm:$0xff] }
 0x2c9   : > { %v2562_v47 = vpop.eup %2561  ;;  %v830_v7 = vadd.f32 1e-09, %v828_v11 }
 0x2ca   : > { %v802_v8 = vmul.f32 %v2562_v47, %v4477_v26  ;;  %1270 = vmatpush.msra.mxu0 %v3199_v19  ;;  %1292 = vmatpush.msra.mxu1 %v3232_v30  ;;  %v2564_v9 = vpop.eup %2563 }
 0x2cb   : > { %2565 = vrcp.f32 %v830_v7  ;;  %v814_v13 = vmul.f32 %v2564_v9, %v4478_v12 }
 0x2cc   : > { %v836_v49 = vsel %vm355_vm0, %v782_v27, %v802_v8  ;;  %1271 = vmatpush.msra.mxu0 %v3208_v20  ;;  %1293 = vmatpush.msra.mxu1 %v3244_v36  ;;  %v1100_v20 = vpop.permute.xlu0 %1099  ;;  %v3550_v36 = vld [vmem:[%s4443_s3 + $0x38] sm:$0xff] }
 0x2cd   : > { %858 = vmatmul.f32.gmra.mxu0 %v836_v49 }
 0x2ce   : > { %1272 = vmatpush.msra.mxu0 %v3215_v21  ;;  %1294 = vmatpush.msra.mxu1 %v3258_v44  ;;  %v3562_v44 = vld [vmem:[%s4443_s3 + $0x28] sm:$0xff] }
 0x2d0   : > { %1273 = vmatpush.msra.mxu0 %v3227_v28  ;;  %1295 = vmatpush.msra.mxu1 %v3272_v46  ;;  %v1102_v21 = vpop.permute.xlu2 %1101  ;;  %v3536_v28 = vld [vmem:[%s4443_s3 + $0x30] sm:$0xff]  ;;  %v3574_v46 = vld [vmem:[%s4443_s3 + $0x18] sm:$0xff] }
 0x2d1   : > { %v2566_v10 = vpop.eup %2565 }
 0x2d2   : > { %v834_v19 = vmul.f32 %v2566_v10, %v4478_v12  ;;  %1274 = vmatpush.msra.mxu0 %v3239_v34  ;;  %1296 = vmatpush.msra.mxu1 %v3287_v53  ;;  %v3544_v34 = vld [vmem:[%s4443_s3 + $0x20] sm:$0xff] }
 0x2d3   : > { %v3586_v53 = vld [vmem:[%s4446_s6] ss:$0 sm:$0xff] }
 0x2d4   : > { %v838_v30 = vsel %vm355_vm0, %v814_v13, %v834_v19  ;;  %1275 = vmatpush.msra.mxu0 %v3253_v43  ;;  %1297 = vmatpush.msra.mxu1 %v3302_v55  ;;  %v3556_v43 = vld [vmem:[%s4443_s3 + $0x10] sm:$0xff] }
 0x2d5   : > { %881 = vmatmul.f32.gmra.mxu1 %v838_v30  ;;  %2413 = vmatmul.msk.f32.vlgmr.msrb.gmra.mxu0 %vm455_vm1, %v1100_v20 }
 0x2d6   : > { %1276 = vmatpush.msra.mxu0 %v3263_v45  ;;  %1298 = vmatpush.msra.mxu1 %v3314_v56  ;;  %v3568_v45 = vld [vmem:[%s4443_s3] sm:$0xff] }
 0x2d8   : > { %1277 = vmatpush.msra.mxu0 %v3282_v50  ;;  %1299 = vmatpush.msra.mxu1 %v3328_v58  ;;  %v3580_v50 = vld [vmem:[%s4443_s3 + $0x8] sm:$0xff] }
 0x2da   : > { %1278 = vmatpush.msra.mxu0 %v3297_v54  ;;  %1300 = vmatpush.msra.mxu1 %v3344_v60 }
 0x2dc   : > { %1279 = vmatpush.msra.mxu0 %v3309_v29  ;;  %1301 = vmatpush.msra.mxu1 %v3358_v62 }
 0x2dd   : > { %2414 = vmatmul.msk.f32.gmra.mxu0 %vm455_vm1, %v1102_v21  ;;  %2415 = vmatmul.msk.f32.vlgmr.msrb.gmra.mxu1 %vm455_vm1, %v1100_v20 }
 0x2de   : > { %1280 = vmatpush.msra.mxu0 %v3321_v57  ;;  %1302 = vmatpush.msra.mxu1 %v3365_v63 }
 0x2e0   : > { %1281 = vmatpush.msra.mxu0 %v3339_v59  ;;  %1303 = vmatpush.msra.mxu1 %v3373_v0 }
 0x2e2   : > { %1282 = vmatpush.msra.mxu0 %v3353_v61  ;;  %1304 = vmatpush.msra.mxu1 %v3385_v22 }
 0x2e4   : > { %1545 = vmatpush.msrb.mxu0 %v3536_v28  ;;  %1305 = vmatpush.msra.mxu1 %v3394_v23 }
 0x2e5   : > { %2416 = vmatmul.msk.f32.gmra.mxu1 %vm455_vm1, %v1102_v21 }
 0x2e6   : > { %1546 = vmatpush.msrb.mxu0 %v3544_v34  ;;  %1568 = vmatpush.msrb.mxu1 %v3550_v36 }
 0x2e8   : > { %1547 = vmatpush.msrb.mxu0 %v3556_v43  ;;  %1569 = vmatpush.msrb.mxu1 %v3562_v44 }
 0x2ea   : > { %1548 = vmatpush.msrb.mxu0 %v3568_v45  ;;  %1570 = vmatpush.msrb.mxu1 %v3574_v46 }
 0x2ec   : > { %1571 = vmatpush.msrb.mxu1 %v3580_v50 }
 0x303   : > { %v642_v54 = vpop.f32.mrf.mxu2 }
 0x304   : > { %v643_v29 = vadd.f32 %v3586_v53, %v642_v54 }
 0x30b   : > { %v665_v57 = vpop.f32.mrf.mxu3 }
 0x30c   : > { %v3589_v2 = vadd.f32 %v665_v57, %v643_v29 }
 0x30e   : > { %4479 = vst [vmem:[#allocation10_spill] sm:$0xff] %v3589_v2 }
 0x313   : > { %v645_v31 = vpop.f32.mrf.mxu2 }
 0x314   : > { %v646_v32 = vadd.f32 %v3586_v53, %v645_v31 }
 0x316   : > { %v668_v39 = vpop.f32.mrf.mxu3 }
 0x317   : > { %v3592_v3 = vadd.f32 %v668_v39, %v646_v32 }
 0x319   : > { %4480 = vst [vmem:[#allocation9_spill] sm:$0xff] %v3592_v3 }
 0x31b   : > { %v910_v5 = vpop.f32.mrf.mxu2 }
 0x31c   : > { %v911_v16 = vadd.f32 %v910_v5, %v4481_v42 }
 0x31e   : > { %v933_v1 = vpop.f32.mrf.mxu3 }
 0x31f   : > { %v934_v15 = vadd.f32 %v933_v1, %v4482_v37 }
 0x323   : > { %v913_v14 = vpop.f32.mrf.mxu2 }
 0x324   : > { %v914_v41 = vadd.f32 %v913_v14, %v4481_v42 }
 0x326   : > { %v939_v4 = vmax.f32 %v911_v16, %v914_v41  ;;  %v936_v6 = vpop.f32.mrf.mxu3 }
 0x327   : > { %v937_v17 = vadd.f32 %v936_v6, %v4482_v37 }
 0x328   : > { %v940_v24 = vrot.slane %v939_v4, 4 }
 0x329   : > { %v946_v38 = vmax.f32 %v934_v15, %v937_v17 }
 0x32a   : > { %v941_v25 = vmax.f32 %v939_v4, %v940_v24 }
 0x32b   : > { %v947_v33 = vrot.slane %v946_v38, 4 }
 0x32c   : > { %v942_v52 = vrot.slane %v941_v25, 2 }
 0x32d   : > { %v948_v18 = vmax.f32 %v946_v38, %v947_v33 }
 0x32e   : > { %v943_v51 = vmax.f32 %v941_v25, %v942_v52 }
 0x32f   : > { %v949_v40 = vrot.slane %v948_v18, 2 }
 0x330   : > { %v944_v35 = vrot.slane %v943_v51, 1 }
 0x331   : > { %v950_v48 = vmax.f32 %v948_v18, %v949_v40 }
 0x332   : > { %v945_v11 = vmax.f32 %v943_v51, %v944_v35 }
 0x333   : > { %v951_v47 = vrot.slane %v950_v48, 1 }
 0x334   : > { %v953_v7 = vsub.f32 %v911_v16, %v945_v11  ;;  %v955_v26 = vsub.f32 %v914_v41, %v945_v11 }
 0x335   : > { %v952_v27 = vmax.f32 %v950_v48, %v951_v47 }
 0x336   : > { %v957_v8 = vmul.f32 1.442695, %v953_v7  ;;  %v961_v49 = vmul.f32 1.442695, %v955_v26 }
 0x337   : > { %v954_v9 = vsub.f32 %v934_v15, %v952_v27  ;;  %v956_v10 = vsub.f32 %v937_v17, %v952_v27 }
 0x338   : > { %2567 = vpow2.f32 %v957_v8 }
 0x339   : > { %2569 = vpow2.f32 %v961_v49  ;;  %v959_v12 = vmul.f32 1.442695, %v954_v9  ;;  %v963_v13 = vmul.f32 1.442695, %v956_v10 }
 0x33b   : > { %2571 = vpow2.f32 %v959_v12 }
 0x33c   : > { %2573 = vpow2.f32 %v963_v13 }
 0x33e   : > { %v2568_v19 = vpop.eup %2567 }
 0x33f   : > { %v2570_v20 = vpop.eup %2569 }
 0x340   : > { %v965_v30 = vadd.f32 %v2570_v20, %v2568_v19  ;;  %v856_v21 = vpop.f32.mrf.mxu0 }
 0x341   : > { %v2572_v54 = vpop.eup %2571  ;;  %v857_v29 = vadd.f32 %v3586_v53, %v856_v21 }
 0x342   : > { %v2574_v57 = vpop.eup %2573  ;;  %v966_v31 = vrot.slane %v965_v30, 4  ;;  %v879_v32 = vpop.f32.mrf.mxu1 }
 0x343   : > { %v972_v39 = vadd.f32 %v2574_v57, %v2572_v54  ;;  %v3599_v5 = vadd.f32 %v879_v32, %v857_v29 }
 0x344   : > { %v967_v1 = vadd.f32 %v966_v31, %v965_v30 }
 0x345   : > { %4483 = vst [vmem:[#allocation11_spill] sm:$0xff] %v3599_v5  ;;  %v973_v14 = vrot.slane %v972_v39, 4 }
 0x346   : > { %v968_v16 = vrot.slane %v967_v1, 2 }
 0x347   : > { %v974_v41 = vadd.f32 %v973_v14, %v972_v39 }
 0x348   : > { %v969_v4 = vadd.f32 %v968_v16, %v967_v1 }
 0x349   : > { %v975_v6 = vrot.slane %v974_v41, 2 }
 0x34a   : > { %v970_v15 = vrot.slane %v969_v4, 1  ;;  %v859_v17 = vpop.f32.mrf.mxu0 }
 0x34b   : > { %v976_v24 = vadd.f32 %v975_v6, %v974_v41  ;;  %v860_v52 = vadd.f32 %v3586_v53, %v859_v17 }
 0x34c   : > { %v971_v38 = vadd.f32 %v970_v15, %v969_v4 }
 0x34d   : > { %v977_v25 = vrot.slane %v976_v24, 1 }
 0x34e   : > { %2575 = vrcp.f32 %v971_v38 }
 0x34f   : > { %v978_v33 = vadd.f32 %v977_v25, %v976_v24 }
 0x351   : > { %2577 = vrcp.f32 %v978_v33 }
 0x352   : > { %v882_v18 = vpop.f32.mrf.mxu1  ;;  %v1124_v51 = vpop.f32.mrf.mxu0 }
 0x353   : > { %v3602_v40 = vadd.f32 %v882_v18, %v860_v52  ;;  %v1125_v9 = vadd.f32 %v1124_v51, %v4481_v42 }
 0x354   : > { %v2576_v35 = vpop.eup %2575 }
 0x355   : > { %4484 = vst [vmem:[#allocation5_spill] sm:$0xff] %v3602_v40  ;;  %v3606_v11 = vmul.f32 %v2576_v35, %v2570_v20  ;;  %v3608_v47 = vmul.f32 %v2576_v35, %v2568_v19 }
 0x357   : > { %v2578_v7 = vpop.eup %2577  ;;  %1001 = vrot.lane.b32.xlu1 %v3606_v11, %s2842_s14  ;;  %999 = vrot.lane.b32.xlu0 %v3608_v47, %s2842_s14 }
 0x358   : > { %v3614_v26 = vmul.f32 %v2578_v7, %v2572_v54  ;;  %v3624_v32 = vmul.f32 %v2578_v7, %v2574_v57 }
 0x35a   : > { %v1127_v27 = vpop.f32.mrf.mxu0  ;;  %v1147_v8 = vpop.f32.mrf.mxu1  ;;  %v1017_v49 = vsel %vm355_vm0, %v3614_v26, 0.0 }
 0x35b   : > { %v1128_v10 = vadd.f32 %v1127_v27, %v4481_v42  ;;  %1018 = vadd.xlane.f32.xlu2 %v1017_v49  ;;  %v1148_v21 = vadd.f32 %v1147_v8, %v4482_v37 }
 0x35d   : > { %v1153_v12 = vmax.f32 %v1125_v9, %v1128_v10 }
 0x35f   : > { %v1154_v13 = vrot.slane %v1153_v12, 4  ;;  %1031 = vrot.lane.b32.xlu0 %v3614_v26, %s2842_s14 }
 0x361   : > { %v1155_v19 = vmax.f32 %v1153_v12, %v1154_v13 }
 0x362   : > { %v1150_v20 = vpop.f32.mrf.mxu1 }
 0x363   : > { %v1156_v30 = vrot.slane %v1155_v19, 2  ;;  %v1151_v54 = vadd.f32 %v1150_v20, %v4482_v37 }
 0x365   : > { %v1157_v29 = vmax.f32 %v1155_v19, %v1156_v30  ;;  %v1160_v31 = vmax.f32 %v1148_v21, %v1151_v54  ;;  %v985_v19 = vsel %vm355_vm0, %v3608_v47, 0.0 }
 0x367   : > { %v1158_v39 = vrot.slane %v1157_v29, 1  ;;  %v1161_v1 = vrot.slane %v1160_v31, 4  ;;  %1033 = vrot.lane.b32.xlu0 %v3624_v32, %s2842_s14 }
 0x369   : > { %v1159_v14 = vmax.f32 %v1157_v29, %v1158_v39  ;;  %v1162_v16 = vmax.f32 %v1160_v31, %v1161_v1 }
 0x36b   : > { %v1167_v41 = vsub.f32 %v1125_v9, %v1159_v14  ;;  %v1169_v4 = vsub.f32 %v1128_v10, %v1159_v14  ;;  %v1163_v6 = vrot.slane %v1162_v16, 2 }
 0x36d   : > { %v1171_v15 = vmul.f32 1.442695, %v1167_v41  ;;  %v1175_v17 = vmul.f32 1.442695, %v1169_v4  ;;  %v1164_v24 = vmax.f32 %v1162_v16, %v1163_v6  ;;  %v988_v41 = vsel %vm355_vm0, %v3606_v11, 0.0 }
 0x36f   : > { %2579 = vpow2.f32 %v1171_v15  ;;  %v1165_v38 = vrot.slane %v1164_v24, 1 }
 0x370   : > { %2581 = vpow2.f32 %v1175_v17 }
 0x371   : > { %v1166_v25 = vmax.f32 %v1164_v24, %v1165_v38 }
 0x373   : > { %v1168_v33 = vsub.f32 %v1148_v21, %v1166_v25  ;;  %v1170_v57 = vsub.f32 %v1151_v54, %v1166_v25 }
 0x375   : > { %v2580_v52 = vpop.eup %2579  ;;  %v1173_v18 = vmul.f32 1.442695, %v1168_v33  ;;  %v1177_v51 = vmul.f32 1.442695, %v1170_v57 }
 0x376   : > { %v2582_v35 = vpop.eup %2581 }
 0x377   : > { %v1179_v7 = vadd.f32 %v2582_v35, %v2580_v52  ;;  %2583 = vpow2.f32 %v1173_v18 }
 0x378   : > { %2585 = vpow2.f32 %v1177_v51 }
 0x379   : > { %v1180_v27 = vrot.slane %v1179_v7, 4 }
 0x37b   : > { %v1181_v8 = vadd.f32 %v1180_v27, %v1179_v7  ;;  %v1020_v7 = vsel %vm355_vm0, %v3624_v32, 0.0 }
 0x37d   : > { %v2584_v49 = vpop.eup %2583  ;;  %v1182_v9 = vrot.slane %v1181_v8, 2 }
 0x37e   : > { %v2586_v10 = vpop.eup %2585 }
 0x37f   : > { %v1183_v12 = vadd.f32 %v1182_v9, %v1181_v8  ;;  %v1186_v13 = vadd.f32 %v2586_v10, %v2584_v49 }
 0x381   : > { %v1184_v20 = vrot.slane %v1183_v12, 1  ;;  %v1187_v30 = vrot.slane %v1186_v13, 4  ;;  %986 = vadd.xlane.f32.xlu1 %v985_v19 }
 0x383   : > { %v1188_v21 = vadd.f32 %v1187_v30, %v1186_v13  ;;  %v1185_v54 = vadd.f32 %v1184_v20, %v1183_v12 }
 0x385   : > { %v1189_v29 = vrot.slane %v1188_v21, 2  ;;  %2587 = vrcp.f32 %v1185_v54 }
 0x387   : > { %v1190_v31 = vadd.f32 %v1189_v29, %v1188_v21 }
 0x389   : > { %v1191_v39 = vrot.slane %v1190_v31, 1 }
 0x38b   : > { %v2588_v1 = vpop.eup %2587  ;;  %v1192_v14 = vadd.f32 %v1191_v39, %v1190_v31  ;;  %v2743_v39 = vld [vmem:[%s4442_s2] sm:$0x3] }
 0x38c   : > { %v3630_v16 = vmul.f32 %v2588_v1, %v2580_v52  ;;  %v3644_v17 = vmul.f32 %v2588_v1, %v2582_v35  ;;  %v352_v1 = vperm.slane %v2743_v39, 1 }
 0x38d   : > { %2589 = vrcp.f32 %v1192_v14  ;;  %v4485_v14 = vld [vmem:[#allocation8_spill] sm:$0xff] }
 0x38e   : > { %1213 = vrot.lane.b32.xlu2 %v3630_v16, %s2842_s14  ;;  %v1199_v24 = vsel %vm355_vm0, %v3630_v16, 0.0  ;;  %v1202_v12 = vsel %vm355_vm0, %v3644_v17, 0.0 }
 0x391   : > { %989 = vadd.xlane.f32.xlu0 %v988_v41  ;;  %v3670_v41 = vadd.f32 %v4485_v14, %v352_v1 }
 0x393   : > { %v2590_v4 = vpop.eup %2589 }
 0x394   : > { %v3636_v6 = vmul.f32 %v2590_v4, %v2586_v10  ;;  %v3640_v15 = vmul.f32 %v2590_v4, %v2584_v49  ;;  %v4486_v4 = vld [vmem:[#allocation7_spill] sm:$0xff] }
 0x396   : > { %1247 = vrot.lane.b32.xlu2 %v3636_v6, %s2842_s14  ;;  %v1234_v18 = vsel %vm355_vm0, %v3636_v6, 0.0  ;;  %v1231_v35 = vsel %vm355_vm0, %v3640_v15, 0.0 }
 0x39a   : > { %1245 = vrot.lane.b32.xlu1 %v3640_v15, %s2842_s14 }
 0x3a5   : > { %1215 = vrot.lane.b32.xlu0 %v3644_v17, %s2842_s14 }
 0x3bf   : > { %1200 = vadd.xlane.f32.xlu2 %v1199_v24  ;;  %v3675_v24 = vadd.f32 %v4486_v4, %v352_v1  ;;  %v3698_v4 = vld [vmem:[%s4445_s5 + $0x70] sm:$0xff] }
 0x3c9   : > { %v1002_v38 = vpop.permute.xlu1 %1001  ;;  %v1000_v25 = vpop.permute.xlu0 %999 }
 0x3ca   : > { %v1008_v33 = vsel %vm355_vm0, %v1002_v38, 0.0  ;;  %v1005_v57 = vsel %vm355_vm0, %v1000_v25, 0.0 }
 0x3cb   : > { %1009 = vadd.xlane.f32.xlu2 %v1008_v33 }
 0x3ce   : > { %v1019_v49 = vpop.xlane.xlu2 %1018 }
 0x3cf   : > { %1006 = vadd.xlane.f32.xlu0 %v1005_v57 }
 0x3d1   : > { %v1032_v52 = vpop.permute.xlu0 %1031 }
 0x3d2   : > { %v1037_v51 = vsel %vm355_vm0, %v1032_v52, 0.0 }
 0x3d3   : > { %1235 = vadd.xlane.f32.xlu2 %v1234_v18  ;;  %1038 = vadd.xlane.f32.xlu1 %v1037_v51  ;;  %v1023_v18 = vadd.f32 1e-09, %v1019_v49 }
 0x3d7   : > { %1232 = vadd.xlane.f32.xlu0 %v1231_v35 }
 0x3d9   : > { %v1034_v27 = vpop.permute.xlu0 %1033 }
 0x3da   : > { %v1040_v8 = vsel %vm355_vm0, %v1034_v27, 0.0 }
 0x3db   : > { %1021 = vadd.xlane.f32.xlu1 %v1020_v7 }
 0x3df   : > { %1041 = vadd.xlane.f32.xlu0 %v1040_v8 }
 0x3e8   : > { %v1214_v9 = vpop.permute.xlu2 %1213 }
 0x3e9   : > { %v1219_v10 = vsel %vm355_vm0, %v1214_v9, 0.0 }
 0x3ea   : > { %1220 = vadd.xlane.f32.xlu1 %v1219_v10 }
 0x3f0   : > { %v1248_v13 = vpop.permute.xlu2 %1247 }
 0x3f1   : > { %v1254_v19 = vsel %vm355_vm0, %v1248_v13, 0.0 }
 0x3f2   : > { %1203 = vadd.xlane.f32.xlu1 %v1202_v12 }
 0x3f4   : > { %v987_v20 = vpop.xlane.xlu1 %986 }
 0x3f5   : > { %v991_v25 = vadd.f32 1e-09, %v987_v20 }
 0x3f7   : > { %2591 = vrcp.f32 %v991_v25 }
 0x3fa   : > { %1255 = vadd.xlane.f32.xlu1 %v1254_v19 }
 0x3fd   : > { %v2592_v8 = vpop.eup %2591 }
 0x3fe   : > { %v995_v12 = vmul.f32 %v2592_v8, %v3608_v47 }
 0x404   : > { %v990_v54 = vpop.xlane.xlu0 %989 }
 0x405   : > { %v992_v7 = vadd.f32 1e-09, %v990_v54 }
 0x40c   : > { %v1246_v30 = vpop.permute.xlu1 %1245 }
 0x40d   : > { %v1251_v21 = vsel %vm355_vm0, %v1246_v30, 0.0 }
 0x40e   : > { %1252 = vadd.xlane.f32.xlu2 %v1251_v21 }
 0x417   : > { %v1216_v29 = vpop.permute.xlu0 %1215 }
 0x418   : > { %v1222_v31 = vsel %vm355_vm0, %v1216_v29, 0.0  ;;  %v3689_v29 = vld [vmem:[%s4445_s5 + $0x78] sm:$0xff] }
 0x419   : > { %1223 = vadd.xlane.f32.xlu0 %v1222_v31 }
 0x426   : > { %1527 = vrot.lane.b32.xlu2 %v3670_v41, %s2841_s28 }
 0x42d   : > { %1525 = vrot.lane.b32.xlu0 %v3675_v24, %s2841_s28 }
 0x432   : > { %v1201_v38 = vpop.xlane.xlu2 %1200 }
 0x433   : > { %v1205_v8 = vadd.f32 1e-09, %v1201_v38  ;;  %v3757_v38 = vld [vmem:[%s4445_s5 + $0x48] sm:$0xff] }
 0x435   : > { %1739 = vrot.lane.b32.xlu0 %v3675_v24, %s2842_s14 }
 0x43e   : > { %v1010_v33 = vpop.xlane.xlu2 %1009 }
 0x43f   : > { %v1012_v51 = vadd.f32 1e-09, %v1010_v33 }
 0x442   : > { %v1007_v57 = vpop.xlane.xlu0 %1006 }
 0x443   : > { %v1011_v52 = vadd.f32 1e-09, %v1007_v57 }
 0x445   : > { %2593 = vrcp.f32 %v1011_v52  ;;  %v3712_v52 = vld [vmem:[%s4445_s5 + $0xf8] sm:$0xff] }
 0x446   : > { %v1039_v35 = vpop.xlane.xlu1 %1038  ;;  %2595 = vrcp.f32 %v1023_v18 }
 0x447   : > { %v1043_v27 = vadd.f32 1e-09, %v1039_v35  ;;  %2597 = vrcp.f32 %v1012_v51  ;;  %v3725_v51 = vld [vmem:[%s4445_s5 + $0xf0] sm:$0xff]  ;;  %v3731_v35 = vld [vmem:[%s4445_s5 + $0x58] sm:$0xff] }
 0x449   : > { %2599 = vrcp.f32 %v1043_v27  ;;  %v3737_v27 = vld [vmem:[%s4445_s5 + $0xe8] sm:$0xff] }
 0x44a   : > { %v3681_v9 = vpop.xlane.xlu0 %1232  ;;  %2601 = vrcp.f32 %v992_v7 }
 0x44b   : > { %v2594_v10 = vpop.eup %2593 }
 0x44c   : > { %v1015_v13 = vmul.f32 %v2594_v10, %v3608_v47  ;;  %v2596_v19 = vpop.eup %2595  ;;  %v3743_v10 = vld [vmem:[%s4445_s5 + $0x50] sm:$0xff] }
 0x44d   : > { %v2598_v30 = vpop.eup %2597  ;;  %v1027_v39 = vmul.f32 %v2596_v19, %v3614_v26 }
 0x44e   : > { %v1022_v20 = vpop.xlane.xlu1 %1021  ;;  %v1049_v49 = vsel %vm355_vm0, %v995_v12, %v1015_v13  ;;  %v1016_v14 = vmul.f32 %v2598_v30, %v3606_v11  ;;  %v3749_v13 = vld [vmem:[%s4445_s5 + $0xe0] sm:$0xff]  ;;  %v3763_v30 = vld [vmem:[%s4445_s5 + $0xd8] sm:$0xff] }
 0x44f   : > { %v1024_v21 = vadd.f32 1e-09, %v1022_v20  ;;  %1069 = vmatmul.f32.vlgmr.msrb.gmra.mxu2 %v1049_v49  ;;  %v2600_v54 = vpop.eup %2599 }
 0x450   : > { %1479 = vmatpush.msrb.mxu2 %v3689_v29  ;;  %v2602_v31 = vpop.eup %2601  ;;  %v1047_v47 = vmul.f32 %v2600_v54, %v3614_v26  ;;  %v3706_v26 = vld [vmem:[%s4445_s5 + $0x68] sm:$0xff] }
 0x451   : > { %2603 = vrcp.f32 %v1024_v21  ;;  %v996_v57 = vmul.f32 %v2602_v31, %v3606_v11  ;;  %v3719_v11 = vld [vmem:[%s4445_s5 + $0x60] sm:$0xff]  ;;  %v3778_v31 = vld [vmem:[%s4445_s5 + $0xd0] sm:$0xff] }
 0x452   : > { %v1042_v1 = vpop.xlane.xlu0 %1041  ;;  %1480 = vmatpush.msrb.mxu2 %v3698_v4  ;;  %v1051_v33 = vsel %vm355_vm0, %v1027_v39, %v1047_v47  ;;  %v3784_v39 = vld [vmem:[%s4445_s5 + $0x38] sm:$0xff]  ;;  %v3790_v47 = vld [vmem:[%s4445_s5 + $0xc8] sm:$0xff] }
 0x453   : > { %v1044_v25 = vadd.f32 1e-09, %v1042_v1  ;;  %1092 = vmatmul.f32.vlgmr.msrb.gmra.mxu3 %v1051_v33  ;;  %v1050_v18 = vsel %vm355_vm0, %v996_v57, %v1016_v14  ;;  %v3796_v1 = vld [vmem:[%s4445_s5 + $0x30] sm:$0xff]  ;;  %v3810_v57 = vld [vmem:[%s4445_s5 + $0x20] sm:$0xff] }
 0x454   : > { %1481 = vmatpush.msrb.mxu2 %v3706_v26  ;;  %1502 = vmatpush.msrb.mxu3 %v3712_v52 }
 0x455   : > { %2605 = vrcp.f32 %v1044_v25  ;;  %v3803_v25 = vld [vmem:[%s4445_s5 + $0x28] sm:$0xff] }
 0x456   : > { %1482 = vmatpush.msrb.mxu2 %v3719_v11  ;;  %1503 = vmatpush.msrb.mxu3 %v3725_v51  ;;  %2607 = vrcp.f32 %v1205_v8  ;;  %v3831_v8 = vld [vmem:[%s4445_s5 + $0x10] sm:$0xff] }
 0x457   : > { %1072 = vmatmul.f32.gmra.mxu2 %v1050_v18  ;;  %v2604_v7 = vpop.eup %2603 }
 0x458   : > { %1483 = vmatpush.msrb.mxu2 %v3731_v35  ;;  %1504 = vmatpush.msrb.mxu3 %v3737_v27  ;;  %v1028_v19 = vmul.f32 %v2604_v7, %v3624_v32 }
 0x45a   : > { %1484 = vmatpush.msrb.mxu2 %v3743_v10  ;;  %1505 = vmatpush.msrb.mxu3 %v3749_v13 }
 0x45b   : > { %v2606_v12 = vpop.eup %2605 }
 0x45c   : > { %v1048_v20 = vmul.f32 %v2606_v12, %v3624_v32  ;;  %1485 = vmatpush.msrb.mxu2 %v3757_v38  ;;  %1506 = vmatpush.msrb.mxu3 %v3763_v30  ;;  %v3770_v32 = vld [vmem:[%s4445_s5 + $0x40] sm:$0xff]  ;;  %v2608_v14 = vpop.eup %2607 }
 0x45d   : > { %v1221_v49 = vpop.xlane.xlu1 %1220 }
 0x45e   : > { %v1225_v21 = vadd.f32 1e-09, %v1221_v49  ;;  %v1052_v54 = vsel %vm355_vm0, %v1028_v19, %v1048_v20  ;;  %1486 = vmatpush.msrb.mxu2 %v3770_v32  ;;  %1507 = vmatpush.msrb.mxu3 %v3778_v31  ;;  %v3877_v49 = vld [vmem:[%s4445_s5] sm:$0xff] }
 0x45f   : > { %1095 = vmatmul.f32.gmra.mxu3 %v1052_v54  ;;  %2417 = vmatmul.msk.f32.vlgmr.msra.gmra.mxu2 %vm455_vm1, %v3675_v24 }
 0x460   : > { %2609 = vrcp.f32 %v1225_v21  ;;  %1487 = vmatpush.msrb.mxu2 %v3784_v39  ;;  %1508 = vmatpush.msrb.mxu3 %v3790_v47 }
 0x462   : > { %1488 = vmatpush.msrb.mxu2 %v3796_v1  ;;  %1509 = vmatpush.msrb.mxu3 %v3302_v55  ;;  %v1209_v55 = vmul.f32 %v2608_v14, %v3630_v16 }
 0x464   : > { %1489 = vmatpush.msrb.mxu2 %v3803_v25  ;;  %1510 = vmatpush.msrb.mxu3 %v3314_v56  ;;  %v3823_v56 = vld [vmem:[%s4445_s5 + $0x18] sm:$0xff] }
 0x466   : > { %v2610_v33 = vpop.eup %2609  ;;  %1490 = vmatpush.msrb.mxu2 %v3810_v57  ;;  %1511 = vmatpush.msrb.mxu3 %v3328_v58  ;;  %v1204_v58 = vpop.xlane.xlu1 %1203 }
 0x467   : > { %2418 = vmatmul.msk.f32.gmra.mxu2 %vm455_vm1, %v3670_v41  ;;  %2419 = vmatmul.msk.f32.vlgmr.msra.gmra.mxu3 %vm455_vm1, %v3675_v24  ;;  %v1229_v18 = vmul.f32 %v2610_v33, %v3630_v16  ;;  %v1206_v16 = vadd.f32 1e-09, %v1204_v58 }
 0x468   : > { %1491 = vmatpush.msrb.mxu2 %v3823_v56  ;;  %1512 = vmatpush.msrb.mxu3 %v3344_v60  ;;  %v1237_v60 = vadd.f32 1e-09, %v3681_v9  ;;  %v3869_v9 = vld [vmem:[%s4445_s5 + $0x8] sm:$0xff] }
 0x469   : > { %v1263_v7 = vsel %vm355_vm0, %v1209_v55, %v1229_v18 }
 0x46a   : > { %1283 = vmatmul.f32.vlgmr.msra.gmra.mxu0 %v1263_v7  ;;  %1492 = vmatpush.msrb.mxu2 %v3831_v8  ;;  %2611 = vrcp.f32 %v1237_v60 }
 0x46b   : > { %1693 = vmatpush.msra.mxu0 %v3689_v29  ;;  %1513 = vmatpush.msrb.mxu3 %v3358_v62 }
 0x46c   : > { %1493 = vmatpush.msrb.mxu2 %v3339_v59  ;;  %v1236_v59 = vpop.xlane.xlu2 %1235 }
 0x46d   : > { %1694 = vmatpush.msra.mxu0 %v3698_v4  ;;  %1514 = vmatpush.msrb.mxu3 %v3365_v63 }
 0x46e   : > { %1494 = vmatpush.msrb.mxu2 %v3353_v61  ;;  %v1256_v61 = vpop.xlane.xlu1 %1255 }
 0x46f   : > { %2420 = vmatmul.msk.f32.gmra.mxu3 %vm455_vm1, %v3670_v41  ;;  %1695 = vmatpush.msra.mxu0 %v3706_v26 }
 0x470   : > { %1515 = vmatpush.msrb.mxu3 %v3373_v0  ;;  %1759 = vmatpush.msra.mxu2 %v3536_v28  ;;  %v1258_v0 = vadd.f32 1e-09, %v1256_v61 }
 0x471   : > { %1696 = vmatpush.msra.mxu0 %v3719_v11 }
 0x472   : > { %1516 = vmatpush.msrb.mxu3 %v3385_v22  ;;  %1760 = vmatpush.msra.mxu2 %v3544_v34  ;;  %v1238_v22 = vadd.f32 1e-09, %v1236_v59 }
 0x473   : > { %1697 = vmatpush.msra.mxu0 %v3731_v35 }
 0x474   : > { %1517 = vmatpush.msrb.mxu3 %v3394_v23  ;;  %1761 = vmatpush.msra.mxu2 %v3556_v43  ;;  %v2612_v23 = vpop.eup %2611 }
 0x475   : > { %1698 = vmatpush.msra.mxu0 %v3743_v10  ;;  %v1241_v19 = vmul.f32 %v2612_v23, %v3640_v15  ;;  %v3925_v23 = vld [vmem:[%s4445_s5 + $0xa0] sm:$0xff] }
 0x476   : > { %1782 = vmatpush.msra.mxu3 %v3550_v36  ;;  %1762 = vmatpush.msra.mxu2 %v3568_v45 }
 0x477   : > { %1699 = vmatpush.msra.mxu0 %v3757_v38 }
 0x478   : > { %1783 = vmatpush.msra.mxu3 %v3562_v44 }
 0x479   : > { %1700 = vmatpush.msra.mxu0 %v3770_v32 }
 0x47a   : > { %1784 = vmatpush.msra.mxu3 %v3574_v46 }
 0x47b   : > { %1701 = vmatpush.msra.mxu0 %v3784_v39 }
 0x47c   : > { %1785 = vmatpush.msra.mxu3 %v3580_v50 }
 0x47d   : > { %1702 = vmatpush.msra.mxu0 %v3796_v1 }
 0x47f   : > { %1703 = vmatpush.msra.mxu0 %v3803_v25 }
 0x481   : > { %v1253_v62 = vpop.xlane.xlu2 %1252  ;;  %1704 = vmatpush.msra.mxu0 %v3810_v57 }
 0x482   : > { %v1257_v63 = vadd.f32 1e-09, %v1253_v62 }
 0x483   : > { %1705 = vmatpush.msra.mxu0 %v3823_v56 }
 0x484   : > { %2613 = vrcp.f32 %v1257_v63 }
 0x485   : > { %1706 = vmatpush.msra.mxu0 %v3831_v8  ;;  %2615 = vrcp.f32 %v1258_v0  ;;  %v3911_v0 = vld [vmem:[%s4445_s5 + $0xb0] sm:$0xff] }
 0x486   : > { %2617 = vrcp.f32 %v1238_v22  ;;  %v3918_v22 = vld [vmem:[%s4445_s5 + $0xa8] sm:$0xff] }
 0x487   : > { %1707 = vmatpush.msra.mxu0 %v3869_v9  ;;  %2619 = vrcp.f32 %v1206_v16 }
 0x489   : > { %1708 = vmatpush.msra.mxu0 %v3877_v49  ;;  %v1528_v16 = vpop.permute.xlu2 %1527 }
 0x48a   : > { %v2614_v12 = vpop.eup %2613 }
 0x48b   : > { %v1261_v20 = vmul.f32 %v2614_v12, %v3640_v15  ;;  %v2616_v33 = vpop.eup %2615 }
 0x48c   : > { %v1224_v21 = vpop.xlane.xlu0 %1223  ;;  %v2618_v55 = vpop.eup %2617  ;;  %v1262_v15 = vmul.f32 %v2616_v33, %v3636_v6 }
 0x48d   : > { %v1226_v54 = vadd.f32 1e-09, %v1224_v21  ;;  %v1265_v14 = vsel %vm355_vm0, %v1241_v19, %v1261_v20  ;;  %v2620_v18 = vpop.eup %2619  ;;  %v1242_v7 = vmul.f32 %v2618_v55, %v3636_v6  ;;  %v3897_v6 = vld [vmem:[%s4445_s5 + $0xc0] sm:$0xff] }
 0x48e   : > { %1306 = vmatmul.f32.vlgmr.msra.gmra.mxu1 %v1265_v14  ;;  %v1210_v60 = vmul.f32 %v2620_v18, %v3644_v17 }
 0x48f   : > { %2621 = vrcp.f32 %v1226_v54  ;;  %1716 = vmatpush.msra.mxu1 %v3712_v52  ;;  %v1266_v59 = vsel %vm355_vm0, %v1242_v7, %v1262_v15 }
 0x491   : > { %1717 = vmatpush.msra.mxu1 %v3725_v51 }
 0x493   : > { %1718 = vmatpush.msra.mxu1 %v3737_v27 }
 0x495   : > { %v2622_v58 = vpop.eup %2621  ;;  %1719 = vmatpush.msra.mxu1 %v3749_v13 }
 0x496   : > { %1309 = vmatmul.f32.gmra.mxu1 %v1266_v59  ;;  %v1230_v61 = vmul.f32 %v2622_v58, %v3644_v17  ;;  %v3903_v17 = vld [vmem:[%s4445_s5 + $0xb8] sm:$0xff] }
 0x497   : > { %1720 = vmatpush.msra.mxu1 %v3763_v30 }
 0x498   : > { %v1264_v62 = vsel %vm355_vm0, %v1210_v60, %v1230_v61 }
 0x499   : > { %1286 = vmatmul.f32.gmra.mxu0 %v1264_v62  ;;  %1721 = vmatpush.msra.mxu1 %v3778_v31 }
 0x49b   : > { %1722 = vmatpush.msra.mxu1 %v3790_v47 }
 0x49d   : > { %1723 = vmatpush.msra.mxu1 %v3897_v6 }
 0x49f   : > { %v1526_v63 = vpop.permute.xlu0 %1525  ;;  %1724 = vmatpush.msra.mxu1 %v3903_v17 }
 0x4a0   : > { %2423 = vmatmul.msk.f32.vlgmr.msrb.gmra.mxu1 %vm455_vm1, %v1526_v63 }
 0x4a1   : > { %2421 = vmatmul.msk.f32.vlgmr.msrb.gmra.mxu0 %vm455_vm1, %v1526_v63  ;;  %1725 = vmatpush.msra.mxu1 %v3911_v0 }
 0x4a2   : > { %1973 = vmatpush.msrb.mxu0 %v3536_v28  ;;  %v3932_v28 = vld [vmem:[%s4445_s5 + $0x98] sm:$0xff] }
 0x4a3   : > { %1726 = vmatpush.msra.mxu1 %v3918_v22 }
 0x4a4   : > { %1974 = vmatpush.msrb.mxu0 %v3544_v34  ;;  %v3941_v34 = vld [vmem:[%s4445_s5 + $0x90] sm:$0xff] }
 0x4a5   : > { %1727 = vmatpush.msra.mxu1 %v3925_v23 }
 0x4a6   : > { %1975 = vmatpush.msrb.mxu0 %v3556_v43  ;;  %v3947_v43 = vld [vmem:[%s4445_s5 + $0x88] sm:$0xff] }
 0x4a7   : > { %1728 = vmatpush.msra.mxu1 %v3932_v28 }
 0x4a8   : > { %2424 = vmatmul.msk.f32.gmra.mxu1 %vm455_vm1, %v1528_v16  ;;  %1976 = vmatpush.msrb.mxu0 %v3568_v45  ;;  %v3953_v45 = vld [vmem:[%s4445_s5 + $0x80] sm:$0xff] }
 0x4a9   : > { %2422 = vmatmul.msk.f32.gmra.mxu0 %vm455_vm1, %v1528_v16  ;;  %1729 = vmatpush.msra.mxu1 %v3941_v34 }
 0x4ab   : > { %1730 = vmatpush.msra.mxu1 %v3947_v43 }
 0x4ad   : > { %1731 = vmatpush.msra.mxu1 %v3953_v45 }
 0x4af   : > { %1996 = vmatpush.msrb.mxu1 %v3550_v36 }
 0x4b1   : > { %1997 = vmatpush.msrb.mxu1 %v3562_v44 }
 0x4b3   : > { %1998 = vmatpush.msrb.mxu1 %v3574_v46 }
 0x4b5   : > { %1999 = vmatpush.msrb.mxu1 %v3580_v50 }
 0x4d2   : > { %v1070_v12 = vpop.f32.mrf.mxu2 }
 0x4d3   : > { %v1071_v19 = vadd.f32 %v3586_v53, %v1070_v12 }
 0x4d6   : > { %v1093_v20 = vpop.f32.mrf.mxu3 }
 0x4d7   : > { %v3961_v21 = vadd.f32 %v1093_v20, %v1071_v19 }
 0x4d9   : > { %4487 = vst [vmem:[#allocation8_spill] sm:$0xff] %v3961_v21 }
 0x4da   : > { %v1073_v54 = vpop.f32.mrf.mxu2 }
 0x4db   : > { %v1074_v14 = vadd.f32 %v3586_v53, %v1073_v54 }
 0x4e2   : > { %v1096_v33 = vpop.f32.mrf.mxu3  ;;  %v1336_v55 = vpop.f32.mrf.mxu2 }
 0x4e3   : > { %v3964_v15 = vadd.f32 %v1096_v33, %v1074_v14  ;;  %v1337_v50 = vadd.f32 %v1336_v55, %v4481_v42 }
 0x4e5   : > { %4488 = vst [vmem:[#allocation7_spill] sm:$0xff] %v3964_v15 }
 0x4e7   : > { %v1284_v40 = vpop.f32.mrf.mxu0 }
 0x4ea   : > { %v1339_v44 = vpop.f32.mrf.mxu2  ;;  %v1359_v46 = vpop.f32.mrf.mxu3 }
 0x4eb   : > { %v1340_v18 = vadd.f32 %v1339_v44, %v4481_v42  ;;  %v1360_v62 = vadd.f32 %v1359_v46, %v4482_v37 }
 0x4ed   : > { %v1365_v7 = vmax.f32 %v1337_v50, %v1340_v18 }
 0x4ef   : > { %v1366_v58 = vrot.slane %v1365_v7, 4 }
 0x4f1   : > { %v1367_v59 = vmax.f32 %v1365_v7, %v1366_v58 }
 0x4f2   : > { %v1362_v60 = vpop.f32.mrf.mxu3 }
 0x4f3   : > { %v1368_v61 = vrot.slane %v1367_v59, 2  ;;  %v1363_v63 = vadd.f32 %v1362_v60, %v4482_v37 }
 0x4f5   : > { %v1369_v16 = vmax.f32 %v1367_v59, %v1368_v61  ;;  %v1372_v12 = vmax.f32 %v1360_v62, %v1363_v63 }
 0x4f7   : > { %v1370_v19 = vrot.slane %v1369_v16, 1  ;;  %v1373_v20 = vrot.slane %v1372_v12, 4 }
 0x4f9   : > { %v1371_v54 = vmax.f32 %v1369_v16, %v1370_v19  ;;  %v1374_v14 = vmax.f32 %v1372_v12, %v1373_v20 }
 0x4fb   : > { %v1379_v33 = vsub.f32 %v1337_v50, %v1371_v54  ;;  %v1381_v48 = vsub.f32 %v1340_v18, %v1371_v54  ;;  %v1375_v55 = vrot.slane %v1374_v14, 2  ;;  %v1285_v18 = vadd.f32 %v3586_v53, %v1284_v40 }
 0x4fd   : > { %v1383_v36 = vmul.f32 1.442695, %v1379_v33  ;;  %v1387_v44 = vmul.f32 1.442695, %v1381_v48  ;;  %v1376_v3 = vmax.f32 %v1374_v14, %v1375_v55 }
 0x4ff   : > { %2623 = vpow2.f32 %v1383_v36  ;;  %v1377_v7 = vrot.slane %v1376_v3, 1 }
 0x500   : > { %2625 = vpow2.f32 %v1387_v44 }
 0x501   : > { %v1378_v58 = vmax.f32 %v1376_v3, %v1377_v7 }
 0x503   : > { %v1380_v2 = vsub.f32 %v1360_v62, %v1378_v58  ;;  %v1382_v46 = vsub.f32 %v1363_v63, %v1378_v58 }
 0x505   : > { %v2624_v5 = vpop.eup %2623  ;;  %v1385_v60 = vmul.f32 1.442695, %v1380_v2  ;;  %v1389_v59 = vmul.f32 1.442695, %v1382_v46 }
 0x506   : > { %v2626_v61 = vpop.eup %2625 }
 0x507   : > { %v1391_v21 = vadd.f32 %v2626_v61, %v2624_v5  ;;  %2627 = vpow2.f32 %v1385_v60 }
 0x508   : > { %2629 = vpow2.f32 %v1389_v59 }
 0x509   : > { %v1392_v50 = vrot.slane %v1391_v21, 4 }
 0x50b   : > { %v1393_v16 = vadd.f32 %v1392_v50, %v1391_v21  ;;  %v1307_v48 = vpop.f32.mrf.mxu1 }
 0x50c   : > { %v3973_v12 = vadd.f32 %v1307_v48, %v1285_v18 }
 0x50d   : > { %v2628_v36 = vpop.eup %2627  ;;  %v1394_v19 = vrot.slane %v1393_v16, 2 }
 0x50e   : > { %4489 = vst [vmem:[#allocation12_spill] sm:$0xff] %v3973_v12  ;;  %v2630_v3 = vpop.eup %2629 }
 0x50f   : > { %v1395_v62 = vadd.f32 %v1394_v19, %v1393_v16  ;;  %v1398_v63 = vadd.f32 %v2630_v3, %v2628_v36 }
 0x511   : > { %v1396_v20 = vrot.slane %v1395_v62, 1  ;;  %v1399_v2 = vrot.slane %v1398_v63, 4 }
 0x513   : > { %v1400_v54 = vadd.f32 %v1399_v2, %v1398_v63  ;;  %v1397_v14 = vadd.f32 %v1396_v20, %v1395_v62  ;;  %v1310_v55 = vpop.f32.mrf.mxu1 }
 0x515   : > { %v1401_v33 = vrot.slane %v1400_v54, 2  ;;  %2631 = vrcp.f32 %v1397_v14 }
 0x516   : > { %v1287_v44 = vpop.f32.mrf.mxu0 }
 0x517   : > { %v1402_v7 = vadd.f32 %v1401_v33, %v1400_v54  ;;  %v1288_v40 = vadd.f32 %v3586_v53, %v1287_v44 }
 0x519   : > { %v1403_v21 = vrot.slane %v1402_v7, 1  ;;  %v3976_v58 = vadd.f32 %v1310_v55, %v1288_v40 }
 0x51b   : > { %4490 = vst [vmem:[#allocation13_spill] sm:$0xff] %v3976_v58  ;;  %v2632_v46 = vpop.eup %2631  ;;  %v1404_v60 = vadd.f32 %v1403_v21, %v1402_v7 }
 0x51c   : > { %v3980_v50 = vmul.f32 %v2632_v46, %v2624_v5  ;;  %v3982_v18 = vmul.f32 %v2632_v46, %v2626_v61 }
 0x51d   : > { %v1573_v16 = vpop.f32.mrf.mxu1  ;;  %2633 = vrcp.f32 %v1404_v60 }
 0x51e   : > { %1425 = vrot.lane.b32.xlu1 %v3980_v50, %s2842_s14  ;;  %1427 = vrot.lane.b32.xlu2 %v3982_v18, %s2842_s14  ;;  %v1550_v53 = vpop.f32.mrf.mxu0  ;;  %v1574_v63 = vadd.f32 %v1573_v16, %v4482_v37 }
 0x51f   : > { %v1551_v20 = vadd.f32 %v1550_v53, %v4481_v42 }
 0x523   : > { %v2634_v48 = vpop.eup %2633 }
 0x524   : > { %v3988_v19 = vmul.f32 %v2634_v48, %v2628_v36  ;;  %v3996_v36 = vmul.f32 %v2634_v48, %v2630_v3 }
 0x525   : > { %v1576_v62 = vpop.f32.mrf.mxu1 }
 0x526   : > { %1457 = vrot.lane.b32.xlu0 %v3988_v19, %s2842_s14  ;;  %v1577_v5 = vadd.f32 %v1576_v62, %v4482_v37  ;;  %v1553_v61 = vpop.f32.mrf.mxu0 }
 0x527   : > { %v1554_v2 = vadd.f32 %v1553_v61, %v4481_v42 }
 0x528   : > { %v1586_v54 = vmax.f32 %v1574_v63, %v1577_v5 }
 0x529   : > { %v1579_v14 = vmax.f32 %v1551_v20, %v1554_v2 }
 0x52a   : > { %v1587_v33 = vrot.slane %v1586_v54, 4 }
 0x52b   : > { %v1580_v55 = vrot.slane %v1579_v14, 4 }
 0x52c   : > { %v1588_v44 = vmax.f32 %v1586_v54, %v1587_v33 }
 0x52d   : > { %v1581_v7 = vmax.f32 %v1579_v14, %v1580_v55 }
 0x52e   : > { %v1589_v40 = vrot.slane %v1588_v44, 2  ;;  %1459 = vrot.lane.b32.xlu0 %v3996_v36, %s2842_s14 }
 0x52f   : > { %v1582_v21 = vrot.slane %v1581_v7, 2 }
 0x530   : > { %v1590_v46 = vmax.f32 %v1588_v44, %v1589_v40 }
 0x531   : > { %v1583_v60 = vmax.f32 %v1581_v7, %v1582_v21 }
 0x532   : > { %v1591_v16 = vrot.slane %v1590_v46, 1 }
 0x533   : > { %v1584_v62 = vrot.slane %v1583_v60, 1 }
 0x534   : > { %v1592_v53 = vmax.f32 %v1590_v46, %v1591_v16 }
 0x535   : > { %v1585_v59 = vmax.f32 %v1583_v60, %v1584_v62 }
 0x536   : > { %v1594_v61 = vsub.f32 %v1574_v63, %v1592_v53  ;;  %v1596_v12 = vsub.f32 %v1577_v5, %v1592_v53  ;;  %v1411_v63 = vsel %vm355_vm0, %v3980_v50, 0.0  ;;  %v1414_v53 = vsel %vm355_vm0, %v3982_v18, 0.0 }
 0x537   : > { %v1593_v58 = vsub.f32 %v1551_v20, %v1585_v59  ;;  %v1595_v15 = vsub.f32 %v1554_v2, %v1585_v59  ;;  %v1446_v2 = vsel %vm355_vm0, %v3996_v36, 0.0 }
 0x538   : > { %v1599_v37 = vmul.f32 1.442695, %v1594_v61  ;;  %v1603_v54 = vmul.f32 1.442695, %v1596_v12  ;;  %v1443_v12 = vsel %vm355_vm0, %v3988_v19, 0.0 }
 0x539   : > { %v1597_v3 = vmul.f32 1.442695, %v1593_v58  ;;  %v1601_v48 = vmul.f32 1.442695, %v1595_v15 }
 0x53a   : > { %2635 = vpow2.f32 %v1599_v37 }
 0x53b   : > { %2637 = vpow2.f32 %v1603_v54 }
 0x53c   : > { %2639 = vpow2.f32 %v1597_v3 }
 0x53d   : > { %2641 = vpow2.f32 %v1601_v48 }
 0x540   : > { %v2636_v14 = vpop.eup %2635 }
 0x541   : > { %v2638_v33 = vpop.eup %2637 }
 0x542   : > { %v2640_v55 = vpop.eup %2639  ;;  %v1612_v44 = vadd.f32 %v2638_v33, %v2636_v14 }
 0x543   : > { %v2642_v7 = vpop.eup %2641 }
 0x544   : > { %v1613_v40 = vrot.slane %v1612_v44, 4  ;;  %v1605_v21 = vadd.f32 %v2642_v7, %v2640_v55 }
 0x546   : > { %v1606_v46 = vrot.slane %v1605_v21, 4  ;;  %v1614_v15 = vadd.f32 %v1613_v40, %v1612_v44 }
 0x547   : > { %1412 = vadd.xlane.f32.xlu2 %v1411_v63 }
 0x548   : > { %v1607_v37 = vadd.f32 %v1606_v46, %v1605_v21  ;;  %1444 = vadd.xlane.f32.xlu1 %v1443_v12  ;;  %v1615_v59 = vrot.slane %v1614_v15, 2  ;;  %v4026_v46 = vpop.permute.xlu0 %1739 }
 0x54a   : > { %v1608_v58 = vrot.slane %v1607_v37, 2  ;;  %v1616_v60 = vadd.f32 %v1615_v59, %v1614_v15 }
 0x54c   : > { %v1609_v5 = vadd.f32 %v1608_v58, %v1607_v37  ;;  %v1617_v62 = vrot.slane %v1616_v60, 1 }
 0x54e   : > { %v1610_v20 = vrot.slane %v1609_v5, 1  ;;  %v1618_v61 = vadd.f32 %v1617_v62, %v1616_v60 }
 0x54f   : > { %1447 = vadd.xlane.f32.xlu2 %v1446_v2 }
 0x550   : > { %v1611_v16 = vadd.f32 %v1610_v20, %v1609_v5 }
 0x552   : > { %2643 = vrcp.f32 %v1611_v16 }
 0x553   : > { %2645 = vrcp.f32 %v1618_v61 }
 0x558   : > { %1415 = vadd.xlane.f32.xlu0 %v1414_v53  ;;  %v2644_v54 = vpop.eup %2643 }
 0x559   : > { %v4008_v3 = vmul.f32 %v2644_v54, %v2640_v55  ;;  %v2646_v48 = vpop.eup %2645  ;;  %v4020_v21 = vmul.f32 %v2644_v54, %v2642_v7 }
 0x55a   : > { %v4012_v44 = vmul.f32 %v2646_v48, %v2636_v14  ;;  %v4016_v40 = vmul.f32 %v2646_v48, %v2638_v33 }
 0x55b   : > { %v1628_v55 = vsel %vm355_vm0, %v4020_v21, 0.0  ;;  %v1625_v14 = vsel %vm355_vm0, %v4008_v3, 0.0 }
 0x55c   : > { %v1657_v33 = vsel %vm355_vm0, %v4012_v44, 0.0  ;;  %v1660_v15 = vsel %vm355_vm0, %v4016_v40, 0.0 }
 0x561   : > { %1639 = vrot.lane.b32.xlu1 %v4008_v3, %s2842_s14 }
 0x567   : > { %1671 = vrot.lane.b32.xlu2 %v4012_v44, %s2842_s14 }
 0x569   : > { %1673 = vrot.lane.b32.xlu1 %v4016_v40, %s2842_s14 }
 0x56c   : > { %1641 = vrot.lane.b32.xlu0 %v4020_v21, %s2842_s14 }
 0x578   : > { %v1428_v58 = vpop.permute.xlu2 %1427 }
 0x579   : > { %v1434_v5 = vsel %vm355_vm0, %v1428_v58, 0.0 }
 0x590   : > { %1629 = vadd.xlane.f32.xlu2 %v1628_v55  ;;  %v1426_v12 = vpop.permute.xlu1 %1425 }
 0x591   : > { %v1431_v37 = vsel %vm355_vm0, %v1426_v12, 0.0 }
 0x593   : > { %1626 = vadd.xlane.f32.xlu1 %v1625_v14 }
 0x596   : > { %1658 = vadd.xlane.f32.xlu0 %v1657_v33 }
 0x598   : > { %v1458_v63 = vpop.permute.xlu0 %1457 }
 0x599   : > { %v1463_v7 = vsel %vm355_vm0, %v1458_v63, 0.0 }
 0x59a   : > { %1464 = vadd.xlane.f32.xlu2 %v1463_v7 }
 0x59b   : > { %1661 = vadd.xlane.f32.xlu1 %v1660_v15 }
 0x59e   : > { %1432 = vadd.xlane.f32.xlu0 %v1431_v37 }
 0x5a0   : > { %v1460_v59 = vpop.permute.xlu0 %1459 }
 0x5a1   : > { %v1466_v20 = vsel %vm355_vm0, %v1460_v59, 0.0 }
 0x5a3   : > { %1435 = vadd.xlane.f32.xlu1 %v1434_v5 }
 0x5a6   : > { %1467 = vadd.xlane.f32.xlu0 %v1466_v20 }
 0x5ba   : > { %v1413_v2 = vpop.xlane.xlu2 %1412 }
 0x5bb   : > { %v1445_v62 = vpop.xlane.xlu1 %1444  ;;  %v1417_v59 = vadd.f32 1e-09, %v1413_v2 }
 0x5bc   : > { %v1449_v37 = vadd.f32 1e-09, %v1445_v62 }
 0x5be   : > { %2647 = vrcp.f32 %v1449_v37 }
 0x5c2   : > { %v1448_v60 = vpop.xlane.xlu2 %1447 }
 0x5ca   : > { %v1672_v16 = vpop.permute.xlu2 %1671 }
 0x5cb   : > { %v1677_v53 = vsel %vm355_vm0, %v1672_v16, 0.0  ;;  %v1416_v48 = vpop.xlane.xlu0 %1415 }
 0x5cc   : > { %1678 = vadd.xlane.f32.xlu1 %v1677_v53  ;;  %v2648_v53 = vpop.eup %2647 }
 0x5d3   : > { %v1640_v61 = vpop.permute.xlu1 %1639 }
 0x5d4   : > { %v1645_v54 = vsel %vm355_vm0, %v1640_v61, 0.0  ;;  %v1450_v61 = vadd.f32 1e-09, %v1448_v60 }
 0x5d5   : > { %1646 = vadd.xlane.f32.xlu2 %v1645_v54  ;;  %v1418_v54 = vadd.f32 1e-09, %v1416_v48 }
 0x5db   : > { %v1674_v55 = vpop.permute.xlu1 %1673 }
 0x5dc   : > { %v1680_v14 = vsel %vm355_vm0, %v1674_v55, 0.0 }
 0x5dd   : > { %1681 = vadd.xlane.f32.xlu2 %v1680_v14 }
 0x5de   : > { %v1642_v33 = vpop.permute.xlu0 %1641 }
 0x5df   : > { %v1648_v63 = vsel %vm355_vm0, %v1642_v33, 0.0  ;;  %v1453_v33 = vmul.f32 %v2648_v53, %v3988_v19 }
 0x5e0   : > { %1649 = vadd.xlane.f32.xlu0 %v1648_v63 }
 0x5e5   : > { %1741 = vrot.lane.b32.xlu1 %v3670_v41, %s2842_s14 }
 0x5f4   : > { %1955 = vrot.lane.b32.xlu0 %v3670_v41, %s2843_s29 }
 0x5f5   : > { %1953 = vrot.lane.b32.xlu2 %v3675_v24, %s2843_s29 }
 0x603   : > { %v4048_v7 = vpop.xlane.xlu2 %1629 }
 0x606   : > { %v4050_v12 = vpop.xlane.xlu1 %1626 }
 0x609   : > { %v4052_v15 = vpop.xlane.xlu0 %1658 }
 0x60d   : > { %v1465_v58 = vpop.xlane.xlu2 %1464 }
 0x60e   : > { %v1469_v5 = vadd.f32 1e-09, %v1465_v58  ;;  %v4054_v20 = vpop.xlane.xlu1 %1661 }
 0x610   : > { %2649 = vrcp.f32 %v1469_v5 }
 0x611   : > { %v1433_v16 = vpop.xlane.xlu0 %1432  ;;  %2651 = vrcp.f32 %v1417_v59 }
 0x612   : > { %v1437_v41 = vadd.f32 1e-09, %v1433_v16 }
 0x614   : > { %2653 = vrcp.f32 %v1437_v41 }
 0x615   : > { %2655 = vrcp.f32 %v1450_v61 }
 0x616   : > { %v2650_v24 = vpop.eup %2649  ;;  %v1436_v55 = vpop.xlane.xlu1 %1435 }
 0x617   : > { %v1438_v14 = vadd.f32 1e-09, %v1436_v55  ;;  %v1473_v62 = vmul.f32 %v2650_v24, %v3988_v19  ;;  %v2652_v2 = vpop.eup %2651 }
 0x618   : > { %v1421_v60 = vmul.f32 %v2652_v2, %v3980_v50 }
 0x619   : > { %2657 = vrcp.f32 %v1438_v14  ;;  %v1468_v63 = vpop.xlane.xlu0 %1467  ;;  %v1477_v37 = vsel %vm355_vm0, %v1453_v33, %v1473_v62  ;;  %v1631_v33 = vadd.f32 1e-09, %v4050_v12  ;;  %v1632_v12 = vadd.f32 1e-09, %v4048_v7 }
 0x61a   : > { %v2654_v58 = vpop.eup %2653  ;;  %2659 = vrcp.f32 %v1418_v54  ;;  %v1470_v59 = vadd.f32 1e-09, %v1468_v63  ;;  %1518 = vmatmul.f32.vlgmr.msrb.gmra.mxu3 %v1477_v37 }
 0x61b   : > { %v1441_v48 = vmul.f32 %v2654_v58, %v3980_v50  ;;  %1930 = vmatpush.msrb.mxu3 %v3712_v52  ;;  %v2656_v19 = vpop.eup %2655 }
 0x61c   : > { %2661 = vrcp.f32 %v1470_v59  ;;  %v1454_v24 = vmul.f32 %v2656_v19, %v3996_v36 }
 0x61d   : > { %v1475_v5 = vsel %vm355_vm0, %v1421_v60, %v1441_v48  ;;  %1931 = vmatpush.msrb.mxu3 %v3725_v51  ;;  %v1664_v60 = vadd.f32 1e-09, %v4054_v20 }
 0x61e   : > { %1495 = vmatmul.f32.vlgmr.msrb.gmra.mxu2 %v1475_v5 }
 0x61f   : > { %v2658_v16 = vpop.eup %2657  ;;  %1932 = vmatpush.msrb.mxu3 %v3737_v27  ;;  %1907 = vmatpush.msrb.mxu2 %v3689_v29 }
 0x620   : > { %v2660_v41 = vpop.eup %2659  ;;  %v1442_v53 = vmul.f32 %v2658_v16, %v3982_v18 }
 0x621   : > { %1933 = vmatpush.msrb.mxu3 %v3749_v13  ;;  %1908 = vmatpush.msrb.mxu2 %v3698_v4  ;;  %v1422_v61 = vmul.f32 %v2660_v41, %v3982_v18  ;;  %v1663_v18 = vadd.f32 1e-09, %v4052_v15 }
 0x622   : > { %v2662_v50 = vpop.eup %2661 }
 0x623   : > { %v1474_v54 = vmul.f32 %v2662_v50, %v3996_v36  ;;  %1934 = vmatpush.msrb.mxu3 %v3763_v30  ;;  %1909 = vmatpush.msrb.mxu2 %v3706_v26  ;;  %v1476_v55 = vsel %vm355_vm0, %v1422_v61, %v1442_v53  ;;  %2663 = vrcp.f32 %v1663_v18 }
 0x625   : > { %v1478_v14 = vsel %vm355_vm0, %v1454_v24, %v1474_v54  ;;  %1935 = vmatpush.msrb.mxu3 %v3778_v31  ;;  %1910 = vmatpush.msrb.mxu2 %v3719_v11 }
 0x626   : > { %1498 = vmatmul.f32.gmra.mxu2 %v1476_v55  ;;  %1521 = vmatmul.f32.gmra.mxu3 %v1478_v14 }
 0x627   : > { %1936 = vmatpush.msrb.mxu3 %v3790_v47  ;;  %1911 = vmatpush.msrb.mxu2 %v3731_v35 }
 0x629   : > { %1937 = vmatpush.msrb.mxu3 %v3897_v6  ;;  %1912 = vmatpush.msrb.mxu2 %v3743_v10  ;;  %v2664_v62 = vpop.eup %2663 }
 0x62a   : > { %v1667_v58 = vmul.f32 %v2664_v62, %v4012_v44 }
 0x62b   : > { %1938 = vmatpush.msrb.mxu3 %v3903_v17  ;;  %1913 = vmatpush.msrb.mxu2 %v3757_v38 }
 0x62d   : > { %1939 = vmatpush.msrb.mxu3 %v3911_v0  ;;  %1914 = vmatpush.msrb.mxu2 %v3770_v32 }
 0x62e   : > { %2425 = vmatmul.msk.f32.vlgmr.msra.gmra.mxu2 %vm455_vm1, %v4026_v46  ;;  %2427 = vmatmul.msk.f32.vlgmr.msra.gmra.mxu3 %vm455_vm1, %v4026_v46 }
 0x62f   : > { %1940 = vmatpush.msrb.mxu3 %v3918_v22  ;;  %1915 = vmatpush.msrb.mxu2 %v3784_v39 }
 0x631   : > { %1941 = vmatpush.msrb.mxu3 %v3925_v23  ;;  %1916 = vmatpush.msrb.mxu2 %v3796_v1 }
 0x633   : > { %1942 = vmatpush.msrb.mxu3 %v3932_v28  ;;  %1917 = vmatpush.msrb.mxu2 %v3803_v25 }
 0x635   : > { %1943 = vmatpush.msrb.mxu3 %v3941_v34  ;;  %1918 = vmatpush.msrb.mxu2 %v3810_v57 }
 0x637   : > { %1944 = vmatpush.msrb.mxu3 %v3947_v43  ;;  %1919 = vmatpush.msrb.mxu2 %v3823_v56 }
 0x639   : > { %1945 = vmatpush.msrb.mxu3 %v3953_v45  ;;  %1920 = vmatpush.msrb.mxu2 %v3831_v8 }
 0x63b   : > { %1921 = vmatpush.msrb.mxu2 %v3869_v9 }
 0x63d   : > { %1922 = vmatpush.msrb.mxu2 %v3877_v49 }
 0x63f   : > { %v1679_v36 = vpop.xlane.xlu1 %1678 }
 0x640   : > { %v1683_v46 = vadd.f32 1e-09, %v1679_v36 }
 0x642   : > { %2665 = vrcp.f32 %v1683_v46 }
 0x643   : > { %2667 = vrcp.f32 %v1631_v33 }
 0x648   : > { %v2666_v2 = vpop.eup %2665  ;;  %v1647_v63 = vpop.xlane.xlu2 %1646 }
 0x649   : > { %v1651_v37 = vadd.f32 1e-09, %v1647_v63  ;;  %v1687_v59 = vmul.f32 %v2666_v2, %v4012_v44  ;;  %v2668_v48 = vpop.eup %2667 }
 0x64a   : > { %v1635_v44 = vmul.f32 %v2668_v48, %v4008_v3 }
 0x64b   : > { %2669 = vrcp.f32 %v1651_v37  ;;  %v1691_v15 = vsel %vm355_vm0, %v1667_v58, %v1687_v59 }
 0x64c   : > { %1732 = vmatmul.f32.vlgmr.msra.gmra.mxu1 %v1691_v15  ;;  %2671 = vrcp.f32 %v1664_v60 }
 0x64d   : > { %2144 = vmatpush.msra.mxu1 %v3712_v52 }
 0x64f   : > { %2145 = vmatpush.msra.mxu1 %v3725_v51 }
 0x650   : > { %v1682_v5 = vpop.xlane.xlu2 %1681 }
 0x651   : > { %v2670_v19 = vpop.eup %2669  ;;  %v1684_v16 = vadd.f32 1e-09, %v1682_v5  ;;  %2146 = vmatpush.msra.mxu1 %v3737_v27 }
 0x652   : > { %v1655_v41 = vmul.f32 %v2670_v19, %v4008_v3  ;;  %v2672_v7 = vpop.eup %2671 }
 0x653   : > { %2673 = vrcp.f32 %v1684_v16  ;;  %v1650_v53 = vpop.xlane.xlu0 %1649  ;;  %2147 = vmatpush.msra.mxu1 %v3749_v13  ;;  %v1668_v20 = vmul.f32 %v2672_v7, %v4016_v40 }
 0x654   : > { %2675 = vrcp.f32 %v1632_v12  ;;  %v1652_v52 = vadd.f32 1e-09, %v1650_v53  ;;  %v1689_v51 = vsel %vm355_vm0, %v1635_v44, %v1655_v41 }
 0x655   : > { %1709 = vmatmul.f32.vlgmr.msra.gmra.mxu0 %v1689_v51  ;;  %2148 = vmatpush.msra.mxu1 %v3763_v30 }
 0x656   : > { %2677 = vrcp.f32 %v1652_v52  ;;  %2121 = vmatpush.msra.mxu0 %v3689_v29 }
 0x657   : > { %v1742_v27 = vpop.permute.xlu1 %1741  ;;  %2149 = vmatpush.msra.mxu1 %v3778_v31 }
 0x658   : > { %2426 = vmatmul.msk.f32.gmra.mxu2 %vm455_vm1, %v1742_v27  ;;  %2428 = vmatmul.msk.f32.gmra.mxu3 %vm455_vm1, %v1742_v27 }
 0x659   : > { %v2674_v3 = vpop.eup %2673  ;;  %2122 = vmatpush.msra.mxu0 %v3698_v4  ;;  %2150 = vmatpush.msra.mxu1 %v3790_v47 }
 0x65a   : > { %v2676_v13 = vpop.eup %2675  ;;  %v1688_v30 = vmul.f32 %v2674_v3, %v4016_v40 }
 0x65b   : > { %2123 = vmatpush.msra.mxu0 %v3706_v26  ;;  %2151 = vmatpush.msra.mxu1 %v3897_v6  ;;  %v1636_v50 = vmul.f32 %v2676_v13, %v4020_v21  ;;  %v1954_v26 = vpop.permute.xlu2 %1953 }
 0x65c   : > { %v2678_v29 = vpop.eup %2677  ;;  %v1692_v31 = vsel %vm355_vm0, %v1668_v20, %v1688_v30 }
 0x65d   : > { %1735 = vmatmul.f32.gmra.mxu1 %v1692_v31  ;;  %v1656_v61 = vmul.f32 %v2678_v29, %v4020_v21  ;;  %2124 = vmatpush.msra.mxu0 %v3719_v11 }
 0x65e   : > { %2152 = vmatpush.msra.mxu1 %v3903_v17 }
 0x65f   : > { %v1690_v4 = vsel %vm355_vm0, %v1636_v50, %v1656_v61  ;;  %2125 = vmatpush.msra.mxu0 %v3731_v35 }
 0x660   : > { %1712 = vmatmul.f32.gmra.mxu0 %v1690_v4  ;;  %2153 = vmatpush.msra.mxu1 %v3911_v0 }
 0x661   : > { %2126 = vmatpush.msra.mxu0 %v3743_v10  ;;  %v4161_v10 = vld [vmem:[%s4446_s6] ss:$0 sm:$0xff] }
 0x662   : > { %2154 = vmatpush.msra.mxu1 %v3918_v22 }
 0x663   : > { %2127 = vmatpush.msra.mxu0 %v3757_v38 }
 0x664   : > { %2155 = vmatpush.msra.mxu1 %v3925_v23 }
 0x665   : > { %2431 = vmatmul.msk.f32.vlgmr.msrb.gmra.mxu1 %vm455_vm1, %v1954_v26  ;;  %2128 = vmatpush.msra.mxu0 %v3770_v32 }
 0x666   : > { %2156 = vmatpush.msra.mxu1 %v3932_v28  ;;  %v1956_v11 = vpop.permute.xlu0 %1955  ;;  %v4491_v28 = vld [vmem:[#allocation6_spill] sm:$0xff] }
 0x667   : > { %2129 = vmatpush.msra.mxu0 %v3784_v39 }
 0x668   : > { %2429 = vmatmul.msk.f32.vlgmr.msrb.gmra.mxu0 %vm455_vm1, %v1954_v26  ;;  %2157 = vmatpush.msra.mxu1 %v3941_v34 }
 0x669   : > { %2130 = vmatpush.msra.mxu0 %v3796_v1 }
 0x66a   : > { %2158 = vmatpush.msra.mxu1 %v3947_v43 }
 0x66b   : > { %2131 = vmatpush.msra.mxu0 %v3803_v25 }
 0x66c   : > { %2159 = vmatpush.msra.mxu1 %v3953_v45 }
 0x66d   : > { %2432 = vmatmul.msk.f32.gmra.mxu1 %vm455_vm1, %v1956_v11  ;;  %2132 = vmatpush.msra.mxu0 %v3810_v57 }
 0x66f   : > { %2133 = vmatpush.msra.mxu0 %v3823_v56 }
 0x670   : > { %2430 = vmatmul.msk.f32.gmra.mxu0 %vm455_vm1, %v1956_v11 }
 0x671   : > { %2134 = vmatpush.msra.mxu0 %v3831_v8 }
 0x673   : > { %2135 = vmatpush.msra.mxu0 %v3869_v9 }
 0x675   : > { %2136 = vmatpush.msra.mxu0 %v3877_v49 }
 0x69d   : > { %v1519_v32 = vpop.f32.mrf.mxu3 }
 0x6a1   : > { %v1496_v35 = vpop.f32.mrf.mxu2 }
 0x6a2   : > { %v1497_v38 = vadd.f32 %v4161_v10, %v1496_v35 }
 0x6a4   : > { %v4164_v39 = vadd.f32 %v1519_v32, %v1497_v38 }
 0x6a9   : > { %v1499_v47 = vpop.f32.mrf.mxu2  ;;  %v1522_v25 = vpop.f32.mrf.mxu3 }
 0x6aa   : > { %v1500_v1 = vadd.f32 %v4161_v10, %v1499_v47 }
 0x6ac   : > { %v4167_v57 = vadd.f32 %v1522_v25, %v1500_v1 }
 0x6b1   : > { %v1764_v8 = vpop.f32.mrf.mxu2  ;;  %v1787_v9 = vpop.f32.mrf.mxu3 }
 0x6b2   : > { %v1765_v23 = vadd.f32 %v1764_v8, %v4481_v42  ;;  %v1788_v34 = vadd.f32 %v1787_v9, %v4491_v28 }
 0x6c9   : > { %v1733_v6 = vpop.f32.mrf.mxu1 }
 0x6d2   : > { %v1710_v56 = vpop.f32.mrf.mxu0 }
 0x6d3   : > { %v1711_v49 = vadd.f32 %v4161_v10, %v1710_v56 }
 0x6d5   : > { %v4170_v17 = vadd.f32 %v1733_v6, %v1711_v49 }
 0x6da   : > { %v1736_v55 = vpop.f32.mrf.mxu1 }
 0x6db   : > { %v1767_v0 = vpop.f32.mrf.mxu2  ;;  %v1790_v22 = vpop.f32.mrf.mxu3 }
 0x6dc   : > { %v1768_v43 = vadd.f32 %v1767_v0, %v4481_v42  ;;  %v1791_v45 = vadd.f32 %v1790_v22, %v4491_v28 }
 0x6dd   : > { %v1713_v40 = vpop.f32.mrf.mxu0 }
 0x6de   : > { %v1793_v21 = vmax.f32 %v1765_v23, %v1768_v43  ;;  %v1800_v24 = vmax.f32 %v1788_v34, %v1791_v45  ;;  %v1714_v54 = vadd.f32 %v4161_v10, %v1713_v40 }
 0x6e0   : > { %v1794_v14 = vrot.slane %v1793_v21, 4  ;;  %v1801_v18 = vrot.slane %v1800_v24, 4  ;;  %v4177_v36 = vadd.f32 %v1736_v55, %v1714_v54 }
 0x6e2   : > { %v1795_v46 = vmax.f32 %v1793_v21, %v1794_v14  ;;  %v1802_v33 = vmax.f32 %v1800_v24, %v1801_v18  ;;  %v2499_v62 = vpack.i.bf16 %v4177_v36, %v4170_v17  ;;  %v2001_v60 = vpop.f32.mrf.mxu1 }
 0x6e3   : > { %v2002_v50 = vadd.f32 %v2001_v60, %v4491_v28 }
 0x6e4   : > { %v1796_v2 = vrot.slane %v1795_v46, 2  ;;  %v1803_v63 = vrot.slane %v1802_v33, 2 }
 0x6e5   : > { %v1978_v41 = vpop.f32.mrf.mxu0 }
 0x6e6   : > { %v1797_v37 = vmax.f32 %v1795_v46, %v1796_v2  ;;  %v1804_v58 = vmax.f32 %v1802_v33, %v1803_v63  ;;  %v1979_v38 = vadd.f32 %v1978_v41, %v4481_v42 }
 0x6e8   : > { %v1798_v59 = vrot.slane %v1797_v37, 1  ;;  %v1805_v15 = vrot.slane %v1804_v58, 1 }
 0x6ea   : > { %v1799_v48 = vmax.f32 %v1797_v37, %v1798_v59  ;;  %v1806_v12 = vmax.f32 %v1804_v58, %v1805_v15  ;;  %v2004_v27 = vpop.f32.mrf.mxu1 }
 0x6eb   : > { %v2005_v13 = vadd.f32 %v2004_v27, %v4491_v28 }
 0x6ec   : > { %v1807_v5 = vsub.f32 %v1765_v23, %v1799_v48  ;;  %v1809_v19 = vsub.f32 %v1768_v43, %v1799_v48  ;;  %v1808_v16 = vsub.f32 %v1788_v34, %v1806_v12  ;;  %v1810_v44 = vsub.f32 %v1791_v45, %v1806_v12 }
 0x6ed   : > { %v1981_v20 = vpop.f32.mrf.mxu0  ;;  %v2014_v35 = vmax.f32 %v2002_v50, %v2005_v13 }
 0x6ee   : > { %v1811_v53 = vmul.f32 1.442695, %v1807_v5  ;;  %v1815_v52 = vmul.f32 1.442695, %v1809_v19  ;;  %v1813_v51 = vmul.f32 1.442695, %v1808_v16  ;;  %v1982_v4 = vadd.f32 %v1981_v20, %v4481_v42 }
 0x6ef   : > { %v1817_v7 = vmul.f32 1.442695, %v1810_v44  ;;  %v2015_v8 = vrot.slane %v2014_v35, 4 }
 0x6f0   : > { %2679 = vpow2.f32 %v1811_v53  ;;  %v2007_v1 = vmax.f32 %v1979_v38, %v1982_v4 }
 0x6f1   : > { %2681 = vpow2.f32 %v1815_v52  ;;  %v2016_v23 = vmax.f32 %v2014_v35, %v2015_v8 }
 0x6f2   : > { %2683 = vpow2.f32 %v1813_v51  ;;  %v2008_v6 = vrot.slane %v2007_v1, 4 }
 0x6f3   : > { %2685 = vpow2.f32 %v1817_v7  ;;  %v2017_v45 = vrot.slane %v2016_v23, 2 }
 0x6f4   : > { %v2009_v43 = vmax.f32 %v2007_v1, %v2008_v6 }
 0x6f5   : > { %v2018_v21 = vmax.f32 %v2016_v23, %v2017_v45 }
 0x6f6   : > { %v2680_v3 = vpop.eup %2679  ;;  %v2010_v42 = vrot.slane %v2009_v43, 2 }
 0x6f7   : > { %v2682_v30 = vpop.eup %2681  ;;  %v2019_v18 = vrot.slane %v2018_v21, 1 }
 0x6f8   : > { %v2684_v29 = vpop.eup %2683  ;;  %v1819_v31 = vadd.f32 %v2682_v30, %v2680_v3  ;;  %v2011_v54 = vmax.f32 %v2009_v43, %v2010_v42 }
 0x6f9   : > { %v2686_v61 = vpop.eup %2685  ;;  %v2020_v63 = vmax.f32 %v2018_v21, %v2019_v18 }
 0x6fa   : > { %v1820_v26 = vrot.slane %v1819_v31, 4  ;;  %v1826_v11 = vadd.f32 %v2686_v61, %v2684_v29  ;;  %v2012_v2 = vrot.slane %v2011_v54, 1 }
 0x6fb   : > { %v2022_v59 = vsub.f32 %v2002_v50, %v2020_v63  ;;  %v2024_v15 = vsub.f32 %v2005_v13, %v2020_v63 }
 0x6fc   : > { %v1821_v32 = vadd.f32 %v1820_v26, %v1819_v31  ;;  %v1827_v47 = vrot.slane %v1826_v11, 4  ;;  %v2013_v37 = vmax.f32 %v2011_v54, %v2012_v2 }
 0x6fd   : > { %v2027_v48 = vmul.f32 1.442695, %v2022_v59  ;;  %v2031_v5 = vmul.f32 1.442695, %v2024_v15 }
 0x6fe   : > { %v1822_v25 = vrot.slane %v1821_v32, 2  ;;  %v1828_v56 = vadd.f32 %v1827_v47, %v1826_v11  ;;  %v2021_v60 = vsub.f32 %v1979_v38, %v2013_v37  ;;  %v2023_v12 = vsub.f32 %v1982_v4, %v2013_v37 }
 0x700   : > { %v1823_v9 = vadd.f32 %v1822_v25, %v1821_v32  ;;  %v1829_v49 = vrot.slane %v1828_v56, 2  ;;  %v2025_v19 = vmul.f32 1.442695, %v2021_v60  ;;  %v2029_v16 = vmul.f32 1.442695, %v2023_v12 }
 0x702   : > { %v1824_v0 = vrot.slane %v1823_v9, 1  ;;  %v1830_v22 = vadd.f32 %v1829_v49, %v1828_v56 }
 0x704   : > { %v1831_v28 = vrot.slane %v1830_v22, 1  ;;  %v1825_v34 = vadd.f32 %v1824_v0, %v1823_v9 }
 0x706   : > { %v1832_v40 = vadd.f32 %v1831_v28, %v1830_v22  ;;  %2687 = vrcp.f32 %v1825_v34 }
 0x708   : > { %2689 = vrcp.f32 %v1832_v40 }
 0x709   : > { %2691 = vpow2.f32 %v2027_v48 }
 0x70a   : > { %2693 = vpow2.f32 %v2031_v5  ;;  %v4492_v5 = vld [vmem:[#allocation7_spill] sm:$0xff] }
 0x70b   : > { %2695 = vpow2.f32 %v2025_v19  ;;  %v4493_v19 = vld [vmem:[#allocation8_spill] sm:$0xff] }
 0x70c   : > { %v2688_v24 = vpop.eup %2687  ;;  %2697 = vpow2.f32 %v2029_v16  ;;  %v4494_v16 = vpack.i.bf16 %v4492_v5, %v4493_v19 }
 0x70d   : > { %v4185_v55 = vmul.f32 %v2688_v24, %v2680_v3  ;;  %v4197_v58 = vmul.f32 %v2688_v24, %v2682_v30 }
 0x70e   : > { %v2690_v14 = vpop.eup %2689 }
 0x70f   : > { %v4187_v46 = vmul.f32 %v2690_v14, %v2686_v61  ;;  %v4189_v33 = vmul.f32 %v2690_v14, %v2684_v29  ;;  %1853 = vrot.lane.b32.xlu1 %v4185_v55, %s2842_s14  ;;  %v2692_v44 = vpop.eup %2691  ;;  %v1839_v50 = vsel %vm355_vm0, %v4185_v55, 0.0  ;;  %v1842_v49 = vsel %vm355_vm0, %v4197_v58, 0.0 }
 0x710   : > { %v2694_v41 = vpop.eup %2693 }
 0x711   : > { %1887 = vrot.lane.b32.xlu2 %v4187_v46, %s2842_s14  ;;  %1885 = vrot.lane.b32.xlu0 %v4189_v33, %s2842_s14  ;;  %v2696_v53 = vpop.eup %2695  ;;  %v2040_v51 = vadd.f32 %v2694_v41, %v2692_v44  ;;  %v1871_v61 = vsel %vm355_vm0, %v4189_v33, 0.0  ;;  %v1874_v35 = vsel %vm355_vm0, %v4187_v46, 0.0 }
 0x712   : > { %v2698_v52 = vpop.eup %2697 }
 0x713   : > { %v2033_v7 = vadd.f32 %v2698_v52, %v2696_v53  ;;  %v2041_v27 = vrot.slane %v2040_v51, 4 }
 0x715   : > { %v2034_v3 = vrot.slane %v2033_v7, 4  ;;  %v2042_v13 = vadd.f32 %v2041_v27, %v2040_v51  ;;  %v4499_v51 = vld [vmem:[#allocation11_spill] sm:$0xff] }
 0x717   : > { %1855 = vrot.lane.b32.xlu1 %v4197_v58, %s2842_s14  ;;  %v2035_v20 = vadd.f32 %v2034_v3, %v2033_v7  ;;  %v2043_v30 = vrot.slane %v2042_v13, 2 }
 0x719   : > { %v2036_v29 = vrot.slane %v2035_v20, 2  ;;  %v2044_v31 = vadd.f32 %v2043_v30, %v2042_v13 }
 0x71b   : > { %v2037_v4 = vadd.f32 %v2036_v29, %v2035_v20  ;;  %v2045_v26 = vrot.slane %v2044_v31, 1 }
 0x71d   : > { %v2038_v11 = vrot.slane %v2037_v4, 1  ;;  %v2046_v38 = vadd.f32 %v2045_v26, %v2044_v31 }
 0x71f   : > { %v2039_v32 = vadd.f32 %v2038_v11, %v2037_v4  ;;  %2699 = vrcp.f32 %v2046_v38 }
 0x721   : > { %2701 = vrcp.f32 %v2039_v32 }
 0x725   : > { %v2700_v47 = vpop.eup %2699 }
 0x726   : > { %v4207_v25 = vmul.f32 %v2700_v47, %v2692_v44  ;;  %v4215_v8 = vmul.f32 %v2700_v47, %v2694_v41  ;;  %v4495_v44 = vld [vmem:[#allocation13_spill] sm:$0xff]  ;;  %v4496_v41 = vld [vmem:[#allocation12_spill] sm:$0xff] }
 0x727   : > { %v2702_v1 = vpop.eup %2701 }
 0x728   : > { %v4211_v56 = vmul.f32 %v2702_v1, %v2696_v53  ;;  %v4219_v9 = vmul.f32 %v2702_v1, %v2698_v52  ;;  %v2085_v6 = vsel %vm355_vm0, %v4207_v25, 0.0  ;;  %v2088_v59 = vsel %vm355_vm0, %v4215_v8, 0.0  ;;  %v4498_v52 = vld [vmem:[#allocation5_spill] sm:$0xff] }
 0x729   : > { %v4497_v53 = vpack.i.bf16 %v4495_v44, %v4496_v41  ;;  %v4500_v7 = vpack.i.bf16 %v4498_v52, %v4499_v51  ;;  %v2232_v52 = vld [vmem:[%s4447_s7 + $0x20] sm:$0xff] }
 0x72a   : > { %v2053_v22 = vsel %vm355_vm0, %v4211_v56, 0.0  ;;  %v2056_v43 = vsel %vm355_vm0, %v4219_v9, 0.0 }
 0x73a   : > { %1840 = vadd.xlane.f32.xlu2 %v1839_v50 }
 0x73b   : > { %1872 = vadd.xlane.f32.xlu0 %v1871_v61 }
 0x741   : > { %1875 = vadd.xlane.f32.xlu1 %v1874_v35 }
 0x74f   : > { %2099 = vrot.lane.b32.xlu0 %v4207_v25, %s2842_s14 }
 0x752   : > { %2067 = vrot.lane.b32.xlu2 %v4211_v56, %s2842_s14 }
 0x757   : > { %2101 = vrot.lane.b32.xlu0 %v4215_v8, %s2842_s14 }
 0x75a   : > { %2069 = vrot.lane.b32.xlu1 %v4219_v9, %s2842_s14 }
 0x76b   : > { %v1888_v42 = vpop.permute.xlu2 %1887 }
 0x76c   : > { %v1894_v18 = vsel %vm355_vm0, %v1888_v42, 0.0 }
 0x77b   : > { %1843 = vadd.xlane.f32.xlu2 %v1842_v49 }
 0x781   : > { %2086 = vadd.xlane.f32.xlu0 %v2085_v6  ;;  %v1854_v28 = vpop.permute.xlu1 %1853 }
 0x782   : > { %v1859_v34 = vsel %vm355_vm0, %v1854_v28, 0.0  ;;  %v2243_v28 = vld [vmem:[%s4447_s7 + $0x78] sm:$0xff] }
 0x783   : > { %v1886_v0 = vpop.permute.xlu0 %1885  ;;  %2264 = vmatpush.msra.mxu2 %v2243_v28 }
 0x784   : > { %v1891_v23 = vsel %vm355_vm0, %v1886_v0, 0.0  ;;  %2054 = vadd.xlane.f32.xlu1 %v2053_v22 }
 0x785   : > { %1892 = vadd.xlane.f32.xlu2 %v1891_v23 }
 0x789   : > { %v1856_v45 = vpop.permute.xlu1 %1855 }
 0x78a   : > { %v1862_v40 = vsel %vm355_vm0, %v1856_v45, 0.0  ;;  %v2240_v45 = vld [vmem:[%s4447_s7 + $0x60] sm:$0xff] }
 0x78c   : > { %1860 = vadd.xlane.f32.xlu1 %v1859_v34 }
 0x78d   : > { %2057 = vadd.xlane.f32.xlu2 %v2056_v43  ;;  %v2241_v43 = vld [vmem:[%s4447_s7 + $0x68] sm:$0xff] }
 0x794   : > { %1863 = vadd.xlane.f32.xlu1 %v1862_v40  ;;  %v2239_v40 = vld [vmem:[%s4447_s7 + $0x58] sm:$0xff] }
 0x7ad   : > { %v1841_v21 = vpop.xlane.xlu2 %1840 }
 0x7ae   : > { %v1873_v14 = vpop.xlane.xlu0 %1872  ;;  %v1845_v29 = vadd.f32 1e-09, %v1841_v21 }
 0x7af   : > { %v1877_v3 = vadd.f32 1e-09, %v1873_v14 }
 0x7b1   : > { %2703 = vrcp.f32 %v1877_v3 }
 0x7b4   : > { %v4237_v37 = vpop.xlane.xlu1 %1875 }
 0x7b5   : > { %v2068_v24 = vpop.permute.xlu2 %2067 }
 0x7b6   : > { %v2073_v54 = vsel %vm355_vm0, %v2068_v24, 0.0  ;;  %v2238_v24 = vld [vmem:[%s4447_s7 + $0x50] sm:$0xff] }
 0x7b7   : > { %2074 = vadd.xlane.f32.xlu0 %v2073_v54  ;;  %v2704_v31 = vpop.eup %2703  ;;  %v2237_v54 = vld [vmem:[%s4447_s7 + $0x48] sm:$0xff] }
 0x7b8   : > { %v1881_v17 = vmul.f32 %v2704_v31, %v4189_v33 }
 0x7bf   : > { %1895 = vadd.xlane.f32.xlu0 %v1894_v18  ;;  %v2236_v18 = vld [vmem:[%s4447_s7 + $0x40] sm:$0xff] }
 0x7c1   : > { %v2100_v2 = vpop.permute.xlu0 %2099 }
 0x7c2   : > { %v2105_v63 = vsel %vm355_vm0, %v2100_v2, 0.0  ;;  %v1878_v2 = vadd.f32 1e-09, %v4237_v37 }
 0x7c3   : > { %2106 = vadd.xlane.f32.xlu2 %v2105_v63  ;;  %v2235_v63 = vld [vmem:[%s4447_s7 + $0x38] sm:$0xff] }
 0x7c7   : > { %2089 = vadd.xlane.f32.xlu0 %v2088_v59 }
 0x7c9   : > { %v2102_v15 = vpop.permute.xlu0 %2101 }
 0x7ca   : > { %v2108_v60 = vsel %vm355_vm0, %v2102_v15, 0.0  ;;  %v2234_v15 = vld [vmem:[%s4447_s7 + $0x30] sm:$0xff] }
 0x7cb   : > { %2109 = vadd.xlane.f32.xlu2 %v2108_v60 }
 0x7cc   : > { %v2070_v48 = vpop.permute.xlu1 %2069 }
 0x7cd   : > { %v2076_v12 = vsel %vm355_vm0, %v2070_v48, 0.0 }
 0x7ce   : > { %2077 = vadd.xlane.f32.xlu1 %v2076_v12 }
 0x7db   : > { %2490 = vrot.lane.b32.xlu0 %v4494_v16, %s2842_s14  ;;  %v2233_v16 = vld [vmem:[%s4447_s7 + $0x28] sm:$0xff] }
 0x7e3   : > { %2495 = vrot.lane.b32.xlu2 %v4497_v53, %s2841_s28  ;;  %2500 = vrot.lane.b32.xlu0 %v2499_v62, %s2843_s29 }
 0x7e7   : > { %2485 = vrot.lane.b32.xlu1 %v4500_v7, %s2843_s29 }
 0x7ee   : > { %v1844_v27 = vpop.xlane.xlu2 %1843 }
 0x7ef   : > { %v1846_v62 = vadd.f32 1e-09, %v1844_v27 }
 0x7f4   : > { %v2087_v34 = vpop.xlane.xlu0 %2086 }
 0x7f5   : > { %v2091_v12 = vadd.f32 1e-09, %v2087_v34 }
 0x7f7   : > { %v2055_v13 = vpop.xlane.xlu1 %2054 }
 0x7f8   : > { %v1893_v20 = vpop.xlane.xlu2 %1892 }
 0x7f9   : > { %v1897_v30 = vadd.f32 1e-09, %v1893_v20 }
 0x7fb   : > { %2705 = vrcp.f32 %v1897_v30 }
 0x7fc   : > { %2707 = vrcp.f32 %v1845_v29  ;;  %v2229_v29 = vld [vmem:[%s4447_s7 + $0x8] sm:$0xff] }
 0x7ff   : > { %v1861_v50 = vpop.xlane.xlu1 %1860 }
 0x800   : > { %v1865_v61 = vadd.f32 1e-09, %v1861_v50  ;;  %v2058_v14 = vpop.xlane.xlu2 %2057  ;;  %v2228_v50 = vld [vmem:[%s4447_s7] sm:$0xff] }
 0x801   : > { %v2706_v4 = vpop.eup %2705 }
 0x802   : > { %2709 = vrcp.f32 %v1865_v61  ;;  %v1901_v36 = vmul.f32 %v2706_v4, %v4189_v33  ;;  %v2708_v11 = vpop.eup %2707  ;;  %v2060_v61 = vadd.f32 1e-09, %v2058_v14 }
 0x803   : > { %2711 = vrcp.f32 %v1846_v62  ;;  %v1849_v47 = vmul.f32 %v2708_v11, %v4185_v55 }
 0x804   : > { %v1905_v26 = vsel %vm355_vm0, %v1881_v17, %v1901_v36 }
 0x805   : > { %1946 = vmatmul.f32.vlgmr.msrb.gmra.mxu3 %v1905_v26 }
 0x807   : > { %v1864_v35 = vpop.xlane.xlu1 %1863 }
 0x808   : > { %v2710_v38 = vpop.eup %2709  ;;  %v1866_v32 = vadd.f32 1e-09, %v1864_v35 }
 0x809   : > { %v1869_v1 = vmul.f32 %v2710_v38, %v4185_v55  ;;  %v2712_v6 = vpop.eup %2711  ;;  %v2242_v55 = vld [vmem:[%s4447_s7 + $0x70] sm:$0xff] }
 0x80a   : > { %2713 = vrcp.f32 %v1866_v32  ;;  %v1850_v33 = vmul.f32 %v2712_v6, %v4197_v58  ;;  %2265 = vmatpush.msra.mxu2 %v2242_v55 }
 0x80b   : > { %v1903_v49 = vsel %vm355_vm0, %v1849_v47, %v1869_v1 }
 0x80c   : > { %1923 = vmatmul.f32.vlgmr.msrb.gmra.mxu2 %v1903_v49 }
 0x80d   : > { %2266 = vmatpush.msra.mxu2 %v2241_v43 }
 0x80f   : > { %2267 = vmatpush.msra.mxu2 %v2240_v45 }
 0x810   : > { %v2714_v0 = vpop.eup %2713 }
 0x811   : > { %v1870_v22 = vmul.f32 %v2714_v0, %v4197_v58  ;;  %v2059_v58 = vadd.f32 1e-09, %v2055_v13  ;;  %2268 = vmatpush.msra.mxu2 %v2239_v40  ;;  %v2230_v13 = vld [vmem:[%s4447_s7 + $0x10] sm:$0xff] }
 0x813   : > { %v1904_v23 = vsel %vm355_vm0, %v1850_v33, %v1870_v22  ;;  %2715 = vrcp.f32 %v2059_v58  ;;  %2269 = vmatpush.msra.mxu2 %v2238_v24 }
 0x814   : > { %1926 = vmatmul.f32.gmra.mxu2 %v1904_v23 }
 0x815   : > { %2270 = vmatpush.msra.mxu2 %v2237_v54 }
 0x817   : > { %2271 = vmatpush.msra.mxu2 %v2236_v18 }
 0x819   : > { %v2716_v59 = vpop.eup %2715  ;;  %2272 = vmatpush.msra.mxu2 %v2235_v63 }
 0x81a   : > { %v2063_v19 = vmul.f32 %v2716_v59, %v4211_v56 }
 0x81b   : > { %2273 = vmatpush.msra.mxu2 %v2234_v15 }
 0x81d   : > { %2274 = vmatpush.msra.mxu2 %v2233_v16 }
 0x81f   : > { %2275 = vmatpush.msra.mxu2 %v2232_v52 }
 0x82a   : > { %v2075_v42 = vpop.xlane.xlu0 %2074 }
 0x82b   : > { %v2079_v21 = vadd.f32 1e-09, %v2075_v42 }
 0x82d   : > { %2717 = vrcp.f32 %v2079_v21 }
 0x82e   : > { %2719 = vrcp.f32 %v1878_v2 }
 0x832   : > { %v1896_v60 = vpop.xlane.xlu0 %1895 }
 0x833   : > { %v2718_v48 = vpop.eup %2717  ;;  %v1898_v5 = vadd.f32 1e-09, %v1896_v60 }
 0x834   : > { %v2083_v37 = vmul.f32 %v2718_v48, %v4211_v56  ;;  %v2231_v56 = vld [vmem:[%s4447_s7 + $0x18] sm:$0xff]  ;;  %v2720_v51 = vpop.eup %2719 }
 0x835   : > { %2721 = vrcp.f32 %v1898_v5  ;;  %2276 = vmatpush.msra.mxu2 %v2231_v56  ;;  %v1882_v20 = vmul.f32 %v2720_v51, %v4187_v46 }
 0x836   : > { %v2107_v44 = vpop.xlane.xlu2 %2106  ;;  %v2117_v41 = vsel %vm355_vm0, %v2063_v19, %v2083_v37  ;;  %2723 = vrcp.f32 %v2091_v12 }
 0x837   : > { %v2111_v53 = vadd.f32 1e-09, %v2107_v44  ;;  %2137 = vmatmul.f32.vlgmr.msra.gmra.mxu0 %v2117_v41  ;;  %2277 = vmatpush.msra.mxu2 %v2230_v13  ;;  %v2258_v13 = vld [vmem:[%s4447_s7 + $0xf0] sm:$0xff] }
 0x839   : > { %2725 = vrcp.f32 %v2111_v53  ;;  %2278 = vmatpush.msra.mxu2 %v2229_v29  ;;  %v2254_v29 = vld [vmem:[%s4447_s7 + $0xd0] sm:$0xff] }
 0x83a   : > { %v2090_v7 = vpop.xlane.xlu0 %2089 }
 0x83b   : > { %v2722_v27 = vpop.eup %2721  ;;  %v2092_v3 = vadd.f32 1e-09, %v2090_v7  ;;  %2279 = vmatpush.msra.mxu2 %v2228_v50  ;;  %v2252_v50 = vld [vmem:[%s4447_s7 + $0xc0] sm:$0xff] }
 0x83c   : > { %v1902_v30 = vmul.f32 %v2722_v27, %v4187_v46  ;;  %v2724_v31 = vpop.eup %2723 }
 0x83d   : > { %2727 = vrcp.f32 %v2092_v3  ;;  %v2095_v46 = vmul.f32 %v2724_v31, %v4207_v25  ;;  %v2259_v3 = vld [vmem:[%s4447_s7 + $0xf8] sm:$0xff]  ;;  %v2253_v31 = vld [vmem:[%s4447_s7 + $0xc8] sm:$0xff] }
 0x83e   : > { %v2110_v4 = vpop.xlane.xlu2 %2109  ;;  %v1906_v17 = vsel %vm355_vm0, %v1882_v20, %v1902_v30  ;;  %2287 = vmatpush.msra.mxu3 %v2259_v3  ;;  %v2257_v20 = vld [vmem:[%s4447_s7 + $0xe8] sm:$0xff]  ;;  %v2255_v30 = vld [vmem:[%s4447_s7 + $0xd8] sm:$0xff] }
 0x83f   : > { %v2726_v36 = vpop.eup %2725  ;;  %v2112_v62 = vadd.f32 1e-09, %v2110_v4  ;;  %1949 = vmatmul.f32.gmra.mxu3 %v1906_v17  ;;  %v2250_v4 = vld [vmem:[%s4447_s7 + $0xb0] sm:$0xff]  ;;  %v2249_v17 = vld [vmem:[%s4447_s7 + $0xa8] sm:$0xff] }
 0x840   : > { %v2115_v26 = vmul.f32 %v2726_v36, %v4207_v25  ;;  %2288 = vmatpush.msra.mxu3 %v2258_v13  ;;  %v2248_v36 = vld [vmem:[%s4447_s7 + $0xa0] sm:$0xff] }
 0x841   : > { %2729 = vrcp.f32 %v2112_v62  ;;  %v2078_v11 = vpop.xlane.xlu1 %2077  ;;  %v2247_v62 = vld [vmem:[%s4447_s7 + $0x98] sm:$0xff] }
 0x842   : > { %2731 = vrcp.f32 %v2060_v61  ;;  %v2080_v35 = vadd.f32 1e-09, %v2078_v11  ;;  %v2119_v38 = vsel %vm355_vm0, %v2095_v46, %v2115_v26  ;;  %2289 = vmatpush.msra.mxu3 %v2257_v20  ;;  %v2251_v61 = vld [vmem:[%s4447_s7 + $0xb8] sm:$0xff]  ;;  %v2246_v46 = vld [vmem:[%s4447_s7 + $0x90] sm:$0xff]  ;;  %v2245_v26 = vld [vmem:[%s4447_s7 + $0x88] sm:$0xff] }
 0x843   : > { %2160 = vmatmul.f32.vlgmr.msra.gmra.mxu1 %v2119_v38  ;;  %v2728_v32 = vpop.eup %2727  ;;  %v2244_v11 = vld [vmem:[%s4447_s7 + $0x80] sm:$0xff] }
 0x844   : > { %2733 = vrcp.f32 %v2080_v35  ;;  %v2096_v49 = vmul.f32 %v2728_v32, %v4215_v8 }
 0x846   : > { %v2496_v34 = vpop.permute.xlu2 %2495 }
 0x847   : > { %v2730_v47 = vpop.eup %2729  ;;  %v2497_v45 = vunpack.i.l.bf16 %v2496_v34  ;;  %v2498_v2 = vunpack.i.h.bf16 %v2496_v34 }
 0x848   : > { %v2732_v1 = vpop.eup %2731  ;;  %v2116_v6 = vmul.f32 %v2730_v47, %v4215_v8  ;;  %v4501_v8 = vld [vmem:[#allocation10_spill] sm:$0xff] }
 0x849   : > { %v2064_v25 = vmul.f32 %v2732_v1, %v4219_v9 }
 0x84a   : > { %v2734_v0 = vpop.eup %2733  ;;  %v2120_v33 = vsel %vm355_vm0, %v2096_v49, %v2116_v6 }
 0x84b   : > { %2163 = vmatmul.f32.gmra.mxu1 %v2120_v33  ;;  %v2084_v22 = vmul.f32 %v2734_v0, %v4219_v9  ;;  %v4502_v9 = vld [vmem:[#allocation9_spill] sm:$0xff] }
 0x84d   : > { %v2118_v23 = vsel %vm355_vm0, %v2064_v25, %v2084_v22  ;;  %v2491_v28 = vpop.permute.xlu0 %2490 }
 0x84e   : > { %2140 = vmatmul.f32.gmra.mxu0 %v2118_v23  ;;  %v2492_v58 = vunpack.i.l.bf16 %v2491_v28  ;;  %v2493_v14 = vunpack.i.h.bf16 %v2491_v28 }
 0x855   : > { %v2501_v35 = vpop.permute.xlu0 %2500 }
 0x856   : > { %v2502_v38 = vunpack.i.l.bf16 %v2501_v35  ;;  %v2503_v0 = vunpack.i.h.bf16 %v2501_v35 }
 0x858   : > { %v2222_v1 = vsel %vm455_vm1, %v4164_v39, %v2502_v38  ;;  %v2223_v22 = vsel %vm455_vm1, %v4167_v57, %v2503_v0  ;;  %v2510_v39 = vld [vmem:[%s4448_s8] ss:$0 sm:$0xff] }
 0x859   : > { %v2486_v55 = vpop.permute.xlu1 %2485 }
 0x85a   : > { %v2487_v43 = vunpack.i.l.bf16 %v2486_v55  ;;  %v2488_v40 = vunpack.i.h.bf16 %v2486_v55 }
 0x85c   : > { %v2215_v42 = vsel %vm455_vm1, %v4501_v8, %v2487_v43  ;;  %v2216_v54 = vsel %vm455_vm1, %v4502_v9, %v2488_v40 }
 0x85d   : > { %v2217_v21 = vsel %vm355_vm0, %v2215_v42, %v2492_v58  ;;  %v2218_v18 = vsel %vm355_vm0, %v2216_v54, %v2493_v14 }
 0x85e   : > { %v2220_v24 = vsel %vm2219_vm2, %v2217_v21, %v2497_v45  ;;  %v2221_v63 = vsel %vm2219_vm2, %v2218_v18, %v2498_v2 }
 0x85f   : > { %2280 = vmatmul.f32.vlgmr.msra.gmra.mxu2 %v2220_v24 }
 0x867   : > { %2283 = vmatmul.f32.gmra.mxu2 %v2221_v63 }
 0x888   : > { %v1947_v15 = vpop.f32.mrf.mxu3 }
 0x88f   : > { %v1924_v59 = vpop.f32.mrf.mxu2 }
 0x890   : > { %v1925_v12 = vadd.f32 %v4161_v10, %v1924_v59 }
 0x892   : > { %v1948_v41 = vadd.f32 %v1947_v15, %v1925_v12 }
 0x897   : > { %v1927_v48 = vpop.f32.mrf.mxu2 }
 0x898   : > { %v1928_v37 = vadd.f32 %v4161_v10, %v1927_v48 }
 0x8b4   : > { %v2138_v60 = vpop.f32.mrf.mxu0 }
 0x8b5   : > { %v2139_v5 = vadd.f32 %v4161_v10, %v2138_v60 }
 0x8c0   : > { %v2161_v19 = vpop.f32.mrf.mxu1 }
 0x8c1   : > { %v2162_v16 = vadd.f32 %v2161_v19, %v2139_v5 }
 0x8c2   : > { %v1950_v44 = vpop.f32.mrf.mxu3 }
 0x8c3   : > { %v1951_v53 = vadd.f32 %v1950_v44, %v1928_v37  ;;  %2209 = vrot.lane.b32.xlu2 %v2162_v16, %s2841_s28 }
 0x8c5   : > { %v2504_v52 = vpack.i.bf16 %v1951_v53, %v1948_v41 }
 0x8c7   : > { %2505 = vrot.lane.b32.xlu1 %v2504_v52, %s2842_s14  ;;  %s2327_s14 = sshll.u32 %s2324_s16, 4  ;;  %s2328_s14 = int_to_ptr.hbm [resolvable:$true] %s2327_s14 }
 0x8c8   : > { %v2164_v7 = vpop.f32.mrf.mxu1  ;;  %s2791_s22 = sshra.s32 %s2328_s14, 4  ;;  %s2792_s22 = int_to_ptr.hbm [resolvable:$true] %s2791_s22 }
 0x8c9   : > { %s2793_s23 = scalar_lea.hbm %s2792_s22, 16  ;;  %p2798_p0 = scmp.lt.s32.totalorder %s2792_s22, %s4449_s9 }
 0x8ca   : > { %p2794_p11 = scmp.ne.s32.totalorder %s2792_s22, %s2793_s23  ;;  %p2799_p1 = scmp.lt.s32.totalorder %s2797_s25, %s2793_s23 }
 0x8cb   : > { %v2141_v56 = vpop.f32.mrf.mxu0 }
 0x8cc   : > { %v2142_v51 = vadd.f32 %v4161_v10, %v2141_v56  ;;  %v2256_v10 = vld [vmem:[%s4447_s7 + $0xe0] sm:$0xff]  ;;  %p2795_p12 = pnand %p2794_p11, %p2934_p5  ;;  %p2800_p2 = por %p2799_p1, %p2798_p0 }
 0x8cd   : > { %2290 = vmatpush.msra.mxu3 %v2256_v10 }
 0x8ce   : > { %v2165_v27 = vadd.f32 %v2164_v7, %v2142_v51  ;;  %p2796_p13 = pneg %p2795_p12 }
 0x8cf   : > { %2291 = vmatpush.msra.mxu3 %v2255_v30 }
 0x8d0   : > { %2211 = vrot.lane.b32.xlu0 %v2165_v27, %s2841_s28  ;;  %s323_s28 = sand.u32 1, %s2831_s10   ;;  %p2801_p3 = pnand %p2800_p2, %p2796_p13 }
 0x8d1   : > { %2292 = vmatpush.msra.mxu3 %v2254_v29  ;;  %s2394_s24 = sshll.u32 %s323_s28, 4  ;;  %s2313_s13 = scalar_lea.sflag [#allocation3], %s323_s28 }
 0x8d2   : > { %s325_s17 = scalar_lea.vmem [#allocation2], %s2394_s24 }
 0x8d3   : > { %2293 = vmatpush.msra.mxu3 %v2253_v31  ;;  %s2325_s21 = sshll.u32 %s325_s17, 4  ;;  %s2326_s21 = int_to_ptr.vmem [resolvable:$true] %s2325_s21 }
 0x8d5   : > { %2294 = vmatpush.msra.mxu3 %v2252_v50 }
 0x8d7   : > { %2295 = vmatpush.msra.mxu3 %v2251_v61 }
 0x8d9   : > { %2296 = vmatpush.msra.mxu3 %v2250_v4 }
 0x8db   : > { %2297 = vmatpush.msra.mxu3 %v2249_v17 }
 0x8dd   : > { %2298 = vmatpush.msra.mxu3 %v2248_v36 }
 0x8df   : > { %2299 = vmatpush.msra.mxu3 %v2247_v62 }
 0x8e1   : > { %2300 = vmatpush.msra.mxu3 %v2246_v46 }
 0x8e2   : > { %v2281_v55 = vpop.f32.mrf.mxu2 }
 0x8e3   : > { %2301 = vmatpush.msra.mxu3 %v2245_v26  ;;  %v2282_v43 = vadd.f32 %v2510_v39, %v2281_v55 }
 0x8e5   : > { %2302 = vmatpush.msra.mxu3 %v2244_v11 }
 0x8ea   : > { %v2284_v57 = vpop.f32.mrf.mxu2 }
 0x8eb   : > { %v2285_v40 = vadd.f32 %v2510_v39, %v2284_v57 }
 0x91d   : > { %v2210_v49 = vpop.permute.xlu2 %2209 }
 0x939   : > { %v2506_v32 = vpop.permute.xlu1 %2505 }
 0x93a   : > { %v2507_v47 = vunpack.i.l.bf16 %v2506_v32  ;;  %v2508_v25 = vunpack.i.h.bf16 %v2506_v32 }
 0x93c   : > { %v2224_v6 = vsel %vm355_vm0, %v2222_v1, %v2507_v47  ;;  %v2225_v28 = vsel %vm355_vm0, %v2223_v22, %v2508_v25 }
 0x93d   : > { %v2226_v33 = vsel %vm2219_vm2, %v2224_v6, %v2210_v49 }
 0x93e   : > { %2303 = vmatmul.f32.vlgmr.msra.gmra.mxu3 %v2226_v33 }
 0x942   : > { %v2212_v23 = vpop.permute.xlu0 %2211 }
 0x943   : > { %v2227_v34 = vsel %vm2219_vm2, %v2225_v28, %v2212_v23 }
 0x946   : > { %2306 = vmatmul.f32.gmra.mxu3 %v2227_v34 }
 0x9c1   : > { %v2304_v58 = vpop.f32.mrf.mxu3 }
 0x9c2   : > { %v2305_v45 = vadd.f32 %v2304_v58, %v2282_v43 }
 0x9c4   : > { %2310 = vst.msk [vmem:[%s325_s17] sm:$0xff] %vm355_vm0, %v2305_v45 }
 0x9c9   : > { %v2307_v8 = vpop.f32.mrf.mxu3 }
 0x9ca   : > { %v2308_v42 = vadd.f32 %v2307_v8, %v2285_v40 }
 0x9cc   : > { %2311 = vst.msk [vmem:[%s325_s17 + $0x8] sm:$0xff] %vm355_vm0, %v2308_v42 }
 0x9cd   : > { %2804 = shalt.err (!%p2801_p3)
}
 0x9ce   : > { %s2844_s28 = smov 128   ;;  %s2845_s16 = smov 8  }
 0x9cf   : > { %2440 = dma.vmem_to_hbm [thread:$0]  (%p2934_p5), %s2326_s21, 256, %s2328_s14, %s2313_s13, %s2844_s28, %s2844_s28, %s2845_s16  }
 0x9d0 PF: > { %p2446_p4 = scmp.ge.s32.totalorder %s2839_s12, 2  ;;  %s2342_s17 = sand.u32 1, %s2827_s30  }
 0x9d1   : > { %s2343_s29 = scalar_lea.sflag [#allocation3], %s2342_s17 }
 0x9d2   : > { %p2443_p7 = pnand %p2446_p4, %p2938_p6 }
 0x9d4   : > { %p2444_p8 = pneg %p2443_p7 }
 0x9d6   : > { %2822 = dma.done.wait (%p2444_p8), %s2343_s29, 256  }
 0x9d7   : > { %2824 = vsyncadd (%p2444_p8), %s2343_s29, 4294967040  ;;  %p19_p9 = scmp.ge.s32.totalorder %s2921_s15, 4   ;;  %s4503_s30 = smov %s2831_s10 }
 0x9d8   : > { %s4504_s10 = smov %s2835_s11  ;;  %s4505_s11 = smov %s2932_s18 }
 0x9d9   : > { %s4506_s12 = smov %s2921_s15  ;;  %21 = sbr.rel (!%p19_p9) target bundleno = 3 (0x3), region = 91 }
 0x9de   :  { %2349 = vsyncpa [#allocation3], 1 }
 0x9df   :  { %2351 = vsyncpa [#allocation3 + $0x1], 1 }

// kernel: tpu_custom_call.1
= control target key start
LH: loop header
LB: loop body
LE: loop exit
PB: predicated region body
PF: predicated region fallthrough
CT: control target
= control target key end

     0   :  { %14 = vsyncpa [#allocation3], 0  ;;  %s4440_s0 = inlined_call_operand.vmem [shape: f32[2,16,64], index: 0, kind: input, shape index: {}]   ;;  %s4441_s1 = inlined_call_operand.vmem [shape: f32[64,256], index: 1, kind: input, shape index: {}]   ;;  %s4442_s2 = inlined_call_operand.vmem [shape: f32[1,256], index: 2, kind: input, shape index: {}]   ;;  %s4443_s3 = inlined_call_operand.vmem [shape: f32[32,256], index: 3, kind: input, shape index: {}]   ;;  %s4444_s4 = inlined_call_operand.vmem [shape: f32[1,256], index: 4, kind: input, shape index: {}]   ;;  %s4445_s5 = inlined_call_operand.vmem [shape: f32[256,32], index: 5, kind: input, shape index: {}]   ;;  %s4446_s6 = inlined_call_operand.vmem [shape: f32[1,32], index: 6, kind: input, shape index: {}]   ;;  %s4447_s7 = inlined_call_operand.vmem [shape: f32[256,64], index: 7, kind: input, shape index: {}]   ;;  %s4448_s8 = inlined_call_operand.vmem [shape: f32[1,64], index: 8, kind: input, shape index: {}]   ;;  %s4449_s9 = inlined_call_operand.hbm [shape: f32[2,16,64], index: 9, kind: output, shape index: {}]  }
   0x1   :  { %16 = vsyncpa [#allocation3 + $0x1], 0  ;;  %s2896_s30 = smov 0   ;;  %s2898_s10 = smov 0  }
   0x2   :  { %s2900_s11 = smov 0   ;;  %s2902_s12 = smov 0  }
   0x3 LB: > { %s2917_s13 = sadd.s32 4294967295, %s2839_s12   ;;  %s2390_s14 = sadd.s32 4294967294, %s2839_s12   ;;  %s2839_s12 = sphi %s2902_s12, %s4506_s12   ;;  %s2835_s11 = sphi %s2900_s11, %s4505_s11   ;;  %s2831_s10 = sphi %s2898_s10, %s4504_s10   ;;  %s2827_s30 = sphi %s2896_s30, %s4503_s30  }
   0x4   : > { %s2921_s15 = sadd.s32 1, %s2839_s12   ;;  %s223_s16 = sadd.s32 1, %s2835_s11 }
   0x5   : > { %s220_s17 = ssub.s32 %s2839_s12, %s2921_s15  ;;  %p233_p0 = scmp.ne.s32.totalorder %s2835_s11, %s2831_s10 }
   0x6   : > { %p221_p1 = scmp.eq.s32.totalorder %s220_s17, 0  ;;  %p234_p2 = scmp.eq.s32.totalorder %s2917_s13, 1 }
   0x7   : > { %p239_p3 = scmp.ne.s32.totalorder %s2831_s10, %s2827_s30  ;;  %p240_p4 = scmp.eq.s32.totalorder %s2390_s14, 1 }
   0x8   : > { %s2932_s18 = scalar_select %p221_p1, %s2835_s11, %s223_s16  }
   0x9   : > { %p2934_p5 = por %p234_p2, %p233_p0  ;;  %p2938_p6 = por %p240_p4, %p239_p3 }
   0xa   : > { %p2393_p7 = scmp.ge.s32.totalorder %s2839_s12, 1  ;;  %p290_p8 = scmp.lt.s32.totalorder %s2839_s12, 3 }
   0xc   : > { %p291_p9 = pnand %p2393_p7, %p290_p8 }
   0xe   : > { %294 = sbr.rel (%p291_p9) target bundleno = 2512 (0x9d0), region = 56 }
  0x13   : > { %v347_v0 = vld [vmem:[%s4441_s1 + $0x70] sm:$0xff]  ;;  %v345_v1 = vld [vmem:[%s4441_s1 + $0x60] sm:$0xff]  ;;  %p326_p10 = scmp.lt.s32.totalorder %s2917_s13, 1  ;;  %v2964_v4 = vld [vmem:[%s4443_s3 + $0x38] sm:$0xff]  ;;  %vm355_vm0 = vcmask 523264   ;;  %vm455_vm1 = vcmask 261120  }
  0x14   : > { %370 = vmatpush.msra.mxu0 %v347_v0  ;;  %v343_v2 = vld [vmem:[%s4441_s1 + $0x50] sm:$0xff]  ;;  %v2969_v5 = vld [vmem:[%s4443_s3 + $0x20] sm:$0xff]  ;;  %v2974_v6 = vld [vmem:[%s4443_s3 + $0x28] sm:$0xff]  ;;  %497 = vmatpush.msra.mxu3 %v2964_v4  ;;  %s2842_s14 = smov 64   ;;  %vm2219_vm2 = vcmask 785408   ;;  %s2439_s25 = sshll.u32 %s2917_s13, 4 }
  0x15   : > { %v2957_v3 = vld [vmem:[%s4443_s3 + $0x30] sm:$0xff]  ;;  %s327_s29 = scalar_select %p326_p10, %s2917_s13, 1  ;;  %v341_v7 = vld [vmem:[%s4441_s1 + $0x40] sm:$0xff]  ;;  %v3009_v15 = vld [vmem:[%s4443_s3 + $0x18] sm:$0xff] }
  0x16   : > { %371 = vmatpush.msra.mxu0 %v345_v1  ;;  %474 = vmatpush.msra.mxu2 %v2957_v3  ;;  %v339_v8 = vld [vmem:[%s4441_s1 + $0x30] sm:$0xff]  ;;  %v337_v9 = vld [vmem:[%s4441_s1 + $0x20] sm:$0xff]  ;;  %v3021_v17 = vld [vmem:[%s4443_s3 + $0x8] sm:$0xff]  ;;  %s2324_s16 = scalar_lea.hbm %s4449_s9, %s2439_s25  ;;  %s2797_s25 = scalar_lea.hbm %s4449_s9, 32 }
  0x17   : > { %498 = vmatpush.msra.mxu3 %v2974_v6  ;;  %s2438_s28 = sshll.u32 %s327_s29, 4  ;;  %v335_v10 = vld [vmem:[%s4441_s1 + $0x10] sm:$0xff]  ;;  %v333_v11 = vld [vmem:[%s4441_s1] sm:$0xff]  ;;  %v348_v18 = vld [vmem:[%s4441_s1 + $0x78] sm:$0xff]  ;;  %s2843_s29 = smov 32  }
  0x18   : > { %372 = vmatpush.msra.mxu0 %v343_v2  ;;  %475 = vmatpush.msra.mxu2 %v2969_v5  ;;  %s330_s24 = scalar_lea.vmem %s4440_s0, %s2438_s28  ;;  %v3004_v14 = vld [vmem:[%s4443_s3 + $0x10] sm:$0xff]  ;;  %v3016_v16 = vld [vmem:[%s4443_s3] sm:$0xff]  ;;  %v346_v19 = vld [vmem:[%s4441_s1 + $0x68] sm:$0xff]  ;;  %s2841_s28 = smov 96  }
  0x19   : > { %v331_v12 = vld [vmem:[%s330_s24] sm:$0xff]  ;;  %v332_v13 = vld [vmem:[%s330_s24 + $0x8] sm:$0xff]  ;;  %499 = vmatpush.msra.mxu3 %v3009_v15  ;;  %393 = vmatpush.msra.mxu1 %v348_v18  ;;  %v344_v20 = vld [vmem:[%s4441_s1 + $0x58] sm:$0xff] }
  0x1a   : > { %373 = vmatpush.msra.mxu0 %v341_v7  ;;  %476 = vmatpush.msra.mxu2 %v3004_v14  ;;  %v342_v21 = vld [vmem:[%s4441_s1 + $0x48] sm:$0xff]  ;;  %v340_v22 = vld [vmem:[%s4441_s1 + $0x38] sm:$0xff]  ;;  %v349_v23 = vld [vmem:[%s4442_s2] sm:$0x3] }
  0x1b   : > { %500 = vmatpush.msra.mxu3 %v3021_v17  ;;  %394 = vmatpush.msra.mxu1 %v346_v19  ;;  %v338_v24 = vld [vmem:[%s4441_s1 + $0x28] sm:$0xff]  ;;  %v351_v25 = vperm.slane %v349_v23, 0  ;;  %v336_v26 = vld [vmem:[%s4441_s1 + $0x18] sm:$0xff]  ;;  %v416_v36 = vld [vmem:[%s4444_s4] sm:$0x3] }
  0x1c   : > { %374 = vmatpush.msra.mxu0 %v339_v8  ;;  %477 = vmatpush.msra.mxu2 %v3016_v16  ;;  %v334_v27 = vld [vmem:[%s4441_s1 + $0x8] sm:$0xff]  ;;  %v3085_v37 = vperm.slane %v416_v36, 0  ;;  %v3087_v38 = vperm.slane %v416_v36, 1 }
  0x1d   : > { %395 = vmatpush.msra.mxu1 %v344_v20 }
  0x1e   : > { %375 = vmatpush.msra.mxu0 %v337_v9  ;;  %4469 = vst [vmem:[#allocation5_spill] sm:$0xff] %v3085_v37 }
  0x1f   : > { %396 = vmatpush.msra.mxu1 %v342_v21  ;;  %4470 = vst [vmem:[#allocation6_spill] sm:$0xff] %v3087_v38 }
  0x20   : > { %376 = vmatpush.msra.mxu0 %v335_v10 }
  0x21   : > { %397 = vmatpush.msra.mxu1 %v340_v22 }
  0x22   : > { %377 = vmatpush.msra.mxu0 %v333_v11 }
  0x23   : > { %2397 = vmatmul.msk.f32.vlgmr.msra.gmra.mxu0 %vm355_vm0, %v331_v12  ;;  %398 = vmatpush.msra.mxu1 %v338_v24 }
  0x24   : > { %691 = vmatpush.msrb.mxu0 %v2957_v3 }
  0x25   : > { %399 = vmatpush.msra.mxu1 %v336_v26 }
  0x26   : > { %692 = vmatpush.msrb.mxu0 %v2969_v5 }
  0x27   : > { %400 = vmatpush.msra.mxu1 %v334_v27 }
  0x28   : > { %693 = vmatpush.msrb.mxu0 %v3004_v14  ;;  %2399 = vmatmul.msk.f32.vlgmr.msra.gmra.mxu1 %vm355_vm0, %v331_v12 }
  0x29   : > { %714 = vmatpush.msrb.mxu1 %v2964_v4 }
  0x2a   : > { %694 = vmatpush.msrb.mxu0 %v3016_v16 }
  0x2b   : > { %2398 = vmatmul.msk.f32.gmra.mxu0 %vm355_vm0, %v332_v13  ;;  %715 = vmatpush.msrb.mxu1 %v2974_v6 }
  0x2d   : > { %716 = vmatpush.msrb.mxu1 %v3009_v15 }
  0x2f   : > { %717 = vmatpush.msrb.mxu1 %v3021_v17 }
  0x30   : > { %2400 = vmatmul.msk.f32.gmra.mxu1 %vm355_vm0, %v332_v13 }
  0xa0   : > { %v379_v28 = vpop.f32.mrf.mxu0 }
  0xa1   : > { %v3054_v29 = vadd.f32 %v379_v28, %v351_v25 }
  0xa3   : > { %671 = vrot.lane.b32.xlu0 %v3054_v29, %s2841_s28  ;;  %2401 = vmatmul.msk.f32.vlgmr.msra.gmra.mxu2 %vm455_vm1, %v3054_v29 }
  0xa4   : > { %2403 = vmatmul.msk.f32.vlgmr.msra.gmra.mxu3 %vm455_vm1, %v3054_v29 }
  0xa8   : > { %v382_v30 = vpop.f32.mrf.mxu0 }
  0xa9   : > { %v3065_v31 = vadd.f32 %v382_v30, %v351_v25 }
  0xab   : > { %673 = vrot.lane.b32.xlu0 %v3065_v31, %s2841_s28  ;;  %2402 = vmatmul.msk.f32.gmra.mxu2 %vm455_vm1, %v3065_v31 }
  0xac   : > { %2404 = vmatmul.msk.f32.gmra.mxu3 %vm455_vm1, %v3065_v31 }
  0xb3   : > { %885 = vrot.lane.b32.xlu0 %v3054_v29, %s2842_s14 }
 0x115   : > { %v672_v32 = vpop.permute.xlu0 %671 }
 0x116   : > { %2405 = vmatmul.msk.f32.vlgmr.msrb.gmra.mxu0 %vm455_vm1, %v672_v32  ;;  %2407 = vmatmul.msk.f32.vlgmr.msrb.gmra.mxu1 %vm455_vm1, %v672_v32 }
 0x11d   : > { %v674_v33 = vpop.permute.xlu0 %673 }
 0x11e   : > { %2406 = vmatmul.msk.f32.gmra.mxu0 %vm455_vm1, %v674_v33  ;;  %2408 = vmatmul.msk.f32.gmra.mxu1 %vm455_vm1, %v674_v33 }
 0x126   : > { %v479_v34 = vpop.f32.mrf.mxu2 }
 0x127   : > { %v502_v35 = vpop.f32.mrf.mxu3  ;;  %v480_v40 = vadd.f32 %v479_v34, %v3085_v37 }
 0x128   : > { %v503_v43 = vadd.f32 %v502_v35, %v3087_v38 }
 0x12e   : > { %v482_v39 = vpop.f32.mrf.mxu2 }
 0x12f   : > { %v483_v41 = vadd.f32 %v482_v39, %v3085_v37  ;;  %v505_v42 = vpop.f32.mrf.mxu3 }
 0x130   : > { %v506_v44 = vadd.f32 %v505_v42, %v3087_v38 }
 0x131   : > { %v508_v45 = vmax.f32 %v480_v40, %v483_v41 }
 0x132   : > { %v515_v46 = vmax.f32 %v503_v43, %v506_v44 }
 0x133   : > { %v509_v47 = vrot.slane %v508_v45, 4 }
 0x134   : > { %v516_v48 = vrot.slane %v515_v46, 4 }
 0x135   : > { %v510_v49 = vmax.f32 %v508_v45, %v509_v47 }
 0x136   : > { %v517_v50 = vmax.f32 %v515_v46, %v516_v48 }
 0x137   : > { %v511_v51 = vrot.slane %v510_v49, 2 }
 0x138   : > { %v518_v52 = vrot.slane %v517_v50, 2 }
 0x139   : > { %v512_v53 = vmax.f32 %v510_v49, %v511_v51 }
 0x13a   : > { %v519_v54 = vmax.f32 %v517_v50, %v518_v52 }
 0x13b   : > { %v513_v55 = vrot.slane %v512_v53, 1 }
 0x13c   : > { %v520_v56 = vrot.slane %v519_v54, 1 }
 0x13d   : > { %v514_v57 = vmax.f32 %v512_v53, %v513_v55 }
 0x13e   : > { %v521_v58 = vmax.f32 %v519_v54, %v520_v56 }
 0x13f   : > { %v522_v59 = vsub.f32 %v480_v40, %v514_v57  ;;  %v524_v60 = vsub.f32 %v483_v41, %v514_v57  ;;  %v3113_v41 = vpop.f32.mrf.mxu1 }
 0x140   : > { %v523_v61 = vsub.f32 %v503_v43, %v521_v58  ;;  %v525_v62 = vsub.f32 %v506_v44, %v521_v58  ;;  %4471 = vst [vmem:[#allocation7_spill] sm:$0xff] %v3113_v41 }
 0x141   : > { %v526_v63 = vmul.f32 1.442695, %v522_v59  ;;  %v530_v0 = vmul.f32 1.442695, %v524_v60 }
 0x142   : > { %v528_v1 = vmul.f32 1.442695, %v523_v61  ;;  %v532_v2 = vmul.f32 1.442695, %v525_v62 }
 0x143   : > { %2511 = vpow2.f32 %v526_v63 }
 0x144   : > { %2513 = vpow2.f32 %v530_v0 }
 0x145   : > { %2515 = vpow2.f32 %v528_v1 }
 0x146   : > { %2517 = vpow2.f32 %v532_v2 }
 0x147   : > { %v3115_v42 = vpop.f32.mrf.mxu1 }
 0x148   : > { %4472 = vst [vmem:[#allocation8_spill] sm:$0xff] %v3115_v42 }
 0x149   : > { %v2512_v7 = vpop.eup %2511 }
 0x14a   : > { %v2514_v8 = vpop.eup %2513 }
 0x14b   : > { %v2516_v9 = vpop.eup %2515  ;;  %v534_v10 = vadd.f32 %v2514_v8, %v2512_v7 }
 0x14c   : > { %v2518_v11 = vpop.eup %2517 }
 0x14d   : > { %v535_v12 = vrot.slane %v534_v10, 4  ;;  %v541_v13 = vadd.f32 %v2518_v11, %v2516_v9 }
 0x14f   : > { %v536_v18 = vadd.f32 %v535_v12, %v534_v10  ;;  %v542_v19 = vrot.slane %v541_v13, 4 }
 0x151   : > { %v537_v20 = vrot.slane %v536_v18, 2  ;;  %v543_v21 = vadd.f32 %v542_v19, %v541_v13 }
 0x153   : > { %v538_v22 = vadd.f32 %v537_v20, %v536_v18  ;;  %v544_v23 = vrot.slane %v543_v21, 2 }
 0x155   : > { %v539_v24 = vrot.slane %v538_v22, 1  ;;  %v545_v25 = vadd.f32 %v544_v23, %v543_v21 }
 0x157   : > { %v546_v26 = vrot.slane %v545_v25, 1  ;;  %v540_v27 = vadd.f32 %v539_v24, %v538_v22 }
 0x159   : > { %2519 = vrcp.f32 %v540_v27  ;;  %v547_v28 = vadd.f32 %v546_v26, %v545_v25 }
 0x15b   : > { %2521 = vrcp.f32 %v547_v28 }
 0x15f   : > { %v2520_v30 = vpop.eup %2519 }
 0x160   : > { %v3093_v32 = vmul.f32 %v2520_v30, %v2514_v8  ;;  %v3095_v33 = vmul.f32 %v2520_v30, %v2512_v7 }
 0x161   : > { %v2522_v34 = vpop.eup %2521 }
 0x162   : > { %570 = vrot.lane.b32.xlu2 %v3093_v32, %s2842_s14  ;;  %568 = vrot.lane.b32.xlu1 %v3095_v33, %s2842_s14  ;;  %v3101_v35 = vmul.f32 %v2522_v34, %v2516_v9  ;;  %v3105_v39 = vmul.f32 %v2522_v34, %v2518_v11  ;;  %v554_v45 = vsel %vm355_vm0, %v3095_v33, 0.0  ;;  %v557_v48 = vsel %vm355_vm0, %v3093_v32, 0.0 }
 0x164   : > { %v586_v36 = vsel %vm355_vm0, %v3101_v35, 0.0  ;;  %v589_v40 = vsel %vm355_vm0, %v3105_v39, 0.0 }
 0x165   : > { %587 = vadd.xlane.f32.xlu0 %v586_v36 }
 0x16a   : > { %602 = vrot.lane.b32.xlu2 %v3105_v39, %s2842_s14  ;;  %600 = vrot.lane.b32.xlu1 %v3101_v35, %s2842_s14 }
 0x16d   : > { %590 = vadd.xlane.f32.xlu0 %v589_v40 }
 0x193   : > { %v696_v43 = vpop.f32.mrf.mxu0  ;;  %v719_v44 = vpop.f32.mrf.mxu1 }
 0x194   : > { %555 = vadd.xlane.f32.xlu1 %v554_v45  ;;  %v697_v49 = vadd.f32 %v696_v43, %v3085_v37  ;;  %v720_v50 = vadd.f32 %v719_v44, %v3087_v38 }
 0x19b   : > { %v699_v46 = vpop.f32.mrf.mxu0  ;;  %v722_v47 = vpop.f32.mrf.mxu1 }
 0x19c   : > { %v700_v51 = vadd.f32 %v699_v46, %v3085_v37  ;;  %v723_v52 = vadd.f32 %v722_v47, %v3087_v38  ;;  %558 = vadd.xlane.f32.xlu1 %v557_v48 }
 0x19e   : > { %v725_v53 = vmax.f32 %v697_v49, %v700_v51  ;;  %v732_v54 = vmax.f32 %v720_v50, %v723_v52 }
 0x1a0   : > { %v726_v55 = vrot.slane %v725_v53, 4  ;;  %v733_v56 = vrot.slane %v732_v54, 4 }
 0x1a2   : > { %v727_v57 = vmax.f32 %v725_v53, %v726_v55  ;;  %v734_v58 = vmax.f32 %v732_v54, %v733_v56 }
 0x1a4   : > { %v728_v59 = vrot.slane %v727_v57, 2  ;;  %v735_v60 = vrot.slane %v734_v58, 2 }
 0x1a6   : > { %v729_v61 = vmax.f32 %v727_v57, %v728_v59  ;;  %v736_v62 = vmax.f32 %v734_v58, %v735_v60 }
 0x1a8   : > { %v730_v63 = vrot.slane %v729_v61, 1  ;;  %v737_v0 = vrot.slane %v736_v62, 1 }
 0x1aa   : > { %v731_v1 = vmax.f32 %v729_v61, %v730_v63  ;;  %v738_v2 = vmax.f32 %v736_v62, %v737_v0 }
 0x1ac   : > { %v739_v7 = vsub.f32 %v697_v49, %v731_v1  ;;  %v741_v8 = vsub.f32 %v700_v51, %v731_v1  ;;  %v740_v9 = vsub.f32 %v720_v50, %v738_v2  ;;  %v742_v10 = vsub.f32 %v723_v52, %v738_v2  ;;  %v3153_v1 = vpop.permute.xlu0 %885 }
 0x1ae   : > { %v743_v11 = vmul.f32 1.442695, %v739_v7  ;;  %v747_v12 = vmul.f32 1.442695, %v741_v8  ;;  %v745_v13 = vmul.f32 1.442695, %v740_v9 }
 0x1af   : > { %v749_v18 = vmul.f32 1.442695, %v742_v10  ;;  %v3164_v8 = vld [vmem:[%s4445_s5 + $0x78] sm:$0xff]  ;;  %v3169_v9 = vld [vmem:[%s4445_s5 + $0x70] sm:$0xff] }
 0x1b0   : > { %2523 = vpow2.f32 %v743_v11  ;;  %625 = vmatpush.msrb.mxu2 %v3164_v8  ;;  %v3175_v10 = vld [vmem:[%s4445_s5 + $0xf8] sm:$0xff]  ;;  %839 = vmatpush.msra.mxu0 %v3164_v8 }
 0x1b1   : > { %2525 = vpow2.f32 %v747_v12  ;;  %v3183_v12 = vld [vmem:[%s4445_s5 + $0x68] sm:$0xff]  ;;  %648 = vmatpush.msrb.mxu3 %v3175_v10  ;;  %862 = vmatpush.msra.mxu1 %v3175_v10 }
 0x1b2   : > { %2527 = vpow2.f32 %v745_v13  ;;  %v3189_v13 = vld [vmem:[%s4445_s5 + $0xf0] sm:$0xff]  ;;  %626 = vmatpush.msrb.mxu2 %v3169_v9  ;;  %840 = vmatpush.msra.mxu0 %v3169_v9 }
 0x1b3   : > { %2529 = vpow2.f32 %v749_v18  ;;  %649 = vmatpush.msrb.mxu3 %v3189_v13  ;;  %863 = vmatpush.msra.mxu1 %v3189_v13 }
 0x1b4   : > { %627 = vmatpush.msrb.mxu2 %v3183_v12  ;;  %841 = vmatpush.msra.mxu0 %v3183_v12 }
 0x1b6   : > { %v2524_v19 = vpop.eup %2523 }
 0x1b7   : > { %v2526_v20 = vpop.eup %2525 }
 0x1b8   : > { %v2528_v21 = vpop.eup %2527  ;;  %v751_v22 = vadd.f32 %v2526_v20, %v2524_v19 }
 0x1b9   : > { %v2530_v23 = vpop.eup %2529 }
 0x1ba   : > { %v752_v24 = vrot.slane %v751_v22, 4  ;;  %v758_v25 = vadd.f32 %v2530_v23, %v2528_v21 }
 0x1bc   : > { %v753_v26 = vadd.f32 %v752_v24, %v751_v22  ;;  %v759_v27 = vrot.slane %v758_v25, 4  ;;  %v571_v59 = vpop.permute.xlu2 %570 }
 0x1bd   : > { %v577_v63 = vsel %vm355_vm0, %v571_v59, 0.0  ;;  %v3339_v59 = vld [vmem:[%s4445_s5 + $0x8] sm:$0xff] }
 0x1be   : > { %v754_v28 = vrot.slane %v753_v26, 2  ;;  %v760_v30 = vadd.f32 %v759_v27, %v758_v25 }
 0x1c0   : > { %v755_v34 = vadd.f32 %v754_v28, %v753_v26  ;;  %v761_v36 = vrot.slane %v760_v30, 2  ;;  %v3227_v28 = vld [vmem:[%s4445_s5 + $0x48] sm:$0xff] }
 0x1c2   : > { %v756_v40 = vrot.slane %v755_v34, 1  ;;  %v762_v43 = vadd.f32 %v761_v36, %v760_v30  ;;  %v3232_v30 = vld [vmem:[%s4445_s5 + $0xe8] sm:$0xff]  ;;  %v3244_v36 = vld [vmem:[%s4445_s5 + $0xe0] sm:$0xff] }
 0x1c3   : > { %650 = vmatpush.msrb.mxu3 %v3232_v30  ;;  %864 = vmatpush.msra.mxu1 %v3232_v30 }
 0x1c4   : > { %v763_v44 = vrot.slane %v762_v43, 1  ;;  %v757_v45 = vadd.f32 %v756_v40, %v755_v34  ;;  %v603_v62 = vpop.permute.xlu2 %602  ;;  %v3239_v34 = vld [vmem:[%s4445_s5 + $0x40] sm:$0xff] }
 0x1c5   : > { %v609_v0 = vsel %vm355_vm0, %v603_v62, 0.0  ;;  %651 = vmatpush.msrb.mxu3 %v3244_v36  ;;  %865 = vmatpush.msra.mxu1 %v3244_v36  ;;  %v3358_v62 = vld [vmem:[%s4445_s5 + $0xa0] sm:$0xff] }
 0x1c6   : > { %2531 = vrcp.f32 %v757_v45  ;;  %v764_v46 = vadd.f32 %v763_v44, %v762_v43  ;;  %v3253_v43 = vld [vmem:[%s4445_s5 + $0x38] sm:$0xff]  ;;  %v3263_v45 = vld [vmem:[%s4445_s5 + $0x30] sm:$0xff] }
 0x1c7   : > { %v3258_v44 = vld [vmem:[%s4445_s5 + $0xd8] sm:$0xff] }
 0x1c8   : > { %2533 = vrcp.f32 %v764_v46  ;;  %652 = vmatpush.msrb.mxu3 %v3258_v44  ;;  %v3272_v46 = vld [vmem:[%s4445_s5 + $0xd0] sm:$0xff]  ;;  %866 = vmatpush.msra.mxu1 %v3258_v44 }
 0x1ca   : > { %653 = vmatpush.msrb.mxu3 %v3272_v46  ;;  %867 = vmatpush.msra.mxu1 %v3272_v46 }
 0x1cc   : > { %v2532_v47 = vpop.eup %2531 }
 0x1cd   : > { %v3125_v48 = vmul.f32 %v2532_v47, %v2524_v19  ;;  %v3127_v49 = vmul.f32 %v2532_v47, %v2526_v20  ;;  %v3199_v19 = vld [vmem:[%s4445_s5 + $0x60] sm:$0xff]  ;;  %v3208_v20 = vld [vmem:[%s4445_s5 + $0x58] sm:$0xff] }
 0x1ce   : > { %v2534_v50 = vpop.eup %2533  ;;  %628 = vmatpush.msrb.mxu2 %v3199_v19  ;;  %842 = vmatpush.msra.mxu0 %v3199_v19 }
 0x1cf   : > { %4473 = vst [vmem:[#allocation9_spill] sm:$0xff] %v3127_v49  ;;  %785 = vrot.lane.b32.xlu0 %v3125_v48, %s2842_s14  ;;  %787 = vrot.lane.b32.xlu2 %v3127_v49, %s2842_s14  ;;  %v3133_v51 = vmul.f32 %v2534_v50, %v2528_v21  ;;  %v3137_v52 = vmul.f32 %v2534_v50, %v2530_v23  ;;  %v771_v53 = vsel %vm355_vm0, %v3125_v48, 0.0  ;;  %v774_v57 = vsel %vm355_vm0, %v3127_v49, 0.0  ;;  %v3215_v21 = vld [vmem:[%s4445_s5 + $0x50] sm:$0xff]  ;;  %v3282_v50 = vld [vmem:[%s4445_s5 + $0x28] sm:$0xff] }
 0x1d0   : > { %629 = vmatpush.msrb.mxu2 %v3208_v20  ;;  %843 = vmatpush.msra.mxu0 %v3208_v20 }
 0x1d1   : > { %4474 = vst [vmem:[#allocation10_spill] sm:$0xff] %v3133_v51  ;;  %817 = vrot.lane.b32.xlu1 %v3133_v51, %s2842_s14  ;;  %v803_v55 = vsel %vm355_vm0, %v3133_v51, 0.0  ;;  %v806_v61 = vsel %vm355_vm0, %v3137_v52, 0.0 }
 0x1d2   : > { %4475 = vst [vmem:[#allocation11_spill] sm:$0xff] %v3137_v52  ;;  %630 = vmatpush.msrb.mxu2 %v3215_v21  ;;  %844 = vmatpush.msra.mxu0 %v3215_v21 }
 0x1d4   : > { %v569_v54 = vpop.permute.xlu1 %568  ;;  %631 = vmatpush.msrb.mxu2 %v3227_v28  ;;  %845 = vmatpush.msra.mxu0 %v3227_v28 }
 0x1d5   : > { %v574_v56 = vsel %vm355_vm0, %v569_v54, 0.0  ;;  %v3297_v54 = vld [vmem:[%s4445_s5 + $0x20] sm:$0xff] }
 0x1d6   : > { %632 = vmatpush.msrb.mxu2 %v3239_v34  ;;  %846 = vmatpush.msra.mxu0 %v3239_v34 }
 0x1d7   : > { %819 = vrot.lane.b32.xlu0 %v3137_v52, %s2842_s14 }
 0x1d8   : > { %v3157_v2 = vpop.xlane.xlu0 %587  ;;  %633 = vmatpush.msrb.mxu2 %v3253_v43  ;;  %847 = vmatpush.msra.mxu0 %v3253_v43 }
 0x1da   : > { %634 = vmatpush.msrb.mxu2 %v3263_v45  ;;  %848 = vmatpush.msra.mxu0 %v3263_v45 }
 0x1dc   : > { %v601_v58 = vpop.permute.xlu1 %600  ;;  %635 = vmatpush.msrb.mxu2 %v3282_v50  ;;  %849 = vmatpush.msra.mxu0 %v3282_v50 }
 0x1dd   : > { %v606_v60 = vsel %vm355_vm0, %v601_v58, 0.0  ;;  %v3328_v58 = vld [vmem:[%s4445_s5 + $0xb0] sm:$0xff] }
 0x1de   : > { %636 = vmatpush.msrb.mxu2 %v3297_v54  ;;  %850 = vmatpush.msra.mxu0 %v3297_v54 }
 0x1e0   : > { %v3178_v11 = vpop.xlane.xlu0 %590 }
 0x1f8   : > { %772 = vadd.xlane.f32.xlu2 %v771_v53  ;;  %v3287_v53 = vld [vmem:[%s4445_s5 + $0xc8] sm:$0xff] }
 0x1f9   : > { %654 = vmatpush.msrb.mxu3 %v3287_v53  ;;  %868 = vmatpush.msra.mxu1 %v3287_v53 }
 0x1fb   : > { %804 = vadd.xlane.f32.xlu1 %v803_v55  ;;  %v3302_v55 = vld [vmem:[%s4445_s5 + $0xc0] sm:$0xff] }
 0x1fc   : > { %655 = vmatpush.msrb.mxu3 %v3302_v55  ;;  %869 = vmatpush.msra.mxu1 %v3302_v55 }
 0x200   : > { %575 = vadd.xlane.f32.xlu2 %v574_v56  ;;  %v3314_v56 = vld [vmem:[%s4445_s5 + $0xb8] sm:$0xff] }
 0x201   : > { %656 = vmatpush.msrb.mxu3 %v3314_v56  ;;  %870 = vmatpush.msra.mxu1 %v3314_v56 }
 0x203   : > { %775 = vadd.xlane.f32.xlu1 %v774_v57  ;;  %v3321_v57 = vld [vmem:[%s4445_s5 + $0x10] sm:$0xff]  ;;  %657 = vmatpush.msrb.mxu3 %v3328_v58 }
 0x204   : > { %871 = vmatpush.msra.mxu1 %v3328_v58 }
 0x207   : > { %v3159_v7 = vpop.xlane.xlu1 %555 }
 0x208   : > { %607 = vadd.xlane.f32.xlu2 %v606_v60  ;;  %v3344_v60 = vld [vmem:[%s4445_s5 + $0xa8] sm:$0xff] }
 0x209   : > { %658 = vmatpush.msrb.mxu3 %v3344_v60  ;;  %872 = vmatpush.msra.mxu1 %v3344_v60 }
 0x20b   : > { %807 = vadd.xlane.f32.xlu1 %v806_v61  ;;  %v3353_v61 = vld [vmem:[%s4445_s5] sm:$0xff]  ;;  %659 = vmatpush.msrb.mxu3 %v3358_v62 }
 0x20c   : > { %873 = vmatpush.msra.mxu1 %v3358_v62 }
 0x20f   : > { %v3194_v18 = vpop.xlane.xlu1 %558 }
 0x210   : > { %578 = vadd.xlane.f32.xlu2 %v577_v63  ;;  %v3365_v63 = vld [vmem:[%s4445_s5 + $0x98] sm:$0xff] }
 0x211   : > { %660 = vmatpush.msrb.mxu3 %v3365_v63  ;;  %874 = vmatpush.msra.mxu1 %v3365_v63 }
 0x213   : > { %610 = vadd.xlane.f32.xlu1 %v609_v0  ;;  %v3373_v0 = vld [vmem:[%s4445_s5 + $0x90] sm:$0xff] }
 0x214   : > { %661 = vmatpush.msrb.mxu3 %v3373_v0  ;;  %875 = vmatpush.msra.mxu1 %v3373_v0 }
 0x229   : > { %v788_v26 = vpop.permute.xlu2 %787 }
 0x22a   : > { %v794_v27 = vsel %vm355_vm0, %v788_v26, 0.0  ;;  %v560_v26 = vadd.f32 1e-09, %v3159_v7 }
 0x22c   : > { %887 = vrot.lane.b32.xlu1 %v3065_v31, %s2842_s14  ;;  %2535 = vrcp.f32 %v560_v26 }
 0x232   : > { %v2536_v41 = vpop.eup %2535 }
 0x233   : > { %v564_v7 = vmul.f32 %v2536_v41, %v3095_v33 }
 0x241   : > { %v786_v22 = vpop.permute.xlu0 %785 }
 0x242   : > { %v791_v23 = vsel %vm355_vm0, %v786_v22, 0.0  ;;  %v3385_v22 = vld [vmem:[%s4445_s5 + $0x88] sm:$0xff] }
 0x243   : > { %v818_v24 = vpop.permute.xlu1 %817  ;;  %792 = vadd.xlane.f32.xlu0 %v791_v23  ;;  %662 = vmatpush.msrb.mxu3 %v3385_v22  ;;  %v3394_v23 = vld [vmem:[%s4445_s5 + $0x80] sm:$0xff] }
 0x244   : > { %v823_v25 = vsel %vm355_vm0, %v818_v24, 0.0  ;;  %876 = vmatpush.msra.mxu1 %v3385_v22 }
 0x245   : > { %824 = vadd.xlane.f32.xlu2 %v823_v25  ;;  %663 = vmatpush.msrb.mxu3 %v3394_v23 }
 0x246   : > { %877 = vmatpush.msra.mxu1 %v3394_v23 }
 0x247   : > { %928 = vmatpush.msra.mxu3 %v2964_v4 }
 0x248   : > { %1142 = vmatpush.msrb.mxu1 %v2964_v4 }
 0x249   : > { %v820_v40 = vpop.permute.xlu0 %819  ;;  %929 = vmatpush.msra.mxu3 %v2974_v6 }
 0x24a   : > { %v826_v47 = vsel %vm355_vm0, %v820_v40, 0.0  ;;  %1143 = vmatpush.msrb.mxu1 %v2974_v6 }
 0x24b   : > { %930 = vmatpush.msra.mxu3 %v3009_v15 }
 0x24c   : > { %1144 = vmatpush.msrb.mxu1 %v3009_v15 }
 0x24d   : > { %795 = vadd.xlane.f32.xlu2 %v794_v27  ;;  %931 = vmatpush.msra.mxu3 %v3021_v17 }
 0x24e   : > { %1145 = vmatpush.msrb.mxu1 %v3021_v17 }
 0x255   : > { %827 = vadd.xlane.f32.xlu2 %v826_v47  ;;  %v592_v47 = vadd.f32 1e-09, %v3157_v2 }
 0x257   : > { %1099 = vrot.lane.b32.xlu0 %v3054_v29, %s2843_s29  ;;  %v3309_v29 = vld [vmem:[%s4445_s5 + $0x18] sm:$0xff] }
 0x258   : > { %637 = vmatpush.msrb.mxu2 %v3309_v29  ;;  %851 = vmatpush.msra.mxu0 %v3309_v29 }
 0x25a   : > { %638 = vmatpush.msrb.mxu2 %v3321_v57  ;;  %852 = vmatpush.msra.mxu0 %v3321_v57 }
 0x25c   : > { %639 = vmatpush.msrb.mxu2 %v3339_v59  ;;  %853 = vmatpush.msra.mxu0 %v3339_v59 }
 0x25e   : > { %640 = vmatpush.msrb.mxu2 %v3353_v61  ;;  %854 = vmatpush.msra.mxu0 %v3353_v61 }
 0x260   : > { %905 = vmatpush.msra.mxu2 %v2957_v3  ;;  %1119 = vmatpush.msrb.mxu0 %v2957_v3 }
 0x262   : > { %906 = vmatpush.msra.mxu2 %v2969_v5  ;;  %1120 = vmatpush.msrb.mxu0 %v2969_v5 }
 0x264   : > { %907 = vmatpush.msra.mxu2 %v3004_v14  ;;  %1121 = vmatpush.msrb.mxu0 %v3004_v14 }
 0x266   : > { %908 = vmatpush.msra.mxu2 %v3016_v16  ;;  %1122 = vmatpush.msrb.mxu0 %v3016_v16 }
 0x26b   : > { %v3400_v24 = vpop.xlane.xlu2 %772 }
 0x26d   : > { %1101 = vrot.lane.b32.xlu2 %v3065_v31, %s2843_s29 }
 0x26e   : > { %v3409_v25 = vpop.xlane.xlu1 %804 }
 0x273   : > { %v576_v27 = vpop.xlane.xlu2 %575 }
 0x274   : > { %v580_v31 = vadd.f32 1e-09, %v576_v27  ;;  %v561_v27 = vadd.f32 1e-09, %v3194_v18 }
 0x276   : > { %2537 = vrcp.f32 %v580_v31  ;;  %v3418_v40 = vpop.xlane.xlu1 %775  ;;  %v593_v31 = vadd.f32 1e-09, %v3178_v11 }
 0x277   : > { %2539 = vrcp.f32 %v592_v47 }
 0x27b   : > { %v608_v42 = vpop.xlane.xlu2 %607 }
 0x27c   : > { %v2538_v38 = vpop.eup %2537  ;;  %v612_v37 = vadd.f32 1e-09, %v608_v42 }
 0x27d   : > { %v584_v52 = vmul.f32 %v2538_v38, %v3095_v33  ;;  %v2540_v2 = vpop.eup %2539 }
 0x27e   : > { %2541 = vrcp.f32 %v612_v37  ;;  %v3423_v49 = vpop.xlane.xlu1 %807  ;;  %v596_v37 = vmul.f32 %v2540_v2, %v3101_v35 }
 0x27f   : > { %v618_v26 = vsel %vm355_vm0, %v564_v7, %v584_v52  ;;  %2543 = vrcp.f32 %v561_v27 }
 0x280   : > { %641 = vmatmul.f32.vlgmr.msrb.gmra.mxu2 %v618_v26 }
 0x281   : > { %1053 = vmatpush.msrb.mxu2 %v3164_v8 }
 0x283   : > { %v579_v51 = vpop.xlane.xlu2 %578  ;;  %1054 = vmatpush.msrb.mxu2 %v3169_v9 }
 0x284   : > { %v2542_v42 = vpop.eup %2541  ;;  %v581_v41 = vadd.f32 1e-09, %v579_v51 }
 0x285   : > { %v616_v38 = vmul.f32 %v2542_v42, %v3101_v35  ;;  %1055 = vmatpush.msrb.mxu2 %v3183_v12  ;;  %v2544_v51 = vpop.eup %2543 }
 0x286   : > { %2545 = vrcp.f32 %v581_v41  ;;  %v611_v33 = vpop.xlane.xlu1 %610  ;;  %v565_v47 = vmul.f32 %v2544_v51, %v3093_v32 }
 0x287   : > { %2547 = vrcp.f32 %v593_v31  ;;  %v613_v52 = vadd.f32 1e-09, %v611_v33  ;;  %v620_v18 = vsel %vm355_vm0, %v596_v37, %v616_v38  ;;  %1056 = vmatpush.msrb.mxu2 %v3199_v19 }
 0x288   : > { %664 = vmatmul.f32.vlgmr.msrb.gmra.mxu3 %v620_v18 }
 0x289   : > { %2549 = vrcp.f32 %v613_v52  ;;  %1076 = vmatpush.msrb.mxu3 %v3175_v10  ;;  %1057 = vmatpush.msrb.mxu2 %v3208_v20  ;;  %v4476_v52 = vld [vmem:[#allocation10_spill] sm:$0xff] }
 0x28b   : > { %1077 = vmatpush.msrb.mxu3 %v3189_v13  ;;  %1058 = vmatpush.msrb.mxu2 %v3215_v21 }
 0x28c   : > { %v2546_v35 = vpop.eup %2545 }
 0x28d   : > { %v2548_v11 = vpop.eup %2547  ;;  %v585_v7 = vmul.f32 %v2546_v35, %v3093_v32  ;;  %1078 = vmatpush.msrb.mxu3 %v3232_v30  ;;  %1059 = vmatpush.msrb.mxu2 %v3227_v28  ;;  %v810_v35 = vadd.f32 1e-09, %v3423_v49 }
 0x28e   : > { %v597_v2 = vmul.f32 %v2548_v11, %v3105_v39 }
 0x28f   : > { %v2550_v26 = vpop.eup %2549  ;;  %v619_v27 = vsel %vm355_vm0, %v565_v47, %v585_v7  ;;  %1079 = vmatpush.msrb.mxu3 %v3244_v36  ;;  %1060 = vmatpush.msrb.mxu2 %v3239_v34 }
 0x290   : > { %644 = vmatmul.f32.gmra.mxu2 %v619_v27  ;;  %v617_v31 = vmul.f32 %v2550_v26, %v3105_v39  ;;  %v4477_v26 = vld [vmem:[#allocation9_spill] sm:$0xff] }
 0x291   : > { %1080 = vmatpush.msrb.mxu3 %v3258_v44  ;;  %1061 = vmatpush.msrb.mxu2 %v3253_v43 }
 0x292   : > { %v621_v32 = vsel %vm355_vm0, %v597_v2, %v617_v31 }
 0x293   : > { %667 = vmatmul.f32.gmra.mxu3 %v621_v32  ;;  %1062 = vmatpush.msrb.mxu2 %v3263_v45 }
 0x294   : > { %1081 = vmatpush.msrb.mxu3 %v3272_v46 }
 0x295   : > { %1063 = vmatpush.msrb.mxu2 %v3282_v50 }
 0x296   : > { %1082 = vmatpush.msrb.mxu3 %v3287_v53 }
 0x297   : > { %1064 = vmatpush.msrb.mxu2 %v3297_v54 }
 0x298   : > { %2409 = vmatmul.msk.f32.vlgmr.msra.gmra.mxu2 %vm455_vm1, %v3153_v1  ;;  %1083 = vmatpush.msrb.mxu3 %v3302_v55 }
 0x299   : > { %1065 = vmatpush.msrb.mxu2 %v3309_v29 }
 0x29a   : > { %1084 = vmatpush.msrb.mxu3 %v3314_v56 }
 0x29b   : > { %2411 = vmatmul.msk.f32.vlgmr.msra.gmra.mxu3 %vm455_vm1, %v3153_v1  ;;  %1066 = vmatpush.msrb.mxu2 %v3321_v57 }
 0x29c   : > { %1085 = vmatpush.msrb.mxu3 %v3328_v58 }
 0x29d   : > { %1067 = vmatpush.msrb.mxu2 %v3339_v59 }
 0x29e   : > { %1086 = vmatpush.msrb.mxu3 %v3344_v60  ;;  %v888_v39 = vpop.permute.xlu1 %887 }
 0x29f   : > { %1068 = vmatpush.msrb.mxu2 %v3353_v61 }
 0x2a0   : > { %2410 = vmatmul.msk.f32.gmra.mxu2 %vm455_vm1, %v888_v39  ;;  %1087 = vmatpush.msrb.mxu3 %v3358_v62 }
 0x2a1   : > { %1331 = vmatpush.msra.mxu2 %v2957_v3  ;;  %v777_v3 = vadd.f32 1e-09, %v3400_v24 }
 0x2a2   : > { %1088 = vmatpush.msrb.mxu3 %v3365_v63 }
 0x2a3   : > { %2412 = vmatmul.msk.f32.gmra.mxu3 %vm455_vm1, %v888_v39  ;;  %1332 = vmatpush.msra.mxu2 %v2969_v5  ;;  %v809_v5 = vadd.f32 1e-09, %v3409_v25  ;;  %2551 = vrcp.f32 %v777_v3 }
 0x2a4   : > { %1089 = vmatpush.msrb.mxu3 %v3373_v0 }
 0x2a5   : > { %1333 = vmatpush.msra.mxu2 %v3004_v14  ;;  %2553 = vrcp.f32 %v809_v5 }
 0x2a6   : > { %1090 = vmatpush.msrb.mxu3 %v3385_v22 }
 0x2a7   : > { %1334 = vmatpush.msra.mxu2 %v3016_v16 }
 0x2a8   : > { %1091 = vmatpush.msrb.mxu3 %v3394_v23 }
 0x2a9   : > { %v2552_v41 = vpop.eup %2551 }
 0x2aa   : > { %1354 = vmatpush.msra.mxu3 %v2964_v4  ;;  %v778_v4 = vadd.f32 1e-09, %v3418_v40 }
 0x2ac   : > { %1355 = vmatpush.msra.mxu3 %v2974_v6  ;;  %v2554_v6 = vpop.eup %2553 }
 0x2ad   : > { %v813_v18 = vmul.f32 %v2554_v6, %v4476_v52 }
 0x2ae   : > { %1356 = vmatpush.msra.mxu3 %v3009_v15 }
 0x2b0   : > { %1357 = vmatpush.msra.mxu3 %v3021_v17  ;;  %v781_v17 = vmul.f32 %v2552_v41, %v3125_v48 }
 0x2b6   : > { %v793_v1 = vpop.xlane.xlu0 %792 }
 0x2b7   : > { %v797_v14 = vadd.f32 1e-09, %v793_v1 }
 0x2b8   : > { %v825_v42 = vpop.xlane.xlu2 %824 }
 0x2b9   : > { %2555 = vrcp.f32 %v797_v14  ;;  %v829_v16 = vadd.f32 1e-09, %v825_v42  ;;  %v4481_v42 = vld [vmem:[#allocation5_spill] sm:$0xff] }
 0x2bb   : > { %2557 = vrcp.f32 %v829_v16 }
 0x2bc   : > { %2559 = vrcp.f32 %v778_v4 }
 0x2bf   : > { %v2556_v37 = vpop.eup %2555 }
 0x2c0   : > { %v796_v15 = vpop.xlane.xlu2 %795  ;;  %v801_v24 = vmul.f32 %v2556_v37, %v3125_v48  ;;  %v4482_v37 = vld [vmem:[#allocation6_spill] sm:$0xff] }
 0x2c1   : > { %v2558_v38 = vpop.eup %2557  ;;  %v798_v25 = vadd.f32 1e-09, %v796_v15 }
 0x2c2   : > { %v835_v33 = vsel %vm355_vm0, %v781_v17, %v801_v24  ;;  %v833_v51 = vmul.f32 %v2558_v38, %v4476_v52  ;;  %v2560_v48 = vpop.eup %2559 }
 0x2c3   : > { %2561 = vrcp.f32 %v798_v25  ;;  %855 = vmatmul.f32.vlgmr.msra.gmra.mxu0 %v835_v33  ;;  %v782_v27 = vmul.f32 %v2560_v48, %v4477_v26 }
 0x2c4   : > { %v837_v40 = vsel %vm355_vm0, %v813_v18, %v833_v51  ;;  %1267 = vmatpush.msra.mxu0 %v3164_v8  ;;  %2563 = vrcp.f32 %v810_v35 }
 0x2c5   : > { %878 = vmatmul.f32.vlgmr.msra.gmra.mxu1 %v837_v40 }
 0x2c6   : > { %1268 = vmatpush.msra.mxu0 %v3169_v9  ;;  %1290 = vmatpush.msra.mxu1 %v3175_v10 }
 0x2c8   : > { %v828_v11 = vpop.xlane.xlu2 %827  ;;  %1269 = vmatpush.msra.mxu0 %v3183_v12  ;;  %1291 = vmatpush.msra.mxu1 %v3189_v13  ;;  %v4478_v12 = vld [vmem:[#allocation11_spill] sm:$0xff] }
 0x2c9   : > { %v2562_v47 = vpop.eup %2561  ;;  %v830_v7 = vadd.f32 1e-09, %v828_v11 }
 0x2ca   : > { %v802_v8 = vmul.f32 %v2562_v47, %v4477_v26  ;;  %1270 = vmatpush.msra.mxu0 %v3199_v19  ;;  %1292 = vmatpush.msra.mxu1 %v3232_v30  ;;  %v2564_v9 = vpop.eup %2563 }
 0x2cb   : > { %2565 = vrcp.f32 %v830_v7  ;;  %v814_v13 = vmul.f32 %v2564_v9, %v4478_v12 }
 0x2cc   : > { %v836_v49 = vsel %vm355_vm0, %v782_v27, %v802_v8  ;;  %1271 = vmatpush.msra.mxu0 %v3208_v20  ;;  %1293 = vmatpush.msra.mxu1 %v3244_v36  ;;  %v1100_v20 = vpop.permute.xlu0 %1099  ;;  %v3550_v36 = vld [vmem:[%s4443_s3 + $0x38] sm:$0xff] }
 0x2cd   : > { %858 = vmatmul.f32.gmra.mxu0 %v836_v49 }
 0x2ce   : > { %1272 = vmatpush.msra.mxu0 %v3215_v21  ;;  %1294 = vmatpush.msra.mxu1 %v3258_v44  ;;  %v3562_v44 = vld [vmem:[%s4443_s3 + $0x28] sm:$0xff] }
 0x2d0   : > { %1273 = vmatpush.msra.mxu0 %v3227_v28  ;;  %1295 = vmatpush.msra.mxu1 %v3272_v46  ;;  %v1102_v21 = vpop.permute.xlu2 %1101  ;;  %v3536_v28 = vld [vmem:[%s4443_s3 + $0x30] sm:$0xff]  ;;  %v3574_v46 = vld [vmem:[%s4443_s3 + $0x18] sm:$0xff] }
 0x2d1   : > { %v2566_v10 = vpop.eup %2565 }
 0x2d2   : > { %v834_v19 = vmul.f32 %v2566_v10, %v4478_v12  ;;  %1274 = vmatpush.msra.mxu0 %v3239_v34  ;;  %1296 = vmatpush.msra.mxu1 %v3287_v53  ;;  %v3544_v34 = vld [vmem:[%s4443_s3 + $0x20] sm:$0xff] }
 0x2d3   : > { %v3586_v53 = vld [vmem:[%s4446_s6] ss:$0 sm:$0xff] }
 0x2d4   : > { %v838_v30 = vsel %vm355_vm0, %v814_v13, %v834_v19  ;;  %1275 = vmatpush.msra.mxu0 %v3253_v43  ;;  %1297 = vmatpush.msra.mxu1 %v3302_v55  ;;  %v3556_v43 = vld [vmem:[%s4443_s3 + $0x10] sm:$0xff] }
 0x2d5   : > { %881 = vmatmul.f32.gmra.mxu1 %v838_v30  ;;  %2413 = vmatmul.msk.f32.vlgmr.msrb.gmra.mxu0 %vm455_vm1, %v1100_v20 }
 0x2d6   : > { %1276 = vmatpush.msra.mxu0 %v3263_v45  ;;  %1298 = vmatpush.msra.mxu1 %v3314_v56  ;;  %v3568_v45 = vld [vmem:[%s4443_s3] sm:$0xff] }
 0x2d8   : > { %1277 = vmatpush.msra.mxu0 %v3282_v50  ;;  %1299 = vmatpush.msra.mxu1 %v3328_v58  ;;  %v3580_v50 = vld [vmem:[%s4443_s3 + $0x8] sm:$0xff] }
 0x2da   : > { %1278 = vmatpush.msra.mxu0 %v3297_v54  ;;  %1300 = vmatpush.msra.mxu1 %v3344_v60 }
 0x2dc   : > { %1279 = vmatpush.msra.mxu0 %v3309_v29  ;;  %1301 = vmatpush.msra.mxu1 %v3358_v62 }
 0x2dd   : > { %2414 = vmatmul.msk.f32.gmra.mxu0 %vm455_vm1, %v1102_v21  ;;  %2415 = vmatmul.msk.f32.vlgmr.msrb.gmra.mxu1 %vm455_vm1, %v1100_v20 }
 0x2de   : > { %1280 = vmatpush.msra.mxu0 %v3321_v57  ;;  %1302 = vmatpush.msra.mxu1 %v3365_v63 }
 0x2e0   : > { %1281 = vmatpush.msra.mxu0 %v3339_v59  ;;  %1303 = vmatpush.msra.mxu1 %v3373_v0 }
 0x2e2   : > { %1282 = vmatpush.msra.mxu0 %v3353_v61  ;;  %1304 = vmatpush.msra.mxu1 %v3385_v22 }
 0x2e4   : > { %1545 = vmatpush.msrb.mxu0 %v3536_v28  ;;  %1305 = vmatpush.msra.mxu1 %v3394_v23 }
 0x2e5   : > { %2416 = vmatmul.msk.f32.gmra.mxu1 %vm455_vm1, %v1102_v21 }
 0x2e6   : > { %1546 = vmatpush.msrb.mxu0 %v3544_v34  ;;  %1568 = vmatpush.msrb.mxu1 %v3550_v36 }
 0x2e8   : > { %1547 = vmatpush.msrb.mxu0 %v3556_v43  ;;  %1569 = vmatpush.msrb.mxu1 %v3562_v44 }
 0x2ea   : > { %1548 = vmatpush.msrb.mxu0 %v3568_v45  ;;  %1570 = vmatpush.msrb.mxu1 %v3574_v46 }
 0x2ec   : > { %1571 = vmatpush.msrb.mxu1 %v3580_v50 }
 0x303   : > { %v642_v54 = vpop.f32.mrf.mxu2 }
 0x304   : > { %v643_v29 = vadd.f32 %v3586_v53, %v642_v54 }
 0x30b   : > { %v665_v57 = vpop.f32.mrf.mxu3 }
 0x30c   : > { %v3589_v2 = vadd.f32 %v665_v57, %v643_v29 }
 0x30e   : > { %4479 = vst [vmem:[#allocation10_spill] sm:$0xff] %v3589_v2 }
 0x313   : > { %v645_v31 = vpop.f32.mrf.mxu2 }
 0x314   : > { %v646_v32 = vadd.f32 %v3586_v53, %v645_v31 }
 0x316   : > { %v668_v39 = vpop.f32.mrf.mxu3 }
 0x317   : > { %v3592_v3 = vadd.f32 %v668_v39, %v646_v32 }
 0x319   : > { %4480 = vst [vmem:[#allocation9_spill] sm:$0xff] %v3592_v3 }
 0x31b   : > { %v910_v5 = vpop.f32.mrf.mxu2 }
 0x31c   : > { %v911_v16 = vadd.f32 %v910_v5, %v4481_v42 }
 0x31e   : > { %v933_v1 = vpop.f32.mrf.mxu3 }
 0x31f   : > { %v934_v15 = vadd.f32 %v933_v1, %v4482_v37 }
 0x323   : > { %v913_v14 = vpop.f32.mrf.mxu2 }
 0x324   : > { %v914_v41 = vadd.f32 %v913_v14, %v4481_v42 }
 0x326   : > { %v939_v4 = vmax.f32 %v911_v16, %v914_v41  ;;  %v936_v6 = vpop.f32.mrf.mxu3 }
 0x327   : > { %v937_v17 = vadd.f32 %v936_v6, %v4482_v37 }
 0x328   : > { %v940_v24 = vrot.slane %v939_v4, 4 }
 0x329   : > { %v946_v38 = vmax.f32 %v934_v15, %v937_v17 }
 0x32a   : > { %v941_v25 = vmax.f32 %v939_v4, %v940_v24 }
 0x32b   : > { %v947_v33 = vrot.slane %v946_v38, 4 }
 0x32c   : > { %v942_v52 = vrot.slane %v941_v25, 2 }
 0x32d   : > { %v948_v18 = vmax.f32 %v946_v38, %v947_v33 }
 0x32e   : > { %v943_v51 = vmax.f32 %v941_v25, %v942_v52 }
 0x32f   : > { %v949_v40 = vrot.slane %v948_v18, 2 }
 0x330   : > { %v944_v35 = vrot.slane %v943_v51, 1 }
 0x331   : > { %v950_v48 = vmax.f32 %v948_v18, %v949_v40 }
 0x332   : > { %v945_v11 = vmax.f32 %v943_v51, %v944_v35 }
 0x333   : > { %v951_v47 = vrot.slane %v950_v48, 1 }
 0x334   : > { %v953_v7 = vsub.f32 %v911_v16, %v945_v11  ;;  %v955_v26 = vsub.f32 %v914_v41, %v945_v11 }
 0x335   : > { %v952_v27 = vmax.f32 %v950_v48, %v951_v47 }
 0x336   : > { %v957_v8 = vmul.f32 1.442695, %v953_v7  ;;  %v961_v49 = vmul.f32 1.442695, %v955_v26 }
 0x337   : > { %v954_v9 = vsub.f32 %v934_v15, %v952_v27  ;;  %v956_v10 = vsub.f32 %v937_v17, %v952_v27 }
 0x338   : > { %2567 = vpow2.f32 %v957_v8 }
 0x339   : > { %2569 = vpow2.f32 %v961_v49  ;;  %v959_v12 = vmul.f32 1.442695, %v954_v9  ;;  %v963_v13 = vmul.f32 1.442695, %v956_v10 }
 0x33b   : > { %2571 = vpow2.f32 %v959_v12 }
 0x33c   : > { %2573 = vpow2.f32 %v963_v13 }
 0x33e   : > { %v2568_v19 = vpop.eup %2567 }
 0x33f   : > { %v2570_v20 = vpop.eup %2569 }
 0x340   : > { %v965_v30 = vadd.f32 %v2570_v20, %v2568_v19  ;;  %v856_v21 = vpop.f32.mrf.mxu0 }
 0x341   : > { %v2572_v54 = vpop.eup %2571  ;;  %v857_v29 = vadd.f32 %v3586_v53, %v856_v21 }
 0x342   : > { %v2574_v57 = vpop.eup %2573  ;;  %v966_v31 = vrot.slane %v965_v30, 4  ;;  %v879_v32 = vpop.f32.mrf.mxu1 }
 0x343   : > { %v972_v39 = vadd.f32 %v2574_v57, %v2572_v54  ;;  %v3599_v5 = vadd.f32 %v879_v32, %v857_v29 }
 0x344   : > { %v967_v1 = vadd.f32 %v966_v31, %v965_v30 }
 0x345   : > { %4483 = vst [vmem:[#allocation11_spill] sm:$0xff] %v3599_v5  ;;  %v973_v14 = vrot.slane %v972_v39, 4 }
 0x346   : > { %v968_v16 = vrot.slane %v967_v1, 2 }
 0x347   : > { %v974_v41 = vadd.f32 %v973_v14, %v972_v39 }
 0x348   : > { %v969_v4 = vadd.f32 %v968_v16, %v967_v1 }
 0x349   : > { %v975_v6 = vrot.slane %v974_v41, 2 }
 0x34a   : > { %v970_v15 = vrot.slane %v969_v4, 1  ;;  %v859_v17 = vpop.f32.mrf.mxu0 }
 0x34b   : > { %v976_v24 = vadd.f32 %v975_v6, %v974_v41  ;;  %v860_v52 = vadd.f32 %v3586_v53, %v859_v17 }
 0x34c   : > { %v971_v38 = vadd.f32 %v970_v15, %v969_v4 }
 0x34d   : > { %v977_v25 = vrot.slane %v976_v24, 1 }
 0x34e   : > { %2575 = vrcp.f32 %v971_v38 }
 0x34f   : > { %v978_v33 = vadd.f32 %v977_v25, %v976_v24 }
 0x351   : > { %2577 = vrcp.f32 %v978_v33 }
 0x352   : > { %v882_v18 = vpop.f32.mrf.mxu1  ;;  %v1124_v51 = vpop.f32.mrf.mxu0 }
 0x353   : > { %v3602_v40 = vadd.f32 %v882_v18, %v860_v52  ;;  %v1125_v9 = vadd.f32 %v1124_v51, %v4481_v42 }
 0x354   : > { %v2576_v35 = vpop.eup %2575 }
 0x355   : > { %4484 = vst [vmem:[#allocation5_spill] sm:$0xff] %v3602_v40  ;;  %v3606_v11 = vmul.f32 %v2576_v35, %v2570_v20  ;;  %v3608_v47 = vmul.f32 %v2576_v35, %v2568_v19 }
 0x357   : > { %v2578_v7 = vpop.eup %2577  ;;  %1001 = vrot.lane.b32.xlu1 %v3606_v11, %s2842_s14  ;;  %999 = vrot.lane.b32.xlu0 %v3608_v47, %s2842_s14 }
 0x358   : > { %v3614_v26 = vmul.f32 %v2578_v7, %v2572_v54  ;;  %v3624_v32 = vmul.f32 %v2578_v7, %v2574_v57 }
 0x35a   : > { %v1127_v27 = vpop.f32.mrf.mxu0  ;;  %v1147_v8 = vpop.f32.mrf.mxu1  ;;  %v1017_v49 = vsel %vm355_vm0, %v3614_v26, 0.0 }
 0x35b   : > { %v1128_v10 = vadd.f32 %v1127_v27, %v4481_v42  ;;  %1018 = vadd.xlane.f32.xlu2 %v1017_v49  ;;  %v1148_v21 = vadd.f32 %v1147_v8, %v4482_v37 }
 0x35d   : > { %v1153_v12 = vmax.f32 %v1125_v9, %v1128_v10 }
 0x35f   : > { %v1154_v13 = vrot.slane %v1153_v12, 4  ;;  %1031 = vrot.lane.b32.xlu0 %v3614_v26, %s2842_s14 }
 0x361   : > { %v1155_v19 = vmax.f32 %v1153_v12, %v1154_v13 }
 0x362   : > { %v1150_v20 = vpop.f32.mrf.mxu1 }
 0x363   : > { %v1156_v30 = vrot.slane %v1155_v19, 2  ;;  %v1151_v54 = vadd.f32 %v1150_v20, %v4482_v37 }
 0x365   : > { %v1157_v29 = vmax.f32 %v1155_v19, %v1156_v30  ;;  %v1160_v31 = vmax.f32 %v1148_v21, %v1151_v54  ;;  %v985_v19 = vsel %vm355_vm0, %v3608_v47, 0.0 }
 0x367   : > { %v1158_v39 = vrot.slane %v1157_v29, 1  ;;  %v1161_v1 = vrot.slane %v1160_v31, 4  ;;  %1033 = vrot.lane.b32.xlu0 %v3624_v32, %s2842_s14 }
 0x369   : > { %v1159_v14 = vmax.f32 %v1157_v29, %v1158_v39  ;;  %v1162_v16 = vmax.f32 %v1160_v31, %v1161_v1 }
 0x36b   : > { %v1167_v41 = vsub.f32 %v1125_v9, %v1159_v14  ;;  %v1169_v4 = vsub.f32 %v1128_v10, %v1159_v14  ;;  %v1163_v6 = vrot.slane %v1162_v16, 2 }
 0x36d   : > { %v1171_v15 = vmul.f32 1.442695, %v1167_v41  ;;  %v1175_v17 = vmul.f32 1.442695, %v1169_v4  ;;  %v1164_v24 = vmax.f32 %v1162_v16, %v1163_v6  ;;  %v988_v41 = vsel %vm355_vm0, %v3606_v11, 0.0 }
 0x36f   : > { %2579 = vpow2.f32 %v1171_v15  ;;  %v1165_v38 = vrot.slane %v1164_v24, 1 }
 0x370   : > { %2581 = vpow2.f32 %v1175_v17 }
 0x371   : > { %v1166_v25 = vmax.f32 %v1164_v24, %v1165_v38 }
 0x373   : > { %v1168_v33 = vsub.f32 %v1148_v21, %v1166_v25  ;;  %v1170_v57 = vsub.f32 %v1151_v54, %v1166_v25 }
 0x375   : > { %v2580_v52 = vpop.eup %2579  ;;  %v1173_v18 = vmul.f32 1.442695, %v1168_v33  ;;  %v1177_v51 = vmul.f32 1.442695, %v1170_v57 }
 0x376   : > { %v2582_v35 = vpop.eup %2581 }
 0x377   : > { %v1179_v7 = vadd.f32 %v2582_v35, %v2580_v52  ;;  %2583 = vpow2.f32 %v1173_v18 }
 0x378   : > { %2585 = vpow2.f32 %v1177_v51 }
 0x379   : > { %v1180_v27 = vrot.slane %v1179_v7, 4 }
 0x37b   : > { %v1181_v8 = vadd.f32 %v1180_v27, %v1179_v7  ;;  %v1020_v7 = vsel %vm355_vm0, %v3624_v32, 0.0 }
 0x37d   : > { %v2584_v49 = vpop.eup %2583  ;;  %v1182_v9 = vrot.slane %v1181_v8, 2 }
 0x37e   : > { %v2586_v10 = vpop.eup %2585 }
 0x37f   : > { %v1183_v12 = vadd.f32 %v1182_v9, %v1181_v8  ;;  %v1186_v13 = vadd.f32 %v2586_v10, %v2584_v49 }
 0x381   : > { %v1184_v20 = vrot.slane %v1183_v12, 1  ;;  %v1187_v30 = vrot.slane %v1186_v13, 4  ;;  %986 = vadd.xlane.f32.xlu1 %v985_v19 }
 0x383   : > { %v1188_v21 = vadd.f32 %v1187_v30, %v1186_v13  ;;  %v1185_v54 = vadd.f32 %v1184_v20, %v1183_v12 }
 0x385   : > { %v1189_v29 = vrot.slane %v1188_v21, 2  ;;  %2587 = vrcp.f32 %v1185_v54 }
 0x387   : > { %v1190_v31 = vadd.f32 %v1189_v29, %v1188_v21 }
 0x389   : > { %v1191_v39 = vrot.slane %v1190_v31, 1 }
 0x38b   : > { %v2588_v1 = vpop.eup %2587  ;;  %v1192_v14 = vadd.f32 %v1191_v39, %v1190_v31  ;;  %v2743_v39 = vld [vmem:[%s4442_s2] sm:$0x3] }
 0x38c   : > { %v3630_v16 = vmul.f32 %v2588_v1, %v2580_v52  ;;  %v3644_v17 = vmul.f32 %v2588_v1, %v2582_v35  ;;  %v352_v1 = vperm.slane %v2743_v39, 1 }
 0x38d   : > { %2589 = vrcp.f32 %v1192_v14  ;;  %v4485_v14 = vld [vmem:[#allocation8_spill] sm:$0xff] }
 0x38e   : > { %1213 = vrot.lane.b32.xlu2 %v3630_v16, %s2842_s14  ;;  %v1199_v24 = vsel %vm355_vm0, %v3630_v16, 0.0  ;;  %v1202_v12 = vsel %vm355_vm0, %v3644_v17, 0.0 }
 0x391   : > { %989 = vadd.xlane.f32.xlu0 %v988_v41  ;;  %v3670_v41 = vadd.f32 %v4485_v14, %v352_v1 }
 0x393   : > { %v2590_v4 = vpop.eup %2589 }
 0x394   : > { %v3636_v6 = vmul.f32 %v2590_v4, %v2586_v10  ;;  %v3640_v15 = vmul.f32 %v2590_v4, %v2584_v49  ;;  %v4486_v4 = vld [vmem:[#allocation7_spill] sm:$0xff] }
 0x396   : > { %1247 = vrot.lane.b32.xlu2 %v3636_v6, %s2842_s14  ;;  %v1234_v18 = vsel %vm355_vm0, %v3636_v6, 0.0  ;;  %v1231_v35 = vsel %vm355_vm0, %v3640_v15, 0.0 }
 0x39a   : > { %1245 = vrot.lane.b32.xlu1 %v3640_v15, %s2842_s14 }
 0x3a5   : > { %1215 = vrot.lane.b32.xlu0 %v3644_v17, %s2842_s14 }
 0x3bf   : > { %1200 = vadd.xlane.f32.xlu2 %v1199_v24  ;;  %v3675_v24 = vadd.f32 %v4486_v4, %v352_v1  ;;  %v3698_v4 = vld [vmem:[%s4445_s5 + $0x70] sm:$0xff] }
 0x3c9   : > { %v1002_v38 = vpop.permute.xlu1 %1001  ;;  %v1000_v25 = vpop.permute.xlu0 %999 }
 0x3ca   : > { %v1008_v33 = vsel %vm355_vm0, %v1002_v38, 0.0  ;;  %v1005_v57 = vsel %vm355_vm0, %v1000_v25, 0.0 }
 0x3cb   : > { %1009 = vadd.xlane.f32.xlu2 %v1008_v33 }
 0x3ce   : > { %v1019_v49 = vpop.xlane.xlu2 %1018 }
 0x3cf   : > { %1006 = vadd.xlane.f32.xlu0 %v1005_v57 }
 0x3d1   : > { %v1032_v52 = vpop.permute.xlu0 %1031 }
 0x3d2   : > { %v1037_v51 = vsel %vm355_vm0, %v1032_v52, 0.0 }
 0x3d3   : > { %1235 = vadd.xlane.f32.xlu2 %v1234_v18  ;;  %1038 = vadd.xlane.f32.xlu1 %v1037_v51  ;;  %v1023_v18 = vadd.f32 1e-09, %v1019_v49 }
 0x3d7   : > { %1232 = vadd.xlane.f32.xlu0 %v1231_v35 }
 0x3d9   : > { %v1034_v27 = vpop.permute.xlu0 %1033 }
 0x3da   : > { %v1040_v8 = vsel %vm355_vm0, %v1034_v27, 0.0 }
 0x3db   : > { %1021 = vadd.xlane.f32.xlu1 %v1020_v7 }
 0x3df   : > { %1041 = vadd.xlane.f32.xlu0 %v1040_v8 }
 0x3e8   : > { %v1214_v9 = vpop.permute.xlu2 %1213 }
 0x3e9   : > { %v1219_v10 = vsel %vm355_vm0, %v1214_v9, 0.0 }
 0x3ea   : > { %1220 = vadd.xlane.f32.xlu1 %v1219_v10 }
 0x3f0   : > { %v1248_v13 = vpop.permute.xlu2 %1247 }
 0x3f1   : > { %v1254_v19 = vsel %vm355_vm0, %v1248_v13, 0.0 }
 0x3f2   : > { %1203 = vadd.xlane.f32.xlu1 %v1202_v12 }
 0x3f4   : > { %v987_v20 = vpop.xlane.xlu1 %986 }
 0x3f5   : > { %v991_v25 = vadd.f32 1e-09, %v987_v20 }
 0x3f7   : > { %2591 = vrcp.f32 %v991_v25 }
 0x3fa   : > { %1255 = vadd.xlane.f32.xlu1 %v1254_v19 }
 0x3fd   : > { %v2592_v8 = vpop.eup %2591 }
 0x3fe   : > { %v995_v12 = vmul.f32 %v2592_v8, %v3608_v47 }
 0x404   : > { %v990_v54 = vpop.xlane.xlu0 %989 }
 0x405   : > { %v992_v7 = vadd.f32 1e-09, %v990_v54 }
 0x40c   : > { %v1246_v30 = vpop.permute.xlu1 %1245 }
 0x40d   : > { %v1251_v21 = vsel %vm355_vm0, %v1246_v30, 0.0 }
 0x40e   : > { %1252 = vadd.xlane.f32.xlu2 %v1251_v21 }
 0x417   : > { %v1216_v29 = vpop.permute.xlu0 %1215 }
 0x418   : > { %v1222_v31 = vsel %vm355_vm0, %v1216_v29, 0.0  ;;  %v3689_v29 = vld [vmem:[%s4445_s5 + $0x78] sm:$0xff] }
 0x419   : > { %1223 = vadd.xlane.f32.xlu0 %v1222_v31 }
 0x426   : > { %1527 = vrot.lane.b32.xlu2 %v3670_v41, %s2841_s28 }
 0x42d   : > { %1525 = vrot.lane.b32.xlu0 %v3675_v24, %s2841_s28 }
 0x432   : > { %v1201_v38 = vpop.xlane.xlu2 %1200 }
 0x433   : > { %v1205_v8 = vadd.f32 1e-09, %v1201_v38  ;;  %v3757_v38 = vld [vmem:[%s4445_s5 + $0x48] sm:$0xff] }
 0x435   : > { %1739 = vrot.lane.b32.xlu0 %v3675_v24, %s2842_s14 }
 0x43e   : > { %v1010_v33 = vpop.xlane.xlu2 %1009 }
 0x43f   : > { %v1012_v51 = vadd.f32 1e-09, %v1010_v33 }
 0x442   : > { %v1007_v57 = vpop.xlane.xlu0 %1006 }
 0x443   : > { %v1011_v52 = vadd.f32 1e-09, %v1007_v57 }
 0x445   : > { %2593 = vrcp.f32 %v1011_v52  ;;  %v3712_v52 = vld [vmem:[%s4445_s5 + $0xf8] sm:$0xff] }
 0x446   : > { %v1039_v35 = vpop.xlane.xlu1 %1038  ;;  %2595 = vrcp.f32 %v1023_v18 }
 0x447   : > { %v1043_v27 = vadd.f32 1e-09, %v1039_v35  ;;  %2597 = vrcp.f32 %v1012_v51  ;;  %v3725_v51 = vld [vmem:[%s4445_s5 + $0xf0] sm:$0xff]  ;;  %v3731_v35 = vld [vmem:[%s4445_s5 + $0x58] sm:$0xff] }
 0x449   : > { %2599 = vrcp.f32 %v1043_v27  ;;  %v3737_v27 = vld [vmem:[%s4445_s5 + $0xe8] sm:$0xff] }
 0x44a   : > { %v3681_v9 = vpop.xlane.xlu0 %1232  ;;  %2601 = vrcp.f32 %v992_v7 }
 0x44b   : > { %v2594_v10 = vpop.eup %2593 }
 0x44c   : > { %v1015_v13 = vmul.f32 %v2594_v10, %v3608_v47  ;;  %v2596_v19 = vpop.eup %2595  ;;  %v3743_v10 = vld [vmem:[%s4445_s5 + $0x50] sm:$0xff] }
 0x44d   : > { %v2598_v30 = vpop.eup %2597  ;;  %v1027_v39 = vmul.f32 %v2596_v19, %v3614_v26 }
 0x44e   : > { %v1022_v20 = vpop.xlane.xlu1 %1021  ;;  %v1049_v49 = vsel %vm355_vm0, %v995_v12, %v1015_v13  ;;  %v1016_v14 = vmul.f32 %v2598_v30, %v3606_v11  ;;  %v3749_v13 = vld [vmem:[%s4445_s5 + $0xe0] sm:$0xff]  ;;  %v3763_v30 = vld [vmem:[%s4445_s5 + $0xd8] sm:$0xff] }
 0x44f   : > { %v1024_v21 = vadd.f32 1e-09, %v1022_v20  ;;  %1069 = vmatmul.f32.vlgmr.msrb.gmra.mxu2 %v1049_v49  ;;  %v2600_v54 = vpop.eup %2599 }
 0x450   : > { %1479 = vmatpush.msrb.mxu2 %v3689_v29  ;;  %v2602_v31 = vpop.eup %2601  ;;  %v1047_v47 = vmul.f32 %v2600_v54, %v3614_v26  ;;  %v3706_v26 = vld [vmem:[%s4445_s5 + $0x68] sm:$0xff] }
 0x451   : > { %2603 = vrcp.f32 %v1024_v21  ;;  %v996_v57 = vmul.f32 %v2602_v31, %v3606_v11  ;;  %v3719_v11 = vld [vmem:[%s4445_s5 + $0x60] sm:$0xff]  ;;  %v3778_v31 = vld [vmem:[%s4445_s5 + $0xd0] sm:$0xff] }
 0x452   : > { %v1042_v1 = vpop.xlane.xlu0 %1041  ;;  %1480 = vmatpush.msrb.mxu2 %v3698_v4  ;;  %v1051_v33 = vsel %vm355_vm0, %v1027_v39, %v1047_v47  ;;  %v3784_v39 = vld [vmem:[%s4445_s5 + $0x38] sm:$0xff]  ;;  %v3790_v47 = vld [vmem:[%s4445_s5 + $0xc8] sm:$0xff] }
 0x453   : > { %v1044_v25 = vadd.f32 1e-09, %v1042_v1  ;;  %1092 = vmatmul.f32.vlgmr.msrb.gmra.mxu3 %v1051_v33  ;;  %v1050_v18 = vsel %vm355_vm0, %v996_v57, %v1016_v14  ;;  %v3796_v1 = vld [vmem:[%s4445_s5 + $0x30] sm:$0xff]  ;;  %v3810_v57 = vld [vmem:[%s4445_s5 + $0x20] sm:$0xff] }
 0x454   : > { %1481 = vmatpush.msrb.mxu2 %v3706_v26  ;;  %1502 = vmatpush.msrb.mxu3 %v3712_v52 }
 0x455   : > { %2605 = vrcp.f32 %v1044_v25  ;;  %v3803_v25 = vld [vmem:[%s4445_s5 + $0x28] sm:$0xff] }
 0x456   : > { %1482 = vmatpush.msrb.mxu2 %v3719_v11  ;;  %1503 = vmatpush.msrb.mxu3 %v3725_v51  ;;  %2607 = vrcp.f32 %v1205_v8  ;;  %v3831_v8 = vld [vmem:[%s4445_s5 + $0x10] sm:$0xff] }
 0x457   : > { %1072 = vmatmul.f32.gmra.mxu2 %v1050_v18  ;;  %v2604_v7 = vpop.eup %2603 }
 0x458   : > { %1483 = vmatpush.msrb.mxu2 %v3731_v35  ;;  %1504 = vmatpush.msrb.mxu3 %v3737_v27  ;;  %v1028_v19 = vmul.f32 %v2604_v7, %v3624_v32 }
 0x45a   : > { %1484 = vmatpush.msrb.mxu2 %v3743_v10  ;;  %1505 = vmatpush.msrb.mxu3 %v3749_v13 }
 0x45b   : > { %v2606_v12 = vpop.eup %2605 }
 0x45c   : > { %v1048_v20 = vmul.f32 %v2606_v12, %v3624_v32  ;;  %1485 = vmatpush.msrb.mxu2 %v3757_v38  ;;  %1506 = vmatpush.msrb.mxu3 %v3763_v30  ;;  %v3770_v32 = vld [vmem:[%s4445_s5 + $0x40] sm:$0xff]  ;;  %v2608_v14 = vpop.eup %2607 }
 0x45d   : > { %v1221_v49 = vpop.xlane.xlu1 %1220 }
 0x45e   : > { %v1225_v21 = vadd.f32 1e-09, %v1221_v49  ;;  %v1052_v54 = vsel %vm355_vm0, %v1028_v19, %v1048_v20  ;;  %1486 = vmatpush.msrb.mxu2 %v3770_v32  ;;  %1507 = vmatpush.msrb.mxu3 %v3778_v31  ;;  %v3877_v49 = vld [vmem:[%s4445_s5] sm:$0xff] }
 0x45f   : > { %1095 = vmatmul.f32.gmra.mxu3 %v1052_v54  ;;  %2417 = vmatmul.msk.f32.vlgmr.msra.gmra.mxu2 %vm455_vm1, %v3675_v24 }
 0x460   : > { %2609 = vrcp.f32 %v1225_v21  ;;  %1487 = vmatpush.msrb.mxu2 %v3784_v39  ;;  %1508 = vmatpush.msrb.mxu3 %v3790_v47 }
 0x462   : > { %1488 = vmatpush.msrb.mxu2 %v3796_v1  ;;  %1509 = vmatpush.msrb.mxu3 %v3302_v55  ;;  %v1209_v55 = vmul.f32 %v2608_v14, %v3630_v16 }
 0x464   : > { %1489 = vmatpush.msrb.mxu2 %v3803_v25  ;;  %1510 = vmatpush.msrb.mxu3 %v3314_v56  ;;  %v3823_v56 = vld [vmem:[%s4445_s5 + $0x18] sm:$0xff] }
 0x466   : > { %v2610_v33 = vpop.eup %2609  ;;  %1490 = vmatpush.msrb.mxu2 %v3810_v57  ;;  %1511 = vmatpush.msrb.mxu3 %v3328_v58  ;;  %v1204_v58 = vpop.xlane.xlu1 %1203 }
 0x467   : > { %2418 = vmatmul.msk.f32.gmra.mxu2 %vm455_vm1, %v3670_v41  ;;  %2419 = vmatmul.msk.f32.vlgmr.msra.gmra.mxu3 %vm455_vm1, %v3675_v24  ;;  %v1229_v18 = vmul.f32 %v2610_v33, %v3630_v16  ;;  %v1206_v16 = vadd.f32 1e-09, %v1204_v58 }
 0x468   : > { %1491 = vmatpush.msrb.mxu2 %v3823_v56  ;;  %1512 = vmatpush.msrb.mxu3 %v3344_v60  ;;  %v1237_v60 = vadd.f32 1e-09, %v3681_v9  ;;  %v3869_v9 = vld [vmem:[%s4445_s5 + $0x8] sm:$0xff] }
 0x469   : > { %v1263_v7 = vsel %vm355_vm0, %v1209_v55, %v1229_v18 }
 0x46a   : > { %1283 = vmatmul.f32.vlgmr.msra.gmra.mxu0 %v1263_v7  ;;  %1492 = vmatpush.msrb.mxu2 %v3831_v8  ;;  %2611 = vrcp.f32 %v1237_v60 }
 0x46b   : > { %1693 = vmatpush.msra.mxu0 %v3689_v29  ;;  %1513 = vmatpush.msrb.mxu3 %v3358_v62 }
 0x46c   : > { %1493 = vmatpush.msrb.mxu2 %v3339_v59  ;;  %v1236_v59 = vpop.xlane.xlu2 %1235 }
 0x46d   : > { %1694 = vmatpush.msra.mxu0 %v3698_v4  ;;  %1514 = vmatpush.msrb.mxu3 %v3365_v63 }
 0x46e   : > { %1494 = vmatpush.msrb.mxu2 %v3353_v61  ;;  %v1256_v61 = vpop.xlane.xlu1 %1255 }
 0x46f   : > { %2420 = vmatmul.msk.f32.gmra.mxu3 %vm455_vm1, %v3670_v41  ;;  %1695 = vmatpush.msra.mxu0 %v3706_v26 }
 0x470   : > { %1515 = vmatpush.msrb.mxu3 %v3373_v0  ;;  %1759 = vmatpush.msra.mxu2 %v3536_v28  ;;  %v1258_v0 = vadd.f32 1e-09, %v1256_v61 }
 0x471   : > { %1696 = vmatpush.msra.mxu0 %v3719_v11 }
 0x472   : > { %1516 = vmatpush.msrb.mxu3 %v3385_v22  ;;  %1760 = vmatpush.msra.mxu2 %v3544_v34  ;;  %v1238_v22 = vadd.f32 1e-09, %v1236_v59 }
 0x473   : > { %1697 = vmatpush.msra.mxu0 %v3731_v35 }
 0x474   : > { %1517 = vmatpush.msrb.mxu3 %v3394_v23  ;;  %1761 = vmatpush.msra.mxu2 %v3556_v43  ;;  %v2612_v23 = vpop.eup %2611 }
 0x475   : > { %1698 = vmatpush.msra.mxu0 %v3743_v10  ;;  %v1241_v19 = vmul.f32 %v2612_v23, %v3640_v15  ;;  %v3925_v23 = vld [vmem:[%s4445_s5 + $0xa0] sm:$0xff] }
 0x476   : > { %1782 = vmatpush.msra.mxu3 %v3550_v36  ;;  %1762 = vmatpush.msra.mxu2 %v3568_v45 }
 0x477   : > { %1699 = vmatpush.msra.mxu0 %v3757_v38 }
 0x478   : > { %1783 = vmatpush.msra.mxu3 %v3562_v44 }
 0x479   : > { %1700 = vmatpush.msra.mxu0 %v3770_v32 }
 0x47a   : > { %1784 = vmatpush.msra.mxu3 %v3574_v46 }
 0x47b   : > { %1701 = vmatpush.msra.mxu0 %v3784_v39 }
 0x47c   : > { %1785 = vmatpush.msra.mxu3 %v3580_v50 }
 0x47d   : > { %1702 = vmatpush.msra.mxu0 %v3796_v1 }
 0x47f   : > { %1703 = vmatpush.msra.mxu0 %v3803_v25 }
 0x481   : > { %v1253_v62 = vpop.xlane.xlu2 %1252  ;;  %1704 = vmatpush.msra.mxu0 %v3810_v57 }
 0x482   : > { %v1257_v63 = vadd.f32 1e-09, %v1253_v62 }
 0x483   : > { %1705 = vmatpush.msra.mxu0 %v3823_v56 }
 0x484   : > { %2613 = vrcp.f32 %v1257_v63 }
 0x485   : > { %1706 = vmatpush.msra.mxu0 %v3831_v8  ;;  %2615 = vrcp.f32 %v1258_v0  ;;  %v3911_v0 = vld [vmem:[%s4445_s5 + $0xb0] sm:$0xff] }
 0x486   : > { %2617 = vrcp.f32 %v1238_v22  ;;  %v3918_v22 = vld [vmem:[%s4445_s5 + $0xa8] sm:$0xff] }
 0x487   : > { %1707 = vmatpush.msra.mxu0 %v3869_v9  ;;  %2619 = vrcp.f32 %v1206_v16 }
 0x489   : > { %1708 = vmatpush.msra.mxu0 %v3877_v49  ;;  %v1528_v16 = vpop.permute.xlu2 %1527 }
 0x48a   : > { %v2614_v12 = vpop.eup %2613 }
 0x48b   : > { %v1261_v20 = vmul.f32 %v2614_v12, %v3640_v15  ;;  %v2616_v33 = vpop.eup %2615 }
 0x48c   : > { %v1224_v21 = vpop.xlane.xlu0 %1223  ;;  %v2618_v55 = vpop.eup %2617  ;;  %v1262_v15 = vmul.f32 %v2616_v33, %v3636_v6 }
 0x48d   : > { %v1226_v54 = vadd.f32 1e-09, %v1224_v21  ;;  %v1265_v14 = vsel %vm355_vm0, %v1241_v19, %v1261_v20  ;;  %v2620_v18 = vpop.eup %2619  ;;  %v1242_v7 = vmul.f32 %v2618_v55, %v3636_v6  ;;  %v3897_v6 = vld [vmem:[%s4445_s5 + $0xc0] sm:$0xff] }
 0x48e   : > { %1306 = vmatmul.f32.vlgmr.msra.gmra.mxu1 %v1265_v14  ;;  %v1210_v60 = vmul.f32 %v2620_v18, %v3644_v17 }
 0x48f   : > { %2621 = vrcp.f32 %v1226_v54  ;;  %1716 = vmatpush.msra.mxu1 %v3712_v52  ;;  %v1266_v59 = vsel %vm355_vm0, %v1242_v7, %v1262_v15 }
 0x491   : > { %1717 = vmatpush.msra.mxu1 %v3725_v51 }
 0x493   : > { %1718 = vmatpush.msra.mxu1 %v3737_v27 }
 0x495   : > { %v2622_v58 = vpop.eup %2621  ;;  %1719 = vmatpush.msra.mxu1 %v3749_v13 }
 0x496   : > { %1309 = vmatmul.f32.gmra.mxu1 %v1266_v59  ;;  %v1230_v61 = vmul.f32 %v2622_v58, %v3644_v17  ;;  %v3903_v17 = vld [vmem:[%s4445_s5 + $0xb8] sm:$0xff] }
 0x497   : > { %1720 = vmatpush.msra.mxu1 %v3763_v30 }
 0x498   : > { %v1264_v62 = vsel %vm355_vm0, %v1210_v60, %v1230_v61 }
 0x499   : > { %1286 = vmatmul.f32.gmra.mxu0 %v1264_v62  ;;  %1721 = vmatpush.msra.mxu1 %v3778_v31 }
 0x49b   : > { %1722 = vmatpush.msra.mxu1 %v3790_v47 }
 0x49d   : > { %1723 = vmatpush.msra.mxu1 %v3897_v6 }
 0x49f   : > { %v1526_v63 = vpop.permute.xlu0 %1525  ;;  %1724 = vmatpush.msra.mxu1 %v3903_v17 }
 0x4a0   : > { %2423 = vmatmul.msk.f32.vlgmr.msrb.gmra.mxu1 %vm455_vm1, %v1526_v63 }
 0x4a1   : > { %2421 = vmatmul.msk.f32.vlgmr.msrb.gmra.mxu0 %vm455_vm1, %v1526_v63  ;;  %1725 = vmatpush.msra.mxu1 %v3911_v0 }
 0x4a2   : > { %1973 = vmatpush.msrb.mxu0 %v3536_v28  ;;  %v3932_v28 = vld [vmem:[%s4445_s5 + $0x98] sm:$0xff] }
 0x4a3   : > { %1726 = vmatpush.msra.mxu1 %v3918_v22 }
 0x4a4   : > { %1974 = vmatpush.msrb.mxu0 %v3544_v34  ;;  %v3941_v34 = vld [vmem:[%s4445_s5 + $0x90] sm:$0xff] }
 0x4a5   : > { %1727 = vmatpush.msra.mxu1 %v3925_v23 }
 0x4a6   : > { %1975 = vmatpush.msrb.mxu0 %v3556_v43  ;;  %v3947_v43 = vld [vmem:[%s4445_s5 + $0x88] sm:$0xff] }
 0x4a7   : > { %1728 = vmatpush.msra.mxu1 %v3932_v28 }
 0x4a8   : > { %2424 = vmatmul.msk.f32.gmra.mxu1 %vm455_vm1, %v1528_v16  ;;  %1976 = vmatpush.msrb.mxu0 %v3568_v45  ;;  %v3953_v45 = vld [vmem:[%s4445_s5 + $0x80] sm:$0xff] }
 0x4a9   : > { %2422 = vmatmul.msk.f32.gmra.mxu0 %vm455_vm1, %v1528_v16  ;;  %1729 = vmatpush.msra.mxu1 %v3941_v34 }
 0x4ab   : > { %1730 = vmatpush.msra.mxu1 %v3947_v43 }
 0x4ad   : > { %1731 = vmatpush.msra.mxu1 %v3953_v45 }
 0x4af   : > { %1996 = vmatpush.msrb.mxu1 %v3550_v36 }
 0x4b1   : > { %1997 = vmatpush.msrb.mxu1 %v3562_v44 }
 0x4b3   : > { %1998 = vmatpush.msrb.mxu1 %v3574_v46 }
 0x4b5   : > { %1999 = vmatpush.msrb.mxu1 %v3580_v50 }
 0x4d2   : > { %v1070_v12 = vpop.f32.mrf.mxu2 }
 0x4d3   : > { %v1071_v19 = vadd.f32 %v3586_v53, %v1070_v12 }
 0x4d6   : > { %v1093_v20 = vpop.f32.mrf.mxu3 }
 0x4d7   : > { %v3961_v21 = vadd.f32 %v1093_v20, %v1071_v19 }
 0x4d9   : > { %4487 = vst [vmem:[#allocation8_spill] sm:$0xff] %v3961_v21 }
 0x4da   : > { %v1073_v54 = vpop.f32.mrf.mxu2 }
 0x4db   : > { %v1074_v14 = vadd.f32 %v3586_v53, %v1073_v54 }
 0x4e2   : > { %v1096_v33 = vpop.f32.mrf.mxu3  ;;  %v1336_v55 = vpop.f32.mrf.mxu2 }
 0x4e3   : > { %v3964_v15 = vadd.f32 %v1096_v33, %v1074_v14  ;;  %v1337_v50 = vadd.f32 %v1336_v55, %v4481_v42 }
 0x4e5   : > { %4488 = vst [vmem:[#allocation7_spill] sm:$0xff] %v3964_v15 }
 0x4e7   : > { %v1284_v40 = vpop.f32.mrf.mxu0 }
 0x4ea   : > { %v1339_v44 = vpop.f32.mrf.mxu2  ;;  %v1359_v46 = vpop.f32.mrf.mxu3 }
 0x4eb   : > { %v1340_v18 = vadd.f32 %v1339_v44, %v4481_v42  ;;  %v1360_v62 = vadd.f32 %v1359_v46, %v4482_v37 }
 0x4ed   : > { %v1365_v7 = vmax.f32 %v1337_v50, %v1340_v18 }
 0x4ef   : > { %v1366_v58 = vrot.slane %v1365_v7, 4 }
 0x4f1   : > { %v1367_v59 = vmax.f32 %v1365_v7, %v1366_v58 }
 0x4f2   : > { %v1362_v60 = vpop.f32.mrf.mxu3 }
 0x4f3   : > { %v1368_v61 = vrot.slane %v1367_v59, 2  ;;  %v1363_v63 = vadd.f32 %v1362_v60, %v4482_v37 }
 0x4f5   : > { %v1369_v16 = vmax.f32 %v1367_v59, %v1368_v61  ;;  %v1372_v12 = vmax.f32 %v1360_v62, %v1363_v63 }
 0x4f7   : > { %v1370_v19 = vrot.slane %v1369_v16, 1  ;;  %v1373_v20 = vrot.slane %v1372_v12, 4 }
 0x4f9   : > { %v1371_v54 = vmax.f32 %v1369_v16, %v1370_v19  ;;  %v1374_v14 = vmax.f32 %v1372_v12, %v1373_v20 }
 0x4fb   : > { %v1379_v33 = vsub.f32 %v1337_v50, %v1371_v54  ;;  %v1381_v48 = vsub.f32 %v1340_v18, %v1371_v54  ;;  %v1375_v55 = vrot.slane %v1374_v14, 2  ;;  %v1285_v18 = vadd.f32 %v3586_v53, %v1284_v40 }
 0x4fd   : > { %v1383_v36 = vmul.f32 1.442695, %v1379_v33  ;;  %v1387_v44 = vmul.f32 1.442695, %v1381_v48  ;;  %v1376_v3 = vmax.f32 %v1374_v14, %v1375_v55 }
 0x4ff   : > { %2623 = vpow2.f32 %v1383_v36  ;;  %v1377_v7 = vrot.slane %v1376_v3, 1 }
 0x500   : > { %2625 = vpow2.f32 %v1387_v44 }
 0x501   : > { %v1378_v58 = vmax.f32 %v1376_v3, %v1377_v7 }
 0x503   : > { %v1380_v2 = vsub.f32 %v1360_v62, %v1378_v58  ;;  %v1382_v46 = vsub.f32 %v1363_v63, %v1378_v58 }
 0x505   : > { %v2624_v5 = vpop.eup %2623  ;;  %v1385_v60 = vmul.f32 1.442695, %v1380_v2  ;;  %v1389_v59 = vmul.f32 1.442695, %v1382_v46 }
 0x506   : > { %v2626_v61 = vpop.eup %2625 }
 0x507   : > { %v1391_v21 = vadd.f32 %v2626_v61, %v2624_v5  ;;  %2627 = vpow2.f32 %v1385_v60 }
 0x508   : > { %2629 = vpow2.f32 %v1389_v59 }
 0x509   : > { %v1392_v50 = vrot.slane %v1391_v21, 4 }
 0x50b   : > { %v1393_v16 = vadd.f32 %v1392_v50, %v1391_v21  ;;  %v1307_v48 = vpop.f32.mrf.mxu1 }
 0x50c   : > { %v3973_v12 = vadd.f32 %v1307_v48, %v1285_v18 }
 0x50d   : > { %v2628_v36 = vpop.eup %2627  ;;  %v1394_v19 = vrot.slane %v1393_v16, 2 }
 0x50e   : > { %4489 = vst [vmem:[#allocation12_spill] sm:$0xff] %v3973_v12  ;;  %v2630_v3 = vpop.eup %2629 }
 0x50f   : > { %v1395_v62 = vadd.f32 %v1394_v19, %v1393_v16  ;;  %v1398_v63 = vadd.f32 %v2630_v3, %v2628_v36 }
 0x511   : > { %v1396_v20 = vrot.slane %v1395_v62, 1  ;;  %v1399_v2 = vrot.slane %v1398_v63, 4 }
 0x513   : > { %v1400_v54 = vadd.f32 %v1399_v2, %v1398_v63  ;;  %v1397_v14 = vadd.f32 %v1396_v20, %v1395_v62  ;;  %v1310_v55 = vpop.f32.mrf.mxu1 }
 0x515   : > { %v1401_v33 = vrot.slane %v1400_v54, 2  ;;  %2631 = vrcp.f32 %v1397_v14 }
 0x516   : > { %v1287_v44 = vpop.f32.mrf.mxu0 }
 0x517   : > { %v1402_v7 = vadd.f32 %v1401_v33, %v1400_v54  ;;  %v1288_v40 = vadd.f32 %v3586_v53, %v1287_v44 }
 0x519   : > { %v1403_v21 = vrot.slane %v1402_v7, 1  ;;  %v3976_v58 = vadd.f32 %v1310_v55, %v1288_v40 }
 0x51b   : > { %4490 = vst [vmem:[#allocation13_spill] sm:$0xff] %v3976_v58  ;;  %v2632_v46 = vpop.eup %2631  ;;  %v1404_v60 = vadd.f32 %v1403_v21, %v1402_v7 }
 0x51c   : > { %v3980_v50 = vmul.f32 %v2632_v46, %v2624_v5  ;;  %v3982_v18 = vmul.f32 %v2632_v46, %v2626_v61 }
 0x51d   : > { %v1573_v16 = vpop.f32.mrf.mxu1  ;;  %2633 = vrcp.f32 %v1404_v60 }
 0x51e   : > { %1425 = vrot.lane.b32.xlu1 %v3980_v50, %s2842_s14  ;;  %1427 = vrot.lane.b32.xlu2 %v3982_v18, %s2842_s14  ;;  %v1550_v53 = vpop.f32.mrf.mxu0  ;;  %v1574_v63 = vadd.f32 %v1573_v16, %v4482_v37 }
 0x51f   : > { %v1551_v20 = vadd.f32 %v1550_v53, %v4481_v42 }
 0x523   : > { %v2634_v48 = vpop.eup %2633 }
 0x524   : > { %v3988_v19 = vmul.f32 %v2634_v48, %v2628_v36  ;;  %v3996_v36 = vmul.f32 %v2634_v48, %v2630_v3 }
 0x525   : > { %v1576_v62 = vpop.f32.mrf.mxu1 }
 0x526   : > { %1457 = vrot.lane.b32.xlu0 %v3988_v19, %s2842_s14  ;;  %v1577_v5 = vadd.f32 %v1576_v62, %v4482_v37  ;;  %v1553_v61 = vpop.f32.mrf.mxu0 }
 0x527   : > { %v1554_v2 = vadd.f32 %v1553_v61, %v4481_v42 }
 0x528   : > { %v1586_v54 = vmax.f32 %v1574_v63, %v1577_v5 }
 0x529   : > { %v1579_v14 = vmax.f32 %v1551_v20, %v1554_v2 }
 0x52a   : > { %v1587_v33 = vrot.slane %v1586_v54, 4 }
 0x52b   : > { %v1580_v55 = vrot.slane %v1579_v14, 4 }
 0x52c   : > { %v1588_v44 = vmax.f32 %v1586_v54, %v1587_v33 }
 0x52d   : > { %v1581_v7 = vmax.f32 %v1579_v14, %v1580_v55 }
 0x52e   : > { %v1589_v40 = vrot.slane %v1588_v44, 2  ;;  %1459 = vrot.lane.b32.xlu0 %v3996_v36, %s2842_s14 }
 0x52f   : > { %v1582_v21 = vrot.slane %v1581_v7, 2 }
 0x530   : > { %v1590_v46 = vmax.f32 %v1588_v44, %v1589_v40 }
 0x531   : > { %v1583_v60 = vmax.f32 %v1581_v7, %v1582_v21 }
 0x532   : > { %v1591_v16 = vrot.slane %v1590_v46, 1 }
 0x533   : > { %v1584_v62 = vrot.slane %v1583_v60, 1 }
 0x534   : > { %v1592_v53 = vmax.f32 %v1590_v46, %v1591_v16 }
 0x535   : > { %v1585_v59 = vmax.f32 %v1583_v60, %v1584_v62 }
 0x536   : > { %v1594_v61 = vsub.f32 %v1574_v63, %v1592_v53  ;;  %v1596_v12 = vsub.f32 %v1577_v5, %v1592_v53  ;;  %v1411_v63 = vsel %vm355_vm0, %v3980_v50, 0.0  ;;  %v1414_v53 = vsel %vm355_vm0, %v3982_v18, 0.0 }
 0x537   : > { %v1593_v58 = vsub.f32 %v1551_v20, %v1585_v59  ;;  %v1595_v15 = vsub.f32 %v1554_v2, %v1585_v59  ;;  %v1446_v2 = vsel %vm355_vm0, %v3996_v36, 0.0 }
 0x538   : > { %v1599_v37 = vmul.f32 1.442695, %v1594_v61  ;;  %v1603_v54 = vmul.f32 1.442695, %v1596_v12  ;;  %v1443_v12 = vsel %vm355_vm0, %v3988_v19, 0.0 }
 0x539   : > { %v1597_v3 = vmul.f32 1.442695, %v1593_v58  ;;  %v1601_v48 = vmul.f32 1.442695, %v1595_v15 }
 0x53a   : > { %2635 = vpow2.f32 %v1599_v37 }
 0x53b   : > { %2637 = vpow2.f32 %v1603_v54 }
 0x53c   : > { %2639 = vpow2.f32 %v1597_v3 }
 0x53d   : > { %2641 = vpow2.f32 %v1601_v48 }
 0x540   : > { %v2636_v14 = vpop.eup %2635 }
 0x541   : > { %v2638_v33 = vpop.eup %2637 }
 0x542   : > { %v2640_v55 = vpop.eup %2639  ;;  %v1612_v44 = vadd.f32 %v2638_v33, %v2636_v14 }
 0x543   : > { %v2642_v7 = vpop.eup %2641 }
 0x544   : > { %v1613_v40 = vrot.slane %v1612_v44, 4  ;;  %v1605_v21 = vadd.f32 %v2642_v7, %v2640_v55 }
 0x546   : > { %v1606_v46 = vrot.slane %v1605_v21, 4  ;;  %v1614_v15 = vadd.f32 %v1613_v40, %v1612_v44 }
 0x547   : > { %1412 = vadd.xlane.f32.xlu2 %v1411_v63 }
 0x548   : > { %v1607_v37 = vadd.f32 %v1606_v46, %v1605_v21  ;;  %1444 = vadd.xlane.f32.xlu1 %v1443_v12  ;;  %v1615_v59 = vrot.slane %v1614_v15, 2  ;;  %v4026_v46 = vpop.permute.xlu0 %1739 }
 0x54a   : > { %v1608_v58 = vrot.slane %v1607_v37, 2  ;;  %v1616_v60 = vadd.f32 %v1615_v59, %v1614_v15 }
 0x54c   : > { %v1609_v5 = vadd.f32 %v1608_v58, %v1607_v37  ;;  %v1617_v62 = vrot.slane %v1616_v60, 1 }
 0x54e   : > { %v1610_v20 = vrot.slane %v1609_v5, 1  ;;  %v1618_v61 = vadd.f32 %v1617_v62, %v1616_v60 }
 0x54f   : > { %1447 = vadd.xlane.f32.xlu2 %v1446_v2 }
 0x550   : > { %v1611_v16 = vadd.f32 %v1610_v20, %v1609_v5 }
 0x552   : > { %2643 = vrcp.f32 %v1611_v16 }
 0x553   : > { %2645 = vrcp.f32 %v1618_v61 }
 0x558   : > { %1415 = vadd.xlane.f32.xlu0 %v1414_v53  ;;  %v2644_v54 = vpop.eup %2643 }
 0x559   : > { %v4008_v3 = vmul.f32 %v2644_v54, %v2640_v55  ;;  %v2646_v48 = vpop.eup %2645  ;;  %v4020_v21 = vmul.f32 %v2644_v54, %v2642_v7 }
 0x55a   : > { %v4012_v44 = vmul.f32 %v2646_v48, %v2636_v14  ;;  %v4016_v40 = vmul.f32 %v2646_v48, %v2638_v33 }
 0x55b   : > { %v1628_v55 = vsel %vm355_vm0, %v4020_v21, 0.0  ;;  %v1625_v14 = vsel %vm355_vm0, %v4008_v3, 0.0 }
 0x55c   : > { %v1657_v33 = vsel %vm355_vm0, %v4012_v44, 0.0  ;;  %v1660_v15 = vsel %vm355_vm0, %v4016_v40, 0.0 }
 0x561   : > { %1639 = vrot.lane.b32.xlu1 %v4008_v3, %s2842_s14 }
 0x567   : > { %1671 = vrot.lane.b32.xlu2 %v4012_v44, %s2842_s14 }
 0x569   : > { %1673 = vrot.lane.b32.xlu1 %v4016_v40, %s2842_s14 }
 0x56c   : > { %1641 = vrot.lane.b32.xlu0 %v4020_v21, %s2842_s14 }
 0x578   : > { %v1428_v58 = vpop.permute.xlu2 %1427 }
 0x579   : > { %v1434_v5 = vsel %vm355_vm0, %v1428_v58, 0.0 }
 0x590   : > { %1629 = vadd.xlane.f32.xlu2 %v1628_v55  ;;  %v1426_v12 = vpop.permute.xlu1 %1425 }
 0x591   : > { %v1431_v37 = vsel %vm355_vm0, %v1426_v12, 0.0 }
 0x593   : > { %1626 = vadd.xlane.f32.xlu1 %v1625_v14 }
 0x596   : > { %1658 = vadd.xlane.f32.xlu0 %v1657_v33 }
 0x598   : > { %v1458_v63 = vpop.permute.xlu0 %1457 }
 0x599   : > { %v1463_v7 = vsel %vm355_vm0, %v1458_v63, 0.0 }
 0x59a   : > { %1464 = vadd.xlane.f32.xlu2 %v1463_v7 }
 0x59b   : > { %1661 = vadd.xlane.f32.xlu1 %v1660_v15 }
 0x59e   : > { %1432 = vadd.xlane.f32.xlu0 %v1431_v37 }
 0x5a0   : > { %v1460_v59 = vpop.permute.xlu0 %1459 }
 0x5a1   : > { %v1466_v20 = vsel %vm355_vm0, %v1460_v59, 0.0 }
 0x5a3   : > { %1435 = vadd.xlane.f32.xlu1 %v1434_v5 }
 0x5a6   : > { %1467 = vadd.xlane.f32.xlu0 %v1466_v20 }
 0x5ba   : > { %v1413_v2 = vpop.xlane.xlu2 %1412 }
 0x5bb   : > { %v1445_v62 = vpop.xlane.xlu1 %1444  ;;  %v1417_v59 = vadd.f32 1e-09, %v1413_v2 }
 0x5bc   : > { %v1449_v37 = vadd.f32 1e-09, %v1445_v62 }
 0x5be   : > { %2647 = vrcp.f32 %v1449_v37 }
 0x5c2   : > { %v1448_v60 = vpop.xlane.xlu2 %1447 }
 0x5ca   : > { %v1672_v16 = vpop.permute.xlu2 %1671 }
 0x5cb   : > { %v1677_v53 = vsel %vm355_vm0, %v1672_v16, 0.0  ;;  %v1416_v48 = vpop.xlane.xlu0 %1415 }
 0x5cc   : > { %1678 = vadd.xlane.f32.xlu1 %v1677_v53  ;;  %v2648_v53 = vpop.eup %2647 }
 0x5d3   : > { %v1640_v61 = vpop.permute.xlu1 %1639 }
 0x5d4   : > { %v1645_v54 = vsel %vm355_vm0, %v1640_v61, 0.0  ;;  %v1450_v61 = vadd.f32 1e-09, %v1448_v60 }
 0x5d5   : > { %1646 = vadd.xlane.f32.xlu2 %v1645_v54  ;;  %v1418_v54 = vadd.f32 1e-09, %v1416_v48 }
 0x5db   : > { %v1674_v55 = vpop.permute.xlu1 %1673 }
 0x5dc   : > { %v1680_v14 = vsel %vm355_vm0, %v1674_v55, 0.0 }
 0x5dd   : > { %1681 = vadd.xlane.f32.xlu2 %v1680_v14 }
 0x5de   : > { %v1642_v33 = vpop.permute.xlu0 %1641 }
 0x5df   : > { %v1648_v63 = vsel %vm355_vm0, %v1642_v33, 0.0  ;;  %v1453_v33 = vmul.f32 %v2648_v53, %v3988_v19 }
 0x5e0   : > { %1649 = vadd.xlane.f32.xlu0 %v1648_v63 }
 0x5e5   : > { %1741 = vrot.lane.b32.xlu1 %v3670_v41, %s2842_s14 }
 0x5f4   : > { %1955 = vrot.lane.b32.xlu0 %v3670_v41, %s2843_s29 }
 0x5f5   : > { %1953 = vrot.lane.b32.xlu2 %v3675_v24, %s2843_s29 }
 0x603   : > { %v4048_v7 = vpop.xlane.xlu2 %1629 }
 0x606   : > { %v4050_v12 = vpop.xlane.xlu1 %1626 }
 0x609   : > { %v4052_v15 = vpop.xlane.xlu0 %1658 }
 0x60d   : > { %v1465_v58 = vpop.xlane.xlu2 %1464 }
 0x60e   : > { %v1469_v5 = vadd.f32 1e-09, %v1465_v58  ;;  %v4054_v20 = vpop.xlane.xlu1 %1661 }
 0x610   : > { %2649 = vrcp.f32 %v1469_v5 }
 0x611   : > { %v1433_v16 = vpop.xlane.xlu0 %1432  ;;  %2651 = vrcp.f32 %v1417_v59 }
 0x612   : > { %v1437_v41 = vadd.f32 1e-09, %v1433_v16 }
 0x614   : > { %2653 = vrcp.f32 %v1437_v41 }
 0x615   : > { %2655 = vrcp.f32 %v1450_v61 }
 0x616   : > { %v2650_v24 = vpop.eup %2649  ;;  %v1436_v55 = vpop.xlane.xlu1 %1435 }
 0x617   : > { %v1438_v14 = vadd.f32 1e-09, %v1436_v55  ;;  %v1473_v62 = vmul.f32 %v2650_v24, %v3988_v19  ;;  %v2652_v2 = vpop.eup %2651 }
 0x618   : > { %v1421_v60 = vmul.f32 %v2652_v2, %v3980_v50 }
 0x619   : > { %2657 = vrcp.f32 %v1438_v14  ;;  %v1468_v63 = vpop.xlane.xlu0 %1467  ;;  %v1477_v37 = vsel %vm355_vm0, %v1453_v33, %v1473_v62  ;;  %v1631_v33 = vadd.f32 1e-09, %v4050_v12  ;;  %v1632_v12 = vadd.f32 1e-09, %v4048_v7 }
 0x61a   : > { %v2654_v58 = vpop.eup %2653  ;;  %2659 = vrcp.f32 %v1418_v54  ;;  %v1470_v59 = vadd.f32 1e-09, %v1468_v63  ;;  %1518 = vmatmul.f32.vlgmr.msrb.gmra.mxu3 %v1477_v37 }
 0x61b   : > { %v1441_v48 = vmul.f32 %v2654_v58, %v3980_v50  ;;  %1930 = vmatpush.msrb.mxu3 %v3712_v52  ;;  %v2656_v19 = vpop.eup %2655 }
 0x61c   : > { %2661 = vrcp.f32 %v1470_v59  ;;  %v1454_v24 = vmul.f32 %v2656_v19, %v3996_v36 }
 0x61d   : > { %v1475_v5 = vsel %vm355_vm0, %v1421_v60, %v1441_v48  ;;  %1931 = vmatpush.msrb.mxu3 %v3725_v51  ;;  %v1664_v60 = vadd.f32 1e-09, %v4054_v20 }
 0x61e   : > { %1495 = vmatmul.f32.vlgmr.msrb.gmra.mxu2 %v1475_v5 }
 0x61f   : > { %v2658_v16 = vpop.eup %2657  ;;  %1932 = vmatpush.msrb.mxu3 %v3737_v27  ;;  %1907 = vmatpush.msrb.mxu2 %v3689_v29 }
 0x620   : > { %v2660_v41 = vpop.eup %2659  ;;  %v1442_v53 = vmul.f32 %v2658_v16, %v3982_v18 }
 0x621   : > { %1933 = vmatpush.msrb.mxu3 %v3749_v13  ;;  %1908 = vmatpush.msrb.mxu2 %v3698_v4  ;;  %v1422_v61 = vmul.f32 %v2660_v41, %v3982_v18  ;;  %v1663_v18 = vadd.f32 1e-09, %v4052_v15 }
 0x622   : > { %v2662_v50 = vpop.eup %2661 }
 0x623   : > { %v1474_v54 = vmul.f32 %v2662_v50, %v3996_v36  ;;  %1934 = vmatpush.msrb.mxu3 %v3763_v30  ;;  %1909 = vmatpush.msrb.mxu2 %v3706_v26  ;;  %v1476_v55 = vsel %vm355_vm0, %v1422_v61, %v1442_v53  ;;  %2663 = vrcp.f32 %v1663_v18 }
 0x625   : > { %v1478_v14 = vsel %vm355_vm0, %v1454_v24, %v1474_v54  ;;  %1935 = vmatpush.msrb.mxu3 %v3778_v31  ;;  %1910 = vmatpush.msrb.mxu2 %v3719_v11 }
 0x626   : > { %1498 = vmatmul.f32.gmra.mxu2 %v1476_v55  ;;  %1521 = vmatmul.f32.gmra.mxu3 %v1478_v14 }
 0x627   : > { %1936 = vmatpush.msrb.mxu3 %v3790_v47  ;;  %1911 = vmatpush.msrb.mxu2 %v3731_v35 }
 0x629   : > { %1937 = vmatpush.msrb.mxu3 %v3897_v6  ;;  %1912 = vmatpush.msrb.mxu2 %v3743_v10  ;;  %v2664_v62 = vpop.eup %2663 }
 0x62a   : > { %v1667_v58 = vmul.f32 %v2664_v62, %v4012_v44 }
 0x62b   : > { %1938 = vmatpush.msrb.mxu3 %v3903_v17  ;;  %1913 = vmatpush.msrb.mxu2 %v3757_v38 }
 0x62d   : > { %1939 = vmatpush.msrb.mxu3 %v3911_v0  ;;  %1914 = vmatpush.msrb.mxu2 %v3770_v32 }
 0x62e   : > { %2425 = vmatmul.msk.f32.vlgmr.msra.gmra.mxu2 %vm455_vm1, %v4026_v46  ;;  %2427 = vmatmul.msk.f32.vlgmr.msra.gmra.mxu3 %vm455_vm1, %v4026_v46 }
 0x62f   : > { %1940 = vmatpush.msrb.mxu3 %v3918_v22  ;;  %1915 = vmatpush.msrb.mxu2 %v3784_v39 }
 0x631   : > { %1941 = vmatpush.msrb.mxu3 %v3925_v23  ;;  %1916 = vmatpush.msrb.mxu2 %v3796_v1 }
 0x633   : > { %1942 = vmatpush.msrb.mxu3 %v3932_v28  ;;  %1917 = vmatpush.msrb.mxu2 %v3803_v25 }
 0x635   : > { %1943 = vmatpush.msrb.mxu3 %v3941_v34  ;;  %1918 = vmatpush.msrb.mxu2 %v3810_v57 }
 0x637   : > { %1944 = vmatpush.msrb.mxu3 %v3947_v43  ;;  %1919 = vmatpush.msrb.mxu2 %v3823_v56 }
 0x639   : > { %1945 = vmatpush.msrb.mxu3 %v3953_v45  ;;  %1920 = vmatpush.msrb.mxu2 %v3831_v8 }
 0x63b   : > { %1921 = vmatpush.msrb.mxu2 %v3869_v9 }
 0x63d   : > { %1922 = vmatpush.msrb.mxu2 %v3877_v49 }
 0x63f   : > { %v1679_v36 = vpop.xlane.xlu1 %1678 }
 0x640   : > { %v1683_v46 = vadd.f32 1e-09, %v1679_v36 }
 0x642   : > { %2665 = vrcp.f32 %v1683_v46 }
 0x643   : > { %2667 = vrcp.f32 %v1631_v33 }
 0x648   : > { %v2666_v2 = vpop.eup %2665  ;;  %v1647_v63 = vpop.xlane.xlu2 %1646 }
 0x649   : > { %v1651_v37 = vadd.f32 1e-09, %v1647_v63  ;;  %v1687_v59 = vmul.f32 %v2666_v2, %v4012_v44  ;;  %v2668_v48 = vpop.eup %2667 }
 0x64a   : > { %v1635_v44 = vmul.f32 %v2668_v48, %v4008_v3 }
 0x64b   : > { %2669 = vrcp.f32 %v1651_v37  ;;  %v1691_v15 = vsel %vm355_vm0, %v1667_v58, %v1687_v59 }
 0x64c   : > { %1732 = vmatmul.f32.vlgmr.msra.gmra.mxu1 %v1691_v15  ;;  %2671 = vrcp.f32 %v1664_v60 }
 0x64d   : > { %2144 = vmatpush.msra.mxu1 %v3712_v52 }
 0x64f   : > { %2145 = vmatpush.msra.mxu1 %v3725_v51 }
 0x650   : > { %v1682_v5 = vpop.xlane.xlu2 %1681 }
 0x651   : > { %v2670_v19 = vpop.eup %2669  ;;  %v1684_v16 = vadd.f32 1e-09, %v1682_v5  ;;  %2146 = vmatpush.msra.mxu1 %v3737_v27 }
 0x652   : > { %v1655_v41 = vmul.f32 %v2670_v19, %v4008_v3  ;;  %v2672_v7 = vpop.eup %2671 }
 0x653   : > { %2673 = vrcp.f32 %v1684_v16  ;;  %v1650_v53 = vpop.xlane.xlu0 %1649  ;;  %2147 = vmatpush.msra.mxu1 %v3749_v13  ;;  %v1668_v20 = vmul.f32 %v2672_v7, %v4016_v40 }
 0x654   : > { %2675 = vrcp.f32 %v1632_v12  ;;  %v1652_v52 = vadd.f32 1e-09, %v1650_v53  ;;  %v1689_v51 = vsel %vm355_vm0, %v1635_v44, %v1655_v41 }
 0x655   : > { %1709 = vmatmul.f32.vlgmr.msra.gmra.mxu0 %v1689_v51  ;;  %2148 = vmatpush.msra.mxu1 %v3763_v30 }
 0x656   : > { %2677 = vrcp.f32 %v1652_v52  ;;  %2121 = vmatpush.msra.mxu0 %v3689_v29 }
 0x657   : > { %v1742_v27 = vpop.permute.xlu1 %1741  ;;  %2149 = vmatpush.msra.mxu1 %v3778_v31 }
 0x658   : > { %2426 = vmatmul.msk.f32.gmra.mxu2 %vm455_vm1, %v1742_v27  ;;  %2428 = vmatmul.msk.f32.gmra.mxu3 %vm455_vm1, %v1742_v27 }
 0x659   : > { %v2674_v3 = vpop.eup %2673  ;;  %2122 = vmatpush.msra.mxu0 %v3698_v4  ;;  %2150 = vmatpush.msra.mxu1 %v3790_v47 }
 0x65a   : > { %v2676_v13 = vpop.eup %2675  ;;  %v1688_v30 = vmul.f32 %v2674_v3, %v4016_v40 }
 0x65b   : > { %2123 = vmatpush.msra.mxu0 %v3706_v26  ;;  %2151 = vmatpush.msra.mxu1 %v3897_v6  ;;  %v1636_v50 = vmul.f32 %v2676_v13, %v4020_v21  ;;  %v1954_v26 = vpop.permute.xlu2 %1953 }
 0x65c   : > { %v2678_v29 = vpop.eup %2677  ;;  %v1692_v31 = vsel %vm355_vm0, %v1668_v20, %v1688_v30 }
 0x65d   : > { %1735 = vmatmul.f32.gmra.mxu1 %v1692_v31  ;;  %v1656_v61 = vmul.f32 %v2678_v29, %v4020_v21  ;;  %2124 = vmatpush.msra.mxu0 %v3719_v11 }
 0x65e   : > { %2152 = vmatpush.msra.mxu1 %v3903_v17 }
 0x65f   : > { %v1690_v4 = vsel %vm355_vm0, %v1636_v50, %v1656_v61  ;;  %2125 = vmatpush.msra.mxu0 %v3731_v35 }
 0x660   : > { %1712 = vmatmul.f32.gmra.mxu0 %v1690_v4  ;;  %2153 = vmatpush.msra.mxu1 %v3911_v0 }
 0x661   : > { %2126 = vmatpush.msra.mxu0 %v3743_v10  ;;  %v4161_v10 = vld [vmem:[%s4446_s6] ss:$0 sm:$0xff] }
 0x662   : > { %2154 = vmatpush.msra.mxu1 %v3918_v22 }
 0x663   : > { %2127 = vmatpush.msra.mxu0 %v3757_v38 }
 0x664   : > { %2155 = vmatpush.msra.mxu1 %v3925_v23 }
 0x665   : > { %2431 = vmatmul.msk.f32.vlgmr.msrb.gmra.mxu1 %vm455_vm1, %v1954_v26  ;;  %2128 = vmatpush.msra.mxu0 %v3770_v32 }
 0x666   : > { %2156 = vmatpush.msra.mxu1 %v3932_v28  ;;  %v1956_v11 = vpop.permute.xlu0 %1955  ;;  %v4491_v28 = vld [vmem:[#allocation6_spill] sm:$0xff] }
 0x667   : > { %2129 = vmatpush.msra.mxu0 %v3784_v39 }
 0x668   : > { %2429 = vmatmul.msk.f32.vlgmr.msrb.gmra.mxu0 %vm455_vm1, %v1954_v26  ;;  %2157 = vmatpush.msra.mxu1 %v3941_v34 }
 0x669   : > { %2130 = vmatpush.msra.mxu0 %v3796_v1 }
 0x66a   : > { %2158 = vmatpush.msra.mxu1 %v3947_v43 }
 0x66b   : > { %2131 = vmatpush.msra.mxu0 %v3803_v25 }
 0x66c   : > { %2159 = vmatpush.msra.mxu1 %v3953_v45 }
 0x66d   : > { %2432 = vmatmul.msk.f32.gmra.mxu1 %vm455_vm1, %v1956_v11  ;;  %2132 = vmatpush.msra.mxu0 %v3810_v57 }
 0x66f   : > { %2133 = vmatpush.msra.mxu0 %v3823_v56 }
 0x670   : > { %2430 = vmatmul.msk.f32.gmra.mxu0 %vm455_vm1, %v1956_v11 }
 0x671   : > { %2134 = vmatpush.msra.mxu0 %v3831_v8 }
 0x673   : > { %2135 = vmatpush.msra.mxu0 %v3869_v9 }
 0x675   : > { %2136 = vmatpush.msra.mxu0 %v3877_v49 }
 0x69d   : > { %v1519_v32 = vpop.f32.mrf.mxu3 }
 0x6a1   : > { %v1496_v35 = vpop.f32.mrf.mxu2 }
 0x6a2   : > { %v1497_v38 = vadd.f32 %v4161_v10, %v1496_v35 }
 0x6a4   : > { %v4164_v39 = vadd.f32 %v1519_v32, %v1497_v38 }
 0x6a9   : > { %v1499_v47 = vpop.f32.mrf.mxu2  ;;  %v1522_v25 = vpop.f32.mrf.mxu3 }
 0x6aa   : > { %v1500_v1 = vadd.f32 %v4161_v10, %v1499_v47 }
 0x6ac   : > { %v4167_v57 = vadd.f32 %v1522_v25, %v1500_v1 }
 0x6b1   : > { %v1764_v8 = vpop.f32.mrf.mxu2  ;;  %v1787_v9 = vpop.f32.mrf.mxu3 }
 0x6b2   : > { %v1765_v23 = vadd.f32 %v1764_v8, %v4481_v42  ;;  %v1788_v34 = vadd.f32 %v1787_v9, %v4491_v28 }
 0x6c9   : > { %v1733_v6 = vpop.f32.mrf.mxu1 }
 0x6d2   : > { %v1710_v56 = vpop.f32.mrf.mxu0 }
 0x6d3   : > { %v1711_v49 = vadd.f32 %v4161_v10, %v1710_v56 }
 0x6d5   : > { %v4170_v17 = vadd.f32 %v1733_v6, %v1711_v49 }
 0x6da   : > { %v1736_v55 = vpop.f32.mrf.mxu1 }
 0x6db   : > { %v1767_v0 = vpop.f32.mrf.mxu2  ;;  %v1790_v22 = vpop.f32.mrf.mxu3 }
 0x6dc   : > { %v1768_v43 = vadd.f32 %v1767_v0, %v4481_v42  ;;  %v1791_v45 = vadd.f32 %v1790_v22, %v4491_v28 }
 0x6dd   : > { %v1713_v40 = vpop.f32.mrf.mxu0 }
 0x6de   : > { %v1793_v21 = vmax.f32 %v1765_v23, %v1768_v43  ;;  %v1800_v24 = vmax.f32 %v1788_v34, %v1791_v45  ;;  %v1714_v54 = vadd.f32 %v4161_v10, %v1713_v40 }
 0x6e0   : > { %v1794_v14 = vrot.slane %v1793_v21, 4  ;;  %v1801_v18 = vrot.slane %v1800_v24, 4  ;;  %v4177_v36 = vadd.f32 %v1736_v55, %v1714_v54 }
 0x6e2   : > { %v1795_v46 = vmax.f32 %v1793_v21, %v1794_v14  ;;  %v1802_v33 = vmax.f32 %v1800_v24, %v1801_v18  ;;  %v2499_v62 = vpack.i.bf16 %v4177_v36, %v4170_v17  ;;  %v2001_v60 = vpop.f32.mrf.mxu1 }
 0x6e3   : > { %v2002_v50 = vadd.f32 %v2001_v60, %v4491_v28 }
 0x6e4   : > { %v1796_v2 = vrot.slane %v1795_v46, 2  ;;  %v1803_v63 = vrot.slane %v1802_v33, 2 }
 0x6e5   : > { %v1978_v41 = vpop.f32.mrf.mxu0 }
 0x6e6   : > { %v1797_v37 = vmax.f32 %v1795_v46, %v1796_v2  ;;  %v1804_v58 = vmax.f32 %v1802_v33, %v1803_v63  ;;  %v1979_v38 = vadd.f32 %v1978_v41, %v4481_v42 }
 0x6e8   : > { %v1798_v59 = vrot.slane %v1797_v37, 1  ;;  %v1805_v15 = vrot.slane %v1804_v58, 1 }
 0x6ea   : > { %v1799_v48 = vmax.f32 %v1797_v37, %v1798_v59  ;;  %v1806_v12 = vmax.f32 %v1804_v58, %v1805_v15  ;;  %v2004_v27 = vpop.f32.mrf.mxu1 }
 0x6eb   : > { %v2005_v13 = vadd.f32 %v2004_v27, %v4491_v28 }
 0x6ec   : > { %v1807_v5 = vsub.f32 %v1765_v23, %v1799_v48  ;;  %v1809_v19 = vsub.f32 %v1768_v43, %v1799_v48  ;;  %v1808_v16 = vsub.f32 %v1788_v34, %v1806_v12  ;;  %v1810_v44 = vsub.f32 %v1791_v45, %v1806_v12 }
 0x6ed   : > { %v1981_v20 = vpop.f32.mrf.mxu0  ;;  %v2014_v35 = vmax.f32 %v2002_v50, %v2005_v13 }
 0x6ee   : > { %v1811_v53 = vmul.f32 1.442695, %v1807_v5  ;;  %v1815_v52 = vmul.f32 1.442695, %v1809_v19  ;;  %v1813_v51 = vmul.f32 1.442695, %v1808_v16  ;;  %v1982_v4 = vadd.f32 %v1981_v20, %v4481_v42 }
 0x6ef   : > { %v1817_v7 = vmul.f32 1.442695, %v1810_v44  ;;  %v2015_v8 = vrot.slane %v2014_v35, 4 }
 0x6f0   : > { %2679 = vpow2.f32 %v1811_v53  ;;  %v2007_v1 = vmax.f32 %v1979_v38, %v1982_v4 }
 0x6f1   : > { %2681 = vpow2.f32 %v1815_v52  ;;  %v2016_v23 = vmax.f32 %v2014_v35, %v2015_v8 }
 0x6f2   : > { %2683 = vpow2.f32 %v1813_v51  ;;  %v2008_v6 = vrot.slane %v2007_v1, 4 }
 0x6f3   : > { %2685 = vpow2.f32 %v1817_v7  ;;  %v2017_v45 = vrot.slane %v2016_v23, 2 }
 0x6f4   : > { %v2009_v43 = vmax.f32 %v2007_v1, %v2008_v6 }
 0x6f5   : > { %v2018_v21 = vmax.f32 %v2016_v23, %v2017_v45 }
 0x6f6   : > { %v2680_v3 = vpop.eup %2679  ;;  %v2010_v42 = vrot.slane %v2009_v43, 2 }
 0x6f7   : > { %v2682_v30 = vpop.eup %2681  ;;  %v2019_v18 = vrot.slane %v2018_v21, 1 }
 0x6f8   : > { %v2684_v29 = vpop.eup %2683  ;;  %v1819_v31 = vadd.f32 %v2682_v30, %v2680_v3  ;;  %v2011_v54 = vmax.f32 %v2009_v43, %v2010_v42 }
 0x6f9   : > { %v2686_v61 = vpop.eup %2685  ;;  %v2020_v63 = vmax.f32 %v2018_v21, %v2019_v18 }
 0x6fa   : > { %v1820_v26 = vrot.slane %v1819_v31, 4  ;;  %v1826_v11 = vadd.f32 %v2686_v61, %v2684_v29  ;;  %v2012_v2 = vrot.slane %v2011_v54, 1 }
 0x6fb   : > { %v2022_v59 = vsub.f32 %v2002_v50, %v2020_v63  ;;  %v2024_v15 = vsub.f32 %v2005_v13, %v2020_v63 }
 0x6fc   : > { %v1821_v32 = vadd.f32 %v1820_v26, %v1819_v31  ;;  %v1827_v47 = vrot.slane %v1826_v11, 4  ;;  %v2013_v37 = vmax.f32 %v2011_v54, %v2012_v2 }
 0x6fd   : > { %v2027_v48 = vmul.f32 1.442695, %v2022_v59  ;;  %v2031_v5 = vmul.f32 1.442695, %v2024_v15 }
 0x6fe   : > { %v1822_v25 = vrot.slane %v1821_v32, 2  ;;  %v1828_v56 = vadd.f32 %v1827_v47, %v1826_v11  ;;  %v2021_v60 = vsub.f32 %v1979_v38, %v2013_v37  ;;  %v2023_v12 = vsub.f32 %v1982_v4, %v2013_v37 }
 0x700   : > { %v1823_v9 = vadd.f32 %v1822_v25, %v1821_v32  ;;  %v1829_v49 = vrot.slane %v1828_v56, 2  ;;  %v2025_v19 = vmul.f32 1.442695, %v2021_v60  ;;  %v2029_v16 = vmul.f32 1.442695, %v2023_v12 }
 0x702   : > { %v1824_v0 = vrot.slane %v1823_v9, 1  ;;  %v1830_v22 = vadd.f32 %v1829_v49, %v1828_v56 }
 0x704   : > { %v1831_v28 = vrot.slane %v1830_v22, 1  ;;  %v1825_v34 = vadd.f32 %v1824_v0, %v1823_v9 }
 0x706   : > { %v1832_v40 = vadd.f32 %v1831_v28, %v1830_v22  ;;  %2687 = vrcp.f32 %v1825_v34 }
 0x708   : > { %2689 = vrcp.f32 %v1832_v40 }
 0x709   : > { %2691 = vpow2.f32 %v2027_v48 }
 0x70a   : > { %2693 = vpow2.f32 %v2031_v5  ;;  %v4492_v5 = vld [vmem:[#allocation7_spill] sm:$0xff] }
 0x70b   : > { %2695 = vpow2.f32 %v2025_v19  ;;  %v4493_v19 = vld [vmem:[#allocation8_spill] sm:$0xff] }
 0x70c   : > { %v2688_v24 = vpop.eup %2687  ;;  %2697 = vpow2.f32 %v2029_v16  ;;  %v4494_v16 = vpack.i.bf16 %v4492_v5, %v4493_v19 }
 0x70d   : > { %v4185_v55 = vmul.f32 %v2688_v24, %v2680_v3  ;;  %v4197_v58 = vmul.f32 %v2688_v24, %v2682_v30 }
 0x70e   : > { %v2690_v14 = vpop.eup %2689 }
 0x70f   : > { %v4187_v46 = vmul.f32 %v2690_v14, %v2686_v61  ;;  %v4189_v33 = vmul.f32 %v2690_v14, %v2684_v29  ;;  %1853 = vrot.lane.b32.xlu1 %v4185_v55, %s2842_s14  ;;  %v2692_v44 = vpop.eup %2691  ;;  %v1839_v50 = vsel %vm355_vm0, %v4185_v55, 0.0  ;;  %v1842_v49 = vsel %vm355_vm0, %v4197_v58, 0.0 }
 0x710   : > { %v2694_v41 = vpop.eup %2693 }
 0x711   : > { %1887 = vrot.lane.b32.xlu2 %v4187_v46, %s2842_s14  ;;  %1885 = vrot.lane.b32.xlu0 %v4189_v33, %s2842_s14  ;;  %v2696_v53 = vpop.eup %2695  ;;  %v2040_v51 = vadd.f32 %v2694_v41, %v2692_v44  ;;  %v1871_v61 = vsel %vm355_vm0, %v4189_v33, 0.0  ;;  %v1874_v35 = vsel %vm355_vm0, %v4187_v46, 0.0 }
 0x712   : > { %v2698_v52 = vpop.eup %2697 }
 0x713   : > { %v2033_v7 = vadd.f32 %v2698_v52, %v2696_v53  ;;  %v2041_v27 = vrot.slane %v2040_v51, 4 }
 0x715   : > { %v2034_v3 = vrot.slane %v2033_v7, 4  ;;  %v2042_v13 = vadd.f32 %v2041_v27, %v2040_v51  ;;  %v4499_v51 = vld [vmem:[#allocation11_spill] sm:$0xff] }
 0x717   : > { %1855 = vrot.lane.b32.xlu1 %v4197_v58, %s2842_s14  ;;  %v2035_v20 = vadd.f32 %v2034_v3, %v2033_v7  ;;  %v2043_v30 = vrot.slane %v2042_v13, 2 }
 0x719   : > { %v2036_v29 = vrot.slane %v2035_v20, 2  ;;  %v2044_v31 = vadd.f32 %v2043_v30, %v2042_v13 }
 0x71b   : > { %v2037_v4 = vadd.f32 %v2036_v29, %v2035_v20  ;;  %v2045_v26 = vrot.slane %v2044_v31, 1 }
 0x71d   : > { %v2038_v11 = vrot.slane %v2037_v4, 1  ;;  %v2046_v38 = vadd.f32 %v2045_v26, %v2044_v31 }
 0x71f   : > { %v2039_v32 = vadd.f32 %v2038_v11, %v2037_v4  ;;  %2699 = vrcp.f32 %v2046_v38 }
 0x721   : > { %2701 = vrcp.f32 %v2039_v32 }
 0x725   : > { %v2700_v47 = vpop.eup %2699 }
 0x726   : > { %v4207_v25 = vmul.f32 %v2700_v47, %v2692_v44  ;;  %v4215_v8 = vmul.f32 %v2700_v47, %v2694_v41  ;;  %v4495_v44 = vld [vmem:[#allocation13_spill] sm:$0xff]  ;;  %v4496_v41 = vld [vmem:[#allocation12_spill] sm:$0xff] }
 0x727   : > { %v2702_v1 = vpop.eup %2701 }
 0x728   : > { %v4211_v56 = vmul.f32 %v2702_v1, %v2696_v53  ;;  %v4219_v9 = vmul.f32 %v2702_v1, %v2698_v52  ;;  %v2085_v6 = vsel %vm355_vm0, %v4207_v25, 0.0  ;;  %v2088_v59 = vsel %vm355_vm0, %v4215_v8, 0.0  ;;  %v4498_v52 = vld [vmem:[#allocation5_spill] sm:$0xff] }
 0x729   : > { %v4497_v53 = vpack.i.bf16 %v4495_v44, %v4496_v41  ;;  %v4500_v7 = vpack.i.bf16 %v4498_v52, %v4499_v51  ;;  %v2232_v52 = vld [vmem:[%s4447_s7 + $0x20] sm:$0xff] }
 0x72a   : > { %v2053_v22 = vsel %vm355_vm0, %v4211_v56, 0.0  ;;  %v2056_v43 = vsel %vm355_vm0, %v4219_v9, 0.0 }
 0x73a   : > { %1840 = vadd.xlane.f32.xlu2 %v1839_v50 }
 0x73b   : > { %1872 = vadd.xlane.f32.xlu0 %v1871_v61 }
 0x741   : > { %1875 = vadd.xlane.f32.xlu1 %v1874_v35 }
 0x74f   : > { %2099 = vrot.lane.b32.xlu0 %v4207_v25, %s2842_s14 }
 0x752   : > { %2067 = vrot.lane.b32.xlu2 %v4211_v56, %s2842_s14 }
 0x757   : > { %2101 = vrot.lane.b32.xlu0 %v4215_v8, %s2842_s14 }
 0x75a   : > { %2069 = vrot.lane.b32.xlu1 %v4219_v9, %s2842_s14 }
 0x76b   : > { %v1888_v42 = vpop.permute.xlu2 %1887 }
 0x76c   : > { %v1894_v18 = vsel %vm355_vm0, %v1888_v42, 0.0 }
 0x77b   : > { %1843 = vadd.xlane.f32.xlu2 %v1842_v49 }
 0x781   : > { %2086 = vadd.xlane.f32.xlu0 %v2085_v6  ;;  %v1854_v28 = vpop.permute.xlu1 %1853 }
 0x782   : > { %v1859_v34 = vsel %vm355_vm0, %v1854_v28, 0.0  ;;  %v2243_v28 = vld [vmem:[%s4447_s7 + $0x78] sm:$0xff] }
 0x783   : > { %v1886_v0 = vpop.permute.xlu0 %1885  ;;  %2264 = vmatpush.msra.mxu2 %v2243_v28 }
 0x784   : > { %v1891_v23 = vsel %vm355_vm0, %v1886_v0, 0.0  ;;  %2054 = vadd.xlane.f32.xlu1 %v2053_v22 }
 0x785   : > { %1892 = vadd.xlane.f32.xlu2 %v1891_v23 }
 0x789   : > { %v1856_v45 = vpop.permute.xlu1 %1855 }
 0x78a   : > { %v1862_v40 = vsel %vm355_vm0, %v1856_v45, 0.0  ;;  %v2240_v45 = vld [vmem:[%s4447_s7 + $0x60] sm:$0xff] }
 0x78c   : > { %1860 = vadd.xlane.f32.xlu1 %v1859_v34 }
 0x78d   : > { %2057 = vadd.xlane.f32.xlu2 %v2056_v43  ;;  %v2241_v43 = vld [vmem:[%s4447_s7 + $0x68] sm:$0xff] }
 0x794   : > { %1863 = vadd.xlane.f32.xlu1 %v1862_v40  ;;  %v2239_v40 = vld [vmem:[%s4447_s7 + $0x58] sm:$0xff] }
 0x7ad   : > { %v1841_v21 = vpop.xlane.xlu2 %1840 }
 0x7ae   : > { %v1873_v14 = vpop.xlane.xlu0 %1872  ;;  %v1845_v29 = vadd.f32 1e-09, %v1841_v21 }
 0x7af   : > { %v1877_v3 = vadd.f32 1e-09, %v1873_v14 }
 0x7b1   : > { %2703 = vrcp.f32 %v1877_v3 }
 0x7b4   : > { %v4237_v37 = vpop.xlane.xlu1 %1875 }
 0x7b5   : > { %v2068_v24 = vpop.permute.xlu2 %2067 }
 0x7b6   : > { %v2073_v54 = vsel %vm355_vm0, %v2068_v24, 0.0  ;;  %v2238_v24 = vld [vmem:[%s4447_s7 + $0x50] sm:$0xff] }
 0x7b7   : > { %2074 = vadd.xlane.f32.xlu0 %v2073_v54  ;;  %v2704_v31 = vpop.eup %2703  ;;  %v2237_v54 = vld [vmem:[%s4447_s7 + $0x48] sm:$0xff] }
 0x7b8   : > { %v1881_v17 = vmul.f32 %v2704_v31, %v4189_v33 }
 0x7bf   : > { %1895 = vadd.xlane.f32.xlu0 %v1894_v18  ;;  %v2236_v18 = vld [vmem:[%s4447_s7 + $0x40] sm:$0xff] }
 0x7c1   : > { %v2100_v2 = vpop.permute.xlu0 %2099 }
 0x7c2   : > { %v2105_v63 = vsel %vm355_vm0, %v2100_v2, 0.0  ;;  %v1878_v2 = vadd.f32 1e-09, %v4237_v37 }
 0x7c3   : > { %2106 = vadd.xlane.f32.xlu2 %v2105_v63  ;;  %v2235_v63 = vld [vmem:[%s4447_s7 + $0x38] sm:$0xff] }
 0x7c7   : > { %2089 = vadd.xlane.f32.xlu0 %v2088_v59 }
 0x7c9   : > { %v2102_v15 = vpop.permute.xlu0 %2101 }
 0x7ca   : > { %v2108_v60 = vsel %vm355_vm0, %v2102_v15, 0.0  ;;  %v2234_v15 = vld [vmem:[%s4447_s7 + $0x30] sm:$0xff] }
 0x7cb   : > { %2109 = vadd.xlane.f32.xlu2 %v2108_v60 }
 0x7cc   : > { %v2070_v48 = vpop.permute.xlu1 %2069 }
 0x7cd   : > { %v2076_v12 = vsel %vm355_vm0, %v2070_v48, 0.0 }
 0x7ce   : > { %2077 = vadd.xlane.f32.xlu1 %v2076_v12 }
 0x7db   : > { %2490 = vrot.lane.b32.xlu0 %v4494_v16, %s2842_s14  ;;  %v2233_v16 = vld [vmem:[%s4447_s7 + $0x28] sm:$0xff] }
 0x7e3   : > { %2495 = vrot.lane.b32.xlu2 %v4497_v53, %s2841_s28  ;;  %2500 = vrot.lane.b32.xlu0 %v2499_v62, %s2843_s29 }
 0x7e7   : > { %2485 = vrot.lane.b32.xlu1 %v4500_v7, %s2843_s29 }
 0x7ee   : > { %v1844_v27 = vpop.xlane.xlu2 %1843 }
 0x7ef   : > { %v1846_v62 = vadd.f32 1e-09, %v1844_v27 }
 0x7f4   : > { %v2087_v34 = vpop.xlane.xlu0 %2086 }
 0x7f5   : > { %v2091_v12 = vadd.f32 1e-09, %v2087_v34 }
 0x7f7   : > { %v2055_v13 = vpop.xlane.xlu1 %2054 }
 0x7f8   : > { %v1893_v20 = vpop.xlane.xlu2 %1892 }
 0x7f9   : > { %v1897_v30 = vadd.f32 1e-09, %v1893_v20 }
 0x7fb   : > { %2705 = vrcp.f32 %v1897_v30 }
 0x7fc   : > { %2707 = vrcp.f32 %v1845_v29  ;;  %v2229_v29 = vld [vmem:[%s4447_s7 + $0x8] sm:$0xff] }
 0x7ff   : > { %v1861_v50 = vpop.xlane.xlu1 %1860 }
 0x800   : > { %v1865_v61 = vadd.f32 1e-09, %v1861_v50  ;;  %v2058_v14 = vpop.xlane.xlu2 %2057  ;;  %v2228_v50 = vld [vmem:[%s4447_s7] sm:$0xff] }
 0x801   : > { %v2706_v4 = vpop.eup %2705 }
 0x802   : > { %2709 = vrcp.f32 %v1865_v61  ;;  %v1901_v36 = vmul.f32 %v2706_v4, %v4189_v33  ;;  %v2708_v11 = vpop.eup %2707  ;;  %v2060_v61 = vadd.f32 1e-09, %v2058_v14 }
 0x803   : > { %2711 = vrcp.f32 %v1846_v62  ;;  %v1849_v47 = vmul.f32 %v2708_v11, %v4185_v55 }
 0x804   : > { %v1905_v26 = vsel %vm355_vm0, %v1881_v17, %v1901_v36 }
 0x805   : > { %1946 = vmatmul.f32.vlgmr.msrb.gmra.mxu3 %v1905_v26 }
 0x807   : > { %v1864_v35 = vpop.xlane.xlu1 %1863 }
 0x808   : > { %v2710_v38 = vpop.eup %2709  ;;  %v1866_v32 = vadd.f32 1e-09, %v1864_v35 }
 0x809   : > { %v1869_v1 = vmul.f32 %v2710_v38, %v4185_v55  ;;  %v2712_v6 = vpop.eup %2711  ;;  %v2242_v55 = vld [vmem:[%s4447_s7 + $0x70] sm:$0xff] }
 0x80a   : > { %2713 = vrcp.f32 %v1866_v32  ;;  %v1850_v33 = vmul.f32 %v2712_v6, %v4197_v58  ;;  %2265 = vmatpush.msra.mxu2 %v2242_v55 }
 0x80b   : > { %v1903_v49 = vsel %vm355_vm0, %v1849_v47, %v1869_v1 }
 0x80c   : > { %1923 = vmatmul.f32.vlgmr.msrb.gmra.mxu2 %v1903_v49 }
 0x80d   : > { %2266 = vmatpush.msra.mxu2 %v2241_v43 }
 0x80f   : > { %2267 = vmatpush.msra.mxu2 %v2240_v45 }
 0x810   : > { %v2714_v0 = vpop.eup %2713 }
 0x811   : > { %v1870_v22 = vmul.f32 %v2714_v0, %v4197_v58  ;;  %v2059_v58 = vadd.f32 1e-09, %v2055_v13  ;;  %2268 = vmatpush.msra.mxu2 %v2239_v40  ;;  %v2230_v13 = vld [vmem:[%s4447_s7 + $0x10] sm:$0xff] }
 0x813   : > { %v1904_v23 = vsel %vm355_vm0, %v1850_v33, %v1870_v22  ;;  %2715 = vrcp.f32 %v2059_v58  ;;  %2269 = vmatpush.msra.mxu2 %v2238_v24 }
 0x814   : > { %1926 = vmatmul.f32.gmra.mxu2 %v1904_v23 }
 0x815   : > { %2270 = vmatpush.msra.mxu2 %v2237_v54 }
 0x817   : > { %2271 = vmatpush.msra.mxu2 %v2236_v18 }
 0x819   : > { %v2716_v59 = vpop.eup %2715  ;;  %2272 = vmatpush.msra.mxu2 %v2235_v63 }
 0x81a   : > { %v2063_v19 = vmul.f32 %v2716_v59, %v4211_v56 }
 0x81b   : > { %2273 = vmatpush.msra.mxu2 %v2234_v15 }
 0x81d   : > { %2274 = vmatpush.msra.mxu2 %v2233_v16 }
 0x81f   : > { %2275 = vmatpush.msra.mxu2 %v2232_v52 }
 0x82a   : > { %v2075_v42 = vpop.xlane.xlu0 %2074 }
 0x82b   : > { %v2079_v21 = vadd.f32 1e-09, %v2075_v42 }
 0x82d   : > { %2717 = vrcp.f32 %v2079_v21 }
 0x82e   : > { %2719 = vrcp.f32 %v1878_v2 }
 0x832   : > { %v1896_v60 = vpop.xlane.xlu0 %1895 }
 0x833   : > { %v2718_v48 = vpop.eup %2717  ;;  %v1898_v5 = vadd.f32 1e-09, %v1896_v60 }
 0x834   : > { %v2083_v37 = vmul.f32 %v2718_v48, %v4211_v56  ;;  %v2231_v56 = vld [vmem:[%s4447_s7 + $0x18] sm:$0xff]  ;;  %v2720_v51 = vpop.eup %2719 }
 0x835   : > { %2721 = vrcp.f32 %v1898_v5  ;;  %2276 = vmatpush.msra.mxu2 %v2231_v56  ;;  %v1882_v20 = vmul.f32 %v2720_v51, %v4187_v46 }
 0x836   : > { %v2107_v44 = vpop.xlane.xlu2 %2106  ;;  %v2117_v41 = vsel %vm355_vm0, %v2063_v19, %v2083_v37  ;;  %2723 = vrcp.f32 %v2091_v12 }
 0x837   : > { %v2111_v53 = vadd.f32 1e-09, %v2107_v44  ;;  %2137 = vmatmul.f32.vlgmr.msra.gmra.mxu0 %v2117_v41  ;;  %2277 = vmatpush.msra.mxu2 %v2230_v13  ;;  %v2258_v13 = vld [vmem:[%s4447_s7 + $0xf0] sm:$0xff] }
 0x839   : > { %2725 = vrcp.f32 %v2111_v53  ;;  %2278 = vmatpush.msra.mxu2 %v2229_v29  ;;  %v2254_v29 = vld [vmem:[%s4447_s7 + $0xd0] sm:$0xff] }
 0x83a   : > { %v2090_v7 = vpop.xlane.xlu0 %2089 }
 0x83b   : > { %v2722_v27 = vpop.eup %2721  ;;  %v2092_v3 = vadd.f32 1e-09, %v2090_v7  ;;  %2279 = vmatpush.msra.mxu2 %v2228_v50  ;;  %v2252_v50 = vld [vmem:[%s4447_s7 + $0xc0] sm:$0xff] }
 0x83c   : > { %v1902_v30 = vmul.f32 %v2722_v27, %v4187_v46  ;;  %v2724_v31 = vpop.eup %2723 }
 0x83d   : > { %2727 = vrcp.f32 %v2092_v3  ;;  %v2095_v46 = vmul.f32 %v2724_v31, %v4207_v25  ;;  %v2259_v3 = vld [vmem:[%s4447_s7 + $0xf8] sm:$0xff]  ;;  %v2253_v31 = vld [vmem:[%s4447_s7 + $0xc8] sm:$0xff] }
 0x83e   : > { %v2110_v4 = vpop.xlane.xlu2 %2109  ;;  %v1906_v17 = vsel %vm355_vm0, %v1882_v20, %v1902_v30  ;;  %2287 = vmatpush.msra.mxu3 %v2259_v3  ;;  %v2257_v20 = vld [vmem:[%s4447_s7 + $0xe8] sm:$0xff]  ;;  %v2255_v30 = vld [vmem:[%s4447_s7 + $0xd8] sm:$0xff] }
 0x83f   : > { %v2726_v36 = vpop.eup %2725  ;;  %v2112_v62 = vadd.f32 1e-09, %v2110_v4  ;;  %1949 = vmatmul.f32.gmra.mxu3 %v1906_v17  ;;  %v2250_v4 = vld [vmem:[%s4447_s7 + $0xb0] sm:$0xff]  ;;  %v2249_v17 = vld [vmem:[%s4447_s7 + $0xa8] sm:$0xff] }
 0x840   : > { %v2115_v26 = vmul.f32 %v2726_v36, %v4207_v25  ;;  %2288 = vmatpush.msra.mxu3 %v2258_v13  ;;  %v2248_v36 = vld [vmem:[%s4447_s7 + $0xa0] sm:$0xff] }
 0x841   : > { %2729 = vrcp.f32 %v2112_v62  ;;  %v2078_v11 = vpop.xlane.xlu1 %2077  ;;  %v2247_v62 = vld [vmem:[%s4447_s7 + $0x98] sm:$0xff] }
 0x842   : > { %2731 = vrcp.f32 %v2060_v61  ;;  %v2080_v35 = vadd.f32 1e-09, %v2078_v11  ;;  %v2119_v38 = vsel %vm355_vm0, %v2095_v46, %v2115_v26  ;;  %2289 = vmatpush.msra.mxu3 %v2257_v20  ;;  %v2251_v61 = vld [vmem:[%s4447_s7 + $0xb8] sm:$0xff]  ;;  %v2246_v46 = vld [vmem:[%s4447_s7 + $0x90] sm:$0xff]  ;;  %v2245_v26 = vld [vmem:[%s4447_s7 + $0x88] sm:$0xff] }
 0x843   : > { %2160 = vmatmul.f32.vlgmr.msra.gmra.mxu1 %v2119_v38  ;;  %v2728_v32 = vpop.eup %2727  ;;  %v2244_v11 = vld [vmem:[%s4447_s7 + $0x80] sm:$0xff] }
 0x844   : > { %2733 = vrcp.f32 %v2080_v35  ;;  %v2096_v49 = vmul.f32 %v2728_v32, %v4215_v8 }
 0x846   : > { %v2496_v34 = vpop.permute.xlu2 %2495 }
 0x847   : > { %v2730_v47 = vpop.eup %2729  ;;  %v2497_v45 = vunpack.i.l.bf16 %v2496_v34  ;;  %v2498_v2 = vunpack.i.h.bf16 %v2496_v34 }
 0x848   : > { %v2732_v1 = vpop.eup %2731  ;;  %v2116_v6 = vmul.f32 %v2730_v47, %v4215_v8  ;;  %v4501_v8 = vld [vmem:[#allocation10_spill] sm:$0xff] }
 0x849   : > { %v2064_v25 = vmul.f32 %v2732_v1, %v4219_v9 }
 0x84a   : > { %v2734_v0 = vpop.eup %2733  ;;  %v2120_v33 = vsel %vm355_vm0, %v2096_v49, %v2116_v6 }
 0x84b   : > { %2163 = vmatmul.f32.gmra.mxu1 %v2120_v33  ;;  %v2084_v22 = vmul.f32 %v2734_v0, %v4219_v9  ;;  %v4502_v9 = vld [vmem:[#allocation9_spill] sm:$0xff] }
 0x84d   : > { %v2118_v23 = vsel %vm355_vm0, %v2064_v25, %v2084_v22  ;;  %v2491_v28 = vpop.permute.xlu0 %2490 }
 0x84e   : > { %2140 = vmatmul.f32.gmra.mxu0 %v2118_v23  ;;  %v2492_v58 = vunpack.i.l.bf16 %v2491_v28  ;;  %v2493_v14 = vunpack.i.h.bf16 %v2491_v28 }
 0x855   : > { %v2501_v35 = vpop.permute.xlu0 %2500 }
 0x856   : > { %v2502_v38 = vunpack.i.l.bf16 %v2501_v35  ;;  %v2503_v0 = vunpack.i.h.bf16 %v2501_v35 }
 0x858   : > { %v2222_v1 = vsel %vm455_vm1, %v4164_v39, %v2502_v38  ;;  %v2223_v22 = vsel %vm455_vm1, %v4167_v57, %v2503_v0  ;;  %v2510_v39 = vld [vmem:[%s4448_s8] ss:$0 sm:$0xff] }
 0x859   : > { %v2486_v55 = vpop.permute.xlu1 %2485 }
 0x85a   : > { %v2487_v43 = vunpack.i.l.bf16 %v2486_v55  ;;  %v2488_v40 = vunpack.i.h.bf16 %v2486_v55 }
 0x85c   : > { %v2215_v42 = vsel %vm455_vm1, %v4501_v8, %v2487_v43  ;;  %v2216_v54 = vsel %vm455_vm1, %v4502_v9, %v2488_v40 }
 0x85d   : > { %v2217_v21 = vsel %vm355_vm0, %v2215_v42, %v2492_v58  ;;  %v2218_v18 = vsel %vm355_vm0, %v2216_v54, %v2493_v14 }
 0x85e   : > { %v2220_v24 = vsel %vm2219_vm2, %v2217_v21, %v2497_v45  ;;  %v2221_v63 = vsel %vm2219_vm2, %v2218_v18, %v2498_v2 }
 0x85f   : > { %2280 = vmatmul.f32.vlgmr.msra.gmra.mxu2 %v2220_v24 }
 0x867   : > { %2283 = vmatmul.f32.gmra.mxu2 %v2221_v63 }
 0x888   : > { %v1947_v15 = vpop.f32.mrf.mxu3 }
 0x88f   : > { %v1924_v59 = vpop.f32.mrf.mxu2 }
 0x890   : > { %v1925_v12 = vadd.f32 %v4161_v10, %v1924_v59 }
 0x892   : > { %v1948_v41 = vadd.f32 %v1947_v15, %v1925_v12 }
 0x897   : > { %v1927_v48 = vpop.f32.mrf.mxu2 }
 0x898   : > { %v1928_v37 = vadd.f32 %v4161_v10, %v1927_v48 }
 0x8b4   : > { %v2138_v60 = vpop.f32.mrf.mxu0 }
 0x8b5   : > { %v2139_v5 = vadd.f32 %v4161_v10, %v2138_v60 }
 0x8c0   : > { %v2161_v19 = vpop.f32.mrf.mxu1 }
 0x8c1   : > { %v2162_v16 = vadd.f32 %v2161_v19, %v2139_v5 }
 0x8c2   : > { %v1950_v44 = vpop.f32.mrf.mxu3 }
 0x8c3   : > { %v1951_v53 = vadd.f32 %v1950_v44, %v1928_v37  ;;  %2209 = vrot.lane.b32.xlu2 %v2162_v16, %s2841_s28 }
 0x8c5   : > { %v2504_v52 = vpack.i.bf16 %v1951_v53, %v1948_v41 }
 0x8c7   : > { %2505 = vrot.lane.b32.xlu1 %v2504_v52, %s2842_s14  ;;  %s2327_s14 = sshll.u32 %s2324_s16, 4  ;;  %s2328_s14 = int_to_ptr.hbm [resolvable:$true] %s2327_s14 }
 0x8c8   : > { %v2164_v7 = vpop.f32.mrf.mxu1  ;;  %s2791_s22 = sshra.s32 %s2328_s14, 4  ;;  %s2792_s22 = int_to_ptr.hbm [resolvable:$true] %s2791_s22 }
 0x8c9   : > { %s2793_s23 = scalar_lea.hbm %s2792_s22, 16  ;;  %p2798_p0 = scmp.lt.s32.totalorder %s2792_s22, %s4449_s9 }
 0x8ca   : > { %p2794_p11 = scmp.ne.s32.totalorder %s2792_s22, %s2793_s23  ;;  %p2799_p1 = scmp.lt.s32.totalorder %s2797_s25, %s2793_s23 }
 0x8cb   : > { %v2141_v56 = vpop.f32.mrf.mxu0 }
 0x8cc   : > { %v2142_v51 = vadd.f32 %v4161_v10, %v2141_v56  ;;  %v2256_v10 = vld [vmem:[%s4447_s7 + $0xe0] sm:$0xff]  ;;  %p2795_p12 = pnand %p2794_p11, %p2934_p5  ;;  %p2800_p2 = por %p2799_p1, %p2798_p0 }
 0x8cd   : > { %2290 = vmatpush.msra.mxu3 %v2256_v10 }
 0x8ce   : > { %v2165_v27 = vadd.f32 %v2164_v7, %v2142_v51  ;;  %p2796_p13 = pneg %p2795_p12 }
 0x8cf   : > { %2291 = vmatpush.msra.mxu3 %v2255_v30 }
 0x8d0   : > { %2211 = vrot.lane.b32.xlu0 %v2165_v27, %s2841_s28  ;;  %s323_s28 = sand.u32 1, %s2831_s10   ;;  %p2801_p3 = pnand %p2800_p2, %p2796_p13 }
 0x8d1   : > { %2292 = vmatpush.msra.mxu3 %v2254_v29  ;;  %s2394_s24 = sshll.u32 %s323_s28, 4  ;;  %s2313_s13 = scalar_lea.sflag [#allocation3], %s323_s28 }
 0x8d2   : > { %s325_s17 = scalar_lea.vmem [#allocation2], %s2394_s24 }
 0x8d3   : > { %2293 = vmatpush.msra.mxu3 %v2253_v31  ;;  %s2325_s21 = sshll.u32 %s325_s17, 4  ;;  %s2326_s21 = int_to_ptr.vmem [resolvable:$true] %s2325_s21 }
 0x8d5   : > { %2294 = vmatpush.msra.mxu3 %v2252_v50 }
 0x8d7   : > { %2295 = vmatpush.msra.mxu3 %v2251_v61 }
 0x8d9   : > { %2296 = vmatpush.msra.mxu3 %v2250_v4 }
 0x8db   : > { %2297 = vmatpush.msra.mxu3 %v2249_v17 }
 0x8dd   : > { %2298 = vmatpush.msra.mxu3 %v2248_v36 }
 0x8df   : > { %2299 = vmatpush.msra.mxu3 %v2247_v62 }
 0x8e1   : > { %2300 = vmatpush.msra.mxu3 %v2246_v46 }
 0x8e2   : > { %v2281_v55 = vpop.f32.mrf.mxu2 }
 0x8e3   : > { %2301 = vmatpush.msra.mxu3 %v2245_v26  ;;  %v2282_v43 = vadd.f32 %v2510_v39, %v2281_v55 }
 0x8e5   : > { %2302 = vmatpush.msra.mxu3 %v2244_v11 }
 0x8ea   : > { %v2284_v57 = vpop.f32.mrf.mxu2 }
 0x8eb   : > { %v2285_v40 = vadd.f32 %v2510_v39, %v2284_v57 }
 0x91d   : > { %v2210_v49 = vpop.permute.xlu2 %2209 }
 0x939   : > { %v2506_v32 = vpop.permute.xlu1 %2505 }
 0x93a   : > { %v2507_v47 = vunpack.i.l.bf16 %v2506_v32  ;;  %v2508_v25 = vunpack.i.h.bf16 %v2506_v32 }
 0x93c   : > { %v2224_v6 = vsel %vm355_vm0, %v2222_v1, %v2507_v47  ;;  %v2225_v28 = vsel %vm355_vm0, %v2223_v22, %v2508_v25 }
 0x93d   : > { %v2226_v33 = vsel %vm2219_vm2, %v2224_v6, %v2210_v49 }
 0x93e   : > { %2303 = vmatmul.f32.vlgmr.msra.gmra.mxu3 %v2226_v33 }
 0x942   : > { %v2212_v23 = vpop.permute.xlu0 %2211 }
 0x943   : > { %v2227_v34 = vsel %vm2219_vm2, %v2225_v28, %v2212_v23 }
 0x946   : > { %2306 = vmatmul.f32.gmra.mxu3 %v2227_v34 }
 0x9c1   : > { %v2304_v58 = vpop.f32.mrf.mxu3 }
 0x9c2   : > { %v2305_v45 = vadd.f32 %v2304_v58, %v2282_v43 }
 0x9c4   : > { %2310 = vst.msk [vmem:[%s325_s17] sm:$0xff] %vm355_vm0, %v2305_v45 }
 0x9c9   : > { %v2307_v8 = vpop.f32.mrf.mxu3 }
 0x9ca   : > { %v2308_v42 = vadd.f32 %v2307_v8, %v2285_v40 }
 0x9cc   : > { %2311 = vst.msk [vmem:[%s325_s17 + $0x8] sm:$0xff] %vm355_vm0, %v2308_v42 }
 0x9cd   : > { %2804 = shalt.err (!%p2801_p3)
}
 0x9ce   : > { %s2844_s28 = smov 128   ;;  %s2845_s16 = smov 8  }
 0x9cf   : > { %2440 = dma.vmem_to_hbm [thread:$0]  (%p2934_p5), %s2326_s21, 256, %s2328_s14, %s2313_s13, %s2844_s28, %s2844_s28, %s2845_s16  }
 0x9d0 PF: > { %p2446_p4 = scmp.ge.s32.totalorder %s2839_s12, 2  ;;  %s2342_s17 = sand.u32 1, %s2827_s30  }
 0x9d1   : > { %s2343_s29 = scalar_lea.sflag [#allocation3], %s2342_s17 }
 0x9d2   : > { %p2443_p7 = pnand %p2446_p4, %p2938_p6 }
 0x9d4   : > { %p2444_p8 = pneg %p2443_p7 }
 0x9d6   : > { %2822 = dma.done.wait (%p2444_p8), %s2343_s29, 256  }
 0x9d7   : > { %2824 = vsyncadd (%p2444_p8), %s2343_s29, 4294967040  ;;  %p19_p9 = scmp.ge.s32.totalorder %s2921_s15, 4   ;;  %s4503_s30 = smov %s2831_s10 }
 0x9d8   : > { %s4504_s10 = smov %s2835_s11  ;;  %s4505_s11 = smov %s2932_s18 }
 0x9d9   : > { %s4506_s12 = smov %s2921_s15  ;;  %21 = sbr.rel (!%p19_p9) target bundleno = 3 (0x3), region = 91 }
 0x9de   :  { %2349 = vsyncpa [#allocation3], 1 }
 0x9df   :  { %2351 = vsyncpa [#allocation3 + $0x1], 1 }

</bundles_post_ra>
